<compile_context>
chip_gen: v6e
topology: v6e:2x2x1
jax: 0.10.0
libtpu: 0.0.40
codegen_flags: <defaults>
</compile_context>

<pallas_src>
import jax
import jax.numpy as jnp
from jax.experimental import pallas as pl
from jax.experimental.pallas import tpu as pltpu


# ----------------------------- kernel helpers ------------------------------

def _bn_lrelu(y, gamma, beta):
    # y: (M, C) f32.  Training-mode BatchNorm (batch mean, biased var, eps=1e-5)
    # folded into one scale/shift FMA, stats in a single pass, then LeakyReLU(0.01).
    m = y.shape[0]
    inv_m = 1.0 / m
    s = jnp.sum(y, axis=0, keepdims=True)
    ss = jnp.sum(y * y, axis=0, keepdims=True)
    mean = s * inv_m
    var = ss * inv_m - mean * mean          # one-pass variance (f32 accumulation)
    scale = gamma * jax.lax.rsqrt(var + 1e-5)
    shift = beta - mean * scale
    z = y * scale + shift
    return jnp.where(z >= 0, z, 0.01 * z)


# ----------------------------- fused kernel --------------------------------

def _convnet_fused_kernel(xp_ref, w1_ref, w2_ref, bn_ref, wf_ref, bf_ref,
                          o_ref, act1_ref, pad2_ref, act2_ref):
    # xp:  (N, H+2, W+2, Cin) f32   zero-padded NHWC input
    # w1:  (9*Cin, 64) f32          conv1 taps (dy,dx major, cin minor)
    # w2:  (9*64, 64) bf16          conv2 taps
    # bn:  (4, 64) f32              [gamma1, beta1, gamma2, beta2]
    # wf:  (H4*W4*64, E) bf16       FC weight, rows in NHWC flatten order
    # bf:  (1, E) f32               FC bias
    # o:   (N, E) f32
    n, hp, wp, cin = xp_ref.shape
    h, w = hp - 2, wp - 2
    c = w1_ref.shape[1]
    h2, w2 = h // 2, w // 2
    h4, w4 = h2 // 2, w2 // 2
    e = o_ref.shape[1]

    # ---- block 1: conv 3x3 (Cin -> 64) as 9*Cin VPU broadcast FMAs (no MXU) ----
    y = jnp.zeros((n, h, w, c), jnp.float32)
    for t in range(9):
        dy, dx = t // 3, t % 3
        xs = xp_ref[:, dy:dy + h, dx:dx + w, :]            # (n, h, w, cin)
        wt = w1_ref[t * cin:(t + 1) * cin, :]              # (cin, c)
        for ci in range(cin):
            y = y + xs[:, :, :, ci:ci + 1] * wt[ci:ci + 1, :].reshape(1, 1, 1, c)

    # BN(train) + LeakyReLU (conv bias omitted: cancelled by the batch-mean subtraction)
    y = _bn_lrelu(y.reshape(n * h * w, c), bn_ref[0:1, :], bn_ref[1:2, :])
    act1_ref[...] = y.reshape(n, h, w, c)

    # ---- maxpool 2x2 / stride 2, then zero-pad into VMEM for conv2 ----
    p00 = act1_ref[:, pl.ds(0, h2, 2), pl.ds(0, w2, 2), :]
    p01 = act1_ref[:, pl.ds(0, h2, 2), pl.ds(1, w2, 2), :]
    p10 = act1_ref[:, pl.ds(1, h2, 2), pl.ds(0, w2, 2), :]
    p11 = act1_ref[:, pl.ds(1, h2, 2), pl.ds(1, w2, 2), :]
    pooled1 = jnp.maximum(jnp.maximum(p00, p01), jnp.maximum(p10, p11))  # (n,h2,w2,c)

    pad2_ref[...] = jnp.zeros_like(pad2_ref)
    pad2_ref[:, 1:1 + h2, 1:1 + w2, :] = pooled1

    # ---- block 2: conv 3x3 (64 -> 64) as 9 accumulated K=64 MXU matmuls ----
    m2 = n * h2 * w2
    acc = jnp.zeros((m2, c), jnp.float32)
    for t in range(9):
        dy, dx = t // 3, t % 3
        xs = pad2_ref[:, dy:dy + h2, dx:dx + w2, :].reshape(m2, c)
        acc = acc + jnp.dot(xs.astype(w2_ref.dtype),
                            w2_ref[t * c:(t + 1) * c, :],
                            preferred_element_type=jnp.float32)

    z = _bn_lrelu(acc, bn_ref[2:3, :], bn_ref[3:4, :])
    act2_ref[...] = z.reshape(n, h2, w2, c)

    # ---- maxpool 2x2 / stride 2 ----
    q00 = act2_ref[:, pl.ds(0, h4, 2), pl.ds(0, w4, 2), :]
    q01 = act2_ref[:, pl.ds(0, h4, 2), pl.ds(1, w4, 2), :]
    q10 = act2_ref[:, pl.ds(1, h4, 2), pl.ds(0, w4, 2), :]
    q11 = act2_ref[:, pl.ds(1, h4, 2), pl.ds(1, w4, 2), :]
    zp = jnp.maximum(jnp.maximum(q00, q01), jnp.maximum(q10, q11))       # (n,h4,w4,c)

    # ---- Flatten (NHWC order; wf rows pre-permuted) + Linear ----
    # Done as h4*w4 accumulated (n, c) x (c, e) dots so the pooled activation never
    # needs a lane-collapsing reshape and never leaves VMEM.
    out = jnp.zeros((n, e), jnp.float32) + bf_ref[...]
    for i in range(h4):
        for j in range(w4):
            pos = i * w4 + j
            zij = zp[:, i, j, :]                                          # (n, c)
            out = out + jnp.dot(zij.astype(wf_ref.dtype),
                                wf_ref[pos * c:(pos + 1) * c, :],
                                preferred_element_type=jnp.float32)
    o_ref[...] = out


# ----------------------------- pallas_call wrapper -------------------------

def _full_spec(shape):
    rank = len(shape)
    return pl.BlockSpec(shape, lambda i, _r=rank: (0,) * _r)


def convnet_forward(x_nchw, params):
    # x_nchw: (N, Cin, H, W) f32  ->  (N, emb_dim_size) f32
    n, cin, h, w = x_nchw.shape
    c = 64
    h2, w2 = h // 2, w // 2
    emb = params["bf"].shape[0]

    # glue: NCHW -> NHWC (channels on the lane dim) + 'same' border pad for conv1
    x_nhwc = jnp.transpose(x_nchw, (0, 2, 3, 1))
    xp = jnp.pad(x_nhwc, ((0, 0), (1, 1), (1, 1), (0, 0)))

    w1_2d = params["w1"].reshape(9 * cin, c)                       # f32 (VPU path)
    w2_2d = params["w2"].reshape(9 * c, c).astype(jnp.bfloat16)    # bf16 MXU operand
    wf_bf = params["wf_nhwc"].astype(jnp.bfloat16)                 # bf16 MXU operand
    bn = jnp.stack([params["g1"], params["be1"], params["g2"], params["be2"]], axis=0)
    bf = params["bf"][None, :]

    return pl.pallas_call(
        _convnet_fused_kernel,
        out_shape=jax.ShapeDtypeStruct((n, emb), jnp.float32),
        grid=(1,),
        in_specs=[
            _full_spec(xp.shape),
            _full_spec(w1_2d.shape),
            _full_spec(w2_2d.shape),
            _full_spec(bn.shape),
            _full_spec(wf_bf.shape),
            _full_spec(bf.shape),
        ],
        out_specs=_full_spec((n, emb)),
        scratch_shapes=[
            pltpu.VMEM((n, h, w, c), jnp.float32),            # act1 (pre-pool block 1)
            pltpu.VMEM((n, h2 + 2, w2 + 2, c), jnp.float32),  # padded pooled block-1
            pltpu.VMEM((n, h2, w2, c), jnp.float32),          # act2 (pre-pool block 2)
        ],
        compiler_params=pltpu.CompilerParams(
            dimension_semantics=("arbitrary",),
            vmem_limit_bytes=32 * 1024 * 1024,
        ),
    )(xp, w1_2d, w2_2d, bn, wf_bf, bf)


# ----------------------------- params --------------------------------------

def init_params(key, in_channels=1, emb_dim_size=32, spatial=16):
    # Conv weights kept as (KH, KW, Cin, Cout); Linear weight as (in, out).
    # Conv biases are omitted on purpose: training-mode BatchNorm cancels them exactly.
    k = jax.random.split(key, 4)
    c = 64
    h4 = w4 = spatial // 4
    flat = c * h4 * w4                       # = enc_conv_res.size(1)

    def u(kk, shape, fan_in):
        bound = 1.0 / jnp.sqrt(fan_in)
        return jax.random.uniform(kk, shape, jnp.float32, -bound, bound)

    w1 = u(k[0], (3, 3, in_channels, c), 9 * in_channels)
    w2 = u(k[1], (3, 3, c, c), 9 * c)
    wf_pt = u(k[2], (flat, emb_dim_size), flat)   # rows in PyTorch (C,H,W) flatten order
    bf = u(k[3], (emb_dim_size,), flat)

    # Pre-permute FC rows once from NCHW-flatten order to NHWC-flatten order so the
    # kernel never has to transpose the pooled activation back to NCHW.
    ii, jj, cc = jnp.meshgrid(jnp.arange(h4), jnp.arange(w4), jnp.arange(c), indexing="ij")
    perm = (cc * (h4 * w4) + ii * w4 + jj).reshape(-1)
    wf_nhwc = wf_pt[perm, :]

    return {
        "w1": w1, "g1": jnp.ones((c,), jnp.float32), "be1": jnp.zeros((c,), jnp.float32),
        "w2": w2, "g2": jnp.ones((c,), jnp.float32), "be2": jnp.zeros((c,), jnp.float32),
        "wf_nhwc": wf_nhwc, "bf": bf,
    }


# ----------------------------- main -----------------------------------------

if __name__ == "__main__":
    key = jax.random.PRNGKey(0)
    k_x, k_p = jax.random.split(key)

    N, CIN, H, W = 2, 1, 16, 16
    EMB = 32

    x = jax.random.normal(k_x, (N, CIN, H, W), jnp.float32)   # NCHW, like PyTorch
    params = init_params(k_p, in_channels=CIN, emb_dim_size=EMB, spatial=H)

    out = jax.jit(convnet_forward)(x, params)
    out = jax.block_until_ready(out)

    assert out.shape == (N, EMB), out.shape
    assert bool(jnp.all(jnp.isfinite(out)))
    print("KERNEL_OK")
</pallas_src>

<mosaic_0001>
module attributes {stable_mosaic.version = 11 : i64} {
  func.func @_convnet_fused_kernel(%arg0: i32, %arg1: memref<2x18x18x1xf32, #tpu.memory_space<vmem>>, %arg2: memref<9x64xf32, #tpu.memory_space<vmem>>, %arg3: memref<576x64xbf16, #tpu.memory_space<vmem>>, %arg4: memref<4x64xf32, #tpu.memory_space<vmem>>, %arg5: memref<1024x32xbf16, #tpu.memory_space<vmem>>, %arg6: memref<1x32xf32, #tpu.memory_space<vmem>>, %arg7: memref<2x32xf32, #tpu.memory_space<vmem>>, %arg8: memref<2x16x16x64xf32, #tpu.memory_space<vmem>>, %arg9: memref<2x10x10x64xf32, #tpu.memory_space<vmem>>, %arg10: memref<2x8x8x64xf32, #tpu.memory_space<vmem>>) attributes {dimension_semantics = [#tpu.dimension_semantics<arbitrary>], iteration_bounds = array<i64: 1>, scalar_prefetch = 0 : i64, scratch_operands = 3 : i64, tpu.core_type = #tpu.core_type<tc>, window_params = [{pipeline_mode = #tpu.pipeline_mode<synchronous>, transform_indices = @transform_0, window_bounds = array<i64: 2, 18, 18, 1>}, {pipeline_mode = #tpu.pipeline_mode<synchronous>, transform_indices = @transform_1, window_bounds = array<i64: 9, 64>}, {pipeline_mode = #tpu.pipeline_mode<synchronous>, transform_indices = @transform_2, window_bounds = array<i64: 576, 64>}, {pipeline_mode = #tpu.pipeline_mode<synchronous>, transform_indices = @transform_3, window_bounds = array<i64: 4, 64>}, {pipeline_mode = #tpu.pipeline_mode<synchronous>, transform_indices = @transform_4, window_bounds = array<i64: 1024, 32>}, {pipeline_mode = #tpu.pipeline_mode<synchronous>, transform_indices = @transform_5, window_bounds = array<i64: 1, 32>}, {pipeline_mode = #tpu.pipeline_mode<synchronous>, transform_indices = @transform_6, window_bounds = array<i64: 2, 32>}]} {
    %cst = arith.constant 0.000000e+00 : f32
    %0 = vector.broadcast %cst : f32 to vector<2x16x16x64xf32>
    %c0 = arith.constant 0 : index
    %c0_0 = arith.constant 0 : index
    %c0_1 = arith.constant 0 : index
    %c0_2 = arith.constant 0 : index
    %1 = vector.load %arg1[%c0, %c0_0, %c0_1, %c0_2] : memref<2x18x18x1xf32, #tpu.memory_space<vmem>>, vector<2x16x16x1xf32>
    %c0_3 = arith.constant 0 : index
    %c0_4 = arith.constant 0 : index
    %2 = vector.load %arg2[%c0_3, %c0_4] : memref<9x64xf32, #tpu.memory_space<vmem>>, vector<1x64xf32>
    %3 = vector.shape_cast %2 : vector<1x64xf32> to vector<1x1x1x64xf32>
    %4 = vector.broadcast %1 : vector<2x16x16x1xf32> to vector<2x16x16x64xf32>
    %5 = vector.broadcast %3 : vector<1x1x1x64xf32> to vector<2x16x16x64xf32>
    %6 = arith.mulf %4, %5 : vector<2x16x16x64xf32>
    %7 = arith.addf %0, %6 : vector<2x16x16x64xf32>
    %c0_5 = arith.constant 0 : index
    %c0_6 = arith.constant 0 : index
    %c1 = arith.constant 1 : index
    %c0_7 = arith.constant 0 : index
    %8 = vector.load %arg1[%c0_5, %c0_6, %c1, %c0_7] : memref<2x18x18x1xf32, #tpu.memory_space<vmem>>, vector<2x16x16x1xf32>
    %c1_8 = arith.constant 1 : index
    %c0_9 = arith.constant 0 : index
    %9 = vector.load %arg2[%c1_8, %c0_9] : memref<9x64xf32, #tpu.memory_space<vmem>>, vector<1x64xf32>
    %10 = vector.shape_cast %9 : vector<1x64xf32> to vector<1x1x1x64xf32>
    %11 = vector.broadcast %8 : vector<2x16x16x1xf32> to vector<2x16x16x64xf32>
    %12 = vector.broadcast %10 : vector<1x1x1x64xf32> to vector<2x16x16x64xf32>
    %13 = arith.mulf %11, %12 : vector<2x16x16x64xf32>
    %14 = arith.addf %7, %13 : vector<2x16x16x64xf32>
    %c0_10 = arith.constant 0 : index
    %c0_11 = arith.constant 0 : index
    %c2 = arith.constant 2 : index
    %c0_12 = arith.constant 0 : index
    %15 = vector.load %arg1[%c0_10, %c0_11, %c2, %c0_12] : memref<2x18x18x1xf32, #tpu.memory_space<vmem>>, vector<2x16x16x1xf32>
    %c2_13 = arith.constant 2 : index
    %c0_14 = arith.constant 0 : index
    %16 = vector.load %arg2[%c2_13, %c0_14] : memref<9x64xf32, #tpu.memory_space<vmem>>, vector<1x64xf32>
    %17 = vector.shape_cast %16 : vector<1x64xf32> to vector<1x1x1x64xf32>
    %18 = vector.broadcast %15 : vector<2x16x16x1xf32> to vector<2x16x16x64xf32>
    %19 = vector.broadcast %17 : vector<1x1x1x64xf32> to vector<2x16x16x64xf32>
    %20 = arith.mulf %18, %19 : vector<2x16x16x64xf32>
    %21 = arith.addf %14, %20 : vector<2x16x16x64xf32>
    %c0_15 = arith.constant 0 : index
    %c1_16 = arith.constant 1 : index
    %c0_17 = arith.constant 0 : index
    %c0_18 = arith.constant 0 : index
    %22 = vector.load %arg1[%c0_15, %c1_16, %c0_17, %c0_18] : memref<2x18x18x1xf32, #tpu.memory_space<vmem>>, vector<2x16x16x1xf32>
    %c3 = arith.constant 3 : index
    %c0_19 = arith.constant 0 : index
    %23 = vector.load %arg2[%c3, %c0_19] : memref<9x64xf32, #tpu.memory_space<vmem>>, vector<1x64xf32>
    %24 = vector.shape_cast %23 : vector<1x64xf32> to vector<1x1x1x64xf32>
    %25 = vector.broadcast %22 : vector<2x16x16x1xf32> to vector<2x16x16x64xf32>
    %26 = vector.broadcast %24 : vector<1x1x1x64xf32> to vector<2x16x16x64xf32>
    %27 = arith.mulf %25, %26 : vector<2x16x16x64xf32>
    %28 = arith.addf %21, %27 : vector<2x16x16x64xf32>
    %c0_20 = arith.constant 0 : index
    %c1_21 = arith.constant 1 : index
    %c1_22 = arith.constant 1 : index
    %c0_23 = arith.constant 0 : index
    %29 = vector.load %arg1[%c0_20, %c1_21, %c1_22, %c0_23] : memref<2x18x18x1xf32, #tpu.memory_space<vmem>>, vector<2x16x16x1xf32>
    %c4 = arith.constant 4 : index
    %c0_24 = arith.constant 0 : index
    %30 = vector.load %arg2[%c4, %c0_24] : memref<9x64xf32, #tpu.memory_space<vmem>>, vector<1x64xf32>
    %31 = vector.shape_cast %30 : vector<1x64xf32> to vector<1x1x1x64xf32>
    %32 = vector.broadcast %29 : vector<2x16x16x1xf32> to vector<2x16x16x64xf32>
    %33 = vector.broadcast %31 : vector<1x1x1x64xf32> to vector<2x16x16x64xf32>
    %34 = arith.mulf %32, %33 : vector<2x16x16x64xf32>
    %35 = arith.addf %28, %34 : vector<2x16x16x64xf32>
    %c0_25 = arith.constant 0 : index
    %c1_26 = arith.constant 1 : index
    %c2_27 = arith.constant 2 : index
    %c0_28 = arith.constant 0 : index
    %36 = vector.load %arg1[%c0_25, %c1_26, %c2_27, %c0_28] : memref<2x18x18x1xf32, #tpu.memory_space<vmem>>, vector<2x16x16x1xf32>
    %c5 = arith.constant 5 : index
    %c0_29 = arith.constant 0 : index
    %37 = vector.load %arg2[%c5, %c0_29] : memref<9x64xf32, #tpu.memory_space<vmem>>, vector<1x64xf32>
    %38 = vector.shape_cast %37 : vector<1x64xf32> to vector<1x1x1x64xf32>
    %39 = vector.broadcast %36 : vector<2x16x16x1xf32> to vector<2x16x16x64xf32>
    %40 = vector.broadcast %38 : vector<1x1x1x64xf32> to vector<2x16x16x64xf32>
    %41 = arith.mulf %39, %40 : vector<2x16x16x64xf32>
    %42 = arith.addf %35, %41 : vector<2x16x16x64xf32>
    %c0_30 = arith.constant 0 : index
    %c2_31 = arith.constant 2 : index
    %c0_32 = arith.constant 0 : index
    %c0_33 = arith.constant 0 : index
    %43 = vector.load %arg1[%c0_30, %c2_31, %c0_32, %c0_33] : memref<2x18x18x1xf32, #tpu.memory_space<vmem>>, vector<2x16x16x1xf32>
    %c6 = arith.constant 6 : index
    %c0_34 = arith.constant 0 : index
    %44 = vector.load %arg2[%c6, %c0_34] : memref<9x64xf32, #tpu.memory_space<vmem>>, vector<1x64xf32>
    %45 = vector.shape_cast %44 : vector<1x64xf32> to vector<1x1x1x64xf32>
    %46 = vector.broadcast %43 : vector<2x16x16x1xf32> to vector<2x16x16x64xf32>
    %47 = vector.broadcast %45 : vector<1x1x1x64xf32> to vector<2x16x16x64xf32>
    %48 = arith.mulf %46, %47 : vector<2x16x16x64xf32>
    %49 = arith.addf %42, %48 : vector<2x16x16x64xf32>
    %c0_35 = arith.constant 0 : index
    %c2_36 = arith.constant 2 : index
    %c1_37 = arith.constant 1 : index
    %c0_38 = arith.constant 0 : index
    %50 = vector.load %arg1[%c0_35, %c2_36, %c1_37, %c0_38] : memref<2x18x18x1xf32, #tpu.memory_space<vmem>>, vector<2x16x16x1xf32>
    %c7 = arith.constant 7 : index
    %c0_39 = arith.constant 0 : index
    %51 = vector.load %arg2[%c7, %c0_39] : memref<9x64xf32, #tpu.memory_space<vmem>>, vector<1x64xf32>
    %52 = vector.shape_cast %51 : vector<1x64xf32> to vector<1x1x1x64xf32>
    %53 = vector.broadcast %50 : vector<2x16x16x1xf32> to vector<2x16x16x64xf32>
    %54 = vector.broadcast %52 : vector<1x1x1x64xf32> to vector<2x16x16x64xf32>
    %55 = arith.mulf %53, %54 : vector<2x16x16x64xf32>
    %56 = arith.addf %49, %55 : vector<2x16x16x64xf32>
    %c0_40 = arith.constant 0 : index
    %c2_41 = arith.constant 2 : index
    %c2_42 = arith.constant 2 : index
    %c0_43 = arith.constant 0 : index
    %57 = vector.load %arg1[%c0_40, %c2_41, %c2_42, %c0_43] : memref<2x18x18x1xf32, #tpu.memory_space<vmem>>, vector<2x16x16x1xf32>
    %c8 = arith.constant 8 : index
    %c0_44 = arith.constant 0 : index
    %58 = vector.load %arg2[%c8, %c0_44] : memref<9x64xf32, #tpu.memory_space<vmem>>, vector<1x64xf32>
    %59 = vector.shape_cast %58 : vector<1x64xf32> to vector<1x1x1x64xf32>
    %60 = vector.broadcast %57 : vector<2x16x16x1xf32> to vector<2x16x16x64xf32>
    %61 = vector.broadcast %59 : vector<1x1x1x64xf32> to vector<2x16x16x64xf32>
    %62 = arith.mulf %60, %61 : vector<2x16x16x64xf32>
    %63 = arith.addf %56, %62 : vector<2x16x16x64xf32>
    %64 = vector.shape_cast %63 : vector<2x16x16x64xf32> to vector<512x64xf32>
    %c0_45 = arith.constant 0 : index
    %c0_46 = arith.constant 0 : index
    %65 = vector.load %arg4[%c0_45, %c0_46] : memref<4x64xf32, #tpu.memory_space<vmem>>, vector<1x64xf32>
    %c1_47 = arith.constant 1 : index
    %c0_48 = arith.constant 0 : index
    %66 = vector.load %arg4[%c1_47, %c0_48] : memref<4x64xf32, #tpu.memory_space<vmem>>, vector<1x64xf32>
    %cst_49 = arith.constant dense<0.000000e+00> : vector<64xf32>
    %67 = vector.multi_reduction <add>, %64, %cst_49 [0] : vector<512x64xf32> to vector<64xf32>
    %68 = vector.shape_cast %67 : vector<64xf32> to vector<1x64xf32>
    %69 = arith.mulf %64, %64 : vector<512x64xf32>
    %cst_50 = arith.constant dense<0.000000e+00> : vector<64xf32>
    %70 = vector.multi_reduction <add>, %69, %cst_50 [0] : vector<512x64xf32> to vector<64xf32>
    %71 = vector.shape_cast %70 : vector<64xf32> to vector<1x64xf32>
    %cst_51 = arith.constant 0.001953125 : f32
    %72 = vector.broadcast %cst_51 : f32 to vector<1x64xf32>
    %73 = arith.mulf %68, %72 : vector<1x64xf32>
    %cst_52 = arith.constant 0.001953125 : f32
    %74 = vector.broadcast %cst_52 : f32 to vector<1x64xf32>
    %75 = arith.mulf %71, %74 : vector<1x64xf32>
    %76 = arith.mulf %73, %73 : vector<1x64xf32>
    %77 = arith.subf %75, %76 : vector<1x64xf32>
    %cst_53 = arith.constant 9.99999974E-6 : f32
    %78 = vector.broadcast %cst_53 : f32 to vector<1x64xf32>
    %79 = arith.addf %77, %78 : vector<1x64xf32>
    %80 = math.rsqrt %79 : vector<1x64xf32>
    %81 = arith.mulf %65, %80 : vector<1x64xf32>
    %82 = arith.mulf %73, %81 : vector<1x64xf32>
    %83 = arith.subf %66, %82 : vector<1x64xf32>
    %84 = vector.broadcast %81 : vector<1x64xf32> to vector<512x64xf32>
    %85 = arith.mulf %64, %84 : vector<512x64xf32>
    %86 = vector.broadcast %83 : vector<1x64xf32> to vector<512x64xf32>
    %87 = arith.addf %85, %86 : vector<512x64xf32>
    %cst_54 = arith.constant 0.000000e+00 : f32
    %88 = vector.broadcast %cst_54 : f32 to vector<512x64xf32>
    %89 = arith.cmpf oge, %87, %88 : vector<512x64xf32>
    %cst_55 = arith.constant 0.00999999977 : f32
    %90 = vector.broadcast %cst_55 : f32 to vector<512x64xf32>
    %91 = arith.mulf %90, %87 : vector<512x64xf32>
    %92 = arith.select %89, %87, %91 : vector<512x64xi1>, vector<512x64xf32>
    %93 = vector.shape_cast %92 : vector<512x64xf32> to vector<2x16x16x64xf32>
    %c0_56 = arith.constant 0 : index
    %c0_57 = arith.constant 0 : index
    %c0_58 = arith.constant 0 : index
    %c0_59 = arith.constant 0 : index
    %94 = vector.load %arg8[%c0_56, %c0_57, %c0_58, %c0_59] : memref<2x16x16x64xf32, #tpu.memory_space<vmem>>, vector<2x16x16x64xf32>
    tpu.vector_store %arg8[%c0_56, %c0_57, %c0_58, %c0_59], %93 {strides = array<i32>} : memref<2x16x16x64xf32, #tpu.memory_space<vmem>>, vector<2x16x16x64xf32>,
    %c0_60 = arith.constant 0 : index
    %c0_61 = arith.constant 0 : index
    %c0_62 = arith.constant 0 : index
    %c0_63 = arith.constant 0 : index
    %95 = tpu.strided_load %arg8[%c0_60, %c0_61, %c0_62, %c0_63] {strides = array<i32: 1, 2, 2, 1>} : memref<2x16x16x64xf32, #tpu.memory_space<vmem>>, vector<2x8x8x64xf32>
    %c0_64 = arith.constant 0 : index
    %c0_65 = arith.constant 0 : index
    %c1_66 = arith.constant 1 : index
    %c0_67 = arith.constant 0 : index
    %96 = tpu.strided_load %arg8[%c0_64, %c0_65, %c1_66, %c0_67] {strides = array<i32: 1, 2, 2, 1>} : memref<2x16x16x64xf32, #tpu.memory_space<vmem>>, vector<2x8x8x64xf32>
    %c0_68 = arith.constant 0 : index
    %c1_69 = arith.constant 1 : index
    %c0_70 = arith.constant 0 : index
    %c0_71 = arith.constant 0 : index
    %97 = tpu.strided_load %arg8[%c0_68, %c1_69, %c0_70, %c0_71] {strides = array<i32: 1, 2, 2, 1>} : memref<2x16x16x64xf32, #tpu.memory_space<vmem>>, vector<2x8x8x64xf32>
    %c0_72 = arith.constant 0 : index
    %c1_73 = arith.constant 1 : index
    %c1_74 = arith.constant 1 : index
    %c0_75 = arith.constant 0 : index
    %98 = tpu.strided_load %arg8[%c0_72, %c1_73, %c1_74, %c0_75] {strides = array<i32: 1, 2, 2, 1>} : memref<2x16x16x64xf32, #tpu.memory_space<vmem>>, vector<2x8x8x64xf32>
    %99 = arith.maximumf %95, %96 : vector<2x8x8x64xf32>
    %100 = arith.maximumf %97, %98 : vector<2x8x8x64xf32>
    %101 = arith.maximumf %99, %100 : vector<2x8x8x64xf32>
    %cst_76 = arith.constant 0.000000e+00 : f32
    %102 = vector.broadcast %cst_76 : f32 to vector<2x10x10x64xf32>
    %c0_77 = arith.constant 0 : index
    %c0_78 = arith.constant 0 : index
    %c0_79 = arith.constant 0 : index
    %c0_80 = arith.constant 0 : index
    %103 = vector.load %arg9[%c0_77, %c0_78, %c0_79, %c0_80] : memref<2x10x10x64xf32, #tpu.memory_space<vmem>>, vector<2x10x10x64xf32>
    tpu.vector_store %arg9[%c0_77, %c0_78, %c0_79, %c0_80], %102 {strides = array<i32>} : memref<2x10x10x64xf32, #tpu.memory_space<vmem>>, vector<2x10x10x64xf32>,
    %c0_81 = arith.constant 0 : index
    %c1_82 = arith.constant 1 : index
    %c1_83 = arith.constant 1 : index
    %c0_84 = arith.constant 0 : index
    %104 = vector.load %arg9[%c0_81, %c1_82, %c1_83, %c0_84] : memref<2x10x10x64xf32, #tpu.memory_space<vmem>>, vector<2x8x8x64xf32>
    tpu.vector_store %arg9[%c0_81, %c1_82, %c1_83, %c0_84], %101 {strides = array<i32>} : memref<2x10x10x64xf32, #tpu.memory_space<vmem>>, vector<2x8x8x64xf32>,
    %cst_85 = arith.constant 0.000000e+00 : f32
    %105 = vector.broadcast %cst_85 : f32 to vector<128x64xf32>
    %c0_86 = arith.constant 0 : index
    %c0_87 = arith.constant 0 : index
    %c0_88 = arith.constant 0 : index
    %c0_89 = arith.constant 0 : index
    %106 = vector.load %arg9[%c0_86, %c0_87, %c0_88, %c0_89] : memref<2x10x10x64xf32, #tpu.memory_space<vmem>>, vector<2x8x8x64xf32>
    %107 = vector.shape_cast %106 : vector<2x8x8x64xf32> to vector<128x64xf32>
    %108 = arith.truncf %107 : vector<128x64xf32> to vector<128x64xbf16>
    %c0_90 = arith.constant 0 : index
    %c0_91 = arith.constant 0 : index
    %109 = vector.load %arg3[%c0_90, %c0_91] : memref<576x64xbf16, #tpu.memory_space<vmem>>, vector<64x64xbf16>
    %cst_92 = arith.constant dense<0.000000e+00> : vector<128x64xf32>
    %110 = tpu.matmul %108, %109, %cst_92 {dimension_numbers = #tpu.dot_dimension_numbers<[1], [0], [0], [1], [0, 0, 1, 1], [], []>} : vector<128x64xbf16>, vector<64x64xbf16>, vector<128x64xf32> -> vector<128x64xf32>
    %111 = arith.addf %105, %110 : vector<128x64xf32>
    %c0_93 = arith.constant 0 : index
    %c0_94 = arith.constant 0 : index
    %c1_95 = arith.constant 1 : index
    %c0_96 = arith.constant 0 : index
    %112 = vector.load %arg9[%c0_93, %c0_94, %c1_95, %c0_96] : memref<2x10x10x64xf32, #tpu.memory_space<vmem>>, vector<2x8x8x64xf32>
    %113 = vector.shape_cast %112 : vector<2x8x8x64xf32> to vector<128x64xf32>
    %114 = arith.truncf %113 : vector<128x64xf32> to vector<128x64xbf16>
    %c64 = arith.constant 64 : index
    %c0_97 = arith.constant 0 : index
    %115 = vector.load %arg3[%c64, %c0_97] : memref<576x64xbf16, #tpu.memory_space<vmem>>, vector<64x64xbf16>
    %cst_98 = arith.constant dense<0.000000e+00> : vector<128x64xf32>
    %116 = tpu.matmul %114, %115, %cst_98 {dimension_numbers = #tpu.dot_dimension_numbers<[1], [0], [0], [1], [0, 0, 1, 1], [], []>} : vector<128x64xbf16>, vector<64x64xbf16>, vector<128x64xf32> -> vector<128x64xf32>
    %117 = arith.addf %111, %116 : vector<128x64xf32>
    %c0_99 = arith.constant 0 : index
    %c0_100 = arith.constant 0 : index
    %c2_101 = arith.constant 2 : index
    %c0_102 = arith.constant 0 : index
    %118 = vector.load %arg9[%c0_99, %c0_100, %c2_101, %c0_102] : memref<2x10x10x64xf32, #tpu.memory_space<vmem>>, vector<2x8x8x64xf32>
    %119 = vector.shape_cast %118 : vector<2x8x8x64xf32> to vector<128x64xf32>
    %120 = arith.truncf %119 : vector<128x64xf32> to vector<128x64xbf16>
    %c128 = arith.constant 128 : index
    %c0_103 = arith.constant 0 : index
    %121 = vector.load %arg3[%c128, %c0_103] : memref<576x64xbf16, #tpu.memory_space<vmem>>, vector<64x64xbf16>
    %cst_104 = arith.constant dense<0.000000e+00> : vector<128x64xf32>
    %122 = tpu.matmul %120, %121, %cst_104 {dimension_numbers = #tpu.dot_dimension_numbers<[1], [0], [0], [1], [0, 0, 1, 1], [], []>} : vector<128x64xbf16>, vector<64x64xbf16>, vector<128x64xf32> -> vector<128x64xf32>
    %123 = arith.addf %117, %122 : vector<128x64xf32>
    %c0_105 = arith.constant 0 : index
    %c1_106 = arith.constant 1 : index
    %c0_107 = arith.constant 0 : index
    %c0_108 = arith.constant 0 : index
    %124 = vector.load %arg9[%c0_105, %c1_106, %c0_107, %c0_108] : memref<2x10x10x64xf32, #tpu.memory_space<vmem>>, vector<2x8x8x64xf32>
    %125 = vector.shape_cast %124 : vector<2x8x8x64xf32> to vector<128x64xf32>
    %126 = arith.truncf %125 : vector<128x64xf32> to vector<128x64xbf16>
    %c192 = arith.constant 192 : index
    %c0_109 = arith.constant 0 : index
    %127 = vector.load %arg3[%c192, %c0_109] : memref<576x64xbf16, #tpu.memory_space<vmem>>, vector<64x64xbf16>
    %cst_110 = arith.constant dense<0.000000e+00> : vector<128x64xf32>
    %128 = tpu.matmul %126, %127, %cst_110 {dimension_numbers = #tpu.dot_dimension_numbers<[1], [0], [0], [1], [0, 0, 1, 1], [], []>} : vector<128x64xbf16>, vector<64x64xbf16>, vector<128x64xf32> -> vector<128x64xf32>
    %129 = arith.addf %123, %128 : vector<128x64xf32>
    %c0_111 = arith.constant 0 : index
    %c1_112 = arith.constant 1 : index
    %c1_113 = arith.constant 1 : index
    %c0_114 = arith.constant 0 : index
    %130 = vector.load %arg9[%c0_111, %c1_112, %c1_113, %c0_114] : memref<2x10x10x64xf32, #tpu.memory_space<vmem>>, vector<2x8x8x64xf32>
    %131 = vector.shape_cast %130 : vector<2x8x8x64xf32> to vector<128x64xf32>
    %132 = arith.truncf %131 : vector<128x64xf32> to vector<128x64xbf16>
    %c256 = arith.constant 256 : index
    %c0_115 = arith.constant 0 : index
    %133 = vector.load %arg3[%c256, %c0_115] : memref<576x64xbf16, #tpu.memory_space<vmem>>, vector<64x64xbf16>
    %cst_116 = arith.constant dense<0.000000e+00> : vector<128x64xf32>
    %134 = tpu.matmul %132, %133, %cst_116 {dimension_numbers = #tpu.dot_dimension_numbers<[1], [0], [0], [1], [0, 0, 1, 1], [], []>} : vector<128x64xbf16>, vector<64x64xbf16>, vector<128x64xf32> -> vector<128x64xf32>
    %135 = arith.addf %129, %134 : vector<128x64xf32>
    %c0_117 = arith.constant 0 : index
    %c1_118 = arith.constant 1 : index
    %c2_119 = arith.constant 2 : index
    %c0_120 = arith.constant 0 : index
    %136 = vector.load %arg9[%c0_117, %c1_118, %c2_119, %c0_120] : memref<2x10x10x64xf32, #tpu.memory_space<vmem>>, vector<2x8x8x64xf32>
    %137 = vector.shape_cast %136 : vector<2x8x8x64xf32> to vector<128x64xf32>
    %138 = arith.truncf %137 : vector<128x64xf32> to vector<128x64xbf16>
    %c320 = arith.constant 320 : index
    %c0_121 = arith.constant 0 : index
    %139 = vector.load %arg3[%c320, %c0_121] : memref<576x64xbf16, #tpu.memory_space<vmem>>, vector<64x64xbf16>
    %cst_122 = arith.constant dense<0.000000e+00> : vector<128x64xf32>
    %140 = tpu.matmul %138, %139, %cst_122 {dimension_numbers = #tpu.dot_dimension_numbers<[1], [0], [0], [1], [0, 0, 1, 1], [], []>} : vector<128x64xbf16>, vector<64x64xbf16>, vector<128x64xf32> -> vector<128x64xf32>
    %141 = arith.addf %135, %140 : vector<128x64xf32>
    %c0_123 = arith.constant 0 : index
    %c2_124 = arith.constant 2 : index
    %c0_125 = arith.constant 0 : index
    %c0_126 = arith.constant 0 : index
    %142 = vector.load %arg9[%c0_123, %c2_124, %c0_125, %c0_126] : memref<2x10x10x64xf32, #tpu.memory_space<vmem>>, vector<2x8x8x64xf32>
    %143 = vector.shape_cast %142 : vector<2x8x8x64xf32> to vector<128x64xf32>
    %144 = arith.truncf %143 : vector<128x64xf32> to vector<128x64xbf16>
    %c384 = arith.constant 384 : index
    %c0_127 = arith.constant 0 : index
    %145 = vector.load %arg3[%c384, %c0_127] : memref<576x64xbf16, #tpu.memory_space<vmem>>, vector<64x64xbf16>
    %cst_128 = arith.constant dense<0.000000e+00> : vector<128x64xf32>
    %146 = tpu.matmul %144, %145, %cst_128 {dimension_numbers = #tpu.dot_dimension_numbers<[1], [0], [0], [1], [0, 0, 1, 1], [], []>} : vector<128x64xbf16>, vector<64x64xbf16>, vector<128x64xf32> -> vector<128x64xf32>
    %147 = arith.addf %141, %146 : vector<128x64xf32>
    %c0_129 = arith.constant 0 : index
    %c2_130 = arith.constant 2 : index
    %c1_131 = arith.constant 1 : index
    %c0_132 = arith.constant 0 : index
    %148 = vector.load %arg9[%c0_129, %c2_130, %c1_131, %c0_132] : memref<2x10x10x64xf32, #tpu.memory_space<vmem>>, vector<2x8x8x64xf32>
    %149 = vector.shape_cast %148 : vector<2x8x8x64xf32> to vector<128x64xf32>
    %150 = arith.truncf %149 : vector<128x64xf32> to vector<128x64xbf16>
    %c448 = arith.constant 448 : index
    %c0_133 = arith.constant 0 : index
    %151 = vector.load %arg3[%c448, %c0_133] : memref<576x64xbf16, #tpu.memory_space<vmem>>, vector<64x64xbf16>
    %cst_134 = arith.constant dense<0.000000e+00> : vector<128x64xf32>
    %152 = tpu.matmul %150, %151, %cst_134 {dimension_numbers = #tpu.dot_dimension_numbers<[1], [0], [0], [1], [0, 0, 1, 1], [], []>} : vector<128x64xbf16>, vector<64x64xbf16>, vector<128x64xf32> -> vector<128x64xf32>
    %153 = arith.addf %147, %152 : vector<128x64xf32>
    %c0_135 = arith.constant 0 : index
    %c2_136 = arith.constant 2 : index
    %c2_137 = arith.constant 2 : index
    %c0_138 = arith.constant 0 : index
    %154 = vector.load %arg9[%c0_135, %c2_136, %c2_137, %c0_138] : memref<2x10x10x64xf32, #tpu.memory_space<vmem>>, vector<2x8x8x64xf32>
    %155 = vector.shape_cast %154 : vector<2x8x8x64xf32> to vector<128x64xf32>
    %156 = arith.truncf %155 : vector<128x64xf32> to vector<128x64xbf16>
    %c512 = arith.constant 512 : index
    %c0_139 = arith.constant 0 : index
    %157 = vector.load %arg3[%c512, %c0_139] : memref<576x64xbf16, #tpu.memory_space<vmem>>, vector<64x64xbf16>
    %cst_140 = arith.constant dense<0.000000e+00> : vector<128x64xf32>
    %158 = tpu.matmul %156, %157, %cst_140 {dimension_numbers = #tpu.dot_dimension_numbers<[1], [0], [0], [1], [0, 0, 1, 1], [], []>} : vector<128x64xbf16>, vector<64x64xbf16>, vector<128x64xf32> -> vector<128x64xf32>
    %159 = arith.addf %153, %158 : vector<128x64xf32>
    %c2_141 = arith.constant 2 : index
    %c0_142 = arith.constant 0 : index
    %160 = vector.load %arg4[%c2_141, %c0_142] : memref<4x64xf32, #tpu.memory_space<vmem>>, vector<1x64xf32>
    %c3_143 = arith.constant 3 : index
    %c0_144 = arith.constant 0 : index
    %161 = vector.load %arg4[%c3_143, %c0_144] : memref<4x64xf32, #tpu.memory_space<vmem>>, vector<1x64xf32>
    %cst_145 = arith.constant dense<0.000000e+00> : vector<64xf32>
    %162 = vector.multi_reduction <add>, %159, %cst_145 [0] : vector<128x64xf32> to vector<64xf32>
    %163 = vector.shape_cast %162 : vector<64xf32> to vector<1x64xf32>
    %164 = arith.mulf %159, %159 : vector<128x64xf32>
    %cst_146 = arith.constant dense<0.000000e+00> : vector<64xf32>
    %165 = vector.multi_reduction <add>, %164, %cst_146 [0] : vector<128x64xf32> to vector<64xf32>
    %166 = vector.shape_cast %165 : vector<64xf32> to vector<1x64xf32>
    %cst_147 = arith.constant 7.812500e-03 : f32
    %167 = vector.broadcast %cst_147 : f32 to vector<1x64xf32>
    %168 = arith.mulf %163, %167 : vector<1x64xf32>
    %cst_148 = arith.constant 7.812500e-03 : f32
    %169 = vector.broadcast %cst_148 : f32 to vector<1x64xf32>
    %170 = arith.mulf %166, %169 : vector<1x64xf32>
    %171 = arith.mulf %168, %168 : vector<1x64xf32>
    %172 = arith.subf %170, %171 : vector<1x64xf32>
    %cst_149 = arith.constant 9.99999974E-6 : f32
    %173 = vector.broadcast %cst_149 : f32 to vector<1x64xf32>
    %174 = arith.addf %172, %173 : vector<1x64xf32>
    %175 = math.rsqrt %174 : vector<1x64xf32>
    %176 = arith.mulf %160, %175 : vector<1x64xf32>
    %177 = arith.mulf %168, %176 : vector<1x64xf32>
    %178 = arith.subf %161, %177 : vector<1x64xf32>
    %179 = vector.broadcast %176 : vector<1x64xf32> to vector<128x64xf32>
    %180 = arith.mulf %159, %179 : vector<128x64xf32>
    %181 = vector.broadcast %178 : vector<1x64xf32> to vector<128x64xf32>
    %182 = arith.addf %180, %181 : vector<128x64xf32>
    %cst_150 = arith.constant 0.000000e+00 : f32
    %183 = vector.broadcast %cst_150 : f32 to vector<128x64xf32>
    %184 = arith.cmpf oge, %182, %183 : vector<128x64xf32>
    %cst_151 = arith.constant 0.00999999977 : f32
    %185 = vector.broadcast %cst_151 : f32 to vector<128x64xf32>
    %186 = arith.mulf %185, %182 : vector<128x64xf32>
    %187 = arith.select %184, %182, %186 : vector<128x64xi1>, vector<128x64xf32>
    %188 = vector.shape_cast %187 : vector<128x64xf32> to vector<2x8x8x64xf32>
    %c0_152 = arith.constant 0 : index
    %c0_153 = arith.constant 0 : index
    %c0_154 = arith.constant 0 : index
    %c0_155 = arith.constant 0 : index
    %189 = vector.load %arg10[%c0_152, %c0_153, %c0_154, %c0_155] : memref<2x8x8x64xf32, #tpu.memory_space<vmem>>, vector<2x8x8x64xf32>
    tpu.vector_store %arg10[%c0_152, %c0_153, %c0_154, %c0_155], %188 {strides = array<i32>} : memref<2x8x8x64xf32, #tpu.memory_space<vmem>>, vector<2x8x8x64xf32>,
    %c0_156 = arith.constant 0 : index
    %c0_157 = arith.constant 0 : index
    %c0_158 = arith.constant 0 : index
    %c0_159 = arith.constant 0 : index
    %190 = tpu.strided_load %arg10[%c0_156, %c0_157, %c0_158, %c0_159] {strides = array<i32: 1, 2, 2, 1>} : memref<2x8x8x64xf32, #tpu.memory_space<vmem>>, vector<2x4x4x64xf32>
    %c0_160 = arith.constant 0 : index
    %c0_161 = arith.constant 0 : index
    %c1_162 = arith.constant 1 : index
    %c0_163 = arith.constant 0 : index
    %191 = tpu.strided_load %arg10[%c0_160, %c0_161, %c1_162, %c0_163] {strides = array<i32: 1, 2, 2, 1>} : memref<2x8x8x64xf32, #tpu.memory_space<vmem>>, vector<2x4x4x64xf32>
    %c0_164 = arith.constant 0 : index
    %c1_165 = arith.constant 1 : index
    %c0_166 = arith.constant 0 : index
    %c0_167 = arith.constant 0 : index
    %192 = tpu.strided_load %arg10[%c0_164, %c1_165, %c0_166, %c0_167] {strides = array<i32: 1, 2, 2, 1>} : memref<2x8x8x64xf32, #tpu.memory_space<vmem>>, vector<2x4x4x64xf32>
    %c0_168 = arith.constant 0 : index
    %c1_169 = arith.constant 1 : index
    %c1_170 = arith.constant 1 : index
    %c0_171 = arith.constant 0 : index
    %193 = tpu.strided_load %arg10[%c0_168, %c1_169, %c1_170, %c0_171] {strides = array<i32: 1, 2, 2, 1>} : memref<2x8x8x64xf32, #tpu.memory_space<vmem>>, vector<2x4x4x64xf32>
    %194 = arith.maximumf %190, %191 : vector<2x4x4x64xf32>
    %195 = arith.maximumf %192, %193 : vector<2x4x4x64xf32>
    %196 = arith.maximumf %194, %195 : vector<2x4x4x64xf32>
    %cst_172 = arith.constant 0.000000e+00 : f32
    %197 = vector.broadcast %cst_172 : f32 to vector<2x32xf32>
    %c0_173 = arith.constant 0 : index
    %c0_174 = arith.constant 0 : index
    %198 = vector.load %arg6[%c0_173, %c0_174] : memref<1x32xf32, #tpu.memory_space<vmem>>, vector<1x32xf32>
    %199 = vector.broadcast %198 : vector<1x32xf32> to vector<2x32xf32>
    %200 = arith.addf %197, %199 : vector<2x32xf32>
    %201 = vector.extract_strided_slice %196 {offsets = [0, 0, 0, 0], sizes = [2, 1, 1, 64], strides = [1, 1, 1, 1]} : vector<2x4x4x64xf32> to vector<2x1x1x64xf32>
    %202 = vector.shape_cast %201 : vector<2x1x1x64xf32> to vector<2x64xf32>
    %203 = arith.truncf %202 : vector<2x64xf32> to vector<2x64xbf16>
    %c0_175 = arith.constant 0 : index
    %c0_176 = arith.constant 0 : index
    %204 = vector.load %arg5[%c0_175, %c0_176] : memref<1024x32xbf16, #tpu.memory_space<vmem>>, vector<64x32xbf16>
    %cst_177 = arith.constant dense<0.000000e+00> : vector<2x32xf32>
    %205 = tpu.matmul %203, %204, %cst_177 {dimension_numbers = #tpu.dot_dimension_numbers<[1], [0], [0], [1], [0, 0, 1, 1], [], []>} : vector<2x64xbf16>, vector<64x32xbf16>, vector<2x32xf32> -> vector<2x32xf32>
    %206 = arith.addf %200, %205 : vector<2x32xf32>
    %207 = vector.extract_strided_slice %196 {offsets = [0, 0, 1, 0], sizes = [2, 1, 1, 64], strides = [1, 1, 1, 1]} : vector<2x4x4x64xf32> to vector<2x1x1x64xf32>
    %208 = vector.shape_cast %207 : vector<2x1x1x64xf32> to vector<2x64xf32>
    %209 = arith.truncf %208 : vector<2x64xf32> to vector<2x64xbf16>
    %c64_178 = arith.constant 64 : index
    %c0_179 = arith.constant 0 : index
    %210 = vector.load %arg5[%c64_178, %c0_179] : memref<1024x32xbf16, #tpu.memory_space<vmem>>, vector<64x32xbf16>
    %cst_180 = arith.constant dense<0.000000e+00> : vector<2x32xf32>
    %211 = tpu.matmul %209, %210, %cst_180 {dimension_numbers = #tpu.dot_dimension_numbers<[1], [0], [0], [1], [0, 0, 1, 1], [], []>} : vector<2x64xbf16>, vector<64x32xbf16>, vector<2x32xf32> -> vector<2x32xf32>
    %212 = arith.addf %206, %211 : vector<2x32xf32>
    %213 = vector.extract_strided_slice %196 {offsets = [0, 0, 2, 0], sizes = [2, 1, 1, 64], strides = [1, 1, 1, 1]} : vector<2x4x4x64xf32> to vector<2x1x1x64xf32>
    %214 = vector.shape_cast %213 : vector<2x1x1x64xf32> to vector<2x64xf32>
    %215 = arith.truncf %214 : vector<2x64xf32> to vector<2x64xbf16>
    %c128_181 = arith.constant 128 : index
    %c0_182 = arith.constant 0 : index
    %216 = vector.load %arg5[%c128_181, %c0_182] : memref<1024x32xbf16, #tpu.memory_space<vmem>>, vector<64x32xbf16>
    %cst_183 = arith.constant dense<0.000000e+00> : vector<2x32xf32>
    %217 = tpu.matmul %215, %216, %cst_183 {dimension_numbers = #tpu.dot_dimension_numbers<[1], [0], [0], [1], [0, 0, 1, 1], [], []>} : vector<2x64xbf16>, vector<64x32xbf16>, vector<2x32xf32> -> vector<2x32xf32>
    %218 = arith.addf %212, %217 : vector<2x32xf32>
    %219 = vector.extract_strided_slice %196 {offsets = [0, 0, 3, 0], sizes = [2, 1, 1, 64], strides = [1, 1, 1, 1]} : vector<2x4x4x64xf32> to vector<2x1x1x64xf32>
    %220 = vector.shape_cast %219 : vector<2x1x1x64xf32> to vector<2x64xf32>
    %221 = arith.truncf %220 : vector<2x64xf32> to vector<2x64xbf16>
    %c192_184 = arith.constant 192 : index
    %c0_185 = arith.constant 0 : index
    %222 = vector.load %arg5[%c192_184, %c0_185] : memref<1024x32xbf16, #tpu.memory_space<vmem>>, vector<64x32xbf16>
    %cst_186 = arith.constant dense<0.000000e+00> : vector<2x32xf32>
    %223 = tpu.matmul %221, %222, %cst_186 {dimension_numbers = #tpu.dot_dimension_numbers<[1], [0], [0], [1], [0, 0, 1, 1], [], []>} : vector<2x64xbf16>, vector<64x32xbf16>, vector<2x32xf32> -> vector<2x32xf32>
    %224 = arith.addf %218, %223 : vector<2x32xf32>
    %225 = vector.extract_strided_slice %196 {offsets = [0, 1, 0, 0], sizes = [2, 1, 1, 64], strides = [1, 1, 1, 1]} : vector<2x4x4x64xf32> to vector<2x1x1x64xf32>
    %226 = vector.shape_cast %225 : vector<2x1x1x64xf32> to vector<2x64xf32>
    %227 = arith.truncf %226 : vector<2x64xf32> to vector<2x64xbf16>
    %c256_187 = arith.constant 256 : index
    %c0_188 = arith.constant 0 : index
    %228 = vector.load %arg5[%c256_187, %c0_188] : memref<1024x32xbf16, #tpu.memory_space<vmem>>, vector<64x32xbf16>
    %cst_189 = arith.constant dense<0.000000e+00> : vector<2x32xf32>
    %229 = tpu.matmul %227, %228, %cst_189 {dimension_numbers = #tpu.dot_dimension_numbers<[1], [0], [0], [1], [0, 0, 1, 1], [], []>} : vector<2x64xbf16>, vector<64x32xbf16>, vector<2x32xf32> -> vector<2x32xf32>
    %230 = arith.addf %224, %229 : vector<2x32xf32>
    %231 = vector.extract_strided_slice %196 {offsets = [0, 1, 1, 0], sizes = [2, 1, 1, 64], strides = [1, 1, 1, 1]} : vector<2x4x4x64xf32> to vector<2x1x1x64xf32>
    %232 = vector.shape_cast %231 : vector<2x1x1x64xf32> to vector<2x64xf32>
    %233 = arith.truncf %232 : vector<2x64xf32> to vector<2x64xbf16>
    %c320_190 = arith.constant 320 : index
    %c0_191 = arith.constant 0 : index
    %234 = vector.load %arg5[%c320_190, %c0_191] : memref<1024x32xbf16, #tpu.memory_space<vmem>>, vector<64x32xbf16>
    %cst_192 = arith.constant dense<0.000000e+00> : vector<2x32xf32>
    %235 = tpu.matmul %233, %234, %cst_192 {dimension_numbers = #tpu.dot_dimension_numbers<[1], [0], [0], [1], [0, 0, 1, 1], [], []>} : vector<2x64xbf16>, vector<64x32xbf16>, vector<2x32xf32> -> vector<2x32xf32>
    %236 = arith.addf %230, %235 : vector<2x32xf32>
    %237 = vector.extract_strided_slice %196 {offsets = [0, 1, 2, 0], sizes = [2, 1, 1, 64], strides = [1, 1, 1, 1]} : vector<2x4x4x64xf32> to vector<2x1x1x64xf32>
    %238 = vector.shape_cast %237 : vector<2x1x1x64xf32> to vector<2x64xf32>
    %239 = arith.truncf %238 : vector<2x64xf32> to vector<2x64xbf16>
    %c384_193 = arith.constant 384 : index
    %c0_194 = arith.constant 0 : index
    %240 = vector.load %arg5[%c384_193, %c0_194] : memref<1024x32xbf16, #tpu.memory_space<vmem>>, vector<64x32xbf16>
    %cst_195 = arith.constant dense<0.000000e+00> : vector<2x32xf32>
    %241 = tpu.matmul %239, %240, %cst_195 {dimension_numbers = #tpu.dot_dimension_numbers<[1], [0], [0], [1], [0, 0, 1, 1], [], []>} : vector<2x64xbf16>, vector<64x32xbf16>, vector<2x32xf32> -> vector<2x32xf32>
    %242 = arith.addf %236, %241 : vector<2x32xf32>
    %243 = vector.extract_strided_slice %196 {offsets = [0, 1, 3, 0], sizes = [2, 1, 1, 64], strides = [1, 1, 1, 1]} : vector<2x4x4x64xf32> to vector<2x1x1x64xf32>
    %244 = vector.shape_cast %243 : vector<2x1x1x64xf32> to vector<2x64xf32>
    %245 = arith.truncf %244 : vector<2x64xf32> to vector<2x64xbf16>
    %c448_196 = arith.constant 448 : index
    %c0_197 = arith.constant 0 : index
    %246 = vector.load %arg5[%c448_196, %c0_197] : memref<1024x32xbf16, #tpu.memory_space<vmem>>, vector<64x32xbf16>
    %cst_198 = arith.constant dense<0.000000e+00> : vector<2x32xf32>
    %247 = tpu.matmul %245, %246, %cst_198 {dimension_numbers = #tpu.dot_dimension_numbers<[1], [0], [0], [1], [0, 0, 1, 1], [], []>} : vector<2x64xbf16>, vector<64x32xbf16>, vector<2x32xf32> -> vector<2x32xf32>
    %248 = arith.addf %242, %247 : vector<2x32xf32>
    %249 = vector.extract_strided_slice %196 {offsets = [0, 2, 0, 0], sizes = [2, 1, 1, 64], strides = [1, 1, 1, 1]} : vector<2x4x4x64xf32> to vector<2x1x1x64xf32>
    %250 = vector.shape_cast %249 : vector<2x1x1x64xf32> to vector<2x64xf32>
    %251 = arith.truncf %250 : vector<2x64xf32> to vector<2x64xbf16>
    %c512_199 = arith.constant 512 : index
    %c0_200 = arith.constant 0 : index
    %252 = vector.load %arg5[%c512_199, %c0_200] : memref<1024x32xbf16, #tpu.memory_space<vmem>>, vector<64x32xbf16>
    %cst_201 = arith.constant dense<0.000000e+00> : vector<2x32xf32>
    %253 = tpu.matmul %251, %252, %cst_201 {dimension_numbers = #tpu.dot_dimension_numbers<[1], [0], [0], [1], [0, 0, 1, 1], [], []>} : vector<2x64xbf16>, vector<64x32xbf16>, vector<2x32xf32> -> vector<2x32xf32>
    %254 = arith.addf %248, %253 : vector<2x32xf32>
    %255 = vector.extract_strided_slice %196 {offsets = [0, 2, 1, 0], sizes = [2, 1, 1, 64], strides = [1, 1, 1, 1]} : vector<2x4x4x64xf32> to vector<2x1x1x64xf32>
    %256 = vector.shape_cast %255 : vector<2x1x1x64xf32> to vector<2x64xf32>
    %257 = arith.truncf %256 : vector<2x64xf32> to vector<2x64xbf16>
    %c576 = arith.constant 576 : index
    %c0_202 = arith.constant 0 : index
    %258 = vector.load %arg5[%c576, %c0_202] : memref<1024x32xbf16, #tpu.memory_space<vmem>>, vector<64x32xbf16>
    %cst_203 = arith.constant dense<0.000000e+00> : vector<2x32xf32>
    %259 = tpu.matmul %257, %258, %cst_203 {dimension_numbers = #tpu.dot_dimension_numbers<[1], [0], [0], [1], [0, 0, 1, 1], [], []>} : vector<2x64xbf16>, vector<64x32xbf16>, vector<2x32xf32> -> vector<2x32xf32>
    %260 = arith.addf %254, %259 : vector<2x32xf32>
    %261 = vector.extract_strided_slice %196 {offsets = [0, 2, 2, 0], sizes = [2, 1, 1, 64], strides = [1, 1, 1, 1]} : vector<2x4x4x64xf32> to vector<2x1x1x64xf32>
    %262 = vector.shape_cast %261 : vector<2x1x1x64xf32> to vector<2x64xf32>
    %263 = arith.truncf %262 : vector<2x64xf32> to vector<2x64xbf16>
    %c640 = arith.constant 640 : index
    %c0_204 = arith.constant 0 : index
    %264 = vector.load %arg5[%c640, %c0_204] : memref<1024x32xbf16, #tpu.memory_space<vmem>>, vector<64x32xbf16>
    %cst_205 = arith.constant dense<0.000000e+00> : vector<2x32xf32>
    %265 = tpu.matmul %263, %264, %cst_205 {dimension_numbers = #tpu.dot_dimension_numbers<[1], [0], [0], [1], [0, 0, 1, 1], [], []>} : vector<2x64xbf16>, vector<64x32xbf16>, vector<2x32xf32> -> vector<2x32xf32>
    %266 = arith.addf %260, %265 : vector<2x32xf32>
    %267 = vector.extract_strided_slice %196 {offsets = [0, 2, 3, 0], sizes = [2, 1, 1, 64], strides = [1, 1, 1, 1]} : vector<2x4x4x64xf32> to vector<2x1x1x64xf32>
    %268 = vector.shape_cast %267 : vector<2x1x1x64xf32> to vector<2x64xf32>
    %269 = arith.truncf %268 : vector<2x64xf32> to vector<2x64xbf16>
    %c704 = arith.constant 704 : index
    %c0_206 = arith.constant 0 : index
    %270 = vector.load %arg5[%c704, %c0_206] : memref<1024x32xbf16, #tpu.memory_space<vmem>>, vector<64x32xbf16>
    %cst_207 = arith.constant dense<0.000000e+00> : vector<2x32xf32>
    %271 = tpu.matmul %269, %270, %cst_207 {dimension_numbers = #tpu.dot_dimension_numbers<[1], [0], [0], [1], [0, 0, 1, 1], [], []>} : vector<2x64xbf16>, vector<64x32xbf16>, vector<2x32xf32> -> vector<2x32xf32>
    %272 = arith.addf %266, %271 : vector<2x32xf32>
    %273 = vector.extract_strided_slice %196 {offsets = [0, 3, 0, 0], sizes = [2, 1, 1, 64], strides = [1, 1, 1, 1]} : vector<2x4x4x64xf32> to vector<2x1x1x64xf32>
    %274 = vector.shape_cast %273 : vector<2x1x1x64xf32> to vector<2x64xf32>
    %275 = arith.truncf %274 : vector<2x64xf32> to vector<2x64xbf16>
    %c768 = arith.constant 768 : index
    %c0_208 = arith.constant 0 : index
    %276 = vector.load %arg5[%c768, %c0_208] : memref<1024x32xbf16, #tpu.memory_space<vmem>>, vector<64x32xbf16>
    %cst_209 = arith.constant dense<0.000000e+00> : vector<2x32xf32>
    %277 = tpu.matmul %275, %276, %cst_209 {dimension_numbers = #tpu.dot_dimension_numbers<[1], [0], [0], [1], [0, 0, 1, 1], [], []>} : vector<2x64xbf16>, vector<64x32xbf16>, vector<2x32xf32> -> vector<2x32xf32>
    %278 = arith.addf %272, %277 : vector<2x32xf32>
    %279 = vector.extract_strided_slice %196 {offsets = [0, 3, 1, 0], sizes = [2, 1, 1, 64], strides = [1, 1, 1, 1]} : vector<2x4x4x64xf32> to vector<2x1x1x64xf32>
    %280 = vector.shape_cast %279 : vector<2x1x1x64xf32> to vector<2x64xf32>
    %281 = arith.truncf %280 : vector<2x64xf32> to vector<2x64xbf16>
    %c832 = arith.constant 832 : index
    %c0_210 = arith.constant 0 : index
    %282 = vector.load %arg5[%c832, %c0_210] : memref<1024x32xbf16, #tpu.memory_space<vmem>>, vector<64x32xbf16>
    %cst_211 = arith.constant dense<0.000000e+00> : vector<2x32xf32>
    %283 = tpu.matmul %281, %282, %cst_211 {dimension_numbers = #tpu.dot_dimension_numbers<[1], [0], [0], [1], [0, 0, 1, 1], [], []>} : vector<2x64xbf16>, vector<64x32xbf16>, vector<2x32xf32> -> vector<2x32xf32>
    %284 = arith.addf %278, %283 : vector<2x32xf32>
    %285 = vector.extract_strided_slice %196 {offsets = [0, 3, 2, 0], sizes = [2, 1, 1, 64], strides = [1, 1, 1, 1]} : vector<2x4x4x64xf32> to vector<2x1x1x64xf32>
    %286 = vector.shape_cast %285 : vector<2x1x1x64xf32> to vector<2x64xf32>
    %287 = arith.truncf %286 : vector<2x64xf32> to vector<2x64xbf16>
    %c896 = arith.constant 896 : index
    %c0_212 = arith.constant 0 : index
    %288 = vector.load %arg5[%c896, %c0_212] : memref<1024x32xbf16, #tpu.memory_space<vmem>>, vector<64x32xbf16>
    %cst_213 = arith.constant dense<0.000000e+00> : vector<2x32xf32>
    %289 = tpu.matmul %287, %288, %cst_213 {dimension_numbers = #tpu.dot_dimension_numbers<[1], [0], [0], [1], [0, 0, 1, 1], [], []>} : vector<2x64xbf16>, vector<64x32xbf16>, vector<2x32xf32> -> vector<2x32xf32>
    %290 = arith.addf %284, %289 : vector<2x32xf32>
    %291 = vector.extract_strided_slice %196 {offsets = [0, 3, 3, 0], sizes = [2, 1, 1, 64], strides = [1, 1, 1, 1]} : vector<2x4x4x64xf32> to vector<2x1x1x64xf32>
    %292 = vector.shape_cast %291 : vector<2x1x1x64xf32> to vector<2x64xf32>
    %293 = arith.truncf %292 : vector<2x64xf32> to vector<2x64xbf16>
    %c960 = arith.constant 960 : index
    %c0_214 = arith.constant 0 : index
    %294 = vector.load %arg5[%c960, %c0_214] : memref<1024x32xbf16, #tpu.memory_space<vmem>>, vector<64x32xbf16>
    %cst_215 = arith.constant dense<0.000000e+00> : vector<2x32xf32>
    %295 = tpu.matmul %293, %294, %cst_215 {dimension_numbers = #tpu.dot_dimension_numbers<[1], [0], [0], [1], [0, 0, 1, 1], [], []>} : vector<2x64xbf16>, vector<64x32xbf16>, vector<2x32xf32> -> vector<2x32xf32>
    %296 = arith.addf %290, %295 : vector<2x32xf32>
    %c0_216 = arith.constant 0 : index
    %c0_217 = arith.constant 0 : index
    %297 = vector.load %arg7[%c0_216, %c0_217] : memref<2x32xf32, #tpu.memory_space<vmem>>, vector<2x32xf32>
    tpu.vector_store %arg7[%c0_216, %c0_217], %296 {strides = array<i32>} : memref<2x32xf32, #tpu.memory_space<vmem>>, vector<2x32xf32>,
    return
  }
  func.func @transform_0(%arg0: i32) -> (i32, i32, i32, i32) {
    %c0_i32 = arith.constant 0 : i32
    %c0_i32_0 = arith.constant 0 : i32
    %c0_i32_1 = arith.constant 0 : i32
    %c0_i32_2 = arith.constant 0 : i32
    %c0_i32_3 = arith.constant 0 : i32
    return %c0_i32, %c0_i32_0, %c0_i32_1, %c0_i32_2 : i32, i32, i32, i32
  }
  func.func @transform_1(%arg0: i32) -> (i32, i32) {
    %c0_i32 = arith.constant 0 : i32
    %c0_i32_0 = arith.constant 0 : i32
    %c0_i32_1 = arith.constant 0 : i32
    return %c0_i32, %c0_i32_0 : i32, i32
  }
  func.func @transform_2(%arg0: i32) -> (i32, i32) {
    %c0_i32 = arith.constant 0 : i32
    %c0_i32_0 = arith.constant 0 : i32
    %c0_i32_1 = arith.constant 0 : i32
    return %c0_i32, %c0_i32_0 : i32, i32
  }
  func.func @transform_3(%arg0: i32) -> (i32, i32) {
    %c0_i32 = arith.constant 0 : i32
    %c0_i32_0 = arith.constant 0 : i32
    %c0_i32_1 = arith.constant 0 : i32
    return %c0_i32, %c0_i32_0 : i32, i32
  }
  func.func @transform_4(%arg0: i32) -> (i32, i32) {
    %c0_i32 = arith.constant 0 : i32
    %c0_i32_0 = arith.constant 0 : i32
    %c0_i32_1 = arith.constant 0 : i32
    return %c0_i32, %c0_i32_0 : i32, i32
  }
  func.func @transform_5(%arg0: i32) -> (i32, i32) {
    %c0_i32 = arith.constant 0 : i32
    %c0_i32_0 = arith.constant 0 : i32
    %c0_i32_1 = arith.constant 0 : i32
    return %c0_i32, %c0_i32_0 : i32, i32
  }
  func.func @transform_6(%arg0: i32) -> (i32, i32) {
    %c0_i32 = arith.constant 0 : i32
    %c0_i32_0 = arith.constant 0 : i32
    %c0_i32_1 = arith.constant 0 : i32
    return %c0_i32, %c0_i32_0 : i32, i32
  }
}

</mosaic_0001>

<bundles_post_ra>
// kernel: convnet_forward.1
= control target key start
LH: loop header
LB: loop body
LE: loop exit
PB: predicated region body
PF: predicated region fallthrough
CT: control target
= control target key end

     0   :  { %v10334_v2 = vmov 0   ;;  %s17936_s0 = inlined_call_operand.vmem [shape: f32[2,18,18,1], index: 0, kind: input, shape index: {}]   ;;  %s17937_s1 = inlined_call_operand.vmem [shape: f32[9,64], index: 1, kind: input, shape index: {}]   ;;  %s17938_s2 = inlined_call_operand.vmem [shape: bf16[576,64], index: 2, kind: input, shape index: {}]   ;;  %s17939_s3 = inlined_call_operand.vmem [shape: f32[4,64], index: 3, kind: input, shape index: {}]   ;;  %s17940_s4 = inlined_call_operand.vmem [shape: bf16[1024,32], index: 4, kind: input, shape index: {}]   ;;  %s17941_s5 = inlined_call_operand.vmem [shape: f32[1,32], index: 5, kind: input, shape index: {}]   ;;  %s17942_s6 = inlined_call_operand.hbm [shape: f32[2,32], index: 6, kind: output, shape index: {}]  }
   0x1   :  { %v27_v0 = vld [vmem:[%s17936_s0 + $0x18] sm:$0xff]  ;;  %v25_v1 = vld [vmem:[%s17936_s0] sm:$0xff]  ;;  %10195 = vset.pattern.permute.xlu1 %v10334_v2  ;;  %10194 = vset.pattern.permute.xlu0 %v10334_v2  ;;  %v26_v4 = vld [vmem:[%s17936_s0 + $0x8] sm:$0xff] }
   0x2   :  { %102 = vperm.xlu1 %10195, %v27_v0   ;;  %92 = vperm.xlu0 %10194, %v25_v1   ;;  %v28_v3 = vld [vmem:[%s17936_s0 + $0x20] sm:$0xff]  ;;  %v30_v5 = vld [vmem:[%s17936_s0 + $0x38] sm:$0xff]  ;;  %v29_v6 = vld [vmem:[%s17936_s0 + $0x30] sm:$0xff] }
   0x3   :  { %v32_v7 = vld [vmem:[%s17936_s0 + $0x50] sm:$0xff]  ;;  %v31_v8 = vld [vmem:[%s17936_s0 + $0x48] sm:$0xff]  ;;  %v33_v10 = vld [vmem:[%s17936_s0 + $0x60] sm:$0xff] }
   0x4   :  { %v34_v9 = vld [vmem:[%s17936_s0 + $0x68] sm:$0xff]  ;;  %v36_v11 = vld [vmem:[%s17936_s0 + $0x80] sm:$0xff]  ;;  %v35_v12 = vld [vmem:[%s17936_s0 + $0x78] sm:$0xff] }
   0x5   :  { %v38_v13 = vld [vmem:[%s17936_s0 + $0x98] sm:$0xff]  ;;  %v37_v14 = vld [vmem:[%s17936_s0 + $0x90] sm:$0xff]  ;;  %v39_v16 = vld [vmem:[%s17936_s0 + $0xa8] sm:$0xff] }
   0x6   :  { %107 = vperm.xlu1 %10195, %v28_v3   ;;  %97 = vperm.xlu0 %10194, %v26_v4   ;;  %v40_v15 = vld [vmem:[%s17936_s0 + $0xb0] sm:$0xff]  ;;  %v42_v17 = vld [vmem:[%s17936_s0 + $0xc8] sm:$0xff]  ;;  %v41_v18 = vld [vmem:[%s17936_s0 + $0xc0] sm:$0xff] }
   0x7   :  { %v44_v19 = vld [vmem:[%s17936_s0 + $0xe0] sm:$0xff]  ;;  %v43_v20 = vld [vmem:[%s17936_s0 + $0xd8] sm:$0xff]  ;;  %v45_v22 = vld [vmem:[%s17936_s0 + $0xf0] sm:$0xff] }
   0x8   :  { %v46_v21 = vld [vmem:[%s17936_s0 + $0xf8] sm:$0xff]  ;;  %v48_v23 = vld [vmem:[%s17936_s0 + $0x110] sm:$0xff]  ;;  %v47_v24 = vld [vmem:[%s17936_s0 + $0x108] sm:$0xff] }
   0x9   :  { %v50_v25 = vld [vmem:[%s17936_s0 + $0x128] sm:$0xff]  ;;  %v49_v26 = vld [vmem:[%s17936_s0 + $0x120] sm:$0xff]  ;;  %v51_v28 = vld [vmem:[%s17936_s0 + $0x138] sm:$0xff] }
   0xa   :  { %117 = vperm.xlu1 %10195, %v30_v5   ;;  %112 = vperm.xlu0 %10194, %v29_v6   ;;  %v52_v27 = vld [vmem:[%s17936_s0 + $0x140] sm:$0xff]  ;;  %v54_v29 = vld [vmem:[%s17936_s0 + $0x158] sm:$0xff]  ;;  %v53_v30 = vld [vmem:[%s17936_s0 + $0x150] sm:$0xff] }
   0xb   :  { %v56_v31 = vld [vmem:[%s17936_s0 + $0x170] sm:$0xff]  ;;  %v55_v32 = vld [vmem:[%s17936_s0 + $0x168] sm:$0xff]  ;;  %v58_v33 = vld [vmem:[%s17936_s0 + $0x1b8] sm:$0xff] }
   0xc   :  { %v57_v34 = vld [vmem:[%s17936_s0 + $0x1b0] sm:$0xff]  ;;  %v59_v36 = vld [vmem:[%s17936_s0 + $0x1c8] sm:$0xff]  ;;  %v61_v38 = vld [vmem:[%s17936_s0 + $0x1e0] sm:$0xff] }
   0xd   :  { %v60_v35 = vld [vmem:[%s17936_s0 + $0x1d0] sm:$0xff]  ;;  %v62_v37 = vld [vmem:[%s17936_s0 + $0x1e8] sm:$0xff]  ;;  %v64_v39 = vld [vmem:[%s17936_s0 + $0x200] sm:$0xff] }
   0xe   :  { %127 = vperm.xlu1 %10195, %v32_v7   ;;  %122 = vperm.xlu0 %10194, %v31_v8   ;;  %v63_v40 = vld [vmem:[%s17936_s0 + $0x1f8] sm:$0xff]  ;;  %v65_v42 = vld [vmem:[%s17936_s0 + $0x210] sm:$0xff]  ;;  %v67_v44 = vld [vmem:[%s17936_s0 + $0x228] sm:$0xff] }
   0xf   :  { %v66_v41 = vld [vmem:[%s17936_s0 + $0x218] sm:$0xff]  ;;  %v68_v43 = vld [vmem:[%s17936_s0 + $0x230] sm:$0xff]  ;;  %v70_v45 = vld [vmem:[%s17936_s0 + $0x248] sm:$0xff] }
  0x10   :  { %v69_v46 = vld [vmem:[%s17936_s0 + $0x240] sm:$0xff]  ;;  %v71_v48 = vld [vmem:[%s17936_s0 + $0x258] sm:$0xff]  ;;  %v73_v50 = vld [vmem:[%s17936_s0 + $0x270] sm:$0xff] }
  0x11   :  { %v72_v47 = vld [vmem:[%s17936_s0 + $0x260] sm:$0xff]  ;;  %v74_v49 = vld [vmem:[%s17936_s0 + $0x278] sm:$0xff]  ;;  %v76_v51 = vld [vmem:[%s17936_s0 + $0x290] sm:$0xff] }
  0x12   :  { %137 = vperm.xlu1 %10195, %v34_v9   ;;  %132 = vperm.xlu0 %10194, %v33_v10   ;;  %v75_v52 = vld [vmem:[%s17936_s0 + $0x288] sm:$0xff]  ;;  %v77_v54 = vld [vmem:[%s17936_s0 + $0x2a0] sm:$0xff] }
  0x13   :  { %v78_v53 = vld [vmem:[%s17936_s0 + $0x2a8] sm:$0xff] }
  0x16   :  { %147 = vperm.xlu1 %10195, %v36_v11   ;;  %142 = vperm.xlu0 %10194, %v35_v12  }
  0x1a   :  { %157 = vperm.xlu1 %10195, %v38_v13   ;;  %152 = vperm.xlu0 %10194, %v37_v14  }
  0x1e   :  { %167 = vperm.xlu1 %10195, %v40_v15   ;;  %162 = vperm.xlu0 %10194, %v39_v16  }
  0x22   :  { %177 = vperm.xlu1 %10195, %v42_v17   ;;  %172 = vperm.xlu0 %10194, %v41_v18  }
  0x26   :  { %187 = vperm.xlu1 %10195, %v44_v19   ;;  %182 = vperm.xlu0 %10194, %v43_v20  }
  0x2a   :  { %197 = vperm.xlu1 %10195, %v46_v21   ;;  %192 = vperm.xlu0 %10194, %v45_v22  }
  0x2e   :  { %207 = vperm.xlu1 %10195, %v48_v23   ;;  %202 = vperm.xlu0 %10194, %v47_v24  }
  0x32   :  { %217 = vperm.xlu1 %10195, %v50_v25   ;;  %212 = vperm.xlu0 %10194, %v49_v26  }
  0x36   :  { %227 = vperm.xlu1 %10195, %v52_v27   ;;  %222 = vperm.xlu0 %10194, %v51_v28  }
  0x3a   :  { %237 = vperm.xlu1 %10195, %v54_v29   ;;  %232 = vperm.xlu0 %10194, %v53_v30  }
  0x3e   :  { %247 = vperm.xlu1 %10195, %v56_v31   ;;  %242 = vperm.xlu0 %10194, %v55_v32  }
  0x42   :  { %257 = vperm.xlu1 %10195, %v58_v33   ;;  %252 = vperm.xlu0 %10194, %v57_v34  }
  0x46   :  { %267 = vperm.xlu1 %10195, %v60_v35   ;;  %262 = vperm.xlu0 %10194, %v59_v36  }
  0x4a   :  { %277 = vperm.xlu1 %10195, %v62_v37   ;;  %272 = vperm.xlu0 %10194, %v61_v38  }
  0x4e   :  { %287 = vperm.xlu1 %10195, %v64_v39   ;;  %282 = vperm.xlu0 %10194, %v63_v40  }
  0x52   :  { %297 = vperm.xlu1 %10195, %v66_v41   ;;  %292 = vperm.xlu0 %10194, %v65_v42  }
  0x56   :  { %307 = vperm.xlu1 %10195, %v68_v43   ;;  %302 = vperm.xlu0 %10194, %v67_v44  }
  0x5a   :  { %317 = vperm.xlu1 %10195, %v70_v45   ;;  %312 = vperm.xlu0 %10194, %v69_v46  }
  0x5e   :  { %327 = vperm.xlu1 %10195, %v72_v47   ;;  %322 = vperm.xlu0 %10194, %v71_v48  }
  0x62   :  { %337 = vperm.xlu1 %10195, %v74_v49   ;;  %332 = vperm.xlu0 %10194, %v73_v50  }
  0x66   :  { %347 = vperm.xlu1 %10195, %v76_v51   ;;  %342 = vperm.xlu0 %10194, %v75_v52  }
  0x6a   :  { %357 = vperm.xlu1 %10195, %v78_v53   ;;  %352 = vperm.xlu0 %10194, %v77_v54  }
  0x6b   :  { %11 = vsyncpa [#allocation6], 0  ;;  %v80_v55 = vld [vmem:[%s17936_s0 + $0x2c0] sm:$0xff]  ;;  %v79_v56 = vld [vmem:[%s17936_s0 + $0x2b8] sm:$0xff]  ;;  %vm4682_vm0 = vcmask 523264   ;;  %vm5590_vm1 = vcmask 517120  }
  0x6c   :  { %v82_v57 = vld [vmem:[%s17936_s0 + $0x2d8] sm:$0xff]  ;;  %v81_v58 = vld [vmem:[%s17936_s0 + $0x2d0] sm:$0xff]  ;;  %v83_v60 = vld [vmem:[%s17936_s0 + $0x2e8] sm:$0xff] }
  0x6d   :  { %v84_v59 = vld [vmem:[%s17936_s0 + $0x2f0] sm:$0xff]  ;;  %v86_v61 = vld [vmem:[%s17936_s0 + $0x308] sm:$0xff]  ;;  %v85_v62 = vld [vmem:[%s17936_s0 + $0x300] sm:$0xff] }
  0x6e   :  { %367 = vperm.xlu1 %10195, %v80_v55   ;;  %362 = vperm.xlu0 %10194, %v79_v56   ;;  %v88_v63 = vld [vmem:[%s17936_s0 + $0x320] sm:$0xff]  ;;  %v87_v0 = vld [vmem:[%s17936_s0 + $0x318] sm:$0xff]  ;;  %v543_v3 = vld [vmem:[%s17936_s0 + $0x9] sm:$0xff] }
  0x6f   :  { %v542_v4 = vld [vmem:[%s17936_s0 + $0x1] sm:$0xff]  ;;  %v544_v8 = vld [vmem:[%s17936_s0 + $0x19] sm:$0xff]  ;;  %v546_v12 = vld [vmem:[%s17936_s0 + $0x31] sm:$0xff] }
  0x70   :  { %v545_v7 = vld [vmem:[%s17936_s0 + $0x21] sm:$0xff]  ;;  %v547_v11 = vld [vmem:[%s17936_s0 + $0x39] sm:$0xff]  ;;  %v549_v15 = vld [vmem:[%s17936_s0 + $0x51] sm:$0xff] }
  0x71   :  { %v548_v16 = vld [vmem:[%s17936_s0 + $0x49] sm:$0xff]  ;;  %v550_v20 = vld [vmem:[%s17936_s0 + $0x61] sm:$0xff]  ;;  %v552_v24 = vld [vmem:[%s17936_s0 + $0x79] sm:$0xff] }
  0x72   :  { %377 = vperm.xlu1 %10195, %v82_v57   ;;  %372 = vperm.xlu0 %10194, %v81_v58   ;;  %v551_v19 = vld [vmem:[%s17936_s0 + $0x69] sm:$0xff]  ;;  %v553_v23 = vld [vmem:[%s17936_s0 + $0x81] sm:$0xff]  ;;  %v555_v27 = vld [vmem:[%s17936_s0 + $0x99] sm:$0xff] }
  0x73   :  { %v554_v28 = vld [vmem:[%s17936_s0 + $0x91] sm:$0xff]  ;;  %v556_v32 = vld [vmem:[%s17936_s0 + $0xa9] sm:$0xff]  ;;  %v558_v36 = vld [vmem:[%s17936_s0 + $0xc1] sm:$0xff] }
  0x74   :  { %v557_v31 = vld [vmem:[%s17936_s0 + $0xb1] sm:$0xff]  ;;  %v559_v35 = vld [vmem:[%s17936_s0 + $0xc9] sm:$0xff]  ;;  %v561_v39 = vld [vmem:[%s17936_s0 + $0xe1] sm:$0xff] }
  0x75   :  { %v560_v40 = vld [vmem:[%s17936_s0 + $0xd9] sm:$0xff]  ;;  %v562_v44 = vld [vmem:[%s17936_s0 + $0xf1] sm:$0xff]  ;;  %v564_v48 = vld [vmem:[%s17936_s0 + $0x109] sm:$0xff] }
  0x76   :  { %387 = vperm.xlu1 %10195, %v84_v59   ;;  %382 = vperm.xlu0 %10194, %v83_v60   ;;  %v563_v43 = vld [vmem:[%s17936_s0 + $0xf9] sm:$0xff]  ;;  %v565_v47 = vld [vmem:[%s17936_s0 + $0x111] sm:$0xff]  ;;  %v567_v51 = vld [vmem:[%s17936_s0 + $0x129] sm:$0xff] }
  0x77   :  { %v566_v52 = vld [vmem:[%s17936_s0 + $0x121] sm:$0xff]  ;;  %v568_v56 = vld [vmem:[%s17936_s0 + $0x139] sm:$0xff]  ;;  %v570_v60 = vld [vmem:[%s17936_s0 + $0x151] sm:$0xff] }
  0x78   :  { %v569_v55 = vld [vmem:[%s17936_s0 + $0x141] sm:$0xff]  ;;  %v571_v59 = vld [vmem:[%s17936_s0 + $0x159] sm:$0xff] }
  0x7a   :  { %397 = vperm.xlu1 %10195, %v86_v61   ;;  %392 = vperm.xlu0 %10194, %v85_v62  }
  0x7d   :  { %v10565_v1 = vpop.permute.xlu1 %102  ;;  %v10567_v2 = vpop.permute.xlu0 %92 }
  0x7e   :  { %407 = vperm.xlu1 %10195, %v88_v63   ;;  %402 = vperm.xlu0 %10194, %v87_v0   ;;  %v573_v63 = vld [vmem:[%s17936_s0 + $0x171] sm:$0xff]  ;;  %v572_v0 = vld [vmem:[%s17936_s0 + $0x169] sm:$0xff] }
  0x81   :  { %v10575_v5 = vpop.permute.xlu1 %107  ;;  %v10577_v6 = vpop.permute.xlu0 %97 }
  0x82   :  { %614 = vperm.xlu1 %10195, %v543_v3   ;;  %609 = vperm.xlu0 %10194, %v542_v4  }
  0x85   :  { %v10585_v9 = vpop.permute.xlu1 %117  ;;  %v10587_v10 = vpop.permute.xlu0 %112 }
  0x86   :  { %624 = vperm.xlu1 %10195, %v545_v7   ;;  %619 = vperm.xlu0 %10194, %v544_v8   ;;  %v575_v7 = vld [vmem:[%s17936_s0 + $0x1b9] sm:$0xff]  ;;  %v574_v8 = vld [vmem:[%s17936_s0 + $0x1b1] sm:$0xff] }
  0x89   :  { %v10595_v13 = vpop.permute.xlu1 %127  ;;  %v10597_v14 = vpop.permute.xlu0 %122 }
  0x8a   :  { %634 = vperm.xlu1 %10195, %v547_v11   ;;  %629 = vperm.xlu0 %10194, %v546_v12  }
  0x8d   :  { %v10605_v17 = vpop.permute.xlu1 %137  ;;  %v10607_v18 = vpop.permute.xlu0 %132 }
  0x8e   :  { %644 = vperm.xlu1 %10195, %v549_v15   ;;  %639 = vperm.xlu0 %10194, %v548_v16   ;;  %v577_v15 = vld [vmem:[%s17936_s0 + $0x1d1] sm:$0xff]  ;;  %v576_v16 = vld [vmem:[%s17936_s0 + $0x1c9] sm:$0xff] }
  0x91   :  { %v10615_v21 = vpop.permute.xlu1 %147  ;;  %v10617_v22 = vpop.permute.xlu0 %142 }
  0x92   :  { %654 = vperm.xlu1 %10195, %v551_v19   ;;  %649 = vperm.xlu0 %10194, %v550_v20  }
  0x95   :  { %v10625_v25 = vpop.permute.xlu1 %157  ;;  %v10627_v26 = vpop.permute.xlu0 %152 }
  0x96   :  { %664 = vperm.xlu1 %10195, %v553_v23   ;;  %659 = vperm.xlu0 %10194, %v552_v24   ;;  %v579_v23 = vld [vmem:[%s17936_s0 + $0x1e9] sm:$0xff]  ;;  %v578_v24 = vld [vmem:[%s17936_s0 + $0x1e1] sm:$0xff] }
  0x99   :  { %v10635_v29 = vpop.permute.xlu1 %167  ;;  %v10637_v30 = vpop.permute.xlu0 %162 }
  0x9a   :  { %674 = vperm.xlu1 %10195, %v555_v27   ;;  %669 = vperm.xlu0 %10194, %v554_v28  }
  0x9d   :  { %v10645_v33 = vpop.permute.xlu1 %177  ;;  %v10647_v34 = vpop.permute.xlu0 %172 }
  0x9e   :  { %684 = vperm.xlu1 %10195, %v557_v31   ;;  %679 = vperm.xlu0 %10194, %v556_v32   ;;  %v581_v31 = vld [vmem:[%s17936_s0 + $0x201] sm:$0xff]  ;;  %v580_v32 = vld [vmem:[%s17936_s0 + $0x1f9] sm:$0xff] }
  0xa1   :  { %v10655_v37 = vpop.permute.xlu1 %187  ;;  %v10657_v38 = vpop.permute.xlu0 %182 }
  0xa2   :  { %694 = vperm.xlu1 %10195, %v559_v35   ;;  %689 = vperm.xlu0 %10194, %v558_v36  }
  0xa5   :  { %v10665_v41 = vpop.permute.xlu1 %197  ;;  %v10667_v42 = vpop.permute.xlu0 %192 }
  0xa6   :  { %704 = vperm.xlu1 %10195, %v561_v39   ;;  %699 = vperm.xlu0 %10194, %v560_v40   ;;  %v583_v39 = vld [vmem:[%s17936_s0 + $0x219] sm:$0xff]  ;;  %v582_v40 = vld [vmem:[%s17936_s0 + $0x211] sm:$0xff] }
  0xa9   :  { %v10675_v45 = vpop.permute.xlu1 %207  ;;  %v10677_v46 = vpop.permute.xlu0 %202 }
  0xaa   :  { %714 = vperm.xlu1 %10195, %v563_v43   ;;  %709 = vperm.xlu0 %10194, %v562_v44  }
  0xad   :  { %v10685_v49 = vpop.permute.xlu1 %217  ;;  %v10687_v50 = vpop.permute.xlu0 %212 }
  0xae   :  { %724 = vperm.xlu1 %10195, %v565_v47   ;;  %719 = vperm.xlu0 %10194, %v564_v48   ;;  %v585_v47 = vld [vmem:[%s17936_s0 + $0x231] sm:$0xff]  ;;  %v584_v48 = vld [vmem:[%s17936_s0 + $0x229] sm:$0xff] }
  0xb1   :  { %v10695_v53 = vpop.permute.xlu1 %227  ;;  %v10697_v54 = vpop.permute.xlu0 %222 }
  0xb2   :  { %734 = vperm.xlu1 %10195, %v567_v51   ;;  %729 = vperm.xlu0 %10194, %v566_v52  }
  0xb5   :  { %v10705_v57 = vpop.permute.xlu1 %237  ;;  %v10707_v58 = vpop.permute.xlu0 %232 }
  0xb6   :  { %744 = vperm.xlu1 %10195, %v569_v55   ;;  %739 = vperm.xlu0 %10194, %v568_v56   ;;  %v587_v55 = vld [vmem:[%s17936_s0 + $0x249] sm:$0xff]  ;;  %v586_v56 = vld [vmem:[%s17936_s0 + $0x241] sm:$0xff] }
  0xb9   :  { %v10715_v61 = vpop.permute.xlu1 %247  ;;  %v10717_v62 = vpop.permute.xlu0 %242 }
  0xba   :  { %754 = vperm.xlu1 %10195, %v571_v59   ;;  %749 = vperm.xlu0 %10194, %v570_v60  }
  0xbd   :  { %v10725_v3 = vpop.permute.xlu1 %257  ;;  %v10727_v4 = vpop.permute.xlu0 %252 }
  0xbe   :  { %764 = vperm.xlu1 %10195, %v573_v63   ;;  %759 = vperm.xlu0 %10194, %v572_v0   ;;  %v589_v63 = vld [vmem:[%s17936_s0 + $0x261] sm:$0xff]  ;;  %v588_v0 = vld [vmem:[%s17936_s0 + $0x259] sm:$0xff] }
  0xc1   :  { %v10735_v11 = vpop.permute.xlu1 %267  ;;  %v10737_v12 = vpop.permute.xlu0 %262 }
  0xc2   :  { %774 = vperm.xlu1 %10195, %v575_v7   ;;  %769 = vperm.xlu0 %10194, %v574_v8  }
  0xc5   :  { %v10745_v19 = vpop.permute.xlu1 %277  ;;  %v10747_v20 = vpop.permute.xlu0 %272 }
  0xc6   :  { %784 = vperm.xlu1 %10195, %v577_v15   ;;  %779 = vperm.xlu0 %10194, %v576_v16   ;;  %v591_v15 = vld [vmem:[%s17936_s0 + $0x279] sm:$0xff]  ;;  %v590_v16 = vld [vmem:[%s17936_s0 + $0x271] sm:$0xff] }
  0xc9   :  { %v10755_v27 = vpop.permute.xlu1 %287  ;;  %v10757_v28 = vpop.permute.xlu0 %282 }
  0xca   :  { %794 = vperm.xlu1 %10195, %v579_v23   ;;  %789 = vperm.xlu0 %10194, %v578_v24  }
  0xcd   :  { %v10765_v35 = vpop.permute.xlu1 %297  ;;  %v10767_v36 = vpop.permute.xlu0 %292 }
  0xce   :  { %804 = vperm.xlu1 %10195, %v581_v31   ;;  %799 = vperm.xlu0 %10194, %v580_v32   ;;  %v593_v31 = vld [vmem:[%s17936_s0 + $0x291] sm:$0xff]  ;;  %v592_v32 = vld [vmem:[%s17936_s0 + $0x289] sm:$0xff] }
  0xd1   :  { %v10775_v43 = vpop.permute.xlu1 %307  ;;  %v10777_v44 = vpop.permute.xlu0 %302 }
  0xd2   :  { %18019 = vst [vmem:[#allocation8_spill] sm:$0xff] %v10775_v43  ;;  %18020 = vst [vmem:[#allocation9_spill] sm:$0xff] %v10777_v44  ;;  %814 = vperm.xlu1 %10195, %v583_v39   ;;  %809 = vperm.xlu0 %10194, %v582_v40   ;;  %v9149_v43 = vld [vmem:[%s17936_s0 + $0x4a] sm:$0xff] }
  0xd5   :  { %v10785_v51 = vpop.permute.xlu1 %317  ;;  %v10787_v52 = vpop.permute.xlu0 %312 }
  0xd6   :  { %18021 = vst [vmem:[#allocation10_spill] sm:$0xff] %v10785_v51  ;;  %18022 = vst [vmem:[#allocation11_spill] sm:$0xff] %v10787_v52  ;;  %824 = vperm.xlu1 %10195, %v585_v47   ;;  %819 = vperm.xlu0 %10194, %v584_v48   ;;  %v595_v47 = vld [vmem:[%s17936_s0 + $0x2a9] sm:$0xff]  ;;  %v594_v48 = vld [vmem:[%s17936_s0 + $0x2a1] sm:$0xff] }
  0xd9   :  { %v10795_v59 = vpop.permute.xlu1 %327  ;;  %v10797_v60 = vpop.permute.xlu0 %322 }
  0xda   :  { %18023 = vst [vmem:[#allocation12_spill] sm:$0xff] %v10795_v59  ;;  %18024 = vst [vmem:[#allocation13_spill] sm:$0xff] %v10797_v60  ;;  %834 = vperm.xlu1 %10195, %v587_v55   ;;  %829 = vperm.xlu0 %10194, %v586_v56  }
  0xdd   :  { %v10805_v7 = vpop.permute.xlu1 %337  ;;  %v10807_v8 = vpop.permute.xlu0 %332 }
  0xde   :  { %18025 = vst [vmem:[#allocation14_spill] sm:$0xff] %v10805_v7  ;;  %18026 = vst [vmem:[#allocation15_spill] sm:$0xff] %v10807_v8  ;;  %844 = vperm.xlu1 %10195, %v589_v63   ;;  %839 = vperm.xlu0 %10194, %v588_v0   ;;  %v597_v63 = vld [vmem:[%s17936_s0 + $0x2c1] sm:$0xff]  ;;  %v596_v0 = vld [vmem:[%s17936_s0 + $0x2b9] sm:$0xff] }
  0xe1   :  { %v10815_v23 = vpop.permute.xlu1 %347  ;;  %v10817_v24 = vpop.permute.xlu0 %342 }
  0xe2   :  { %18027 = vst [vmem:[#allocation16_spill] sm:$0xff] %v10815_v23  ;;  %18028 = vst [vmem:[#allocation17_spill] sm:$0xff] %v10817_v24  ;;  %854 = vperm.xlu1 %10195, %v591_v15   ;;  %849 = vperm.xlu0 %10194, %v590_v16  }
  0xe5   :  { %v10825_v39 = vpop.permute.xlu1 %357  ;;  %v10827_v40 = vpop.permute.xlu0 %352 }
  0xe6   :  { %18029 = vst [vmem:[#allocation18_spill] sm:$0xff] %v10825_v39  ;;  %18030 = vst [vmem:[#allocation19_spill] sm:$0xff] %v10827_v40  ;;  %864 = vperm.xlu1 %10195, %v593_v31   ;;  %859 = vperm.xlu0 %10194, %v592_v32   ;;  %v599_v31 = vld [vmem:[%s17936_s0 + $0x2d9] sm:$0xff]  ;;  %v598_v32 = vld [vmem:[%s17936_s0 + $0x2d1] sm:$0xff] }
  0xe9   :  { %v10835_v55 = vpop.permute.xlu1 %367  ;;  %v10837_v56 = vpop.permute.xlu0 %362 }
  0xea   :  { %18031 = vst [vmem:[#allocation20_spill] sm:$0xff] %v10835_v55  ;;  %18032 = vst [vmem:[#allocation21_spill] sm:$0xff] %v10837_v56  ;;  %874 = vperm.xlu1 %10195, %v595_v47   ;;  %869 = vperm.xlu0 %10194, %v594_v48   ;;  %v1062_v56 = vld [vmem:[%s17936_s0 + $0x22] sm:$0xff] }
  0xed   :  { %v10845_v15 = vpop.permute.xlu1 %377  ;;  %v10847_v16 = vpop.permute.xlu0 %372 }
  0xee   :  { %18033 = vst [vmem:[#allocation22_spill] sm:$0xff] %v10845_v15  ;;  %18034 = vst [vmem:[#allocation23_spill] sm:$0xff] %v10847_v16  ;;  %884 = vperm.xlu1 %10195, %v597_v63   ;;  %879 = vperm.xlu0 %10194, %v596_v0   ;;  %v601_v16 = vld [vmem:[%s17936_s0 + $0x2f1] sm:$0xff]  ;;  %v600_v63 = vld [vmem:[%s17936_s0 + $0x2e9] sm:$0xff] }
  0xf1   :  { %v10855_v47 = vpop.permute.xlu1 %387  ;;  %v10857_v48 = vpop.permute.xlu0 %382 }
  0xf2   :  { %18035 = vst [vmem:[#allocation24_spill] sm:$0xff] %v10855_v47  ;;  %18036 = vst [vmem:[#allocation25_spill] sm:$0xff] %v10857_v48  ;;  %894 = vperm.xlu1 %10195, %v599_v31   ;;  %889 = vperm.xlu0 %10194, %v598_v32   ;;  %v603_v48 = vld [vmem:[%s17936_s0 + $0x309] sm:$0xff]  ;;  %v602_v31 = vld [vmem:[%s17936_s0 + $0x301] sm:$0xff] }
  0xf5   :  { %v10865_v0 = vpop.permute.xlu1 %397  ;;  %v10867_v15 = vpop.permute.xlu0 %392 }
  0xf6   :  { %18037 = vst [vmem:[#allocation26_spill] sm:$0xff] %v10865_v0  ;;  %18038 = vst [vmem:[#allocation27_spill] sm:$0xff] %v10867_v15  ;;  %904 = vperm.xlu1 %10195, %v601_v16   ;;  %899 = vperm.xlu0 %10194, %v600_v63   ;;  %v605_v15 = vld [vmem:[%s17936_s0 + $0x321] sm:$0xff]  ;;  %v604_v16 = vld [vmem:[%s17936_s0 + $0x319] sm:$0xff] }
  0xf9   :  { %v10875_v32 = vpop.permute.xlu1 %407  ;;  %v10877_v47 = vpop.permute.xlu0 %402 }
  0xfa   :  { %18039 = vst [vmem:[#allocation28_spill] sm:$0xff] %v10875_v32  ;;  %18040 = vst [vmem:[#allocation29_spill] sm:$0xff] %v10877_v47  ;;  %914 = vperm.xlu1 %10195, %v603_v48   ;;  %909 = vperm.xlu0 %10194, %v602_v31   ;;  %v1060_v47 = vld [vmem:[%s17936_s0 + $0xa] sm:$0xff]  ;;  %v1059_v48 = vld [vmem:[%s17936_s0 + $0x2] sm:$0xff] }
  0xfd   :  { %v10885_v63 = vpop.permute.xlu1 %614  ;;  %v10887_v0 = vpop.permute.xlu0 %609 }
  0xfe   :  { %18041 = vst [vmem:[#allocation30_spill] sm:$0xff] %v10885_v63  ;;  %18042 = vst [vmem:[#allocation31_spill] sm:$0xff] %v10887_v0  ;;  %924 = vperm.xlu1 %10195, %v605_v15   ;;  %919 = vperm.xlu0 %10194, %v604_v16   ;;  %v1061_v15 = vld [vmem:[%s17936_s0 + $0x1a] sm:$0xff] }
 0x101   :  { %v10895_v31 = vpop.permute.xlu1 %624  ;;  %v10897_v32 = vpop.permute.xlu0 %619 }
 0x102   :  { %18043 = vst [vmem:[#allocation32_spill] sm:$0xff] %v10895_v31  ;;  %18044 = vst [vmem:[#allocation33_spill] sm:$0xff] %v10897_v32  ;;  %1131 = vperm.xlu1 %10195, %v1060_v47   ;;  %1126 = vperm.xlu0 %10194, %v1059_v48   ;;  %v1064_v32 = vld [vmem:[%s17936_s0 + $0x3a] sm:$0xff]  ;;  %v1063_v47 = vld [vmem:[%s17936_s0 + $0x32] sm:$0xff] }
 0x105   :  { %v10905_v16 = vpop.permute.xlu1 %634  ;;  %v10907_v0 = vpop.permute.xlu0 %629 }
 0x106   :  { %18045 = vst [vmem:[#allocation34_spill] sm:$0xff] %v10905_v16  ;;  %18046 = vst [vmem:[#allocation35_spill] sm:$0xff] %v10907_v0  ;;  %1141 = vperm.xlu1 %10195, %v1062_v56   ;;  %1136 = vperm.xlu0 %10194, %v1061_v15   ;;  %v1066_v0 = vld [vmem:[%s17936_s0 + $0x52] sm:$0xff]  ;;  %v1065_v56 = vld [vmem:[%s17936_s0 + $0x4a] sm:$0xff] }
 0x109   :  { %v10915_v48 = vpop.permute.xlu1 %644  ;;  %v10917_v31 = vpop.permute.xlu0 %639 }
 0x10a   :  { %18047 = vst [vmem:[#allocation36_spill] sm:$0xff] %v10915_v48  ;;  %18048 = vst [vmem:[#allocation37_spill] sm:$0xff] %v10917_v31  ;;  %1151 = vperm.xlu1 %10195, %v1064_v32   ;;  %1146 = vperm.xlu0 %10194, %v1063_v47   ;;  %v1068_v31 = vld [vmem:[%s17936_s0 + $0x6a] sm:$0xff]  ;;  %v1067_v32 = vld [vmem:[%s17936_s0 + $0x62] sm:$0xff] }
 0x10d   :  { %v10925_v15 = vpop.permute.xlu1 %654  ;;  %v10927_v16 = vpop.permute.xlu0 %649 }
 0x10e   :  { %18049 = vst [vmem:[#allocation38_spill] sm:$0xff] %v10925_v15  ;;  %18050 = vst [vmem:[#allocation39_spill] sm:$0xff] %v10927_v16  ;;  %1161 = vperm.xlu1 %10195, %v1066_v0   ;;  %1156 = vperm.xlu0 %10194, %v1065_v56   ;;  %v1070_v16 = vld [vmem:[%s17936_s0 + $0x82] sm:$0xff]  ;;  %v1069_v0 = vld [vmem:[%s17936_s0 + $0x7a] sm:$0xff] }
 0x111   :  { %v10935_v47 = vpop.permute.xlu1 %664  ;;  %v10937_v48 = vpop.permute.xlu0 %659 }
 0x112   :  { %18051 = vst [vmem:[#allocation40_spill] sm:$0xff] %v10935_v47  ;;  %18052 = vst [vmem:[#allocation41_spill] sm:$0xff] %v10937_v48  ;;  %1171 = vperm.xlu1 %10195, %v1068_v31   ;;  %1166 = vperm.xlu0 %10194, %v1067_v32   ;;  %v1072_v48 = vld [vmem:[%s17936_s0 + $0x9a] sm:$0xff]  ;;  %v1071_v31 = vld [vmem:[%s17936_s0 + $0x92] sm:$0xff] }
 0x115   :  { %v10945_v56 = vpop.permute.xlu1 %674  ;;  %v10947_v15 = vpop.permute.xlu0 %669 }
 0x116   :  { %18053 = vst [vmem:[#allocation42_spill] sm:$0xff] %v10945_v56  ;;  %18054 = vst [vmem:[#allocation43_spill] sm:$0xff] %v10947_v15  ;;  %1181 = vperm.xlu1 %10195, %v1070_v16   ;;  %1176 = vperm.xlu0 %10194, %v1069_v0   ;;  %v1074_v15 = vld [vmem:[%s17936_s0 + $0xb2] sm:$0xff]  ;;  %v1073_v16 = vld [vmem:[%s17936_s0 + $0xaa] sm:$0xff] }
 0x119   :  { %v10955_v32 = vpop.permute.xlu1 %684  ;;  %v10957_v47 = vpop.permute.xlu0 %679 }
 0x11a   :  { %18055 = vst [vmem:[#allocation44_spill] sm:$0xff] %v10955_v32  ;;  %18056 = vst [vmem:[#allocation45_spill] sm:$0xff] %v10957_v47  ;;  %1191 = vperm.xlu1 %10195, %v1072_v48   ;;  %1186 = vperm.xlu0 %10194, %v1071_v31   ;;  %v1076_v47 = vld [vmem:[%s17936_s0 + $0xca] sm:$0xff]  ;;  %v1075_v48 = vld [vmem:[%s17936_s0 + $0xc2] sm:$0xff] }
 0x11d   :  { %v10965_v0 = vpop.permute.xlu1 %694  ;;  %v10967_v56 = vpop.permute.xlu0 %689 }
 0x11e   :  { %18057 = vst [vmem:[#allocation46_spill] sm:$0xff] %v10965_v0  ;;  %18058 = vst [vmem:[#allocation47_spill] sm:$0xff] %v10967_v56  ;;  %1201 = vperm.xlu1 %10195, %v1074_v15   ;;  %1196 = vperm.xlu0 %10194, %v1073_v16   ;;  %v1078_v56 = vld [vmem:[%s17936_s0 + $0xe2] sm:$0xff]  ;;  %v1077_v15 = vld [vmem:[%s17936_s0 + $0xda] sm:$0xff] }
 0x121   :  { %v10975_v31 = vpop.permute.xlu1 %704  ;;  %v10977_v32 = vpop.permute.xlu0 %699 }
 0x122   :  { %18059 = vst [vmem:[#allocation48_spill] sm:$0xff] %v10975_v31  ;;  %18060 = vst [vmem:[#allocation49_spill] sm:$0xff] %v10977_v32  ;;  %1211 = vperm.xlu1 %10195, %v1076_v47   ;;  %1206 = vperm.xlu0 %10194, %v1075_v48   ;;  %v1080_v32 = vld [vmem:[%s17936_s0 + $0xfa] sm:$0xff]  ;;  %v1079_v47 = vld [vmem:[%s17936_s0 + $0xf2] sm:$0xff] }
 0x125   :  { %v10985_v16 = vpop.permute.xlu1 %714  ;;  %v10987_v0 = vpop.permute.xlu0 %709 }
 0x126   :  { %18061 = vst [vmem:[#allocation50_spill] sm:$0xff] %v10985_v16  ;;  %18062 = vst [vmem:[#allocation51_spill] sm:$0xff] %v10987_v0  ;;  %1221 = vperm.xlu1 %10195, %v1078_v56   ;;  %1216 = vperm.xlu0 %10194, %v1077_v15   ;;  %v1082_v0 = vld [vmem:[%s17936_s0 + $0x112] sm:$0xff]  ;;  %v1081_v56 = vld [vmem:[%s17936_s0 + $0x10a] sm:$0xff] }
 0x129   :  { %v10995_v48 = vpop.permute.xlu1 %724  ;;  %v10997_v31 = vpop.permute.xlu0 %719 }
 0x12a   :  { %18063 = vst [vmem:[#allocation52_spill] sm:$0xff] %v10995_v48  ;;  %18064 = vst [vmem:[#allocation53_spill] sm:$0xff] %v10997_v31  ;;  %1231 = vperm.xlu1 %10195, %v1080_v32   ;;  %1226 = vperm.xlu0 %10194, %v1079_v47   ;;  %v1084_v31 = vld [vmem:[%s17936_s0 + $0x12a] sm:$0xff]  ;;  %v1083_v32 = vld [vmem:[%s17936_s0 + $0x122] sm:$0xff] }
 0x12d   :  { %v11005_v15 = vpop.permute.xlu1 %734  ;;  %v11007_v16 = vpop.permute.xlu0 %729 }
 0x12e   :  { %18065 = vst [vmem:[#allocation54_spill] sm:$0xff] %v11005_v15  ;;  %18066 = vst [vmem:[#allocation55_spill] sm:$0xff] %v11007_v16  ;;  %1241 = vperm.xlu1 %10195, %v1082_v0   ;;  %1236 = vperm.xlu0 %10194, %v1081_v56   ;;  %v1086_v16 = vld [vmem:[%s17936_s0 + $0x142] sm:$0xff]  ;;  %v1085_v0 = vld [vmem:[%s17936_s0 + $0x13a] sm:$0xff] }
 0x131   :  { %v11015_v47 = vpop.permute.xlu1 %744  ;;  %v11017_v48 = vpop.permute.xlu0 %739 }
 0x132   :  { %18067 = vst [vmem:[#allocation56_spill] sm:$0xff] %v11015_v47  ;;  %18068 = vst [vmem:[#allocation57_spill] sm:$0xff] %v11017_v48  ;;  %1251 = vperm.xlu1 %10195, %v1084_v31   ;;  %1246 = vperm.xlu0 %10194, %v1083_v32   ;;  %v1088_v48 = vld [vmem:[%s17936_s0 + $0x15a] sm:$0xff]  ;;  %v1087_v31 = vld [vmem:[%s17936_s0 + $0x152] sm:$0xff] }
 0x135   :  { %v11025_v56 = vpop.permute.xlu1 %754  ;;  %v11027_v15 = vpop.permute.xlu0 %749 }
 0x136   :  { %18069 = vst [vmem:[#allocation58_spill] sm:$0xff] %v11025_v56  ;;  %18070 = vst [vmem:[#allocation59_spill] sm:$0xff] %v11027_v15  ;;  %1261 = vperm.xlu1 %10195, %v1086_v16   ;;  %1256 = vperm.xlu0 %10194, %v1085_v0   ;;  %v1090_v15 = vld [vmem:[%s17936_s0 + $0x172] sm:$0xff]  ;;  %v1089_v16 = vld [vmem:[%s17936_s0 + $0x16a] sm:$0xff] }
 0x139   :  { %v11035_v32 = vpop.permute.xlu1 %764  ;;  %v11037_v47 = vpop.permute.xlu0 %759 }
 0x13a   :  { %18071 = vst [vmem:[#allocation60_spill] sm:$0xff] %v11035_v32  ;;  %18072 = vst [vmem:[#allocation61_spill] sm:$0xff] %v11037_v47  ;;  %1271 = vperm.xlu1 %10195, %v1088_v48   ;;  %1266 = vperm.xlu0 %10194, %v1087_v31   ;;  %v1092_v47 = vld [vmem:[%s17936_s0 + $0x1ba] sm:$0xff]  ;;  %v1091_v48 = vld [vmem:[%s17936_s0 + $0x1b2] sm:$0xff] }
 0x13d   :  { %v11045_v0 = vpop.permute.xlu1 %774  ;;  %v11047_v56 = vpop.permute.xlu0 %769 }
 0x13e   :  { %18073 = vst [vmem:[#allocation62_spill] sm:$0xff] %v11045_v0  ;;  %18074 = vst [vmem:[#allocation63_spill] sm:$0xff] %v11047_v56  ;;  %1281 = vperm.xlu1 %10195, %v1090_v15   ;;  %1276 = vperm.xlu0 %10194, %v1089_v16   ;;  %v1094_v56 = vld [vmem:[%s17936_s0 + $0x1d2] sm:$0xff]  ;;  %v1093_v15 = vld [vmem:[%s17936_s0 + $0x1ca] sm:$0xff] }
 0x141   :  { %v11055_v31 = vpop.permute.xlu1 %784  ;;  %v11057_v32 = vpop.permute.xlu0 %779 }
 0x142   :  { %18075 = vst [vmem:[#allocation64_spill] sm:$0xff] %v11055_v31  ;;  %18076 = vst [vmem:[#allocation65_spill] sm:$0xff] %v11057_v32  ;;  %1291 = vperm.xlu1 %10195, %v1092_v47   ;;  %1286 = vperm.xlu0 %10194, %v1091_v48   ;;  %v1096_v32 = vld [vmem:[%s17936_s0 + $0x1ea] sm:$0xff]  ;;  %v1095_v47 = vld [vmem:[%s17936_s0 + $0x1e2] sm:$0xff] }
 0x145   :  { %v11065_v16 = vpop.permute.xlu1 %794  ;;  %v11067_v0 = vpop.permute.xlu0 %789 }
 0x146   :  { %18077 = vst [vmem:[#allocation66_spill] sm:$0xff] %v11065_v16  ;;  %18078 = vst [vmem:[#allocation67_spill] sm:$0xff] %v11067_v0  ;;  %1301 = vperm.xlu1 %10195, %v1094_v56   ;;  %1296 = vperm.xlu0 %10194, %v1093_v15   ;;  %v1098_v0 = vld [vmem:[%s17936_s0 + $0x202] sm:$0xff]  ;;  %v1097_v56 = vld [vmem:[%s17936_s0 + $0x1fa] sm:$0xff] }
 0x149   :  { %v11075_v48 = vpop.permute.xlu1 %804  ;;  %v11077_v31 = vpop.permute.xlu0 %799 }
 0x14a   :  { %18079 = vst [vmem:[#allocation68_spill] sm:$0xff] %v11075_v48  ;;  %18080 = vst [vmem:[#allocation69_spill] sm:$0xff] %v11077_v31  ;;  %1311 = vperm.xlu1 %10195, %v1096_v32   ;;  %1306 = vperm.xlu0 %10194, %v1095_v47   ;;  %v1100_v31 = vld [vmem:[%s17936_s0 + $0x21a] sm:$0xff]  ;;  %v1099_v32 = vld [vmem:[%s17936_s0 + $0x212] sm:$0xff] }
 0x14d   :  { %v11085_v15 = vpop.permute.xlu1 %814  ;;  %v11087_v16 = vpop.permute.xlu0 %809 }
 0x14e   :  { %18081 = vst [vmem:[#allocation70_spill] sm:$0xff] %v11085_v15  ;;  %18082 = vst [vmem:[#allocation71_spill] sm:$0xff] %v11087_v16  ;;  %1321 = vperm.xlu1 %10195, %v1098_v0   ;;  %1316 = vperm.xlu0 %10194, %v1097_v56   ;;  %v1102_v16 = vld [vmem:[%s17936_s0 + $0x232] sm:$0xff]  ;;  %v1101_v0 = vld [vmem:[%s17936_s0 + $0x22a] sm:$0xff] }
 0x151   :  { %v11095_v47 = vpop.permute.xlu1 %824  ;;  %v11097_v48 = vpop.permute.xlu0 %819 }
 0x152   :  { %18083 = vst [vmem:[#allocation72_spill] sm:$0xff] %v11095_v47  ;;  %18084 = vst [vmem:[#allocation73_spill] sm:$0xff] %v11097_v48  ;;  %1331 = vperm.xlu1 %10195, %v1100_v31   ;;  %1326 = vperm.xlu0 %10194, %v1099_v32   ;;  %v1104_v48 = vld [vmem:[%s17936_s0 + $0x24a] sm:$0xff]  ;;  %v1103_v31 = vld [vmem:[%s17936_s0 + $0x242] sm:$0xff] }
 0x155   :  { %v11105_v56 = vpop.permute.xlu1 %834  ;;  %v11107_v15 = vpop.permute.xlu0 %829 }
 0x156   :  { %18085 = vst [vmem:[#allocation74_spill] sm:$0xff] %v11105_v56  ;;  %18086 = vst [vmem:[#allocation75_spill] sm:$0xff] %v11107_v15  ;;  %1341 = vperm.xlu1 %10195, %v1102_v16   ;;  %1336 = vperm.xlu0 %10194, %v1101_v0   ;;  %v1106_v15 = vld [vmem:[%s17936_s0 + $0x262] sm:$0xff]  ;;  %v1105_v16 = vld [vmem:[%s17936_s0 + $0x25a] sm:$0xff] }
 0x159   :  { %v11115_v32 = vpop.permute.xlu1 %844  ;;  %v11117_v47 = vpop.permute.xlu0 %839 }
 0x15a   :  { %18087 = vst [vmem:[#allocation76_spill] sm:$0xff] %v11115_v32  ;;  %18088 = vst [vmem:[#allocation77_spill] sm:$0xff] %v11117_v47  ;;  %1351 = vperm.xlu1 %10195, %v1104_v48   ;;  %1346 = vperm.xlu0 %10194, %v1103_v31   ;;  %v1108_v47 = vld [vmem:[%s17936_s0 + $0x27a] sm:$0xff]  ;;  %v1107_v48 = vld [vmem:[%s17936_s0 + $0x272] sm:$0xff] }
 0x15d   :  { %v11125_v0 = vpop.permute.xlu1 %854  ;;  %v11127_v56 = vpop.permute.xlu0 %849 }
 0x15e   :  { %18089 = vst [vmem:[#allocation78_spill] sm:$0xff] %v11125_v0  ;;  %18090 = vst [vmem:[#allocation79_spill] sm:$0xff] %v11127_v56  ;;  %1361 = vperm.xlu1 %10195, %v1106_v15   ;;  %1356 = vperm.xlu0 %10194, %v1105_v16   ;;  %v1110_v56 = vld [vmem:[%s17936_s0 + $0x292] sm:$0xff]  ;;  %v1109_v15 = vld [vmem:[%s17936_s0 + $0x28a] sm:$0xff] }
 0x161   :  { %v11135_v31 = vpop.permute.xlu1 %864  ;;  %v11137_v32 = vpop.permute.xlu0 %859 }
 0x162   :  { %18091 = vst [vmem:[#allocation80_spill] sm:$0xff] %v11135_v31  ;;  %18092 = vst [vmem:[#allocation81_spill] sm:$0xff] %v11137_v32  ;;  %1371 = vperm.xlu1 %10195, %v1108_v47   ;;  %1366 = vperm.xlu0 %10194, %v1107_v48   ;;  %v1112_v32 = vld [vmem:[%s17936_s0 + $0x2aa] sm:$0xff]  ;;  %v1111_v47 = vld [vmem:[%s17936_s0 + $0x2a2] sm:$0xff] }
 0x165   :  { %v11145_v16 = vpop.permute.xlu1 %874  ;;  %v11147_v0 = vpop.permute.xlu0 %869 }
 0x166   :  { %18093 = vst [vmem:[#allocation82_spill] sm:$0xff] %v11145_v16  ;;  %18094 = vst [vmem:[#allocation83_spill] sm:$0xff] %v11147_v0  ;;  %1381 = vperm.xlu1 %10195, %v1110_v56   ;;  %1376 = vperm.xlu0 %10194, %v1109_v15   ;;  %v1114_v0 = vld [vmem:[%s17936_s0 + $0x2c2] sm:$0xff]  ;;  %v1113_v56 = vld [vmem:[%s17936_s0 + $0x2ba] sm:$0xff] }
 0x169   :  { %v11155_v48 = vpop.permute.xlu1 %884  ;;  %v11157_v31 = vpop.permute.xlu0 %879 }
 0x16a   :  { %18095 = vst [vmem:[#allocation84_spill] sm:$0xff] %v11155_v48  ;;  %18096 = vst [vmem:[#allocation85_spill] sm:$0xff] %v11157_v31  ;;  %1391 = vperm.xlu1 %10195, %v1112_v32   ;;  %1386 = vperm.xlu0 %10194, %v1111_v47   ;;  %v1116_v31 = vld [vmem:[%s17936_s0 + $0x2da] sm:$0xff]  ;;  %v1115_v32 = vld [vmem:[%s17936_s0 + $0x2d2] sm:$0xff] }
 0x16d   :  { %v11165_v15 = vpop.permute.xlu1 %894  ;;  %v11167_v16 = vpop.permute.xlu0 %889 }
 0x16e   :  { %18097 = vst [vmem:[#allocation86_spill] sm:$0xff] %v11165_v15  ;;  %18098 = vst [vmem:[#allocation87_spill] sm:$0xff] %v11167_v16  ;;  %1401 = vperm.xlu1 %10195, %v1114_v0   ;;  %1396 = vperm.xlu0 %10194, %v1113_v56   ;;  %v1118_v16 = vld [vmem:[%s17936_s0 + $0x2f2] sm:$0xff]  ;;  %v1117_v0 = vld [vmem:[%s17936_s0 + $0x2ea] sm:$0xff] }
 0x171   :  { %v11175_v47 = vpop.permute.xlu1 %904  ;;  %v11177_v48 = vpop.permute.xlu0 %899 }
 0x172   :  { %18099 = vst [vmem:[#allocation88_spill] sm:$0xff] %v11175_v47  ;;  %18100 = vst [vmem:[#allocation89_spill] sm:$0xff] %v11177_v48  ;;  %1411 = vperm.xlu1 %10195, %v1116_v31   ;;  %1406 = vperm.xlu0 %10194, %v1115_v32   ;;  %v1120_v48 = vld [vmem:[%s17936_s0 + $0x30a] sm:$0xff]  ;;  %v1119_v31 = vld [vmem:[%s17936_s0 + $0x302] sm:$0xff] }
 0x175   :  { %v11185_v56 = vpop.permute.xlu1 %914  ;;  %v11187_v15 = vpop.permute.xlu0 %909 }
 0x176   :  { %18101 = vst [vmem:[#allocation90_spill] sm:$0xff] %v11185_v56  ;;  %18102 = vst [vmem:[#allocation91_spill] sm:$0xff] %v11187_v15  ;;  %1421 = vperm.xlu1 %10195, %v1118_v16   ;;  %1416 = vperm.xlu0 %10194, %v1117_v0   ;;  %v1122_v15 = vld [vmem:[%s17936_s0 + $0x322] sm:$0xff]  ;;  %v1121_v16 = vld [vmem:[%s17936_s0 + $0x31a] sm:$0xff] }
 0x179   :  { %v11195_v32 = vpop.permute.xlu1 %924  ;;  %v11197_v47 = vpop.permute.xlu0 %919 }
 0x17a   :  { %18103 = vst [vmem:[#allocation92_spill] sm:$0xff] %v11195_v32  ;;  %18104 = vst [vmem:[#allocation93_spill] sm:$0xff] %v11197_v47  ;;  %1431 = vperm.xlu1 %10195, %v1120_v48   ;;  %1426 = vperm.xlu0 %10194, %v1119_v31   ;;  %v9016_v47 = vld [vmem:[%s17936_s0 + $0x20] sm:$0xff]  ;;  %v9015_v48 = vld [vmem:[%s17936_s0 + $0x18] sm:$0xff] }
 0x17d   :  { %v11205_v0 = vpop.permute.xlu1 %1131  ;;  %v11207_v56 = vpop.permute.xlu0 %1126 }
 0x17e   :  { %18105 = vst [vmem:[#allocation94_spill] sm:$0xff] %v11205_v0  ;;  %18106 = vst [vmem:[#allocation95_spill] sm:$0xff] %v11207_v56  ;;  %1441 = vperm.xlu1 %10195, %v1122_v15   ;;  %1436 = vperm.xlu0 %10194, %v1121_v16   ;;  %v9018_v56 = vld [vmem:[%s17936_s0 + $0x38] sm:$0xff]  ;;  %v9017_v15 = vld [vmem:[%s17936_s0 + $0x30] sm:$0xff] }
 0x181   :  { %v11215_v31 = vpop.permute.xlu1 %1141  ;;  %v11217_v32 = vpop.permute.xlu0 %1136 }
 0x182   :  { %18107 = vst [vmem:[#allocation96_spill] sm:$0xff] %v11215_v31  ;;  %18108 = vst [vmem:[#allocation97_spill] sm:$0xff] %v11217_v32  ;;  %1649 = vperm.xlu1 %10195, %v9016_v47   ;;  %1644 = vperm.xlu0 %10194, %v9015_v48   ;;  %v9020_v32 = vld [vmem:[%s17936_s0 + $0x50] sm:$0xff]  ;;  %v9019_v47 = vld [vmem:[%s17936_s0 + $0x48] sm:$0xff] }
 0x185   :  { %v11225_v16 = vpop.permute.xlu1 %1151  ;;  %v11227_v0 = vpop.permute.xlu0 %1146 }
 0x186   :  { %18109 = vst [vmem:[#allocation98_spill] sm:$0xff] %v11225_v16  ;;  %18110 = vst [vmem:[#allocation99_spill] sm:$0xff] %v11227_v0  ;;  %1659 = vperm.xlu1 %10195, %v9018_v56   ;;  %1654 = vperm.xlu0 %10194, %v9017_v15   ;;  %v9022_v0 = vld [vmem:[%s17936_s0 + $0x68] sm:$0xff]  ;;  %v9021_v56 = vld [vmem:[%s17936_s0 + $0x60] sm:$0xff] }
 0x189   :  { %v11235_v48 = vpop.permute.xlu1 %1161  ;;  %v11237_v31 = vpop.permute.xlu0 %1156 }
 0x18a   :  { %18111 = vst [vmem:[#allocation100_spill] sm:$0xff] %v11235_v48  ;;  %18112 = vst [vmem:[#allocation101_spill] sm:$0xff] %v11237_v31  ;;  %1669 = vperm.xlu1 %10195, %v9020_v32   ;;  %1664 = vperm.xlu0 %10194, %v9019_v47   ;;  %v9024_v31 = vld [vmem:[%s17936_s0 + $0x80] sm:$0xff]  ;;  %v9023_v32 = vld [vmem:[%s17936_s0 + $0x78] sm:$0xff] }
 0x18d   :  { %v11245_v15 = vpop.permute.xlu1 %1171  ;;  %v11247_v16 = vpop.permute.xlu0 %1166 }
 0x18e   :  { %18113 = vst [vmem:[#allocation102_spill] sm:$0xff] %v11245_v15  ;;  %18114 = vst [vmem:[#allocation103_spill] sm:$0xff] %v11247_v16  ;;  %1679 = vperm.xlu1 %10195, %v9022_v0   ;;  %1674 = vperm.xlu0 %10194, %v9021_v56   ;;  %v9026_v16 = vld [vmem:[%s17936_s0 + $0x98] sm:$0xff]  ;;  %v9025_v0 = vld [vmem:[%s17936_s0 + $0x90] sm:$0xff] }
 0x191   :  { %v11255_v47 = vpop.permute.xlu1 %1181  ;;  %v11257_v48 = vpop.permute.xlu0 %1176 }
 0x192   :  { %18115 = vst [vmem:[#allocation104_spill] sm:$0xff] %v11255_v47  ;;  %18116 = vst [vmem:[#allocation105_spill] sm:$0xff] %v11257_v48  ;;  %1689 = vperm.xlu1 %10195, %v9024_v31   ;;  %1684 = vperm.xlu0 %10194, %v9023_v32   ;;  %v9028_v48 = vld [vmem:[%s17936_s0 + $0xb0] sm:$0xff]  ;;  %v9027_v31 = vld [vmem:[%s17936_s0 + $0xa8] sm:$0xff] }
 0x195   :  { %v11265_v56 = vpop.permute.xlu1 %1191  ;;  %v11267_v15 = vpop.permute.xlu0 %1186 }
 0x196   :  { %18117 = vst [vmem:[#allocation106_spill] sm:$0xff] %v11265_v56  ;;  %18118 = vst [vmem:[#allocation107_spill] sm:$0xff] %v11267_v15  ;;  %1699 = vperm.xlu1 %10195, %v9026_v16   ;;  %1694 = vperm.xlu0 %10194, %v9025_v0   ;;  %v9030_v15 = vld [vmem:[%s17936_s0 + $0xc8] sm:$0xff]  ;;  %v9029_v16 = vld [vmem:[%s17936_s0 + $0xc0] sm:$0xff] }
 0x199   :  { %v11275_v32 = vpop.permute.xlu1 %1201  ;;  %v11277_v47 = vpop.permute.xlu0 %1196 }
 0x19a   :  { %18119 = vst [vmem:[#allocation108_spill] sm:$0xff] %v11275_v32  ;;  %18120 = vst [vmem:[#allocation109_spill] sm:$0xff] %v11277_v47  ;;  %1709 = vperm.xlu1 %10195, %v9028_v48   ;;  %1704 = vperm.xlu0 %10194, %v9027_v31   ;;  %v9032_v47 = vld [vmem:[%s17936_s0 + $0xe0] sm:$0xff]  ;;  %v9031_v48 = vld [vmem:[%s17936_s0 + $0xd8] sm:$0xff] }
 0x19d   :  { %v11285_v0 = vpop.permute.xlu1 %1211  ;;  %v11287_v56 = vpop.permute.xlu0 %1206 }
 0x19e   :  { %18121 = vst [vmem:[#allocation110_spill] sm:$0xff] %v11285_v0  ;;  %18122 = vst [vmem:[#allocation111_spill] sm:$0xff] %v11287_v56  ;;  %1719 = vperm.xlu1 %10195, %v9030_v15   ;;  %1714 = vperm.xlu0 %10194, %v9029_v16   ;;  %v9034_v56 = vld [vmem:[%s17936_s0 + $0xf8] sm:$0xff]  ;;  %v9033_v15 = vld [vmem:[%s17936_s0 + $0xf0] sm:$0xff] }
 0x1a1   :  { %v11295_v31 = vpop.permute.xlu1 %1221  ;;  %v11297_v32 = vpop.permute.xlu0 %1216 }
 0x1a2   :  { %18123 = vst [vmem:[#allocation112_spill] sm:$0xff] %v11295_v31  ;;  %18124 = vst [vmem:[#allocation113_spill] sm:$0xff] %v11297_v32  ;;  %1729 = vperm.xlu1 %10195, %v9032_v47   ;;  %1724 = vperm.xlu0 %10194, %v9031_v48   ;;  %v9036_v32 = vld [vmem:[%s17936_s0 + $0x110] sm:$0xff]  ;;  %v9035_v47 = vld [vmem:[%s17936_s0 + $0x108] sm:$0xff] }
 0x1a5   :  { %v11305_v16 = vpop.permute.xlu1 %1231  ;;  %v11307_v0 = vpop.permute.xlu0 %1226 }
 0x1a6   :  { %18125 = vst [vmem:[#allocation114_spill] sm:$0xff] %v11305_v16  ;;  %18126 = vst [vmem:[#allocation115_spill] sm:$0xff] %v11307_v0  ;;  %1739 = vperm.xlu1 %10195, %v9034_v56   ;;  %1734 = vperm.xlu0 %10194, %v9033_v15   ;;  %v9038_v0 = vld [vmem:[%s17936_s0 + $0x128] sm:$0xff]  ;;  %v9037_v56 = vld [vmem:[%s17936_s0 + $0x120] sm:$0xff] }
 0x1a9   :  { %v11315_v48 = vpop.permute.xlu1 %1241  ;;  %v11317_v31 = vpop.permute.xlu0 %1236 }
 0x1aa   :  { %18127 = vst [vmem:[#allocation116_spill] sm:$0xff] %v11315_v48  ;;  %18128 = vst [vmem:[#allocation117_spill] sm:$0xff] %v11317_v31  ;;  %1749 = vperm.xlu1 %10195, %v9036_v32   ;;  %1744 = vperm.xlu0 %10194, %v9035_v47   ;;  %v9040_v31 = vld [vmem:[%s17936_s0 + $0x140] sm:$0xff]  ;;  %v9039_v32 = vld [vmem:[%s17936_s0 + $0x138] sm:$0xff] }
 0x1ad   :  { %v11325_v15 = vpop.permute.xlu1 %1251  ;;  %v11327_v16 = vpop.permute.xlu0 %1246 }
 0x1ae   :  { %18129 = vst [vmem:[#allocation118_spill] sm:$0xff] %v11325_v15  ;;  %18130 = vst [vmem:[#allocation119_spill] sm:$0xff] %v11327_v16  ;;  %1759 = vperm.xlu1 %10195, %v9038_v0   ;;  %1754 = vperm.xlu0 %10194, %v9037_v56   ;;  %v9042_v16 = vld [vmem:[%s17936_s0 + $0x158] sm:$0xff]  ;;  %v9041_v0 = vld [vmem:[%s17936_s0 + $0x150] sm:$0xff] }
 0x1b1   :  { %v11335_v47 = vpop.permute.xlu1 %1261  ;;  %v11337_v48 = vpop.permute.xlu0 %1256 }
 0x1b2   :  { %18131 = vst [vmem:[#allocation120_spill] sm:$0xff] %v11335_v47  ;;  %18132 = vst [vmem:[#allocation121_spill] sm:$0xff] %v11337_v48  ;;  %1769 = vperm.xlu1 %10195, %v9040_v31   ;;  %1764 = vperm.xlu0 %10194, %v9039_v32   ;;  %v9044_v48 = vld [vmem:[%s17936_s0 + $0x170] sm:$0xff]  ;;  %v9043_v31 = vld [vmem:[%s17936_s0 + $0x168] sm:$0xff] }
 0x1b5   :  { %v11345_v56 = vpop.permute.xlu1 %1271  ;;  %v11347_v15 = vpop.permute.xlu0 %1266 }
 0x1b6   :  { %18133 = vst [vmem:[#allocation122_spill] sm:$0xff] %v11345_v56  ;;  %18134 = vst [vmem:[#allocation123_spill] sm:$0xff] %v11347_v15  ;;  %1779 = vperm.xlu1 %10195, %v9042_v16   ;;  %1774 = vperm.xlu0 %10194, %v9041_v0   ;;  %v9046_v15 = vld [vmem:[%s17936_s0 + $0x188] sm:$0xff]  ;;  %v9045_v16 = vld [vmem:[%s17936_s0 + $0x180] sm:$0xff] }
 0x1b9   :  { %v11355_v32 = vpop.permute.xlu1 %1281  ;;  %v11357_v47 = vpop.permute.xlu0 %1276 }
 0x1ba   :  { %18135 = vst [vmem:[#allocation124_spill] sm:$0xff] %v11355_v32  ;;  %18136 = vst [vmem:[#allocation125_spill] sm:$0xff] %v11357_v47  ;;  %1789 = vperm.xlu1 %10195, %v9044_v48   ;;  %1784 = vperm.xlu0 %10194, %v9043_v31   ;;  %v9048_v47 = vld [vmem:[%s17936_s0 + $0x1d0] sm:$0xff]  ;;  %v9047_v48 = vld [vmem:[%s17936_s0 + $0x1c8] sm:$0xff] }
 0x1bd   :  { %v11365_v0 = vpop.permute.xlu1 %1291  ;;  %v11367_v56 = vpop.permute.xlu0 %1286 }
 0x1be   :  { %18137 = vst [vmem:[#allocation126_spill] sm:$0xff] %v11365_v0  ;;  %18138 = vst [vmem:[#allocation127_spill] sm:$0xff] %v11367_v56  ;;  %1799 = vperm.xlu1 %10195, %v9046_v15   ;;  %1794 = vperm.xlu0 %10194, %v9045_v16   ;;  %v9050_v56 = vld [vmem:[%s17936_s0 + $0x1e8] sm:$0xff]  ;;  %v9049_v15 = vld [vmem:[%s17936_s0 + $0x1e0] sm:$0xff] }
 0x1c1   :  { %v11375_v31 = vpop.permute.xlu1 %1301  ;;  %v11377_v32 = vpop.permute.xlu0 %1296 }
 0x1c2   :  { %18139 = vst [vmem:[#allocation128_spill] sm:$0xff] %v11375_v31  ;;  %18140 = vst [vmem:[#allocation129_spill] sm:$0xff] %v11377_v32  ;;  %1809 = vperm.xlu1 %10195, %v9048_v47   ;;  %1804 = vperm.xlu0 %10194, %v9047_v48   ;;  %v9052_v32 = vld [vmem:[%s17936_s0 + $0x200] sm:$0xff]  ;;  %v9051_v47 = vld [vmem:[%s17936_s0 + $0x1f8] sm:$0xff] }
 0x1c5   :  { %v11385_v16 = vpop.permute.xlu1 %1311  ;;  %v11387_v0 = vpop.permute.xlu0 %1306 }
 0x1c6   :  { %18141 = vst [vmem:[#allocation130_spill] sm:$0xff] %v11385_v16  ;;  %18142 = vst [vmem:[#allocation131_spill] sm:$0xff] %v11387_v0  ;;  %1819 = vperm.xlu1 %10195, %v9050_v56   ;;  %1814 = vperm.xlu0 %10194, %v9049_v15   ;;  %v9054_v0 = vld [vmem:[%s17936_s0 + $0x218] sm:$0xff]  ;;  %v9053_v56 = vld [vmem:[%s17936_s0 + $0x210] sm:$0xff] }
 0x1c9   :  { %v11395_v48 = vpop.permute.xlu1 %1321  ;;  %v11397_v31 = vpop.permute.xlu0 %1316 }
 0x1ca   :  { %18143 = vst [vmem:[#allocation132_spill] sm:$0xff] %v11395_v48  ;;  %18144 = vst [vmem:[#allocation133_spill] sm:$0xff] %v11397_v31  ;;  %1829 = vperm.xlu1 %10195, %v9052_v32   ;;  %1824 = vperm.xlu0 %10194, %v9051_v47   ;;  %v9056_v31 = vld [vmem:[%s17936_s0 + $0x230] sm:$0xff]  ;;  %v9055_v32 = vld [vmem:[%s17936_s0 + $0x228] sm:$0xff] }
 0x1cd   :  { %v11405_v15 = vpop.permute.xlu1 %1331  ;;  %v11407_v16 = vpop.permute.xlu0 %1326 }
 0x1ce   :  { %18145 = vst [vmem:[#allocation134_spill] sm:$0xff] %v11405_v15  ;;  %18146 = vst [vmem:[#allocation135_spill] sm:$0xff] %v11407_v16  ;;  %1839 = vperm.xlu1 %10195, %v9054_v0   ;;  %1834 = vperm.xlu0 %10194, %v9053_v56   ;;  %v9058_v16 = vld [vmem:[%s17936_s0 + $0x248] sm:$0xff]  ;;  %v9057_v0 = vld [vmem:[%s17936_s0 + $0x240] sm:$0xff] }
 0x1d1   :  { %v11415_v47 = vpop.permute.xlu1 %1341  ;;  %v11417_v48 = vpop.permute.xlu0 %1336 }
 0x1d2   :  { %18147 = vst [vmem:[#allocation136_spill] sm:$0xff] %v11415_v47  ;;  %18148 = vst [vmem:[#allocation137_spill] sm:$0xff] %v11417_v48  ;;  %1849 = vperm.xlu1 %10195, %v9056_v31   ;;  %1844 = vperm.xlu0 %10194, %v9055_v32   ;;  %v9060_v48 = vld [vmem:[%s17936_s0 + $0x260] sm:$0xff]  ;;  %v9059_v31 = vld [vmem:[%s17936_s0 + $0x258] sm:$0xff] }
 0x1d5   :  { %v11425_v56 = vpop.permute.xlu1 %1351  ;;  %v11427_v15 = vpop.permute.xlu0 %1346 }
 0x1d6   :  { %18149 = vst [vmem:[#allocation138_spill] sm:$0xff] %v11425_v56  ;;  %18150 = vst [vmem:[#allocation139_spill] sm:$0xff] %v11427_v15  ;;  %1859 = vperm.xlu1 %10195, %v9058_v16   ;;  %1854 = vperm.xlu0 %10194, %v9057_v0   ;;  %v9062_v15 = vld [vmem:[%s17936_s0 + $0x278] sm:$0xff]  ;;  %v9061_v16 = vld [vmem:[%s17936_s0 + $0x270] sm:$0xff] }
 0x1d9   :  { %v11435_v32 = vpop.permute.xlu1 %1361  ;;  %v11437_v47 = vpop.permute.xlu0 %1356 }
 0x1da   :  { %18151 = vst [vmem:[#allocation140_spill] sm:$0xff] %v11435_v32  ;;  %18152 = vst [vmem:[#allocation141_spill] sm:$0xff] %v11437_v47  ;;  %1869 = vperm.xlu1 %10195, %v9060_v48   ;;  %1864 = vperm.xlu0 %10194, %v9059_v31   ;;  %v9064_v47 = vld [vmem:[%s17936_s0 + $0x290] sm:$0xff]  ;;  %v9063_v48 = vld [vmem:[%s17936_s0 + $0x288] sm:$0xff] }
 0x1dd   :  { %v11445_v0 = vpop.permute.xlu1 %1371  ;;  %v11447_v56 = vpop.permute.xlu0 %1366 }
 0x1de   :  { %18153 = vst [vmem:[#allocation142_spill] sm:$0xff] %v11445_v0  ;;  %18154 = vst [vmem:[#allocation143_spill] sm:$0xff] %v11447_v56  ;;  %1879 = vperm.xlu1 %10195, %v9062_v15   ;;  %1874 = vperm.xlu0 %10194, %v9061_v16   ;;  %v9066_v56 = vld [vmem:[%s17936_s0 + $0x2a8] sm:$0xff]  ;;  %v9065_v15 = vld [vmem:[%s17936_s0 + $0x2a0] sm:$0xff] }
 0x1e1   :  { %v11455_v31 = vpop.permute.xlu1 %1381  ;;  %v11457_v32 = vpop.permute.xlu0 %1376 }
 0x1e2   :  { %18155 = vst [vmem:[#allocation144_spill] sm:$0xff] %v11455_v31  ;;  %18156 = vst [vmem:[#allocation145_spill] sm:$0xff] %v11457_v32  ;;  %1889 = vperm.xlu1 %10195, %v9064_v47   ;;  %1884 = vperm.xlu0 %10194, %v9063_v48   ;;  %v9068_v32 = vld [vmem:[%s17936_s0 + $0x2c0] sm:$0xff]  ;;  %v9067_v47 = vld [vmem:[%s17936_s0 + $0x2b8] sm:$0xff] }
 0x1e5   :  { %v11465_v16 = vpop.permute.xlu1 %1391  ;;  %v11467_v0 = vpop.permute.xlu0 %1386 }
 0x1e6   :  { %18157 = vst [vmem:[#allocation146_spill] sm:$0xff] %v11465_v16  ;;  %18158 = vst [vmem:[#allocation147_spill] sm:$0xff] %v11467_v0  ;;  %1899 = vperm.xlu1 %10195, %v9066_v56   ;;  %1894 = vperm.xlu0 %10194, %v9065_v15   ;;  %v9070_v0 = vld [vmem:[%s17936_s0 + $0x2d8] sm:$0xff]  ;;  %v9069_v56 = vld [vmem:[%s17936_s0 + $0x2d0] sm:$0xff] }
 0x1e9   :  { %v11475_v48 = vpop.permute.xlu1 %1401  ;;  %v11477_v31 = vpop.permute.xlu0 %1396 }
 0x1ea   :  { %18159 = vst [vmem:[#allocation148_spill] sm:$0xff] %v11475_v48  ;;  %18160 = vst [vmem:[#allocation149_spill] sm:$0xff] %v11477_v31  ;;  %1909 = vperm.xlu1 %10195, %v9068_v32   ;;  %1904 = vperm.xlu0 %10194, %v9067_v47   ;;  %v9072_v31 = vld [vmem:[%s17936_s0 + $0x2f0] sm:$0xff]  ;;  %v9071_v32 = vld [vmem:[%s17936_s0 + $0x2e8] sm:$0xff] }
 0x1ed   :  { %v11485_v15 = vpop.permute.xlu1 %1411  ;;  %v11487_v16 = vpop.permute.xlu0 %1406 }
 0x1ee   :  { %18161 = vst [vmem:[#allocation150_spill] sm:$0xff] %v11485_v15  ;;  %18162 = vst [vmem:[#allocation151_spill] sm:$0xff] %v11487_v16  ;;  %1919 = vperm.xlu1 %10195, %v9070_v0   ;;  %1914 = vperm.xlu0 %10194, %v9069_v56   ;;  %v9074_v16 = vld [vmem:[%s17936_s0 + $0x308] sm:$0xff]  ;;  %v9073_v0 = vld [vmem:[%s17936_s0 + $0x300] sm:$0xff] }
 0x1f1   :  { %v11495_v47 = vpop.permute.xlu1 %1421  ;;  %v11497_v48 = vpop.permute.xlu0 %1416 }
 0x1f2   :  { %18163 = vst [vmem:[#allocation152_spill] sm:$0xff] %v11495_v47  ;;  %18164 = vst [vmem:[#allocation153_spill] sm:$0xff] %v11497_v48  ;;  %1929 = vperm.xlu1 %10195, %v9072_v31   ;;  %1924 = vperm.xlu0 %10194, %v9071_v32   ;;  %v9076_v48 = vld [vmem:[%s17936_s0 + $0x320] sm:$0xff]  ;;  %v9075_v31 = vld [vmem:[%s17936_s0 + $0x318] sm:$0xff] }
 0x1f5   :  { %v11505_v56 = vpop.permute.xlu1 %1431  ;;  %v11507_v15 = vpop.permute.xlu0 %1426 }
 0x1f6   :  { %18165 = vst [vmem:[#allocation154_spill] sm:$0xff] %v11505_v56  ;;  %18166 = vst [vmem:[#allocation155_spill] sm:$0xff] %v11507_v15  ;;  %1939 = vperm.xlu1 %10195, %v9074_v16   ;;  %1934 = vperm.xlu0 %10194, %v9073_v0   ;;  %v9078_v15 = vld [vmem:[%s17936_s0 + $0x338] sm:$0xff]  ;;  %v9077_v16 = vld [vmem:[%s17936_s0 + $0x330] sm:$0xff] }
 0x1f9   :  { %v11515_v32 = vpop.permute.xlu1 %1441  ;;  %v11517_v47 = vpop.permute.xlu0 %1436 }
 0x1fa   :  { %18167 = vst [vmem:[#allocation156_spill] sm:$0xff] %v11515_v32  ;;  %18168 = vst [vmem:[#allocation157_spill] sm:$0xff] %v11517_v47  ;;  %1949 = vperm.xlu1 %10195, %v9076_v48   ;;  %1944 = vperm.xlu0 %10194, %v9075_v31   ;;  %v9081_v47 = vld [vmem:[%s17936_s0 + $0x21] sm:$0xff]  ;;  %v9080_v48 = vld [vmem:[%s17936_s0 + $0x19] sm:$0xff] }
 0x1fd   :  { %v11525_v0 = vpop.permute.xlu1 %1649  ;;  %v11527_v56 = vpop.permute.xlu0 %1644 }
 0x1fe   :  { %18169 = vst [vmem:[#allocation158_spill] sm:$0xff] %v11525_v0  ;;  %18170 = vst [vmem:[#allocation159_spill] sm:$0xff] %v11527_v56  ;;  %1959 = vperm.xlu1 %10195, %v9078_v15   ;;  %1954 = vperm.xlu0 %10194, %v9077_v16   ;;  %v11542_v56 = vld [vmem:[%s17936_s0 + $0x39] sm:$0xff]  ;;  %v11547_v15 = vld [vmem:[%s17936_s0 + $0x31] sm:$0xff] }
 0x201   :  { %v11535_v31 = vpop.permute.xlu1 %1659  ;;  %v11537_v32 = vpop.permute.xlu0 %1654 }
 0x202   :  { %18171 = vst [vmem:[#allocation160_spill] sm:$0xff] %v11535_v31  ;;  %18172 = vst [vmem:[#allocation161_spill] sm:$0xff] %v11537_v32  ;;  %2166 = vperm.xlu1 %10195, %v9081_v47   ;;  %2161 = vperm.xlu0 %10194, %v9080_v48   ;;  %v11558_v47 = vld [vmem:[%s17936_s0 + $0x51] sm:$0xff]  ;;  %v11563_v48 = vld [vmem:[%s17936_s0 + $0x49] sm:$0xff] }
 0x205   :  { %v11549_v16 = vpop.permute.xlu1 %1669  ;;  %v11551_v0 = vpop.permute.xlu0 %1664 }
 0x206   :  { %18173 = vst [vmem:[#allocation162_spill] sm:$0xff] %v11549_v16  ;;  %18174 = vst [vmem:[#allocation163_spill] sm:$0xff] %v11551_v0  ;;  %2176 = vperm.xlu1 %10195, %v11542_v56   ;;  %2171 = vperm.xlu0 %10194, %v11547_v15   ;;  %v11574_v0 = vld [vmem:[%s17936_s0 + $0x69] sm:$0xff]  ;;  %v11579_v16 = vld [vmem:[%s17936_s0 + $0x61] sm:$0xff] }
 0x209   :  { %v11565_v32 = vpop.permute.xlu1 %1679  ;;  %v11567_v31 = vpop.permute.xlu0 %1674 }
 0x20a   :  { %18175 = vst [vmem:[#allocation164_spill] sm:$0xff] %v11565_v32  ;;  %18176 = vst [vmem:[#allocation165_spill] sm:$0xff] %v11567_v31  ;;  %2186 = vperm.xlu1 %10195, %v11558_v47   ;;  %2181 = vperm.xlu0 %10194, %v11563_v48   ;;  %v11590_v31 = vld [vmem:[%s17936_s0 + $0x81] sm:$0xff]  ;;  %v11595_v32 = vld [vmem:[%s17936_s0 + $0x79] sm:$0xff] }
 0x20d   :  { %v11581_v55 = vpop.permute.xlu1 %1689  ;;  %v11583_v63 = vpop.permute.xlu0 %1684 }
 0x20e   :  { %18177 = vst [vmem:[#allocation166_spill] sm:$0xff] %v11581_v55  ;;  %18178 = vst [vmem:[#allocation167_spill] sm:$0xff] %v11583_v63  ;;  %2196 = vperm.xlu1 %10195, %v11574_v0   ;;  %2191 = vperm.xlu0 %10194, %v11579_v16   ;;  %v11606_v63 = vld [vmem:[%s17936_s0 + $0x99] sm:$0xff]  ;;  %v11611_v55 = vld [vmem:[%s17936_s0 + $0x91] sm:$0xff] }
 0x211   :  { %v11597_v40 = vpop.permute.xlu1 %1699  ;;  %v11599_v39 = vpop.permute.xlu0 %1694 }
 0x212   :  { %18179 = vst [vmem:[#allocation168_spill] sm:$0xff] %v11597_v40  ;;  %18180 = vst [vmem:[#allocation169_spill] sm:$0xff] %v11599_v39  ;;  %2206 = vperm.xlu1 %10195, %v11590_v31   ;;  %2201 = vperm.xlu0 %10194, %v11595_v32   ;;  %v11622_v39 = vld [vmem:[%s17936_s0 + $0xb1] sm:$0xff]  ;;  %v11627_v40 = vld [vmem:[%s17936_s0 + $0xa9] sm:$0xff] }
 0x215   :  { %v11613_v24 = vpop.permute.xlu1 %1709  ;;  %v11615_v23 = vpop.permute.xlu0 %1704 }
 0x216   :  { %18181 = vst [vmem:[#allocation170_spill] sm:$0xff] %v11613_v24  ;;  %18182 = vst [vmem:[#allocation171_spill] sm:$0xff] %v11615_v23  ;;  %2216 = vperm.xlu1 %10195, %v11606_v63   ;;  %2211 = vperm.xlu0 %10194, %v11611_v55   ;;  %v9095_v23 = vld [vmem:[%s17936_s0 + $0xc9] sm:$0xff]  ;;  %v11641_v24 = vld [vmem:[%s17936_s0 + $0xc1] sm:$0xff] }
 0x219   :  { %v11629_v8 = vpop.permute.xlu1 %1719  ;;  %v11631_v7 = vpop.permute.xlu0 %1714 }
 0x21a   :  { %18183 = vst [vmem:[#allocation172_spill] sm:$0xff] %v11629_v8  ;;  %18184 = vst [vmem:[#allocation173_spill] sm:$0xff] %v11631_v7  ;;  %2226 = vperm.xlu1 %10195, %v11622_v39   ;;  %2221 = vperm.xlu0 %10194, %v11627_v40   ;;  %v9097_v7 = vld [vmem:[%s17936_s0 + $0xe1] sm:$0xff]  ;;  %v9096_v8 = vld [vmem:[%s17936_s0 + $0xd9] sm:$0xff] }
 0x21d   :  { %v11643_v60 = vpop.permute.xlu1 %1729  ;;  %v11645_v59 = vpop.permute.xlu0 %1724 }
 0x21e   :  { %18185 = vst [vmem:[#allocation174_spill] sm:$0xff] %v11643_v60  ;;  %18186 = vst [vmem:[#allocation175_spill] sm:$0xff] %v11645_v59  ;;  %2236 = vperm.xlu1 %10195, %v9095_v23   ;;  %2231 = vperm.xlu0 %10194, %v11641_v24   ;;  %v9099_v23 = vld [vmem:[%s17936_s0 + $0xf9] sm:$0xff]  ;;  %v9098_v59 = vld [vmem:[%s17936_s0 + $0xf1] sm:$0xff] }
 0x221   :  { %v11654_v52 = vpop.permute.xlu1 %1739  ;;  %v11656_v51 = vpop.permute.xlu0 %1734 }
 0x222   :  { %18187 = vst [vmem:[#allocation176_spill] sm:$0xff] %v11654_v52  ;;  %18188 = vst [vmem:[#allocation177_spill] sm:$0xff] %v11656_v51  ;;  %2246 = vperm.xlu1 %10195, %v9097_v7   ;;  %2241 = vperm.xlu0 %10194, %v9096_v8   ;;  %v9101_v51 = vld [vmem:[%s17936_s0 + $0x111] sm:$0xff]  ;;  %v9100_v7 = vld [vmem:[%s17936_s0 + $0x109] sm:$0xff] }
 0x225   :  { %v11664_v60 = vpop.permute.xlu1 %1749  ;;  %v11666_v44 = vpop.permute.xlu0 %1744 }
 0x226   :  { %18189 = vst [vmem:[#allocation178_spill] sm:$0xff] %v11664_v60  ;;  %18190 = vst [vmem:[#allocation179_spill] sm:$0xff] %v11666_v44  ;;  %2256 = vperm.xlu1 %10195, %v9099_v23   ;;  %2251 = vperm.xlu0 %10194, %v9098_v59   ;;  %v9103_v44 = vld [vmem:[%s17936_s0 + $0x129] sm:$0xff]  ;;  %v9102_v59 = vld [vmem:[%s17936_s0 + $0x121] sm:$0xff] }
 0x229   :  { %v11674_v8 = vpop.permute.xlu1 %1759  ;;  %v11676_v52 = vpop.permute.xlu0 %1754 }
 0x22a   :  { %18191 = vst [vmem:[#allocation180_spill] sm:$0xff] %v11674_v8  ;;  %18192 = vst [vmem:[#allocation181_spill] sm:$0xff] %v11676_v52  ;;  %2266 = vperm.xlu1 %10195, %v9101_v51   ;;  %2261 = vperm.xlu0 %10194, %v9100_v7   ;;  %v9105_v52 = vld [vmem:[%s17936_s0 + $0x141] sm:$0xff]  ;;  %v9104_v51 = vld [vmem:[%s17936_s0 + $0x139] sm:$0xff] }
 0x22d   :  { %v11684_v23 = vpop.permute.xlu1 %1769  ;;  %v11686_v60 = vpop.permute.xlu0 %1764 }
 0x22e   :  { %18193 = vst [vmem:[#allocation182_spill] sm:$0xff] %v11684_v23  ;;  %18194 = vst [vmem:[#allocation183_spill] sm:$0xff] %v11686_v60  ;;  %2276 = vperm.xlu1 %10195, %v9103_v44   ;;  %2271 = vperm.xlu0 %10194, %v9102_v59   ;;  %v9107_v60 = vld [vmem:[%s17936_s0 + $0x159] sm:$0xff]  ;;  %v9106_v44 = vld [vmem:[%s17936_s0 + $0x151] sm:$0xff] }
 0x231   :  { %v11694_v7 = vpop.permute.xlu1 %1779  ;;  %v11696_v8 = vpop.permute.xlu0 %1774 }
 0x232   :  { %18195 = vst [vmem:[#allocation184_spill] sm:$0xff] %v11694_v7  ;;  %18196 = vst [vmem:[#allocation185_spill] sm:$0xff] %v11696_v8  ;;  %2286 = vperm.xlu1 %10195, %v9105_v52   ;;  %2281 = vperm.xlu0 %10194, %v9104_v51   ;;  %v9109_v8 = vld [vmem:[%s17936_s0 + $0x171] sm:$0xff]  ;;  %v9108_v52 = vld [vmem:[%s17936_s0 + $0x169] sm:$0xff] }
 0x235   :  { %v11704_v59 = vpop.permute.xlu1 %1789  ;;  %v11706_v23 = vpop.permute.xlu0 %1784 }
 0x236   :  { %18197 = vst [vmem:[#allocation186_spill] sm:$0xff] %v11704_v59  ;;  %18198 = vst [vmem:[#allocation187_spill] sm:$0xff] %v11706_v23  ;;  %2296 = vperm.xlu1 %10195, %v9107_v60   ;;  %2291 = vperm.xlu0 %10194, %v9106_v44   ;;  %v9111_v23 = vld [vmem:[%s17936_s0 + $0x189] sm:$0xff]  ;;  %v9110_v60 = vld [vmem:[%s17936_s0 + $0x181] sm:$0xff] }
 0x239   :  { %v11714_v51 = vpop.permute.xlu1 %1799  ;;  %v11716_v7 = vpop.permute.xlu0 %1794 }
 0x23a   :  { %18199 = vst [vmem:[#allocation188_spill] sm:$0xff] %v11714_v51  ;;  %18200 = vst [vmem:[#allocation189_spill] sm:$0xff] %v11716_v7  ;;  %2306 = vperm.xlu1 %10195, %v9109_v8   ;;  %2301 = vperm.xlu0 %10194, %v9108_v52   ;;  %v9113_v7 = vld [vmem:[%s17936_s0 + $0x1d1] sm:$0xff]  ;;  %v9112_v8 = vld [vmem:[%s17936_s0 + $0x1c9] sm:$0xff] }
 0x23d   :  { %v11724_v44 = vpop.permute.xlu1 %1809  ;;  %v11726_v59 = vpop.permute.xlu0 %1804 }
 0x23e   :  { %18201 = vst [vmem:[#allocation190_spill] sm:$0xff] %v11724_v44  ;;  %18202 = vst [vmem:[#allocation191_spill] sm:$0xff] %v11726_v59  ;;  %2316 = vperm.xlu1 %10195, %v9111_v23   ;;  %2311 = vperm.xlu0 %10194, %v9110_v60   ;;  %v9115_v59 = vld [vmem:[%s17936_s0 + $0x1e9] sm:$0xff]  ;;  %v9114_v23 = vld [vmem:[%s17936_s0 + $0x1e1] sm:$0xff] }
 0x241   :  { %v11734_v52 = vpop.permute.xlu1 %1819  ;;  %v11736_v51 = vpop.permute.xlu0 %1814 }
 0x242   :  { %18203 = vst [vmem:[#allocation192_spill] sm:$0xff] %v11734_v52  ;;  %18204 = vst [vmem:[#allocation193_spill] sm:$0xff] %v11736_v51  ;;  %2326 = vperm.xlu1 %10195, %v9113_v7   ;;  %2321 = vperm.xlu0 %10194, %v9112_v8   ;;  %v9117_v51 = vld [vmem:[%s17936_s0 + $0x201] sm:$0xff]  ;;  %v9116_v7 = vld [vmem:[%s17936_s0 + $0x1f9] sm:$0xff] }
 0x245   :  { %v11744_v60 = vpop.permute.xlu1 %1829  ;;  %v11746_v44 = vpop.permute.xlu0 %1824 }
 0x246   :  { %18205 = vst [vmem:[#allocation194_spill] sm:$0xff] %v11744_v60  ;;  %18206 = vst [vmem:[#allocation195_spill] sm:$0xff] %v11746_v44  ;;  %2336 = vperm.xlu1 %10195, %v9115_v59   ;;  %2331 = vperm.xlu0 %10194, %v9114_v23   ;;  %v9119_v44 = vld [vmem:[%s17936_s0 + $0x219] sm:$0xff]  ;;  %v9118_v59 = vld [vmem:[%s17936_s0 + $0x211] sm:$0xff] }
 0x249   :  { %v11754_v8 = vpop.permute.xlu1 %1839  ;;  %v11756_v52 = vpop.permute.xlu0 %1834 }
 0x24a   :  { %18207 = vst [vmem:[#allocation196_spill] sm:$0xff] %v11754_v8  ;;  %18208 = vst [vmem:[#allocation197_spill] sm:$0xff] %v11756_v52  ;;  %2346 = vperm.xlu1 %10195, %v9117_v51   ;;  %2341 = vperm.xlu0 %10194, %v9116_v7   ;;  %v9121_v52 = vld [vmem:[%s17936_s0 + $0x231] sm:$0xff]  ;;  %v9120_v51 = vld [vmem:[%s17936_s0 + $0x229] sm:$0xff] }
 0x24d   :  { %v11764_v23 = vpop.permute.xlu1 %1849  ;;  %v11766_v60 = vpop.permute.xlu0 %1844 }
 0x24e   :  { %18209 = vst [vmem:[#allocation198_spill] sm:$0xff] %v11764_v23  ;;  %18210 = vst [vmem:[#allocation199_spill] sm:$0xff] %v11766_v60  ;;  %2356 = vperm.xlu1 %10195, %v9119_v44   ;;  %2351 = vperm.xlu0 %10194, %v9118_v59   ;;  %v9123_v60 = vld [vmem:[%s17936_s0 + $0x249] sm:$0xff]  ;;  %v9122_v44 = vld [vmem:[%s17936_s0 + $0x241] sm:$0xff] }
 0x251   :  { %v11774_v7 = vpop.permute.xlu1 %1859  ;;  %v11776_v8 = vpop.permute.xlu0 %1854 }
 0x252   :  { %18211 = vst [vmem:[#allocation200_spill] sm:$0xff] %v11774_v7  ;;  %18212 = vst [vmem:[#allocation201_spill] sm:$0xff] %v11776_v8  ;;  %2366 = vperm.xlu1 %10195, %v9121_v52   ;;  %2361 = vperm.xlu0 %10194, %v9120_v51   ;;  %v9125_v8 = vld [vmem:[%s17936_s0 + $0x261] sm:$0xff]  ;;  %v9124_v52 = vld [vmem:[%s17936_s0 + $0x259] sm:$0xff] }
 0x255   :  { %v11784_v59 = vpop.permute.xlu1 %1869  ;;  %v11786_v23 = vpop.permute.xlu0 %1864 }
 0x256   :  { %18213 = vst [vmem:[#allocation202_spill] sm:$0xff] %v11784_v59  ;;  %18214 = vst [vmem:[#allocation203_spill] sm:$0xff] %v11786_v23  ;;  %2376 = vperm.xlu1 %10195, %v9123_v60   ;;  %2371 = vperm.xlu0 %10194, %v9122_v44   ;;  %v9127_v23 = vld [vmem:[%s17936_s0 + $0x279] sm:$0xff]  ;;  %v9126_v60 = vld [vmem:[%s17936_s0 + $0x271] sm:$0xff] }
 0x259   :  { %v11794_v51 = vpop.permute.xlu1 %1879  ;;  %v11796_v7 = vpop.permute.xlu0 %1874 }
 0x25a   :  { %18215 = vst [vmem:[#allocation204_spill] sm:$0xff] %v11794_v51  ;;  %18216 = vst [vmem:[#allocation205_spill] sm:$0xff] %v11796_v7  ;;  %2386 = vperm.xlu1 %10195, %v9125_v8   ;;  %2381 = vperm.xlu0 %10194, %v9124_v52   ;;  %v9129_v7 = vld [vmem:[%s17936_s0 + $0x291] sm:$0xff]  ;;  %v9128_v8 = vld [vmem:[%s17936_s0 + $0x289] sm:$0xff] }
 0x25d   :  { %v11804_v44 = vpop.permute.xlu1 %1889  ;;  %v11806_v59 = vpop.permute.xlu0 %1884 }
 0x25e   :  { %18217 = vst [vmem:[#allocation206_spill] sm:$0xff] %v11804_v44  ;;  %18218 = vst [vmem:[#allocation207_spill] sm:$0xff] %v11806_v59  ;;  %2396 = vperm.xlu1 %10195, %v9127_v23   ;;  %2391 = vperm.xlu0 %10194, %v9126_v60   ;;  %v9131_v59 = vld [vmem:[%s17936_s0 + $0x2a9] sm:$0xff]  ;;  %v9130_v23 = vld [vmem:[%s17936_s0 + $0x2a1] sm:$0xff] }
 0x261   :  { %v11814_v52 = vpop.permute.xlu1 %1899  ;;  %v11816_v51 = vpop.permute.xlu0 %1894 }
 0x262   :  { %18219 = vst [vmem:[#allocation208_spill] sm:$0xff] %v11814_v52  ;;  %18220 = vst [vmem:[#allocation209_spill] sm:$0xff] %v11816_v51  ;;  %2406 = vperm.xlu1 %10195, %v9129_v7   ;;  %2401 = vperm.xlu0 %10194, %v9128_v8   ;;  %v9133_v51 = vld [vmem:[%s17936_s0 + $0x2c1] sm:$0xff]  ;;  %v9132_v7 = vld [vmem:[%s17936_s0 + $0x2b9] sm:$0xff] }
 0x265   :  { %v11824_v60 = vpop.permute.xlu1 %1909  ;;  %v11826_v44 = vpop.permute.xlu0 %1904 }
 0x266   :  { %18221 = vst [vmem:[#allocation210_spill] sm:$0xff] %v11824_v60  ;;  %18222 = vst [vmem:[#allocation211_spill] sm:$0xff] %v11826_v44  ;;  %2416 = vperm.xlu1 %10195, %v9131_v59   ;;  %2411 = vperm.xlu0 %10194, %v9130_v23   ;;  %v9135_v44 = vld [vmem:[%s17936_s0 + $0x2d9] sm:$0xff]  ;;  %v9134_v59 = vld [vmem:[%s17936_s0 + $0x2d1] sm:$0xff] }
 0x269   :  { %v11834_v8 = vpop.permute.xlu1 %1919  ;;  %v11836_v52 = vpop.permute.xlu0 %1914 }
 0x26a   :  { %18223 = vst [vmem:[#allocation212_spill] sm:$0xff] %v11834_v8  ;;  %18224 = vst [vmem:[#allocation213_spill] sm:$0xff] %v11836_v52  ;;  %2426 = vperm.xlu1 %10195, %v9133_v51   ;;  %2421 = vperm.xlu0 %10194, %v9132_v7   ;;  %v9137_v52 = vld [vmem:[%s17936_s0 + $0x2f1] sm:$0xff]  ;;  %v9136_v51 = vld [vmem:[%s17936_s0 + $0x2e9] sm:$0xff] }
 0x26d   :  { %v11844_v23 = vpop.permute.xlu1 %1929  ;;  %v11846_v60 = vpop.permute.xlu0 %1924 }
 0x26e   :  { %18225 = vst [vmem:[#allocation214_spill] sm:$0xff] %v11844_v23  ;;  %18226 = vst [vmem:[#allocation215_spill] sm:$0xff] %v11846_v60  ;;  %2436 = vperm.xlu1 %10195, %v9135_v44   ;;  %2431 = vperm.xlu0 %10194, %v9134_v59   ;;  %v9139_v60 = vld [vmem:[%s17936_s0 + $0x309] sm:$0xff]  ;;  %v9138_v44 = vld [vmem:[%s17936_s0 + $0x301] sm:$0xff] }
 0x271   :  { %v11854_v7 = vpop.permute.xlu1 %1939  ;;  %v11856_v8 = vpop.permute.xlu0 %1934 }
 0x272   :  { %18227 = vst [vmem:[#allocation216_spill] sm:$0xff] %v11854_v7  ;;  %18228 = vst [vmem:[#allocation217_spill] sm:$0xff] %v11856_v8  ;;  %2446 = vperm.xlu1 %10195, %v9137_v52   ;;  %2441 = vperm.xlu0 %10194, %v9136_v51   ;;  %v9141_v8 = vld [vmem:[%s17936_s0 + $0x321] sm:$0xff]  ;;  %v9140_v52 = vld [vmem:[%s17936_s0 + $0x319] sm:$0xff] }
 0x275   :  { %v11864_v59 = vpop.permute.xlu1 %1949  ;;  %v11866_v23 = vpop.permute.xlu0 %1944 }
 0x276   :  { %18229 = vst [vmem:[#allocation218_spill] sm:$0xff] %v11864_v59  ;;  %18230 = vst [vmem:[#allocation219_spill] sm:$0xff] %v11866_v23  ;;  %2456 = vperm.xlu1 %10195, %v9139_v60   ;;  %2451 = vperm.xlu0 %10194, %v9138_v44   ;;  %v9143_v23 = vld [vmem:[%s17936_s0 + $0x339] sm:$0xff]  ;;  %v9142_v60 = vld [vmem:[%s17936_s0 + $0x331] sm:$0xff] }
 0x279   :  { %v11874_v51 = vpop.permute.xlu1 %1959  ;;  %v11876_v7 = vpop.permute.xlu0 %1954 }
 0x27a   :  { %18231 = vst [vmem:[#allocation220_spill] sm:$0xff] %v11874_v51  ;;  %18232 = vst [vmem:[#allocation221_spill] sm:$0xff] %v11876_v7  ;;  %2466 = vperm.xlu1 %10195, %v9141_v8   ;;  %2461 = vperm.xlu0 %10194, %v9140_v52   ;;  %v9146_v7 = vld [vmem:[%s17936_s0 + $0x22] sm:$0xff]  ;;  %v9145_v8 = vld [vmem:[%s17936_s0 + $0x1a] sm:$0xff] }
 0x27d   :  { %v11884_v44 = vpop.permute.xlu1 %2166  ;;  %v11886_v59 = vpop.permute.xlu0 %2161 }
 0x27e   :  { %18233 = vst [vmem:[#allocation222_spill] sm:$0xff] %v11884_v44  ;;  %18234 = vst [vmem:[#allocation223_spill] sm:$0xff] %v11886_v59  ;;  %2476 = vperm.xlu1 %10195, %v9143_v23   ;;  %2471 = vperm.xlu0 %10194, %v9142_v60   ;;  %v9210_v59 = vld [vmem:[%s17936_s0 + $0x30] sm:$0xff] }
 0x27f   :  { %v9147_v23 = vld [vmem:[%s17936_s0 + $0x32] sm:$0xff] }
 0x281   :  { %v11894_v52 = vpop.permute.xlu1 %2176  ;;  %v11896_v51 = vpop.permute.xlu0 %2171 }
 0x282   :  { %18235 = vst [vmem:[#allocation224_spill] sm:$0xff] %v11894_v52  ;;  %18236 = vst [vmem:[#allocation225_spill] sm:$0xff] %v11896_v51  ;;  %2683 = vperm.xlu1 %10195, %v9146_v7   ;;  %2678 = vperm.xlu0 %10194, %v9145_v8   ;;  %v9148_v51 = vld [vmem:[%s17936_s0 + $0x3a] sm:$0xff] }
 0x283   :  { %v9211_v7 = vld [vmem:[%s17936_s0 + $0x38] sm:$0xff] }
 0x285   :  { %v11904_v60 = vpop.permute.xlu1 %2186  ;;  %v11906_v44 = vpop.permute.xlu0 %2181 }
 0x286   :  { %18237 = vst [vmem:[#allocation226_spill] sm:$0xff] %v11904_v60  ;;  %18238 = vst [vmem:[#allocation227_spill] sm:$0xff] %v11906_v44  ;;  %3196 = vperm.xlu1 %10195, %v9210_v59   ;;  %2688 = vperm.xlu0 %10194, %v9147_v23   ;;  %v9212_v44 = vld [vmem:[%s17936_s0 + $0x48] sm:$0xff] }
 0x289   :  { %v11914_v8 = vpop.permute.xlu1 %2196  ;;  %v11916_v52 = vpop.permute.xlu0 %2191 }
 0x28a   :  { %18239 = vst [vmem:[#allocation228_spill] sm:$0xff] %v11914_v8  ;;  %18240 = vst [vmem:[#allocation229_spill] sm:$0xff] %v11916_v52  ;;  %2693 = vperm.xlu1 %10195, %v9148_v51   ;;  %3201 = vperm.xlu0 %10194, %v9211_v7   ;;  %v9213_v7 = vld [vmem:[%s17936_s0 + $0x50] sm:$0xff] }
 0x28d   :  { %v11921_v59 = vpop.permute.xlu1 %2206  ;;  %v11923_v60 = vpop.permute.xlu0 %2201 }
 0x28e   :  { %18241 = vst [vmem:[#allocation230_spill] sm:$0xff] %v11921_v59  ;;  %18242 = vst [vmem:[#allocation231_spill] sm:$0xff] %v11923_v60  ;;  %3713 = vperm.xlu1 %10195, %v11547_v15   ;;  %3206 = vperm.xlu0 %10194, %v9212_v44  }
 0x291   :  { %v11929_v8 = vpop.permute.xlu1 %2216  ;;  %v11931_v52 = vpop.permute.xlu0 %2211 }
 0x292   :  { %18243 = vst [vmem:[#allocation232_spill] sm:$0xff] %v11929_v8  ;;  %18244 = vst [vmem:[#allocation233_spill] sm:$0xff] %v11931_v52  ;;  %2698 = vperm.xlu1 %10195, %v9149_v43   ;;  %3718 = vperm.xlu0 %10194, %v11542_v56   ;;  %v9214_v56 = vld [vmem:[%s17936_s0 + $0x60] sm:$0xff]  ;;  %v9150_v52 = vld [vmem:[%s17936_s0 + $0x52] sm:$0xff] }
 0x293   :  { %v18399_v8 = vld [vmem:[#allocation19_spill] sm:$0xff] }
 0x295   :  { %v11937_v59 = vpop.permute.xlu1 %2226  ;;  %v11939_v60 = vpop.permute.xlu0 %2221 }
 0x296   :  { %18245 = vst [vmem:[#allocation234_spill] sm:$0xff] %v11937_v59  ;;  %18246 = vst [vmem:[#allocation235_spill] sm:$0xff] %v11939_v60  ;;  %3723 = vperm.xlu1 %10195, %v11563_v48   ;;  %3211 = vperm.xlu0 %10194, %v9213_v7  }
 0x299   :  { %v11942_v15 = vpop.permute.xlu1 %2236  ;;  %v11944_v44 = vpop.permute.xlu0 %2231 }
 0x29a   :  { %18247 = vst [vmem:[#allocation236_spill] sm:$0xff] %v11942_v15  ;;  %18248 = vst [vmem:[#allocation237_spill] sm:$0xff] %v11944_v44  ;;  %4235 = vperm.xlu1 %10195, %v9148_v51   ;;  %4230 = vperm.xlu0 %10194, %v9147_v23   ;;  %v9215_v51 = vld [vmem:[%s17936_s0 + $0x68] sm:$0xff]  ;;  %v18397_v15 = vld [vmem:[#allocation18_spill] sm:$0xff] }
 0x29b   :  { %v9151_v23 = vld [vmem:[%s17936_s0 + $0x62] sm:$0xff] }
 0x29d   :  { %v11952_v59 = vpop.permute.xlu1 %2246  ;;  %v11954_v60 = vpop.permute.xlu0 %2241 }
 0x29e   :  { %18249 = vst [vmem:[#allocation238_spill] sm:$0xff] %v11952_v59  ;;  %18250 = vst [vmem:[#allocation239_spill] sm:$0xff] %v11954_v60  ;;  %3216 = vperm.xlu1 %10195, %v9214_v56   ;;  %2703 = vperm.xlu0 %10194, %v9150_v52  }
 0x2a1   :  { %v11956_v48 = vpop.permute.xlu1 %2256  ;;  %v11958_v7 = vpop.permute.xlu0 %2251 }
 0x2a2   :  { %18251 = vst [vmem:[#allocation240_spill] sm:$0xff] %v11956_v48  ;;  %18252 = vst [vmem:[#allocation241_spill] sm:$0xff] %v11958_v7  ;;  %4240 = vperm.xlu1 %10195, %v9149_v43   ;;  %3728 = vperm.xlu0 %10194, %v11558_v47   ;;  %v9216_v43 = vld [vmem:[%s17936_s0 + $0x78] sm:$0xff]  ;;  %v9152_v47 = vld [vmem:[%s17936_s0 + $0x6a] sm:$0xff] }
 0x2a3   :  { %v18395_v48 = vld [vmem:[#allocation17_spill] sm:$0xff] }
 0x2a5   :  { %v11967_v59 = vpop.permute.xlu1 %2266  ;;  %v11969_v60 = vpop.permute.xlu0 %2261 }
 0x2a6   :  { %18253 = vst [vmem:[#allocation242_spill] sm:$0xff] %v11967_v59  ;;  %18254 = vst [vmem:[#allocation243_spill] sm:$0xff] %v11969_v60  ;;  %3221 = vperm.xlu1 %10195, %v9215_v51   ;;  %2708 = vperm.xlu0 %10194, %v9151_v23  }
 0x2a9   :  { %v11971_v56 = vpop.permute.xlu1 %2276  ;;  %v11973_v7 = vpop.permute.xlu0 %2271 }
 0x2aa   :  { %18255 = vst [vmem:[#allocation244_spill] sm:$0xff] %v11971_v56  ;;  %18256 = vst [vmem:[#allocation245_spill] sm:$0xff] %v11973_v7  ;;  %4245 = vperm.xlu1 %10195, %v9150_v52   ;;  %3733 = vperm.xlu0 %10194, %v11579_v16   ;;  %v9217_v16 = vld [vmem:[%s17936_s0 + $0x80] sm:$0xff] }
 0x2ab   :  { %v9153_v52 = vld [vmem:[%s17936_s0 + $0x7a] sm:$0xff]  ;;  %v18393_v56 = vld [vmem:[#allocation16_spill] sm:$0xff] }
 0x2ad   :  { %v11982_v59 = vpop.permute.xlu1 %2286  ;;  %v11984_v60 = vpop.permute.xlu0 %2281 }
 0x2ae   :  { %18257 = vst [vmem:[#allocation246_spill] sm:$0xff] %v11982_v59  ;;  %18258 = vst [vmem:[#allocation247_spill] sm:$0xff] %v11984_v60  ;;  %3226 = vperm.xlu1 %10195, %v9216_v43   ;;  %2713 = vperm.xlu0 %10194, %v9152_v47  }
 0x2b1   :  { %v11986_v51 = vpop.permute.xlu1 %2296  ;;  %v11988_v7 = vpop.permute.xlu0 %2291 }
 0x2b2   :  { %18259 = vst [vmem:[#allocation248_spill] sm:$0xff] %v11986_v51  ;;  %18260 = vst [vmem:[#allocation249_spill] sm:$0xff] %v11988_v7  ;;  %4250 = vperm.xlu1 %10195, %v9151_v23   ;;  %3738 = vperm.xlu0 %10194, %v11574_v0   ;;  %v9218_v0 = vld [vmem:[%s17936_s0 + $0x90] sm:$0xff]  ;;  %v9154_v23 = vld [vmem:[%s17936_s0 + $0x82] sm:$0xff] }
 0x2b3   :  { %v18391_v51 = vld [vmem:[#allocation15_spill] sm:$0xff] }
 0x2b5   :  { %v11997_v59 = vpop.permute.xlu1 %2306  ;;  %v11999_v60 = vpop.permute.xlu0 %2301 }
 0x2b6   :  { %18261 = vst [vmem:[#allocation250_spill] sm:$0xff] %v11997_v59  ;;  %18262 = vst [vmem:[#allocation251_spill] sm:$0xff] %v11999_v60  ;;  %3231 = vperm.xlu1 %10195, %v9217_v16   ;;  %2718 = vperm.xlu0 %10194, %v9153_v52  }
 0x2b9   :  { %v12001_v43 = vpop.permute.xlu1 %2316  ;;  %v12003_v7 = vpop.permute.xlu0 %2311 }
 0x2ba   :  { %18263 = vst [vmem:[#allocation252_spill] sm:$0xff] %v12001_v43  ;;  %18264 = vst [vmem:[#allocation253_spill] sm:$0xff] %v12003_v7  ;;  %4255 = vperm.xlu1 %10195, %v9152_v47   ;;  %3743 = vperm.xlu0 %10194, %v11595_v32   ;;  %v9219_v32 = vld [vmem:[%s17936_s0 + $0x98] sm:$0xff] }
 0x2bb   :  { %v9155_v47 = vld [vmem:[%s17936_s0 + $0x92] sm:$0xff] }
 0x2bc   :  { %v18389_v43 = vld [vmem:[#allocation14_spill] sm:$0xff] }
 0x2bd   :  { %v12012_v59 = vpop.permute.xlu1 %2326  ;;  %v12014_v60 = vpop.permute.xlu0 %2321 }
 0x2be   :  { %18265 = vst [vmem:[#allocation254_spill] sm:$0xff] %v12012_v59  ;;  %18266 = vst [vmem:[#allocation255_spill] sm:$0xff] %v12014_v60  ;;  %3236 = vperm.xlu1 %10195, %v9218_v0   ;;  %2723 = vperm.xlu0 %10194, %v9154_v23  }
 0x2c1   :  { %v12016_v16 = vpop.permute.xlu1 %2336  ;;  %v12018_v7 = vpop.permute.xlu0 %2331 }
 0x2c2   :  { %18267 = vst [vmem:[#allocation256_spill] sm:$0xff] %v12016_v16  ;;  %18268 = vst [vmem:[#allocation257_spill] sm:$0xff] %v12018_v7  ;;  %4260 = vperm.xlu1 %10195, %v9153_v52   ;;  %3748 = vperm.xlu0 %10194, %v11590_v31   ;;  %v9220_v31 = vld [vmem:[%s17936_s0 + $0xa8] sm:$0xff]  ;;  %v9156_v52 = vld [vmem:[%s17936_s0 + $0x9a] sm:$0xff] }
 0x2c3   :  { %v18387_v16 = vld [vmem:[#allocation13_spill] sm:$0xff] }
 0x2c5   :  { %v12027_v59 = vpop.permute.xlu1 %2346  ;;  %v12029_v60 = vpop.permute.xlu0 %2341 }
 0x2c6   :  { %18269 = vst [vmem:[#allocation258_spill] sm:$0xff] %v12027_v59  ;;  %18270 = vst [vmem:[#allocation259_spill] sm:$0xff] %v12029_v60  ;;  %3241 = vperm.xlu1 %10195, %v9219_v32   ;;  %2728 = vperm.xlu0 %10194, %v9155_v47  }
 0x2c9   :  { %v12031_v0 = vpop.permute.xlu1 %2356  ;;  %v12033_v7 = vpop.permute.xlu0 %2351 }
 0x2ca   :  { %18271 = vst [vmem:[#allocation260_spill] sm:$0xff] %v12031_v0  ;;  %18272 = vst [vmem:[#allocation261_spill] sm:$0xff] %v12033_v7  ;;  %4265 = vperm.xlu1 %10195, %v9154_v23   ;;  %3753 = vperm.xlu0 %10194, %v11611_v55   ;;  %v9221_v55 = vld [vmem:[%s17936_s0 + $0xb0] sm:$0xff] }
 0x2cb   :  { %v9157_v23 = vld [vmem:[%s17936_s0 + $0xaa] sm:$0xff] }
 0x2cd   :  { %v12042_v59 = vpop.permute.xlu1 %2366  ;;  %v12044_v60 = vpop.permute.xlu0 %2361 }
 0x2ce   :  { %18273 = vst [vmem:[#allocation262_spill] sm:$0xff] %v12042_v59  ;;  %18274 = vst [vmem:[#allocation263_spill] sm:$0xff] %v12044_v60  ;;  %3246 = vperm.xlu1 %10195, %v9220_v31   ;;  %2733 = vperm.xlu0 %10194, %v9156_v52  }
 0x2d1   :  { %v12046_v32 = vpop.permute.xlu1 %2376  ;;  %v12048_v7 = vpop.permute.xlu0 %2371 }
 0x2d2   :  { %18275 = vst [vmem:[#allocation264_spill] sm:$0xff] %v12046_v32  ;;  %18276 = vst [vmem:[#allocation265_spill] sm:$0xff] %v12048_v7  ;;  %4270 = vperm.xlu1 %10195, %v9155_v47   ;;  %3758 = vperm.xlu0 %10194, %v11606_v63   ;;  %v9222_v63 = vld [vmem:[%s17936_s0 + $0xc0] sm:$0xff]  ;;  %v9158_v47 = vld [vmem:[%s17936_s0 + $0xb2] sm:$0xff] }
 0x2d3   :  { %v18385_v32 = vld [vmem:[#allocation12_spill] sm:$0xff] }
 0x2d5   :  { %v12057_v59 = vpop.permute.xlu1 %2386  ;;  %v12059_v60 = vpop.permute.xlu0 %2381 }
 0x2d6   :  { %18277 = vst [vmem:[#allocation266_spill] sm:$0xff] %v12057_v59  ;;  %18278 = vst [vmem:[#allocation267_spill] sm:$0xff] %v12059_v60  ;;  %3251 = vperm.xlu1 %10195, %v9221_v55   ;;  %2738 = vperm.xlu0 %10194, %v9157_v23  }
 0x2d9   :  { %v12061_v31 = vpop.permute.xlu1 %2396  ;;  %v12063_v7 = vpop.permute.xlu0 %2391 }
 0x2da   :  { %18279 = vst [vmem:[#allocation268_spill] sm:$0xff] %v12061_v31  ;;  %18280 = vst [vmem:[#allocation269_spill] sm:$0xff] %v12063_v7  ;;  %4275 = vperm.xlu1 %10195, %v9156_v52   ;;  %3763 = vperm.xlu0 %10194, %v11627_v40   ;;  %v9223_v40 = vld [vmem:[%s17936_s0 + $0xc8] sm:$0xff]  ;;  %v9291_v31 = vld [vmem:[%s17936_s0 + $0xf1] sm:$0xff] }
 0x2db   :  { %v9159_v52 = vld [vmem:[%s17936_s0 + $0xc2] sm:$0xff] }
 0x2dd   :  { %v12072_v59 = vpop.permute.xlu1 %2406  ;;  %v12074_v60 = vpop.permute.xlu0 %2401 }
 0x2de   :  { %18281 = vst [vmem:[#allocation270_spill] sm:$0xff] %v12072_v59  ;;  %18282 = vst [vmem:[#allocation271_spill] sm:$0xff] %v12074_v60  ;;  %3256 = vperm.xlu1 %10195, %v9222_v63   ;;  %2743 = vperm.xlu0 %10194, %v9158_v47  }
 0x2e1   :  { %v12076_v55 = vpop.permute.xlu1 %2416  ;;  %v12078_v7 = vpop.permute.xlu0 %2411 }
 0x2e2   :  { %18283 = vst [vmem:[#allocation272_spill] sm:$0xff] %v12076_v55  ;;  %18284 = vst [vmem:[#allocation273_spill] sm:$0xff] %v12078_v7  ;;  %4280 = vperm.xlu1 %10195, %v9157_v23   ;;  %3768 = vperm.xlu0 %10194, %v11622_v39   ;;  %v9224_v39 = vld [vmem:[%s17936_s0 + $0xd8] sm:$0xff]  ;;  %v9160_v23 = vld [vmem:[%s17936_s0 + $0xca] sm:$0xff] }
 0x2e5   :  { %v12087_v59 = vpop.permute.xlu1 %2426  ;;  %v12089_v60 = vpop.permute.xlu0 %2421 }
 0x2e6   :  { %18285 = vst [vmem:[#allocation274_spill] sm:$0xff] %v12087_v59  ;;  %18286 = vst [vmem:[#allocation275_spill] sm:$0xff] %v12089_v60  ;;  %3261 = vperm.xlu1 %10195, %v9223_v40   ;;  %2748 = vperm.xlu0 %10194, %v9159_v52  }
 0x2e9   :  { %v12091_v63 = vpop.permute.xlu1 %2436  ;;  %v12093_v7 = vpop.permute.xlu0 %2431 }
 0x2ea   :  { %18287 = vst [vmem:[#allocation276_spill] sm:$0xff] %v12091_v63  ;;  %18288 = vst [vmem:[#allocation277_spill] sm:$0xff] %v12093_v7  ;;  %4285 = vperm.xlu1 %10195, %v9158_v47   ;;  %3773 = vperm.xlu0 %10194, %v11641_v24   ;;  %v9288_v47 = vld [vmem:[%s17936_s0 + $0xc9] sm:$0xff]  ;;  %v9225_v7 = vld [vmem:[%s17936_s0 + $0xe0] sm:$0xff] }
 0x2eb   :  { %v9163_v63 = vld [vmem:[%s17936_s0 + $0xf2] sm:$0xff] }
 0x2ed   :  { %v12102_v59 = vpop.permute.xlu1 %2446  ;;  %v12104_v60 = vpop.permute.xlu0 %2441 }
 0x2ee   :  { %18289 = vst [vmem:[#allocation278_spill] sm:$0xff] %v12102_v59  ;;  %18290 = vst [vmem:[#allocation279_spill] sm:$0xff] %v12104_v60  ;;  %3266 = vperm.xlu1 %10195, %v9224_v39   ;;  %2753 = vperm.xlu0 %10194, %v9160_v23   ;;  %v9161_v60 = vld [vmem:[%s17936_s0 + $0xda] sm:$0xff] }
 0x2f1   :  { %v12109_v40 = vpop.permute.xlu1 %2456  ;;  %v12111_v24 = vpop.permute.xlu0 %2451 }
 0x2f2   :  { %18291 = vst [vmem:[#allocation280_spill] sm:$0xff] %v12109_v40  ;;  %18292 = vst [vmem:[#allocation281_spill] sm:$0xff] %v12111_v24  ;;  %4290 = vperm.xlu1 %10195, %v9159_v52   ;;  %3778 = vperm.xlu0 %10194, %v9288_v47   ;;  %v9289_v24 = vld [vmem:[%s17936_s0 + $0xd9] sm:$0xff]  ;;  %v9226_v40 = vld [vmem:[%s17936_s0 + $0xf0] sm:$0xff] }
 0x2f5   :  { %v12119_v39 = vpop.permute.xlu1 %2466  ;;  %v12121_v59 = vpop.permute.xlu0 %2461 }
 0x2f6   :  { %18293 = vst [vmem:[#allocation282_spill] sm:$0xff] %v12119_v39  ;;  %18294 = vst [vmem:[#allocation283_spill] sm:$0xff] %v12121_v59  ;;  %3271 = vperm.xlu1 %10195, %v9225_v7   ;;  %2758 = vperm.xlu0 %10194, %v9161_v60   ;;  %v9162_v59 = vld [vmem:[%s17936_s0 + $0xe2] sm:$0xff] }
 0x2f9   :  { %v12126_v52 = vpop.permute.xlu1 %2476  ;;  %v12128_v47 = vpop.permute.xlu0 %2471 }
 0x2fa   :  { %18295 = vst [vmem:[#allocation284_spill] sm:$0xff] %v12126_v52  ;;  %18296 = vst [vmem:[#allocation285_spill] sm:$0xff] %v12128_v47  ;;  %4295 = vperm.xlu1 %10195, %v9160_v23   ;;  %3783 = vperm.xlu0 %10194, %v9289_v24   ;;  %v9290_v47 = vld [vmem:[%s17936_s0 + $0xe1] sm:$0xff]  ;;  %v9227_v52 = vld [vmem:[%s17936_s0 + $0xf8] sm:$0xff] }
 0x2fd   :  { %v12136_v7 = vpop.permute.xlu1 %2683  ;;  %v12138_v39 = vpop.permute.xlu0 %2678 }
 0x2fe   :  { %18297 = vst [vmem:[#allocation286_spill] sm:$0xff] %v12136_v7  ;;  %18298 = vst [vmem:[#allocation287_spill] sm:$0xff] %v12138_v39  ;;  %3276 = vperm.xlu1 %10195, %v9226_v40   ;;  %2763 = vperm.xlu0 %10194, %v9162_v59   ;;  %v18379_v39 = vld [vmem:[#allocation8_spill] sm:$0xff]  ;;  %v18383_v7 = vld [vmem:[#allocation11_spill] sm:$0xff] }
 0x301   :  { %v12143_v23 = vpop.permute.xlu1 %3196  ;;  %v12145_v24 = vpop.permute.xlu0 %2688 }
 0x302   :  { %18299 = vst [vmem:[#allocation288_spill] sm:$0xff] %v12143_v23  ;;  %18300 = vst [vmem:[#allocation289_spill] sm:$0xff] %v12145_v24  ;;  %4300 = vperm.xlu1 %10195, %v9161_v60   ;;  %3788 = vperm.xlu0 %10194, %v9290_v47   ;;  %v9228_v24 = vld [vmem:[%s17936_s0 + $0x108] sm:$0xff] }
 0x305   :  { %v12153_v40 = vpop.permute.xlu1 %2693  ;;  %v12155_v55 = vpop.permute.xlu0 %3201 }
 0x306   :  { %18301 = vst [vmem:[#allocation290_spill] sm:$0xff] %v12153_v40  ;;  %18302 = vst [vmem:[#allocation291_spill] sm:$0xff] %v12155_v55  ;;  %3281 = vperm.xlu1 %10195, %v9227_v52   ;;  %2768 = vperm.xlu0 %10194, %v9163_v63   ;;  %v9164_v40 = vld [vmem:[%s17936_s0 + $0xfa] sm:$0xff] }
 0x309   :  { %v12160_v60 = vpop.permute.xlu1 %3713  ;;  %v12162_v47 = vpop.permute.xlu0 %3206 }
 0x30a   :  { %18303 = vst [vmem:[#allocation292_spill] sm:$0xff] %v12160_v60  ;;  %18304 = vst [vmem:[#allocation293_spill] sm:$0xff] %v12162_v47  ;;  %4305 = vperm.xlu1 %10195, %v9162_v59   ;;  %3793 = vperm.xlu0 %10194, %v9291_v31   ;;  %v9292_v47 = vld [vmem:[%s17936_s0 + $0xf9] sm:$0xff]  ;;  %v9229_v60 = vld [vmem:[%s17936_s0 + $0x110] sm:$0xff] }
 0x30d   :  { %v12170_v52 = vpop.permute.xlu1 %2698  ;;  %v12172_v23 = vpop.permute.xlu0 %3718 }
 0x30e   :  { %18305 = vst [vmem:[#allocation294_spill] sm:$0xff] %v12170_v52  ;;  %18306 = vst [vmem:[#allocation295_spill] sm:$0xff] %v12172_v23  ;;  %3286 = vperm.xlu1 %10195, %v9228_v24   ;;  %2773 = vperm.xlu0 %10194, %v9164_v40   ;;  %v9165_v52 = vld [vmem:[%s17936_s0 + $0x10a] sm:$0xff] }
 0x311   :  { %v12177_v59 = vpop.permute.xlu1 %3723  ;;  %v12179_v31 = vpop.permute.xlu0 %3211 }
 0x312   :  { %18307 = vst [vmem:[#allocation296_spill] sm:$0xff] %v12177_v59  ;;  %18308 = vst [vmem:[#allocation297_spill] sm:$0xff] %v12179_v31  ;;  %4310 = vperm.xlu1 %10195, %v9163_v63   ;;  %3798 = vperm.xlu0 %10194, %v9292_v47   ;;  %v9293_v31 = vld [vmem:[%s17936_s0 + $0x109] sm:$0xff]  ;;  %v9230_v59 = vld [vmem:[%s17936_s0 + $0x120] sm:$0xff] }
 0x315   :  { %v12187_v24 = vpop.permute.xlu1 %4235  ;;  %v12189_v23 = vpop.permute.xlu0 %4230 }
 0x316   :  { %18309 = vst [vmem:[#allocation298_spill] sm:$0xff] %v12187_v24  ;;  %18310 = vst [vmem:[#allocation299_spill] sm:$0xff] %v12189_v23  ;;  %3291 = vperm.xlu1 %10195, %v9229_v60   ;;  %2778 = vperm.xlu0 %10194, %v9165_v52   ;;  %v9166_v23 = vld [vmem:[%s17936_s0 + $0x112] sm:$0xff] }
 0x319   :  { %v12194_v63 = vpop.permute.xlu1 %3216  ;;  %v12196_v47 = vpop.permute.xlu0 %2703 }
 0x31a   :  { %18311 = vst [vmem:[#allocation300_spill] sm:$0xff] %v12194_v63  ;;  %18312 = vst [vmem:[#allocation301_spill] sm:$0xff] %v12196_v47  ;;  %4315 = vperm.xlu1 %10195, %v9164_v40   ;;  %3803 = vperm.xlu0 %10194, %v9293_v31   ;;  %v9294_v47 = vld [vmem:[%s17936_s0 + $0x111] sm:$0xff]  ;;  %v9231_v63 = vld [vmem:[%s17936_s0 + $0x128] sm:$0xff] }
 0x31d   :  { %v12204_v60 = vpop.permute.xlu1 %4240  ;;  %v12206_v24 = vpop.permute.xlu0 %3728 }
 0x31e   :  { %18313 = vst [vmem:[#allocation302_spill] sm:$0xff] %v12204_v60  ;;  %18314 = vst [vmem:[#allocation303_spill] sm:$0xff] %v12206_v24  ;;  %3296 = vperm.xlu1 %10195, %v9230_v59   ;;  %2783 = vperm.xlu0 %10194, %v9166_v23   ;;  %v9167_v24 = vld [vmem:[%s17936_s0 + $0x122] sm:$0xff] }
 0x321   :  { %v12211_v40 = vpop.permute.xlu1 %3221  ;;  %v12213_v31 = vpop.permute.xlu0 %2708 }
 0x322   :  { %18315 = vst [vmem:[#allocation304_spill] sm:$0xff] %v12211_v40  ;;  %18316 = vst [vmem:[#allocation305_spill] sm:$0xff] %v12213_v31  ;;  %4320 = vperm.xlu1 %10195, %v9165_v52   ;;  %3808 = vperm.xlu0 %10194, %v9294_v47   ;;  %v9295_v31 = vld [vmem:[%s17936_s0 + $0x121] sm:$0xff]  ;;  %v9232_v40 = vld [vmem:[%s17936_s0 + $0x138] sm:$0xff] }
 0x325   :  { %v12221_v59 = vpop.permute.xlu1 %4245  ;;  %v12223_v60 = vpop.permute.xlu0 %3733 }
 0x326   :  { %18317 = vst [vmem:[#allocation306_spill] sm:$0xff] %v12221_v59  ;;  %18318 = vst [vmem:[#allocation307_spill] sm:$0xff] %v12223_v60  ;;  %3301 = vperm.xlu1 %10195, %v9231_v63   ;;  %2788 = vperm.xlu0 %10194, %v9167_v24   ;;  %v9168_v60 = vld [vmem:[%s17936_s0 + $0x12a] sm:$0xff] }
 0x329   :  { %v12228_v52 = vpop.permute.xlu1 %3226  ;;  %v12230_v47 = vpop.permute.xlu0 %2713 }
 0x32a   :  { %18319 = vst [vmem:[#allocation308_spill] sm:$0xff] %v12228_v52  ;;  %18320 = vst [vmem:[#allocation309_spill] sm:$0xff] %v12230_v47  ;;  %4325 = vperm.xlu1 %10195, %v9166_v23   ;;  %3813 = vperm.xlu0 %10194, %v9295_v31   ;;  %v9296_v47 = vld [vmem:[%s17936_s0 + $0x129] sm:$0xff]  ;;  %v9233_v52 = vld [vmem:[%s17936_s0 + $0x140] sm:$0xff] }
 0x32d   :  { %v12238_v63 = vpop.permute.xlu1 %4250  ;;  %v12240_v59 = vpop.permute.xlu0 %3738 }
 0x32e   :  { %18321 = vst [vmem:[#allocation310_spill] sm:$0xff] %v12238_v63  ;;  %18322 = vst [vmem:[#allocation311_spill] sm:$0xff] %v12240_v59  ;;  %3306 = vperm.xlu1 %10195, %v9232_v40   ;;  %2793 = vperm.xlu0 %10194, %v9168_v60   ;;  %v9169_v59 = vld [vmem:[%s17936_s0 + $0x13a] sm:$0xff] }
 0x331   :  { %v12245_v23 = vpop.permute.xlu1 %3231  ;;  %v12247_v31 = vpop.permute.xlu0 %2718 }
 0x332   :  { %18323 = vst [vmem:[#allocation312_spill] sm:$0xff] %v12245_v23  ;;  %18324 = vst [vmem:[#allocation313_spill] sm:$0xff] %v12247_v31  ;;  %4330 = vperm.xlu1 %10195, %v9167_v24   ;;  %3818 = vperm.xlu0 %10194, %v9296_v47   ;;  %v9297_v31 = vld [vmem:[%s17936_s0 + $0x139] sm:$0xff]  ;;  %v9234_v23 = vld [vmem:[%s17936_s0 + $0x150] sm:$0xff] }
 0x335   :  { %v12255_v40 = vpop.permute.xlu1 %4255  ;;  %v12257_v63 = vpop.permute.xlu0 %3743 }
 0x336   :  { %18325 = vst [vmem:[#allocation314_spill] sm:$0xff] %v12255_v40  ;;  %18326 = vst [vmem:[#allocation315_spill] sm:$0xff] %v12257_v63  ;;  %3311 = vperm.xlu1 %10195, %v9233_v52   ;;  %2798 = vperm.xlu0 %10194, %v9169_v59   ;;  %v9170_v63 = vld [vmem:[%s17936_s0 + $0x142] sm:$0xff] }
 0x339   :  { %v12262_v24 = vpop.permute.xlu1 %3236  ;;  %v12264_v47 = vpop.permute.xlu0 %2723 }
 0x33a   :  { %18327 = vst [vmem:[#allocation316_spill] sm:$0xff] %v12262_v24  ;;  %18328 = vst [vmem:[#allocation317_spill] sm:$0xff] %v12264_v47  ;;  %4335 = vperm.xlu1 %10195, %v9168_v60   ;;  %3823 = vperm.xlu0 %10194, %v9297_v31   ;;  %v9298_v47 = vld [vmem:[%s17936_s0 + $0x141] sm:$0xff]  ;;  %v9235_v24 = vld [vmem:[%s17936_s0 + $0x158] sm:$0xff] }
 0x33d   :  { %v12272_v52 = vpop.permute.xlu1 %4260  ;;  %v12274_v40 = vpop.permute.xlu0 %3748 }
 0x33e   :  { %18329 = vst [vmem:[#allocation318_spill] sm:$0xff] %v12272_v52  ;;  %18330 = vst [vmem:[#allocation319_spill] sm:$0xff] %v12274_v40  ;;  %3316 = vperm.xlu1 %10195, %v9234_v23   ;;  %2803 = vperm.xlu0 %10194, %v9170_v63   ;;  %v9171_v40 = vld [vmem:[%s17936_s0 + $0x152] sm:$0xff] }
 0x341   :  { %v12279_v60 = vpop.permute.xlu1 %3241  ;;  %v12281_v31 = vpop.permute.xlu0 %2728 }
 0x342   :  { %18331 = vst [vmem:[#allocation320_spill] sm:$0xff] %v12279_v60  ;;  %18332 = vst [vmem:[#allocation321_spill] sm:$0xff] %v12281_v31  ;;  %4340 = vperm.xlu1 %10195, %v9169_v59   ;;  %3828 = vperm.xlu0 %10194, %v9298_v47   ;;  %v9299_v60 = vld [vmem:[%s17936_s0 + $0x151] sm:$0xff]  ;;  %v9236_v31 = vld [vmem:[%s17936_s0 + $0x168] sm:$0xff] }
 0x345   :  { %v12289_v23 = vpop.permute.xlu1 %4265  ;;  %v12291_v52 = vpop.permute.xlu0 %3753 }
 0x346   :  { %18333 = vst [vmem:[#allocation322_spill] sm:$0xff] %v12289_v23  ;;  %18334 = vst [vmem:[#allocation323_spill] sm:$0xff] %v12291_v52  ;;  %3321 = vperm.xlu1 %10195, %v9235_v24   ;;  %2808 = vperm.xlu0 %10194, %v9171_v40   ;;  %v9172_v52 = vld [vmem:[%s17936_s0 + $0x15a] sm:$0xff] }
 0x349   :  { %v12296_v59 = vpop.permute.xlu1 %3246  ;;  %v12298_v47 = vpop.permute.xlu0 %2733 }
 0x34a   :  { %18335 = vst [vmem:[#allocation324_spill] sm:$0xff] %v12296_v59  ;;  %18336 = vst [vmem:[#allocation325_spill] sm:$0xff] %v12298_v47  ;;  %4345 = vperm.xlu1 %10195, %v9170_v63   ;;  %3833 = vperm.xlu0 %10194, %v9299_v60   ;;  %v9300_v47 = vld [vmem:[%s17936_s0 + $0x159] sm:$0xff]  ;;  %v9237_v59 = vld [vmem:[%s17936_s0 + $0x170] sm:$0xff] }
 0x34d   :  { %v12306_v24 = vpop.permute.xlu1 %4270  ;;  %v12308_v23 = vpop.permute.xlu0 %3758 }
 0x34e   :  { %18337 = vst [vmem:[#allocation326_spill] sm:$0xff] %v12306_v24  ;;  %18338 = vst [vmem:[#allocation327_spill] sm:$0xff] %v12308_v23  ;;  %3326 = vperm.xlu1 %10195, %v9236_v31   ;;  %2813 = vperm.xlu0 %10194, %v9172_v52   ;;  %v9173_v23 = vld [vmem:[%s17936_s0 + $0x16a] sm:$0xff] }
 0x351   :  { %v12313_v63 = vpop.permute.xlu1 %3251  ;;  %v12315_v60 = vpop.permute.xlu0 %2738 }
 0x352   :  { %18339 = vst [vmem:[#allocation328_spill] sm:$0xff] %v12313_v63  ;;  %18340 = vst [vmem:[#allocation329_spill] sm:$0xff] %v12315_v60  ;;  %4350 = vperm.xlu1 %10195, %v9171_v40   ;;  %3838 = vperm.xlu0 %10194, %v9300_v47   ;;  %v9301_v63 = vld [vmem:[%s17936_s0 + $0x169] sm:$0xff]  ;;  %v9238_v60 = vld [vmem:[%s17936_s0 + $0x180] sm:$0xff] }
 0x355   :  { %v12323_v31 = vpop.permute.xlu1 %4275  ;;  %v12325_v24 = vpop.permute.xlu0 %3763 }
 0x356   :  { %18341 = vst [vmem:[#allocation330_spill] sm:$0xff] %v12323_v31  ;;  %18342 = vst [vmem:[#allocation331_spill] sm:$0xff] %v12325_v24  ;;  %3331 = vperm.xlu1 %10195, %v9237_v59   ;;  %2818 = vperm.xlu0 %10194, %v9173_v23   ;;  %v9174_v24 = vld [vmem:[%s17936_s0 + $0x172] sm:$0xff] }
 0x359   :  { %v12330_v40 = vpop.permute.xlu1 %3256  ;;  %v12332_v47 = vpop.permute.xlu0 %2743 }
 0x35a   :  { %18343 = vst [vmem:[#allocation332_spill] sm:$0xff] %v12330_v40  ;;  %18344 = vst [vmem:[#allocation333_spill] sm:$0xff] %v12332_v47  ;;  %4355 = vperm.xlu1 %10195, %v9172_v52   ;;  %3843 = vperm.xlu0 %10194, %v9301_v63   ;;  %v9302_v47 = vld [vmem:[%s17936_s0 + $0x171] sm:$0xff]  ;;  %v9239_v40 = vld [vmem:[%s17936_s0 + $0x188] sm:$0xff] }
 0x35d   :  { %v12340_v59 = vpop.permute.xlu1 %4280  ;;  %v12342_v31 = vpop.permute.xlu0 %3768 }
 0x35e   :  { %18345 = vst [vmem:[#allocation334_spill] sm:$0xff] %v12340_v59  ;;  %18346 = vst [vmem:[#allocation335_spill] sm:$0xff] %v12342_v31  ;;  %3336 = vperm.xlu1 %10195, %v9238_v60   ;;  %2823 = vperm.xlu0 %10194, %v9174_v24   ;;  %v9175_v31 = vld [vmem:[%s17936_s0 + $0x182] sm:$0xff] }
 0x361   :  { %v12347_v52 = vpop.permute.xlu1 %3261  ;;  %v12349_v63 = vpop.permute.xlu0 %2748 }
 0x362   :  { %18347 = vst [vmem:[#allocation336_spill] sm:$0xff] %v12347_v52  ;;  %18348 = vst [vmem:[#allocation337_spill] sm:$0xff] %v12349_v63  ;;  %4360 = vperm.xlu1 %10195, %v9173_v23   ;;  %3848 = vperm.xlu0 %10194, %v9302_v47   ;;  %v9303_v63 = vld [vmem:[%s17936_s0 + $0x181] sm:$0xff]  ;;  %v9240_v52 = vld [vmem:[%s17936_s0 + $0x198] sm:$0xff] }
 0x365   :  { %v12357_v60 = vpop.permute.xlu1 %4285  ;;  %v12359_v59 = vpop.permute.xlu0 %3773 }
 0x366   :  { %18349 = vst [vmem:[#allocation338_spill] sm:$0xff] %v12357_v60  ;;  %18350 = vst [vmem:[#allocation339_spill] sm:$0xff] %v12359_v59  ;;  %3341 = vperm.xlu1 %10195, %v9239_v40   ;;  %2828 = vperm.xlu0 %10194, %v9175_v31   ;;  %v9176_v59 = vld [vmem:[%s17936_s0 + $0x18a] sm:$0xff] }
 0x369   :  { %v12364_v23 = vpop.permute.xlu1 %3266  ;;  %v12366_v47 = vpop.permute.xlu0 %2753 }
 0x36a   :  { %18351 = vst [vmem:[#allocation340_spill] sm:$0xff] %v12364_v23  ;;  %18352 = vst [vmem:[#allocation341_spill] sm:$0xff] %v12366_v47  ;;  %4365 = vperm.xlu1 %10195, %v9174_v24   ;;  %3853 = vperm.xlu0 %10194, %v9303_v63   ;;  %v9304_v47 = vld [vmem:[%s17936_s0 + $0x189] sm:$0xff]  ;;  %v9241_v23 = vld [vmem:[%s17936_s0 + $0x1a0] sm:$0xff] }
 0x36d   :  { %v12374_v40 = vpop.permute.xlu1 %4290  ;;  %v12376_v60 = vpop.permute.xlu0 %3778 }
 0x36e   :  { %18353 = vst [vmem:[#allocation342_spill] sm:$0xff] %v12374_v40  ;;  %18354 = vst [vmem:[#allocation343_spill] sm:$0xff] %v12376_v60  ;;  %3346 = vperm.xlu1 %10195, %v9240_v52   ;;  %2833 = vperm.xlu0 %10194, %v9176_v59   ;;  %v9177_v60 = vld [vmem:[%s17936_s0 + $0x1ca] sm:$0xff] }
 0x371   :  { %v12381_v24 = vpop.permute.xlu1 %3271  ;;  %v12383_v63 = vpop.permute.xlu0 %2758 }
 0x372   :  { %18355 = vst [vmem:[#allocation344_spill] sm:$0xff] %v12381_v24  ;;  %18356 = vst [vmem:[#allocation345_spill] sm:$0xff] %v12383_v63  ;;  %4370 = vperm.xlu1 %10195, %v9175_v31   ;;  %3858 = vperm.xlu0 %10194, %v9304_v47   ;;  %v9305_v63 = vld [vmem:[%s17936_s0 + $0x199] sm:$0xff] }
 0x373   :  { %v9242_v24 = vld [vmem:[%s17936_s0 + $0x1e0] sm:$0xff] }
 0x375   :  { %v12391_v52 = vpop.permute.xlu1 %4295  ;;  %v12393_v40 = vpop.permute.xlu0 %3783 }
 0x376   :  { %18357 = vst [vmem:[#allocation346_spill] sm:$0xff] %v12391_v52  ;;  %18358 = vst [vmem:[#allocation347_spill] sm:$0xff] %v12393_v40  ;;  %3351 = vperm.xlu1 %10195, %v9241_v23   ;;  %2838 = vperm.xlu0 %10194, %v9177_v60   ;;  %v9178_v40 = vld [vmem:[%s17936_s0 + $0x1d2] sm:$0xff] }
 0x379   :  { %v12398_v31 = vpop.permute.xlu1 %3276  ;;  %v12400_v47 = vpop.permute.xlu0 %2763 }
 0x37a   :  { %18359 = vst [vmem:[#allocation348_spill] sm:$0xff] %v12398_v31  ;;  %18360 = vst [vmem:[#allocation349_spill] sm:$0xff] %v12400_v47  ;;  %4375 = vperm.xlu1 %10195, %v9176_v59   ;;  %3863 = vperm.xlu0 %10194, %v9305_v63   ;;  %v9370_v47 = vld [vmem:[%s17936_s0 + $0x19a] sm:$0xff] }
 0x37b   :  { %v9306_v59 = vld [vmem:[%s17936_s0 + $0x1a1] sm:$0xff] }
 0x37d   :  { %v12408_v23 = vpop.permute.xlu1 %4300  ;;  %v12410_v60 = vpop.permute.xlu0 %3788 }
 0x37e   :  { %18361 = vst [vmem:[#allocation350_spill] sm:$0xff] %v12408_v23  ;;  %18362 = vst [vmem:[#allocation351_spill] sm:$0xff] %v12410_v60  ;;  %3356 = vperm.xlu1 %10195, %v9242_v24   ;;  %2843 = vperm.xlu0 %10194, %v9178_v40   ;;  %v9243_v60 = vld [vmem:[%s17936_s0 + $0x1e8] sm:$0xff] }
 0x37f   :  { %v9179_v40 = vld [vmem:[%s17936_s0 + $0x1e2] sm:$0xff] }
 0x381   :  { %v12418_v63 = vpop.permute.xlu1 %3281  ;;  %v12420_v31 = vpop.permute.xlu0 %2768 }
 0x382   :  { %18363 = vst [vmem:[#allocation352_spill] sm:$0xff] %v12418_v63  ;;  %18364 = vst [vmem:[#allocation353_spill] sm:$0xff] %v12420_v31  ;;  %4380 = vperm.xlu1 %10195, %v9370_v47   ;;  %3868 = vperm.xlu0 %10194, %v9306_v59   ;;  %v9371_v31 = vld [vmem:[%s17936_s0 + $0x1a2] sm:$0xff] }
 0x383   :  { %v9307_v47 = vld [vmem:[%s17936_s0 + $0x1e1] sm:$0xff] }
 0x385   :  { %v12428_v24 = vpop.permute.xlu1 %4305  ;;  %v12430_v23 = vpop.permute.xlu0 %3793 }
 0x386   :  { %18365 = vst [vmem:[#allocation354_spill] sm:$0xff] %v12428_v24  ;;  %18366 = vst [vmem:[#allocation355_spill] sm:$0xff] %v12430_v23  ;;  %3361 = vperm.xlu1 %10195, %v9243_v60   ;;  %2848 = vperm.xlu0 %10194, %v9179_v40   ;;  %v9244_v24 = vld [vmem:[%s17936_s0 + $0x1f8] sm:$0xff]  ;;  %v9180_v60 = vld [vmem:[%s17936_s0 + $0x1ea] sm:$0xff] }
 0x389   :  { %v12438_v59 = vpop.permute.xlu1 %3286  ;;  %v12440_v63 = vpop.permute.xlu0 %2773 }
 0x38a   :  { %18367 = vst [vmem:[#allocation356_spill] sm:$0xff] %v12438_v59  ;;  %18368 = vst [vmem:[#allocation357_spill] sm:$0xff] %v12440_v63  ;;  %4385 = vperm.xlu1 %10195, %v9371_v31   ;;  %3873 = vperm.xlu0 %10194, %v9307_v47   ;;  %v9308_v63 = vld [vmem:[%s17936_s0 + $0x1e9] sm:$0xff]  ;;  %v12458_v31 = vld [vmem:[%s17937_s1] ss:$0 sm:$0xff] }
 0x38b   :  { %v12688_v0 = vmul.f32 %v12458_v31, %v18385_v32  ;;  %v12707_v32 = vmul.f32 %v12458_v31, %v18393_v56  ;;  %v12711_v44 = vmul.f32 %v12458_v31, %v18395_v48  ;;  %v18404_v56 = vld [vmem:[#allocation20_spill] sm:$0xff]  ;;  %v18406_v48 = vld [vmem:[#allocation31_spill] sm:$0xff] }
 0x38d   :  { %v12448_v23 = vpop.permute.xlu1 %4310  ;;  %v12450_v52 = vpop.permute.xlu0 %3798  ;;  %18394 = vst [vmem:[#allocation14_spill] sm:$0xff] %v12707_v32  ;;  %18396 = vst [vmem:[#allocation15_spill] sm:$0xff] %v12711_v44  ;;  %v12729_v32 = vmul.f32 %v12458_v31, %v18404_v56 }
 0x38e   :  { %18369 = vst [vmem:[#allocation358_spill] sm:$0xff] %v12448_v23  ;;  %18370 = vst [vmem:[#allocation359_spill] sm:$0xff] %v12450_v52  ;;  %3366 = vperm.xlu1 %10195, %v9244_v24   ;;  %2853 = vperm.xlu0 %10194, %v9180_v60   ;;  %v12466_v52 = vmul.f32 %v12458_v31, %v10565_v1  ;;  %v12470_v24 = vmul.f32 %v12458_v31, %v10567_v2  ;;  %v9245_v23 = vld [vmem:[%s17936_s0 + $0x200] sm:$0xff] }
 0x38f   :  { %v12486_v1 = vmul.f32 %v12458_v31, %v10577_v6  ;;  %v12490_v2 = vmul.f32 %v12458_v31, %v10585_v9  ;;  %v12506_v6 = vmul.f32 %v12458_v31, %v10605_v17  ;;  %v12510_v9 = vmul.f32 %v12458_v31, %v10607_v18 }
 0x390   :  { %v12526_v17 = vmul.f32 %v12458_v31, %v10625_v25  ;;  %v12531_v18 = vmul.f32 %v12458_v31, %v10627_v26  ;;  %v9309_v25 = vld [vmem:[%s17936_s0 + $0x1f9] sm:$0xff]  ;;  %v12550_v26 = vmul.f32 %v12458_v31, %v10647_v34  ;;  %v12570_v34 = vmul.f32 %v12458_v31, %v10675_v45 }
 0x391   :  { %v12460_v47 = vpop.permute.xlu1 %3291  ;;  %v12462_v59 = vpop.permute.xlu0 %2778  ;;  %v12590_v45 = vmul.f32 %v12458_v31, %v10695_v53  ;;  %v12610_v53 = vmul.f32 %v12458_v31, %v10717_v62  ;;  %v12630_v62 = vmul.f32 %v12458_v31, %v10735_v11  ;;  %v12650_v11 = vmul.f32 %v12458_v31, %v10757_v28  ;;  %v12671_v28 = vld [vmem:[%s17937_s1 + $0x1] ss:$0 sm:$0xff] }
 0x392   :  { %18371 = vst [vmem:[#allocation360_spill] sm:$0xff] %v12460_v47  ;;  %18372 = vst [vmem:[#allocation361_spill] sm:$0xff] %v12462_v59  ;;  %4390 = vperm.xlu1 %10195, %v9179_v40   ;;  %3878 = vperm.xlu0 %10194, %v9308_v63   ;;  %v12478_v47 = vld [vmem:[%s17936_s0 + $0x1fa] sm:$0xff]  ;;  %v12482_v63 = vmul.f32 %v12458_v31, %v10575_v5  ;;  %v12494_v40 = vmul.f32 %v12458_v31, %v10587_v10 }
 0x393   :  { %v12498_v59 = vmul.f32 %v12458_v31, %v10595_v13  ;;  %v12502_v5 = vmul.f32 %v12458_v31, %v10597_v14  ;;  %v12518_v13 = vmul.f32 %v12458_v31, %v10615_v21  ;;  %v12522_v14 = vmul.f32 %v12458_v31, %v10617_v22 }
 0x394   :  { %v12539_v21 = vmul.f32 %v12458_v31, %v10637_v30  ;;  %v12543_v22 = vmul.f32 %v12458_v31, %v10645_v33  ;;  %v12558_v30 = vmul.f32 %v12458_v31, %v10657_v38  ;;  %v12562_v33 = vmul.f32 %v12458_v31, %v10665_v41 }
 0x395   :  { %v12512_v55 = vpop.permute.xlu1 %4315  ;;  %v12514_v10 = vpop.permute.xlu0 %3803  ;;  %v12578_v38 = vmul.f32 %v12458_v31, %v10685_v49  ;;  %v12598_v49 = vmul.f32 %v12458_v31, %v10705_v57  ;;  %v12618_v57 = vld [vmem:[%s17936_s0 + $0x202] sm:$0xff]  ;;  %v931_v44 = vmul.f32 %v12671_v28, %v18406_v48 }
 0x396   :  { %18373 = vst [vmem:[#allocation362_spill] sm:$0xff] %v12512_v55  ;;  %18374 = vst [vmem:[#allocation363_spill] sm:$0xff] %v12514_v10  ;;  %3371 = vperm.xlu1 %10195, %v9245_v23   ;;  %2858 = vperm.xlu0 %10194, %v12478_v47   ;;  %v12535_v10 = vmul.f32 %v12458_v31, %v10635_v29  ;;  %v12554_v29 = vmul.f32 %v12458_v31, %v10655_v37 }
 0x397   :  { %v12566_v23 = vmul.f32 %v12458_v31, %v10667_v42  ;;  %v12574_v37 = vmul.f32 %v12458_v31, %v10677_v46  ;;  %v12586_v42 = vmul.f32 %v12458_v31, %v10687_v50  ;;  %v12594_v46 = vmul.f32 %v12458_v31, %v10697_v54  ;;  %v9246_v54 = vld [vmem:[%s17936_s0 + $0x210] sm:$0xff] }
 0x398   :  { %v12606_v50 = vmul.f32 %v12458_v31, %v10715_v61  ;;  %v12626_v61 = vmul.f32 %v12458_v31, %v10727_v4  ;;  %v12646_v4 = vmul.f32 %v12458_v31, %v10755_v27  ;;  %v12666_v27 = vmul.f32 %v12458_v31, %v18379_v39 }
 0x399   :  { %v12580_v55 = vpop.permute.xlu1 %3296  ;;  %v12582_v41 = vpop.permute.xlu0 %2783  ;;  %v12684_v39 = vmul.f32 %v12458_v31, %v18383_v7  ;;  %v12703_v7 = vmul.f32 %v12458_v31, %v18391_v51 }
 0x39a   :  { %18375 = vst [vmem:[#allocation364_spill] sm:$0xff] %v12580_v55  ;;  %18376 = vst [vmem:[#allocation365_spill] sm:$0xff] %v12582_v41  ;;  %4395 = vperm.xlu1 %10195, %v9180_v60   ;;  %3883 = vperm.xlu0 %10194, %v9309_v25   ;;  %v12602_v41 = vmul.f32 %v12458_v31, %v10707_v58  ;;  %v12622_v58 = vmul.f32 %v12458_v31, %v10725_v3 }
 0x39b   :  { %v12634_v60 = vmul.f32 %v12458_v31, %v10737_v12  ;;  %v12638_v25 = vmul.f32 %v12458_v31, %v10745_v19  ;;  %v12642_v3 = vmul.f32 %v12458_v31, %v10747_v20  ;;  %v12658_v19 = vmul.f32 %v12458_v31, %v10765_v35  ;;  %18392 = vst [vmem:[#allocation13_spill] sm:$0xff] %v12703_v7 }
 0x39c   :  { %v12662_v20 = vmul.f32 %v12458_v31, %v10767_v36 }
 0x39d   :  { %v12652_v55 = vpop.permute.xlu1 %4320  ;;  %v12654_v12 = vpop.permute.xlu0 %3808 }
 0x39e   :  { %18377 = vst [vmem:[#allocation366_spill] sm:$0xff] %v12652_v55  ;;  %18378 = vst [vmem:[#allocation367_spill] sm:$0xff] %v12654_v12  ;;  %3376 = vperm.xlu1 %10195, %v9246_v54   ;;  %2863 = vperm.xlu0 %10194, %v12618_v57   ;;  %v18380_v12 = vld [vmem:[#allocation9_spill] sm:$0xff]  ;;  %v18381_v55 = vld [vmem:[#allocation10_spill] sm:$0xff] }
 0x39f   :  { %v12676_v35 = vmul.f32 %v12458_v31, %v18380_v12  ;;  %v12680_v36 = vmul.f32 %v12458_v31, %v18381_v55  ;;  %18384 = vst [vmem:[#allocation9_spill] sm:$0xff] %v12684_v39  ;;  %18386 = vst [vmem:[#allocation10_spill] sm:$0xff] %v12688_v0  ;;  %v9310_v54 = vld [vmem:[%s17936_s0 + $0x201] sm:$0xff]  ;;  %v12695_v12 = vmul.f32 %v12458_v31, %v18387_v16 }
 0x3a0   :  { %v12699_v55 = vmul.f32 %v12458_v31, %v18389_v43  ;;  %v12715_v16 = vmul.f32 %v12458_v31, %v18397_v15  ;;  %v12719_v43 = vmul.f32 %v12458_v31, %v18399_v8  ;;  %v18407_v15 = vld [vmem:[#allocation32_spill] sm:$0xff]  ;;  %v18408_v8 = vld [vmem:[#allocation21_spill] sm:$0xff] }
 0x3a1   :  { %18382 = vst [vmem:[#allocation8_spill] sm:$0xff] %v12680_v36  ;;  %18388 = vst [vmem:[#allocation11_spill] sm:$0xff] %v12695_v12  ;;  %v12723_v7 = vpop.permute.xlu1 %3301  ;;  %v12725_v12 = vpop.permute.xlu0 %2788  ;;  %v18423_v0 = vld [vmem:[#allocation28_spill] sm:$0xff]  ;;  %v18425_v36 = vld [vmem:[#allocation29_spill] sm:$0xff] }
 0x3a2   :  { %18390 = vst [vmem:[#allocation12_spill] sm:$0xff] %v12699_v55  ;;  %18398 = vst [vmem:[#allocation16_spill] sm:$0xff] %v12715_v16  ;;  %v18401_v55 = vld [vmem:[#allocation30_spill] sm:$0xff]  ;;  %v934_v16 = vmul.f32 %v12671_v28, %v18407_v15  ;;  %4400 = vperm.xlu1 %10195, %v12478_v47   ;;  %3888 = vperm.xlu0 %10194, %v9310_v54   ;;  %v18415_v15 = vld [vmem:[#allocation24_spill] sm:$0xff]  ;;  %v12776_v39 = vmul.f32 %v12458_v31, %v18423_v0 }
 0x3a3   :  { %18400 = vst [vmem:[#allocation17_spill] sm:$0xff] %v12719_v43  ;;  %v932_v51 = vmul.f32 %v12671_v28, %v18401_v55  ;;  %18402 = vst [vmem:[#allocation18_spill] sm:$0xff] %v12723_v7  ;;  %v12738_v55 = vmul.f32 %v12458_v31, %v18408_v8  ;;  %v18410_v7 = vld [vmem:[#allocation22_spill] sm:$0xff]  ;;  %v18412_v43 = vld [vmem:[#allocation23_spill] sm:$0xff] }
 0x3a4   :  { %18403 = vst [vmem:[#allocation19_spill] sm:$0xff] %v12725_v12  ;;  %18405 = vst [vmem:[#allocation30_spill] sm:$0xff] %v12729_v32  ;;  %v12742_v12 = vmul.f32 %v12458_v31, %v18410_v7  ;;  %v12746_v56 = vmul.f32 %v12458_v31, %v18412_v43  ;;  %v18414_v32 = vld [vmem:[#allocation33_spill] sm:$0xff]  ;;  %v9247_v47 = vld [vmem:[%s17936_s0 + $0x218] sm:$0xff]  ;;  %v12760_v7 = vmul.f32 %v12458_v31, %v18415_v15 }
 0x3a5   :  { %18409 = vst [vmem:[#allocation20_spill] sm:$0xff] %v12738_v55  ;;  %v933_v48 = vmul.f32 %v12671_v28, %v18414_v32  ;;  %v12756_v54 = vld [vmem:[%s17936_s0 + $0x212] sm:$0xff]  ;;  %v18417_v8 = vld [vmem:[#allocation25_spill] sm:$0xff]  ;;  %18424 = vst [vmem:[#allocation24_spill] sm:$0xff] %v12776_v39  ;;  %v12780_v15 = vmul.f32 %v12458_v31, %v18425_v36  ;;  %v12795_v0 = vadd.f32 %v934_v16, %v12482_v63 }
 0x3a6   :  { %18411 = vst [vmem:[#allocation31_spill] sm:$0xff] %v12742_v12  ;;  %18413 = vst [vmem:[#allocation32_spill] sm:$0xff] %v12746_v56  ;;  %v12764_v43 = vmul.f32 %v12458_v31, %v18417_v8  ;;  %v18419_v56 = vld [vmem:[#allocation26_spill] sm:$0xff]  ;;  %v18421_v12 = vld [vmem:[#allocation27_spill] sm:$0xff]  ;;  %3381 = vperm.xlu1 %10195, %v9247_v47   ;;  %2868 = vperm.xlu0 %10194, %v12756_v54  }
 0x3a7   :  { %18416 = vst [vmem:[#allocation21_spill] sm:$0xff] %v12760_v7  ;;  %v12768_v32 = vmul.f32 %v12458_v31, %v18419_v56  ;;  %v12772_v55 = vmul.f32 %v12458_v31, %v18421_v12  ;;  %18426 = vst [vmem:[#allocation25_spill] sm:$0xff] %v12780_v15  ;;  %v12783_v7 = vadd.f32 %v932_v51, %v12486_v1  ;;  %v18428_v8 = vld [vmem:[#allocation34_spill] sm:$0xff]  ;;  %v12787_v56 = vpop.permute.xlu1 %4325  ;;  %v18433_v39 = vld [vmem:[#allocation35_spill] sm:$0xff] }
 0x3a8   :  { %18418 = vst [vmem:[#allocation22_spill] sm:$0xff] %v12764_v43  ;;  %v936_v43 = vmul.f32 %v12671_v28, %v18428_v8  ;;  %18429 = vst [vmem:[#allocation27_spill] sm:$0xff] %v12787_v56  ;;  %v12792_v12 = vadd.f32 %v931_v44, %v12470_v24  ;;  %v935_v31 = vmul.f32 %v12671_v28, %v18433_v39  ;;  %v18435_v36 = vld [vmem:[#allocation36_spill] sm:$0xff]  ;;  %v18436_v8 = vld [vmem:[#allocation37_spill] sm:$0xff] }
 0x3a9   :  { %18420 = vst [vmem:[#allocation23_spill] sm:$0xff] %v12768_v32  ;;  %18422 = vst [vmem:[#allocation33_spill] sm:$0xff] %v12772_v55  ;;  %v12789_v32 = vpop.permute.xlu0 %3813  ;;  %v12801_v1 = vadd.f32 %v933_v48, %v12466_v52  ;;  %v938_v51 = vmul.f32 %v12671_v28, %v18435_v36  ;;  %v18437_v44 = vld [vmem:[#allocation38_spill] sm:$0xff]  ;;  %v18438_v39 = vld [vmem:[#allocation39_spill] sm:$0xff] }
 0x3aa   :  { %18427 = vst [vmem:[#allocation26_spill] sm:$0xff] %v12783_v7  ;;  %18430 = vst [vmem:[#allocation28_spill] sm:$0xff] %v12789_v32  ;;  %v937_v32 = vmul.f32 %v12671_v28, %v18436_v8  ;;  %v940_v24 = vmul.f32 %v12671_v28, %v18437_v44  ;;  %v9311_v63 = vld [vmem:[%s17936_s0 + $0x211] sm:$0xff]  ;;  %v939_v16 = vmul.f32 %v12671_v28, %v18438_v39  ;;  %v18439_v47 = vld [vmem:[#allocation40_spill] sm:$0xff]  ;;  %4405 = vperm.xlu1 %10195, %v12618_v57  }
 0x3ab   :  { %18431 = vst [vmem:[#allocation29_spill] sm:$0xff] %v12792_v12  ;;  %18432 = vst [vmem:[#allocation34_spill] sm:$0xff] %v12795_v0  ;;  %v942_v52 = vmul.f32 %v12671_v28, %v18439_v47  ;;  %v18440_v48 = vld [vmem:[#allocation41_spill] sm:$0xff]  ;;  %v18441_v36 = vld [vmem:[#allocation42_spill] sm:$0xff]  ;;  %v12821_v8 = vadd.f32 %v936_v43, %v12490_v2  ;;  %v12829_v55 = vpop.permute.xlu1 %3306  ;;  %3893 = vperm.xlu0 %10194, %v9311_v63  }
 0x3ac   :  { %18434 = vst [vmem:[#allocation35_spill] sm:$0xff] %v12801_v1  ;;  %v941_v56 = vmul.f32 %v12671_v28, %v18440_v48  ;;  %v944_v1 = vmul.f32 %v12671_v28, %v18441_v36  ;;  %v18443_v44 = vld [vmem:[#allocation43_spill] sm:$0xff]  ;;  %v18444_v12 = vld [vmem:[#allocation44_spill] sm:$0xff]  ;;  %v18445_v15 = vld [vmem:[#allocation45_spill] sm:$0xff]  ;;  %v12834_v48 = vadd.f32 %v935_v31, %v12494_v40 }
 0x3ad   :  { %18442 = vst [vmem:[#allocation36_spill] sm:$0xff] %v12821_v8  ;;  %v943_v0 = vmul.f32 %v12671_v28, %v18443_v44  ;;  %v946_v7 = vmul.f32 %v12671_v28, %v18444_v12  ;;  %v945_v39 = vmul.f32 %v12671_v28, %v18445_v15  ;;  %18446 = vst [vmem:[#allocation37_spill] sm:$0xff] %v12829_v55  ;;  %v12831_v47 = vpop.permute.xlu0 %2793  ;;  %v18448_v36 = vld [vmem:[#allocation46_spill] sm:$0xff]  ;;  %v18449_v43 = vld [vmem:[#allocation47_spill] sm:$0xff] }
 0x3ae   :  { %18447 = vst [vmem:[#allocation38_spill] sm:$0xff] %v12831_v47  ;;  %v948_v2 = vmul.f32 %v12671_v28, %v18448_v36  ;;  %v947_v8 = vmul.f32 %v12671_v28, %v18449_v43  ;;  %v12842_v12 = vadd.f32 %v938_v51, %v12498_v59  ;;  %v12845_v15 = vadd.f32 %v937_v32, %v12502_v5  ;;  %v18450_v40 = vld [vmem:[#allocation48_spill] sm:$0xff]  ;;  %v12858_v57 = vld [vmem:[%s17936_s0 + $0x21a] sm:$0xff] }
 0x3af   :  { %v12848_v44 = vadd.f32 %v940_v24, %v12506_v6  ;;  %v950_v31 = vmul.f32 %v12671_v28, %v18450_v40  ;;  %v9248_v36 = vld [vmem:[%s17936_s0 + $0x228] sm:$0xff]  ;;  %v12861_v59 = vadd.f32 %v939_v16, %v12510_v9  ;;  %v12864_v5 = vadd.f32 %v942_v52, %v12518_v13  ;;  %v12883_v13 = vpop.permute.xlu1 %4330  ;;  %2873 = vperm.xlu0 %10194, %v12858_v57   ;;  %v18459_v43 = vld [vmem:[#allocation55_spill] sm:$0xff] }
 0x3b0   :  { %v12867_v6 = vadd.f32 %v941_v56, %v12522_v14  ;;  %v12870_v32 = vadd.f32 %v944_v1, %v12526_v17  ;;  %v12873_v51 = vadd.f32 %v943_v0, %v12531_v18  ;;  %v12876_v24 = vadd.f32 %v946_v7, %v12535_v10  ;;  %v18451_v9 = vld [vmem:[#allocation49_spill] sm:$0xff]  ;;  %18452 = vst [vmem:[#allocation39_spill] sm:$0xff] %v12883_v13  ;;  %v18454_v18 = vld [vmem:[#allocation50_spill] sm:$0xff]  ;;  %v18455_v7 = vld [vmem:[#allocation51_spill] sm:$0xff] }
 0x3b1   :  { %v12879_v63 = vadd.f32 %v945_v39, %v12539_v21  ;;  %v949_v16 = vmul.f32 %v12671_v28, %v18451_v9  ;;  %v12885_v52 = vpop.permute.xlu0 %3818  ;;  %v12888_v14 = vadd.f32 %v948_v2, %v12543_v22  ;;  %v12891_v17 = vadd.f32 %v947_v8, %v12550_v26  ;;  %3386 = vperm.xlu1 %10195, %v9248_v36   ;;  %v18456_v0 = vld [vmem:[#allocation52_spill] sm:$0xff]  ;;  %v18457_v22 = vld [vmem:[#allocation53_spill] sm:$0xff]  ;;  %v9312_v26 = vld [vmem:[%s17936_s0 + $0x219] sm:$0xff] }
 0x3b2   :  { %18453 = vst [vmem:[#allocation40_spill] sm:$0xff] %v12885_v52  ;;  %v952_v10 = vmul.f32 %v12671_v28, %v18454_v18  ;;  %v12897_v21 = vadd.f32 %v950_v31, %v12554_v29  ;;  %v951_v56 = vmul.f32 %v12671_v28, %v18455_v7  ;;  %v954_v1 = vmul.f32 %v12671_v28, %v18456_v0  ;;  %v18458_v8 = vld [vmem:[#allocation54_spill] sm:$0xff]  ;;  %v18460_v40 = vld [vmem:[#allocation56_spill] sm:$0xff]  ;;  %v18461_v36 = vld [vmem:[#allocation57_spill] sm:$0xff] }
 0x3b3   :  { %v953_v39 = vmul.f32 %v12671_v28, %v18457_v22  ;;  %v956_v2 = vmul.f32 %v12671_v28, %v18458_v8  ;;  %v955_v29 = vmul.f32 %v12671_v28, %v18459_v43  ;;  %v958_v31 = vmul.f32 %v12671_v28, %v18460_v40  ;;  %v18462_v7 = vld [vmem:[#allocation58_spill] sm:$0xff]  ;;  %v18463_v22 = vld [vmem:[#allocation59_spill] sm:$0xff]  ;;  %v18464_v52 = vld [vmem:[#allocation60_spill] sm:$0xff]  ;;  %v12925_v55 = vpop.permute.xlu1 %3311  ;;  %3898 = vperm.xlu0 %10194, %v9312_v26  }
 0x3b4   :  { %v957_v9 = vmul.f32 %v12671_v28, %v18461_v36  ;;  %v12917_v18 = vadd.f32 %v949_v16, %v12558_v30  ;;  %v960_v0 = vmul.f32 %v12671_v28, %v18462_v7  ;;  %v959_v47 = vmul.f32 %v12671_v28, %v18463_v22  ;;  %18465 = vst [vmem:[#allocation41_spill] sm:$0xff] %v12925_v55  ;;  %v18467_v36 = vld [vmem:[#allocation61_spill] sm:$0xff]  ;;  %v18468_v16 = vld [vmem:[#allocation62_spill] sm:$0xff]  ;;  %v18483_v55 = vld [vmem:[#allocation75_spill] sm:$0xff] }
 0x3b5   :  { %v962_v8 = vmul.f32 %v12671_v28, %v18464_v52  ;;  %v12927_v43 = vpop.permute.xlu0 %2798  ;;  %v12930_v40 = vadd.f32 %v952_v10, %v12562_v33  ;;  %v961_v30 = vmul.f32 %v12671_v28, %v18467_v36  ;;  %v964_v13 = vmul.f32 %v12671_v28, %v18468_v16  ;;  %4410 = vperm.xlu1 %10195, %v12756_v54   ;;  %v18469_v33 = vld [vmem:[#allocation63_spill] sm:$0xff]  ;;  %v9249_v36 = vld [vmem:[%s17936_s0 + $0x230] sm:$0xff] }
 0x3b6   :  { %18466 = vst [vmem:[#allocation42_spill] sm:$0xff] %v12927_v43  ;;  %v12938_v7 = vadd.f32 %v951_v56, %v12566_v23  ;;  %v12941_v52 = vadd.f32 %v954_v1, %v12570_v34  ;;  %v12944_v22 = vadd.f32 %v953_v39, %v12574_v37  ;;  %v963_v10 = vmul.f32 %v12671_v28, %v18469_v33  ;;  %v12954_v54 = vld [vmem:[%s17936_s0 + $0x22a] sm:$0xff]  ;;  %v18478_v16 = vld [vmem:[#allocation70_spill] sm:$0xff]  ;;  %v18479_v33 = vld [vmem:[#allocation71_spill] sm:$0xff] }
 0x3b7   :  { %v12957_v23 = vadd.f32 %v956_v2, %v12578_v38  ;;  %v12960_v34 = vadd.f32 %v955_v29, %v12586_v42  ;;  %v12963_v37 = vadd.f32 %v958_v31, %v12590_v45  ;;  %v12966_v56 = vadd.f32 %v957_v9, %v12594_v46  ;;  %v18470_v38 = vld [vmem:[#allocation64_spill] sm:$0xff]  ;;  %v12979_v42 = vpop.permute.xlu1 %4335  ;;  %2878 = vperm.xlu0 %10194, %v12954_v54   ;;  %v18475_v9 = vld [vmem:[#allocation67_spill] sm:$0xff] }
 0x3b8   :  { %v12969_v1 = vadd.f32 %v960_v0, %v12598_v49  ;;  %v12972_v39 = vadd.f32 %v959_v47, %v12602_v41  ;;  %v12975_v26 = vadd.f32 %v962_v8, %v12606_v50  ;;  %v966_v2 = vmul.f32 %v12671_v28, %v18470_v38  ;;  %18471 = vst [vmem:[#allocation43_spill] sm:$0xff] %v12979_v42  ;;  %v18473_v49 = vld [vmem:[#allocation65_spill] sm:$0xff]  ;;  %v18474_v47 = vld [vmem:[#allocation66_spill] sm:$0xff] }
 0x3b9   :  { %v12981_v29 = vpop.permute.xlu0 %3823  ;;  %v12984_v45 = vadd.f32 %v961_v30, %v12610_v53  ;;  %v12987_v46 = vadd.f32 %v964_v13, %v12622_v58  ;;  %v965_v41 = vmul.f32 %v12671_v28, %v18473_v49  ;;  %3391 = vperm.xlu1 %10195, %v9249_v36   ;;  %v12993_v50 = vadd.f32 %v963_v10, %v12626_v61  ;;  %v18476_v53 = vld [vmem:[#allocation68_spill] sm:$0xff]  ;;  %v18477_v13 = vld [vmem:[#allocation69_spill] sm:$0xff] }
 0x3ba   :  { %18472 = vst [vmem:[#allocation44_spill] sm:$0xff] %v12981_v29  ;;  %v968_v31 = vmul.f32 %v12671_v28, %v18474_v47  ;;  %v967_v0 = vmul.f32 %v12671_v28, %v18475_v9  ;;  %v970_v8 = vmul.f32 %v12671_v28, %v18476_v53  ;;  %v9313_v58 = vld [vmem:[%s17936_s0 + $0x229] sm:$0xff]  ;;  %v969_v30 = vmul.f32 %v12671_v28, %v18477_v13  ;;  %v18482_v53 = vld [vmem:[#allocation74_spill] sm:$0xff] }
 0x3bb   :  { %v972_v61 = vmul.f32 %v12671_v28, %v18478_v16  ;;  %v971_v10 = vmul.f32 %v12671_v28, %v18479_v33  ;;  %v18480_v36 = vld [vmem:[#allocation72_spill] sm:$0xff]  ;;  %v13013_v49 = vadd.f32 %v966_v2, %v12630_v62  ;;  %v18481_v47 = vld [vmem:[#allocation73_spill] sm:$0xff]  ;;  %v976_v43 = vmul.f32 %v12671_v28, %v18482_v53  ;;  %v13021_v29 = vpop.permute.xlu1 %3316  ;;  %3903 = vperm.xlu0 %10194, %v9313_v58  }
 0x3bc   :  { %v974_v38 = vmul.f32 %v12671_v28, %v18480_v36  ;;  %v973_v9 = vmul.f32 %v12671_v28, %v18481_v47  ;;  %v975_v13 = vmul.f32 %v12671_v28, %v18483_v55  ;;  %18484 = vst [vmem:[#allocation45_spill] sm:$0xff] %v13021_v29  ;;  %v13026_v33 = vadd.f32 %v965_v41, %v12634_v60  ;;  %v18486_v36 = vld [vmem:[#allocation76_spill] sm:$0xff]  ;;  %v18487_v2 = vld [vmem:[#allocation77_spill] sm:$0xff]  ;;  %v18488_v60 = vld [vmem:[#allocation78_spill] sm:$0xff] }
 0x3bd   :  { %v13023_v16 = vpop.permute.xlu0 %2803  ;;  %v978_v62 = vmul.f32 %v12671_v28, %v18486_v36  ;;  %v977_v42 = vmul.f32 %v12671_v28, %v18487_v2  ;;  %4415 = vperm.xlu1 %10195, %v12858_v57   ;;  %v13034_v47 = vadd.f32 %v968_v31, %v12638_v25  ;;  %v13037_v55 = vadd.f32 %v967_v0, %v12642_v3  ;;  %v9250_v36 = vld [vmem:[%s17936_s0 + $0x240] sm:$0xff]  ;;  %v13050_v57 = vld [vmem:[%s17936_s0 + $0x232] sm:$0xff]  ;;  %v18494_v2 = vld [vmem:[#allocation9_spill] sm:$0xff] }
 0x3be   :  { %18485 = vst [vmem:[#allocation46_spill] sm:$0xff] %v13023_v16  ;;  %v13040_v53 = vadd.f32 %v970_v8, %v12646_v4  ;;  %v980_v41 = vmul.f32 %v12671_v28, %v18488_v60  ;;  %v13053_v25 = vadd.f32 %v969_v30, %v12650_v11  ;;  %v13056_v3 = vadd.f32 %v972_v61, %v12658_v19  ;;  %v18492_v8 = vld [vmem:[#allocation8_spill] sm:$0xff]  ;;  %v18496_v11 = vld [vmem:[#allocation79_spill] sm:$0xff] }
 0x3bf   :  { %v13059_v4 = vadd.f32 %v971_v10, %v12662_v20  ;;  %v13062_v31 = vadd.f32 %v974_v38, %v12666_v27  ;;  %v13065_v0 = vadd.f32 %v973_v9, %v12676_v35  ;;  %v13068_v58 = vadd.f32 %v976_v43, %v18492_v8  ;;  %v13075_v19 = vpop.permute.xlu1 %4340  ;;  %v18499_v20 = vld [vmem:[#allocation10_spill] sm:$0xff]  ;;  %v18501_v27 = vld [vmem:[#allocation11_spill] sm:$0xff]  ;;  %v18503_v35 = vld [vmem:[#allocation80_spill] sm:$0xff]  ;;  %2883 = vperm.xlu0 %10194, %v13050_v57  }
 0x3c0   :  { %v13071_v60 = vadd.f32 %v975_v13, %v18494_v2  ;;  %v979_v30 = vmul.f32 %v12671_v28, %v18496_v11  ;;  %18497 = vst [vmem:[#allocation52_spill] sm:$0xff] %v13075_v19  ;;  %v13080_v10 = vadd.f32 %v978_v62, %v18499_v20  ;;  %v13083_v38 = vadd.f32 %v977_v42, %v18501_v27  ;;  %v18504_v9 = vld [vmem:[#allocation12_spill] sm:$0xff]  ;;  %v18506_v8 = vld [vmem:[#allocation81_spill] sm:$0xff]  ;;  %v18507_v11 = vld [vmem:[#allocation82_spill] sm:$0xff] }
 0x3c1   :  { %18489 = vst [vmem:[#allocation47_spill] sm:$0xff] %v13059_v4  ;;  %18490 = vst [vmem:[#allocation48_spill] sm:$0xff] %v13062_v31  ;;  %v13077_v61 = vpop.permute.xlu0 %3828  ;;  %v982_v43 = vmul.f32 %v12671_v28, %v18503_v35  ;;  %3396 = vperm.xlu1 %10195, %v9250_v36   ;;  %v13089_v13 = vadd.f32 %v980_v41, %v18504_v9  ;;  %v981_v2 = vmul.f32 %v12671_v28, %v18506_v8  ;;  %v18508_v62 = vld [vmem:[#allocation83_spill] sm:$0xff]  ;;  %v9314_v42 = vld [vmem:[%s17936_s0 + $0x231] sm:$0xff] }
 0x3c2   :  { %18491 = vst [vmem:[#allocation49_spill] sm:$0xff] %v13065_v0  ;;  %18493 = vst [vmem:[#allocation50_spill] sm:$0xff] %v13068_v58  ;;  %v984_v16 = vmul.f32 %v12671_v28, %v18507_v11  ;;  %v983_v20 = vmul.f32 %v12671_v28, %v18508_v62  ;;  %v18509_v27 = vld [vmem:[#allocation84_spill] sm:$0xff]  ;;  %v18510_v35 = vld [vmem:[#allocation85_spill] sm:$0xff] }
 0x3c3   :  { %18495 = vst [vmem:[#allocation51_spill] sm:$0xff] %v13071_v60  ;;  %18498 = vst [vmem:[#allocation53_spill] sm:$0xff] %v13077_v61  ;;  %v986_v36 = vmul.f32 %v12671_v28, %v18509_v27  ;;  %v985_v41 = vmul.f32 %v12671_v28, %v18510_v35  ;;  %v18511_v9 = vld [vmem:[#allocation86_spill] sm:$0xff]  ;;  %v18512_v8 = vld [vmem:[#allocation87_spill] sm:$0xff]  ;;  %v13117_v58 = vpop.permute.xlu1 %3321  ;;  %3908 = vperm.xlu0 %10194, %v9314_v42  }
 0x3c4   :  { %18500 = vst [vmem:[#allocation54_spill] sm:$0xff] %v13080_v10  ;;  %18502 = vst [vmem:[#allocation55_spill] sm:$0xff] %v13083_v38  ;;  %v988_v29 = vmul.f32 %v12671_v28, %v18511_v9  ;;  %v987_v61 = vmul.f32 %v12671_v28, %v18512_v8  ;;  %v18513_v11 = vld [vmem:[#allocation13_spill] sm:$0xff]  ;;  %v18515_v62 = vld [vmem:[#allocation88_spill] sm:$0xff] }
 0x3c5   :  { %18505 = vst [vmem:[#allocation56_spill] sm:$0xff] %v13089_v13  ;;  %v13109_v19 = vadd.f32 %v979_v30, %v18513_v11  ;;  %v990_v13 = vmul.f32 %v12671_v28, %v18515_v62  ;;  %v18516_v38 = vld [vmem:[#allocation89_spill] sm:$0xff]  ;;  %v18517_v60 = vld [vmem:[#allocation90_spill] sm:$0xff]  ;;  %18518 = vst [vmem:[#allocation58_spill] sm:$0xff] %v13117_v58  ;;  %v13119_v35 = vpop.permute.xlu0 %2808  ;;  %4420 = vperm.xlu1 %10195, %v12954_v54  }
 0x3c6   :  { %v989_v10 = vmul.f32 %v12671_v28, %v18516_v38  ;;  %v992_v27 = vmul.f32 %v12671_v28, %v18517_v60  ;;  %18519 = vst [vmem:[#allocation59_spill] sm:$0xff] %v13119_v35  ;;  %v18520_v9 = vld [vmem:[#allocation14_spill] sm:$0xff]  ;;  %v18522_v8 = vld [vmem:[#allocation91_spill] sm:$0xff]  ;;  %v18523_v11 = vld [vmem:[#allocation92_spill] sm:$0xff] }
 0x3c7   :  { %18514 = vst [vmem:[#allocation57_spill] sm:$0xff] %v13109_v19  ;;  %v13122_v0 = vadd.f32 %v982_v43, %v18520_v9  ;;  %v991_v30 = vmul.f32 %v12671_v28, %v18522_v8  ;;  %v994_v19 = vmul.f32 %v12671_v28, %v18523_v11  ;;  %v13131_v38 = vld [vmem:[%s17937_s1 + $0x2] ss:$0 sm:$0xff]  ;;  %v18524_v60 = vld [vmem:[#allocation15_spill] sm:$0xff]  ;;  %v18528_v9 = vld [vmem:[#allocation17_spill] sm:$0xff] }
 0x3c8   :  { %v13135_v62 = vadd.f32 %v981_v2, %v18524_v60  ;;  %v18526_v35 = vld [vmem:[#allocation16_spill] sm:$0xff]  ;;  %v13141_v58 = vadd.f32 %v983_v20, %v18528_v9  ;;  %v18530_v8 = vld [vmem:[#allocation93_spill] sm:$0xff]  ;;  %v18531_v2 = vld [vmem:[#allocation30_spill] sm:$0xff] }
 0x3c9   :  { %18521 = vst [vmem:[#allocation60_spill] sm:$0xff] %v13122_v0  ;;  %v13138_v43 = vadd.f32 %v984_v16, %v18526_v35  ;;  %v993_v11 = vmul.f32 %v12671_v28, %v18530_v8  ;;  %v9251_v0 = vld [vmem:[%s17936_s0 + $0x248] sm:$0xff]  ;;  %v13154_v42 = vadd.f32 %v986_v36, %v18531_v2  ;;  %v18534_v20 = vld [vmem:[#allocation31_spill] sm:$0xff]  ;;  %v18544_v36 = vld [vmem:[#allocation94_spill] sm:$0xff] }
 0x3ca   :  { %18525 = vst [vmem:[#allocation61_spill] sm:$0xff] %v13135_v62  ;;  %18529 = vst [vmem:[#allocation63_spill] sm:$0xff] %v13141_v58  ;;  %v13151_v54 = vld [vmem:[%s17936_s0 + $0x242] sm:$0xff]  ;;  %v13160_v60 = vadd.f32 %v988_v29, %v18534_v20  ;;  %v18538_v8 = vld [vmem:[#allocation21_spill] sm:$0xff]  ;;  %v1449_v2 = vmul.f32 %v13131_v38, %v18544_v36  ;;  %3401 = vperm.xlu1 %10195, %v9251_v0  }
 0x3cb   :  { %18527 = vst [vmem:[#allocation62_spill] sm:$0xff] %v13138_v43  ;;  %v18532_v16 = vld [vmem:[#allocation20_spill] sm:$0xff]  ;;  %v13166_v58 = vadd.f32 %v990_v13, %v18538_v8  ;;  %v18540_v43 = vld [vmem:[#allocation22_spill] sm:$0xff]  ;;  %v18542_v31 = vld [vmem:[#allocation23_spill] sm:$0xff]  ;;  %2888 = vperm.xlu0 %10194, %v13151_v54  }
 0x3cc   :  { %v13157_v35 = vadd.f32 %v985_v41, %v18532_v16  ;;  %18535 = vst [vmem:[#allocation65_spill] sm:$0xff] %v13160_v60  ;;  %v18536_v9 = vld [vmem:[#allocation32_spill] sm:$0xff]  ;;  %v13169_v62 = vadd.f32 %v989_v10, %v18540_v43  ;;  %v13172_v4 = vadd.f32 %v992_v27, %v18542_v31  ;;  %v13176_v41 = vpop.permute.xlu1 %4345  ;;  %v13178_v16 = vpop.permute.xlu0 %3833  ;;  %v18547_v29 = vld [vmem:[#allocation33_spill] sm:$0xff]  ;;  %v18551_v13 = vld [vmem:[#allocation95_spill] sm:$0xff] }
 0x3cd   :  { %v13163_v28 = vadd.f32 %v987_v61, %v18536_v9  ;;  %18539 = vst [vmem:[#allocation67_spill] sm:$0xff] %v13166_v58  ;;  %18545 = vst [vmem:[#allocation70_spill] sm:$0xff] %v13176_v41  ;;  %v13181_v20 = vadd.f32 %v991_v30, %v18547_v29  ;;  %v18549_v61 = vld [vmem:[#allocation24_spill] sm:$0xff]  ;;  %v1448_v10 = vmul.f32 %v13131_v38, %v18551_v13  ;;  %v18552_v31 = vld [vmem:[#allocation25_spill] sm:$0xff] }
 0x3ce   :  { %18533 = vst [vmem:[#allocation64_spill] sm:$0xff] %v13157_v35  ;;  %18541 = vst [vmem:[#allocation68_spill] sm:$0xff] %v13169_v62  ;;  %v13184_v9 = vadd.f32 %v994_v19, %v18549_v61  ;;  %v13190_v27 = vadd.f32 %v993_v11, %v18552_v31  ;;  %v18554_v43 = vld [vmem:[#allocation96_spill] sm:$0xff]  ;;  %v18555_v36 = vld [vmem:[#allocation97_spill] sm:$0xff]  ;;  %4425 = vperm.xlu1 %10195, %v13050_v57  }
 0x3cf   :  { %18537 = vst [vmem:[#allocation66_spill] sm:$0xff] %v13163_v28  ;;  %18543 = vst [vmem:[#allocation69_spill] sm:$0xff] %v13172_v4  ;;  %v1451_v8 = vmul.f32 %v13131_v38, %v18554_v43  ;;  %v18556_v30 = vld [vmem:[#allocation98_spill] sm:$0xff]  ;;  %v9315_v19 = vld [vmem:[%s17936_s0 + $0x241] sm:$0xff] }
 0x3d0   :  { %18546 = vst [vmem:[#allocation71_spill] sm:$0xff] %v13178_v16  ;;  %18548 = vst [vmem:[#allocation72_spill] sm:$0xff] %v13181_v20  ;;  %v1450_v16 = vmul.f32 %v13131_v38, %v18555_v36  ;;  %v1453_v29 = vmul.f32 %v13131_v38, %v18556_v30  ;;  %v18557_v61 = vld [vmem:[#allocation99_spill] sm:$0xff]  ;;  %v18558_v13 = vld [vmem:[#allocation100_spill] sm:$0xff]  ;;  %v13218_v28 = vpop.permute.xlu1 %3326  ;;  %3913 = vperm.xlu0 %10194, %v9315_v19  }
 0x3d1   :  { %18550 = vst [vmem:[#allocation73_spill] sm:$0xff] %v13184_v9  ;;  %18553 = vst [vmem:[#allocation74_spill] sm:$0xff] %v13190_v27  ;;  %v1452_v0 = vmul.f32 %v13131_v38, %v18557_v61  ;;  %v1455_v11 = vmul.f32 %v13131_v38, %v18558_v13  ;;  %v18559_v31 = vld [vmem:[#allocation101_spill] sm:$0xff]  ;;  %v18560_v43 = vld [vmem:[#allocation102_spill] sm:$0xff]  ;;  %v13220_v13 = vpop.permute.xlu0 %2813 }
 0x3d2   :  { %v1454_v27 = vmul.f32 %v13131_v38, %v18559_v31  ;;  %v1457_v9 = vmul.f32 %v13131_v38, %v18560_v43  ;;  %v18561_v36 = vld [vmem:[#allocation26_spill] sm:$0xff]  ;;  %v18563_v30 = vld [vmem:[#allocation103_spill] sm:$0xff]  ;;  %v18564_v4 = vld [vmem:[#allocation104_spill] sm:$0xff]  ;;  %18566 = vst [vmem:[#allocation76_spill] sm:$0xff] %v13218_v28 }
 0x3d3   :  { %v13210_v20 = vadd.f32 %v1449_v2, %v18561_v36  ;;  %v1456_v41 = vmul.f32 %v13131_v38, %v18563_v30  ;;  %v1459_v62 = vmul.f32 %v13131_v38, %v18564_v4  ;;  %v18565_v58 = vld [vmem:[#allocation105_spill] sm:$0xff]  ;;  %18567 = vst [vmem:[#allocation77_spill] sm:$0xff] %v13220_v13  ;;  %v18569_v43 = vld [vmem:[#allocation106_spill] sm:$0xff]  ;;  %v18570_v36 = vld [vmem:[#allocation107_spill] sm:$0xff] }
 0x3d4   :  { %v1458_v61 = vmul.f32 %v13131_v38, %v18565_v58  ;;  %v18568_v31 = vld [vmem:[#allocation29_spill] sm:$0xff]  ;;  %v1461_v2 = vmul.f32 %v13131_v38, %v18569_v43  ;;  %v18571_v4 = vld [vmem:[#allocation34_spill] sm:$0xff]  ;;  %v18572_v58 = vld [vmem:[#allocation35_spill] sm:$0xff] }
 0x3d5   :  { %18562 = vst [vmem:[#allocation75_spill] sm:$0xff] %v13210_v20  ;;  %v13223_v60 = vadd.f32 %v1448_v10, %v18568_v31  ;;  %v1460_v20 = vmul.f32 %v13131_v38, %v18570_v36  ;;  %v13231_v30 = vadd.f32 %v1451_v8, %v18571_v4  ;;  %v13234_v35 = vadd.f32 %v1450_v16, %v18572_v58  ;;  %v18573_v28 = vld [vmem:[#allocation36_spill] sm:$0xff]  ;;  %v9252_v43 = vld [vmem:[%s17936_s0 + $0x258] sm:$0xff]  ;;  %v13247_v57 = vld [vmem:[%s17936_s0 + $0x24a] sm:$0xff] }
 0x3d6   :  { %v13237_v13 = vadd.f32 %v1453_v29, %v18573_v28  ;;  %v18574_v10 = vld [vmem:[#allocation108_spill] sm:$0xff]  ;;  %v13250_v8 = vadd.f32 %v1452_v0, %v12834_v48  ;;  %v13253_v16 = vadd.f32 %v1455_v11, %v12842_v12  ;;  %v13256_v28 = vadd.f32 %v1454_v27, %v12845_v15  ;;  %v18575_v48 = vld [vmem:[#allocation109_spill] sm:$0xff]  ;;  %v13272_v12 = vpop.permute.xlu1 %4350  ;;  %v13274_v11 = vpop.permute.xlu0 %3838  ;;  %3406 = vperm.xlu1 %10195, %v9252_v43   ;;  %v18584_v58 = vld [vmem:[#allocation115_spill] sm:$0xff] }
 0x3d7   :  { %v1463_v31 = vmul.f32 %v13131_v38, %v18574_v10  ;;  %v13259_v29 = vadd.f32 %v1457_v9, %v12848_v44  ;;  %v13262_v19 = vadd.f32 %v1456_v41, %v12861_v59  ;;  %v13265_v36 = vadd.f32 %v1459_v62, %v12864_v5  ;;  %18576 = vst [vmem:[#allocation78_spill] sm:$0xff] %v13272_v12  ;;  %v18578_v59 = vld [vmem:[#allocation110_spill] sm:$0xff]  ;;  %v18580_v62 = vld [vmem:[#allocation111_spill] sm:$0xff]  ;;  %v18581_v9 = vld [vmem:[#allocation112_spill] sm:$0xff] }
 0x3d8   :  { %v13268_v4 = vadd.f32 %v1458_v61, %v12867_v6  ;;  %v1462_v0 = vmul.f32 %v13131_v38, %v18575_v48  ;;  %18577 = vst [vmem:[#allocation8_spill] sm:$0xff] %v13274_v11  ;;  %v13277_v15 = vadd.f32 %v1461_v2, %v12870_v32  ;;  %v13280_v44 = vadd.f32 %v1460_v20, %v12873_v51  ;;  %v18582_v32 = vld [vmem:[#allocation113_spill] sm:$0xff]  ;;  %v18583_v20 = vld [vmem:[#allocation114_spill] sm:$0xff]  ;;  %v18585_v10 = vld [vmem:[#allocation116_spill] sm:$0xff] }
 0x3d9   :  { %v1465_v5 = vmul.f32 %v13131_v38, %v18578_v59  ;;  %2893 = vperm.xlu0 %10194, %v13247_v57   ;;  %v13286_v6 = vadd.f32 %v1463_v31, %v12876_v24  ;;  %v1464_v41 = vmul.f32 %v13131_v38, %v18580_v62  ;;  %v1467_v27 = vmul.f32 %v13131_v38, %v18581_v9  ;;  %v9316_v51 = vld [vmem:[%s17936_s0 + $0x249] sm:$0xff]  ;;  %v18588_v62 = vld [vmem:[#allocation118_spill] sm:$0xff] }
 0x3da   :  { %v1466_v61 = vmul.f32 %v13131_v38, %v18582_v32  ;;  %v1469_v2 = vmul.f32 %v13131_v38, %v18583_v20  ;;  %v1468_v24 = vmul.f32 %v13131_v38, %v18584_v58  ;;  %v1471_v31 = vmul.f32 %v13131_v38, %v18585_v10  ;;  %v18586_v43 = vld [vmem:[#allocation117_spill] sm:$0xff]  ;;  %v18589_v32 = vld [vmem:[#allocation119_spill] sm:$0xff]  ;;  %v18590_v12 = vld [vmem:[#allocation120_spill] sm:$0xff]  ;;  %v13316_v58 = vpop.permute.xlu0 %2818  ;;  %4430 = vperm.xlu1 %10195, %v13151_v54  }
 0x3db   :  { %18579 = vst [vmem:[#allocation9_spill] sm:$0xff] %v13286_v6  ;;  %v1470_v48 = vmul.f32 %v13131_v38, %v18586_v43  ;;  %v13306_v59 = vadd.f32 %v1462_v0, %v12879_v63  ;;  %v1473_v9 = vmul.f32 %v13131_v38, %v18588_v62  ;;  %v1472_v11 = vmul.f32 %v13131_v38, %v18589_v32  ;;  %v13314_v6 = vpop.permute.xlu1 %3331  ;;  %v18593_v43 = vld [vmem:[#allocation121_spill] sm:$0xff]  ;;  %v18594_v0 = vld [vmem:[#allocation122_spill] sm:$0xff]  ;;  %v13343_v54 = vld [vmem:[%s17936_s0 + $0x25a] sm:$0xff] }
 0x3dc   :  { %v1475_v20 = vmul.f32 %v13131_v38, %v18590_v12  ;;  %18591 = vst [vmem:[#allocation10_spill] sm:$0xff] %v13314_v6  ;;  %18592 = vst [vmem:[#allocation11_spill] sm:$0xff] %v13316_v58  ;;  %v13319_v10 = vadd.f32 %v1465_v5, %v12888_v14  ;;  %v1474_v63 = vmul.f32 %v13131_v38, %v18593_v43  ;;  %v18595_v14 = vld [vmem:[#allocation123_spill] sm:$0xff] }
 0x3dd   :  { %18587 = vst [vmem:[#allocation79_spill] sm:$0xff] %v13306_v59  ;;  %v1477_v59 = vmul.f32 %v13131_v38, %v18594_v0  ;;  %3918 = vperm.xlu0 %10194, %v9316_v51   ;;  %v13327_v62 = vadd.f32 %v1464_v41, %v12891_v17  ;;  %v13330_v12 = vadd.f32 %v1467_v27, %v12897_v21  ;;  %v9253_v43 = vld [vmem:[%s17936_s0 + $0x260] sm:$0xff]  ;;  %v18604_v0 = vld [vmem:[#allocation130_spill] sm:$0xff] }
 0x3de   :  { %v13333_v32 = vadd.f32 %v1466_v61, %v12917_v18  ;;  %v1476_v5 = vmul.f32 %v13131_v38, %v18595_v14  ;;  %v13346_v17 = vadd.f32 %v1469_v2, %v12930_v40  ;;  %v13349_v21 = vadd.f32 %v1468_v24, %v12938_v7  ;;  %v18596_v40 = vld [vmem:[#allocation124_spill] sm:$0xff]  ;;  %v13370_v24 = vpop.permute.xlu0 %3843  ;;  %3411 = vperm.xlu1 %10195, %v9253_v43   ;;  %v18605_v14 = vld [vmem:[#allocation131_spill] sm:$0xff] }
 0x3df   :  { %v13352_v18 = vadd.f32 %v1471_v31, %v12941_v52  ;;  %v13355_v41 = vadd.f32 %v1470_v48, %v12944_v22  ;;  %v13358_v27 = vadd.f32 %v1473_v9, %v12957_v23  ;;  %v13361_v61 = vadd.f32 %v1472_v11, %v12960_v34  ;;  %v13368_v7 = vpop.permute.xlu1 %4355  ;;  %18598 = vst [vmem:[#allocation12_spill] sm:$0xff] %v13370_v24  ;;  %v18599_v23 = vld [vmem:[#allocation125_spill] sm:$0xff]  ;;  %v18600_v11 = vld [vmem:[#allocation126_spill] sm:$0xff]  ;;  %v18601_v48 = vld [vmem:[#allocation127_spill] sm:$0xff] }
 0x3e0   :  { %v13364_v51 = vadd.f32 %v1475_v20, %v12963_v37  ;;  %v1479_v2 = vmul.f32 %v13131_v38, %v18596_v40  ;;  %18597 = vst [vmem:[#allocation80_spill] sm:$0xff] %v13368_v7  ;;  %v13373_v52 = vadd.f32 %v1474_v63, %v12966_v56  ;;  %v13376_v22 = vadd.f32 %v1477_v59, %v12969_v1  ;;  %v18602_v56 = vld [vmem:[#allocation128_spill] sm:$0xff]  ;;  %v9317_v1 = vld [vmem:[%s17936_s0 + $0x259] sm:$0xff]  ;;  %v18603_v59 = vld [vmem:[#allocation129_spill] sm:$0xff] }
 0x3e1   :  { %v1478_v34 = vmul.f32 %v13131_v38, %v18599_v23  ;;  %2898 = vperm.xlu0 %10194, %v13343_v54   ;;  %v13382_v37 = vadd.f32 %v1476_v5, %v12972_v39  ;;  %v1481_v31 = vmul.f32 %v13131_v38, %v18600_v11  ;;  %v1480_v9 = vmul.f32 %v13131_v38, %v18601_v48  ;;  %v18606_v43 = vld [vmem:[#allocation132_spill] sm:$0xff]  ;;  %v18607_v11 = vld [vmem:[#allocation133_spill] sm:$0xff]  ;;  %v18609_v6 = vld [vmem:[#allocation135_spill] sm:$0xff] }
 0x3e2   :  { %v1483_v20 = vmul.f32 %v13131_v38, %v18602_v56  ;;  %v1482_v63 = vmul.f32 %v13131_v38, %v18603_v59  ;;  %v1485_v39 = vmul.f32 %v13131_v38, %v18604_v0  ;;  %v1484_v5 = vmul.f32 %v13131_v38, %v18605_v14  ;;  %v18608_v56 = vld [vmem:[#allocation134_spill] sm:$0xff]  ;;  %v13412_v0 = vpop.permute.xlu0 %2823  ;;  %4435 = vperm.xlu1 %10195, %v13247_v57   ;;  %v13439_v57 = vld [vmem:[%s17936_s0 + $0x262] sm:$0xff] }
 0x3e3   :  { %v1487_v40 = vmul.f32 %v13131_v38, %v18606_v43  ;;  %v13402_v23 = vadd.f32 %v1479_v2, %v12975_v26  ;;  %v1486_v48 = vmul.f32 %v13131_v38, %v18607_v11  ;;  %v1489_v58 = vmul.f32 %v13131_v38, %v18608_v56  ;;  %v13410_v24 = vpop.permute.xlu1 %3336  ;;  %18611 = vst [vmem:[#allocation82_spill] sm:$0xff] %v13412_v0  ;;  %v18612_v43 = vld [vmem:[#allocation136_spill] sm:$0xff]  ;;  %v18613_v2 = vld [vmem:[#allocation137_spill] sm:$0xff] }
 0x3e4   :  { %v1488_v59 = vmul.f32 %v13131_v38, %v18609_v6  ;;  %18610 = vst [vmem:[#allocation81_spill] sm:$0xff] %v13410_v24  ;;  %v13415_v14 = vadd.f32 %v1478_v34, %v12984_v45  ;;  %v1491_v26 = vmul.f32 %v13131_v38, %v18612_v43  ;;  %v1490_v7 = vmul.f32 %v13131_v38, %v18613_v2  ;;  %v18614_v45 = vld [vmem:[#allocation138_spill] sm:$0xff] }
 0x3e5   :  { %3923 = vperm.xlu0 %10194, %v9317_v1   ;;  %v13423_v11 = vadd.f32 %v1481_v31, %v12987_v46  ;;  %v13426_v6 = vadd.f32 %v1480_v9, %v12993_v50  ;;  %v13429_v56 = vadd.f32 %v1483_v20, %v13013_v49  ;;  %v1493_v34 = vmul.f32 %v13131_v38, %v18614_v45  ;;  %v9254_v43 = vld [vmem:[%s17936_s0 + $0x270] sm:$0xff]  ;;  %v18618_v1 = vld [vmem:[#allocation47_spill] sm:$0xff] }
 0x3e6   :  { %v13442_v46 = vadd.f32 %v1482_v63, %v13026_v33  ;;  %v13445_v50 = vadd.f32 %v1485_v39, %v13034_v47  ;;  %v13448_v49 = vadd.f32 %v1484_v5, %v13037_v55  ;;  %v13451_v31 = vadd.f32 %v1487_v40, %v13040_v53  ;;  %v18620_v33 = vld [vmem:[#allocation139_spill] sm:$0xff]  ;;  %v13466_v39 = vpop.permute.xlu0 %3848  ;;  %v18623_v55 = vld [vmem:[#allocation48_spill] sm:$0xff]  ;;  %v18625_v53 = vld [vmem:[#allocation49_spill] sm:$0xff]  ;;  %3416 = vperm.xlu1 %10195, %v9254_v43  }
 0x3e7   :  { %v13454_v9 = vadd.f32 %v1486_v48, %v13053_v25  ;;  %v13457_v20 = vadd.f32 %v1489_v58, %v13056_v3  ;;  %v13460_v2 = vadd.f32 %v1488_v59, %v18618_v1  ;;  %v1492_v63 = vmul.f32 %v13131_v38, %v18620_v33  ;;  %v13464_v47 = vpop.permute.xlu1 %4360  ;;  %18622 = vst [vmem:[#allocation13_spill] sm:$0xff] %v13466_v39  ;;  %v18627_v25 = vld [vmem:[#allocation140_spill] sm:$0xff]  ;;  %v18628_v58 = vld [vmem:[#allocation50_spill] sm:$0xff]  ;;  %v18630_v59 = vld [vmem:[#allocation141_spill] sm:$0xff] }
 0x3e8   :  { %18615 = vst [vmem:[#allocation83_spill] sm:$0xff] %v13451_v31  ;;  %18621 = vst [vmem:[#allocation87_spill] sm:$0xff] %v13464_v47  ;;  %v13469_v5 = vadd.f32 %v1491_v26, %v18623_v55  ;;  %v13472_v40 = vadd.f32 %v1490_v7, %v18625_v53  ;;  %v1495_v3 = vmul.f32 %v13131_v38, %v18627_v25  ;;  %v18631_v1 = vld [vmem:[#allocation142_spill] sm:$0xff]  ;;  %v18632_v26 = vld [vmem:[#allocation143_spill] sm:$0xff] }
 0x3e9   :  { %18616 = vst [vmem:[#allocation84_spill] sm:$0xff] %v13454_v9  ;;  %18617 = vst [vmem:[#allocation85_spill] sm:$0xff] %v13457_v20  ;;  %2903 = vperm.xlu0 %10194, %v13439_v57   ;;  %v13478_v48 = vadd.f32 %v1493_v34, %v18628_v58  ;;  %v1494_v45 = vmul.f32 %v13131_v38, %v18630_v59  ;;  %v1497_v33 = vmul.f32 %v13131_v38, %v18631_v1  ;;  %v9318_v7 = vld [vmem:[%s17936_s0 + $0x261] sm:$0xff]  ;;  %v18634_v25 = vld [vmem:[#allocation145_spill] sm:$0xff] }
 0x3ea   :  { %18619 = vst [vmem:[#allocation86_spill] sm:$0xff] %v13460_v2  ;;  %18624 = vst [vmem:[#allocation88_spill] sm:$0xff] %v13469_v5  ;;  %v1496_v55 = vmul.f32 %v13131_v38, %v18632_v26  ;;  %v18633_v53 = vld [vmem:[#allocation144_spill] sm:$0xff]  ;;  %v1498_v34 = vmul.f32 %v13131_v38, %v18634_v25  ;;  %v18635_v58 = vld [vmem:[#allocation146_spill] sm:$0xff]  ;;  %v13508_v25 = vpop.permute.xlu0 %2828  ;;  %4440 = vperm.xlu1 %10195, %v13343_v54  }
 0x3eb   :  { %18626 = vst [vmem:[#allocation89_spill] sm:$0xff] %v13472_v40  ;;  %18629 = vst [vmem:[#allocation90_spill] sm:$0xff] %v13478_v48  ;;  %v1499_v43 = vmul.f32 %v13131_v38, %v18633_v53  ;;  %v1501_v0 = vmul.f32 %v13131_v38, %v18635_v58  ;;  %v18636_v59 = vld [vmem:[#allocation147_spill] sm:$0xff]  ;;  %v18639_v26 = vld [vmem:[#allocation148_spill] sm:$0xff]  ;;  %v13506_v2 = vpop.permute.xlu1 %3341 }
 0x3ec   :  { %v1500_v24 = vmul.f32 %v13131_v38, %v18636_v59  ;;  %v18637_v1 = vld [vmem:[#allocation51_spill] sm:$0xff]  ;;  %v1503_v47 = vmul.f32 %v13131_v38, %v18639_v26  ;;  %v18640_v48 = vld [vmem:[#allocation149_spill] sm:$0xff]  ;;  %v18641_v5 = vld [vmem:[#allocation150_spill] sm:$0xff]  ;;  %18642 = vst [vmem:[#allocation91_spill] sm:$0xff] %v13506_v2 }
 0x3ed   :  { %v13498_v39 = vadd.f32 %v1492_v63, %v18637_v1  ;;  %v1502_v40 = vmul.f32 %v13131_v38, %v18640_v48  ;;  %v1505_v53 = vmul.f32 %v13131_v38, %v18641_v5  ;;  %18643 = vst [vmem:[#allocation92_spill] sm:$0xff] %v13508_v25  ;;  %v18644_v58 = vld [vmem:[#allocation54_spill] sm:$0xff]  ;;  %v18646_v59 = vld [vmem:[#allocation151_spill] sm:$0xff]  ;;  %v18647_v1 = vld [vmem:[#allocation152_spill] sm:$0xff]  ;;  %3928 = vperm.xlu0 %10194, %v9318_v7  }
 0x3ee   :  { %v13511_v20 = vadd.f32 %v1495_v3, %v18644_v58  ;;  %v1504_v63 = vmul.f32 %v13131_v38, %v18646_v59  ;;  %v18648_v48 = vld [vmem:[#allocation55_spill] sm:$0xff]  ;;  %v18650_v5 = vld [vmem:[#allocation56_spill] sm:$0xff]  ;;  %v18652_v2 = vld [vmem:[#allocation57_spill] sm:$0xff] }
 0x3ef   :  { %18638 = vst [vmem:[#allocation14_spill] sm:$0xff] %v13498_v39  ;;  %v1507_v39 = vmul.f32 %v13131_v38, %v18647_v1  ;;  %v13519_v26 = vadd.f32 %v1494_v45, %v18648_v48  ;;  %v13522_v9 = vadd.f32 %v1497_v33, %v18650_v5  ;;  %v13525_v25 = vadd.f32 %v1496_v55, %v18652_v2  ;;  %v18654_v3 = vld [vmem:[#allocation153_spill] sm:$0xff]  ;;  %v13532_v59 = vld [vmem:[%s17937_s1 + $0x3] ss:$0 sm:$0xff]  ;;  %v9255_v54 = vld [vmem:[%s17936_s0 + $0x278] sm:$0xff] }
 0x3f0   :  { %18645 = vst [vmem:[#allocation15_spill] sm:$0xff] %v13511_v20  ;;  %v1506_v58 = vmul.f32 %v13131_v38, %v18654_v3  ;;  %v13540_v45 = vld [vmem:[%s17936_s0 + $0x272] sm:$0xff]  ;;  %v18655_v33 = vld [vmem:[#allocation60_spill] sm:$0xff]  ;;  %v18656_v55 = vld [vmem:[#allocation61_spill] sm:$0xff]  ;;  %3421 = vperm.xlu1 %10195, %v9255_v54  }
 0x3f1   :  { %18649 = vst [vmem:[#allocation16_spill] sm:$0xff] %v13519_v26  ;;  %18651 = vst [vmem:[#allocation17_spill] sm:$0xff] %v13522_v9  ;;  %v13543_v2 = vadd.f32 %v1499_v43, %v18655_v33  ;;  %v13546_v7 = vadd.f32 %v1498_v34, %v18656_v55  ;;  %v18657_v1 = vld [vmem:[#allocation62_spill] sm:$0xff]  ;;  %v18658_v5 = vld [vmem:[#allocation63_spill] sm:$0xff]  ;;  %v13565_v34 = vpop.permute.xlu1 %4365  ;;  %v13567_v55 = vpop.permute.xlu0 %3853  ;;  %2908 = vperm.xlu0 %10194, %v13540_v45  }
 0x3f2   :  { %18653 = vst [vmem:[#allocation93_spill] sm:$0xff] %v13525_v25  ;;  %v13549_v48 = vadd.f32 %v1501_v0, %v18657_v1  ;;  %v13552_v3 = vadd.f32 %v1500_v24, %v18658_v5  ;;  %v13555_v25 = vadd.f32 %v1503_v47, %v13154_v42  ;;  %v18660_v9 = vld [vmem:[#allocation64_spill] sm:$0xff]  ;;  %v18662_v20 = vld [vmem:[#allocation65_spill] sm:$0xff]  ;;  %v18664_v43 = vld [vmem:[#allocation154_spill] sm:$0xff] }
 0x3f3   :  { %v13558_v26 = vadd.f32 %v1502_v40, %v18660_v9  ;;  %v13561_v31 = vadd.f32 %v1505_v53, %v18662_v20  ;;  %v1509_v33 = vmul.f32 %v13131_v38, %v18664_v43  ;;  %18665 = vst [vmem:[#allocation32_spill] sm:$0xff] %v13565_v34  ;;  %18666 = vst [vmem:[#allocation21_spill] sm:$0xff] %v13567_v55  ;;  %v18667_v0 = vld [vmem:[#allocation66_spill] sm:$0xff]  ;;  %v18669_v24 = vld [vmem:[#allocation67_spill] sm:$0xff] }
 0x3f4   :  { %18659 = vst [vmem:[#allocation30_spill] sm:$0xff] %v13555_v25  ;;  %v13570_v1 = vadd.f32 %v1504_v63, %v18667_v0  ;;  %v13573_v5 = vadd.f32 %v1507_v39, %v18669_v24  ;;  %v18671_v42 = vld [vmem:[#allocation158_spill] sm:$0xff]  ;;  %v18672_v20 = vld [vmem:[#allocation68_spill] sm:$0xff]  ;;  %v18674_v40 = vld [vmem:[#allocation159_spill] sm:$0xff]  ;;  %4445 = vperm.xlu1 %10195, %v13439_v57  }
 0x3f5   :  { %18661 = vst [vmem:[#allocation20_spill] sm:$0xff] %v13558_v26  ;;  %18663 = vst [vmem:[#allocation31_spill] sm:$0xff] %v13561_v31  ;;  %v1967_v9 = vmul.f32 %v13532_v59, %v18671_v42  ;;  %v13579_v47 = vadd.f32 %v1506_v58, %v18672_v20  ;;  %v1966_v53 = vmul.f32 %v13532_v59, %v18674_v40  ;;  %v18675_v43 = vld [vmem:[#allocation160_spill] sm:$0xff]  ;;  %v18676_v63 = vld [vmem:[#allocation161_spill] sm:$0xff]  ;;  %v13613_v55 = vpop.permute.xlu1 %3346 }
 0x3f6   :  { %18668 = vst [vmem:[#allocation22_spill] sm:$0xff] %v13570_v1  ;;  %18670 = vst [vmem:[#allocation23_spill] sm:$0xff] %v13573_v5  ;;  %v1969_v31 = vmul.f32 %v13532_v59, %v18675_v43  ;;  %v1968_v0 = vmul.f32 %v13532_v59, %v18676_v63  ;;  %v9319_v39 = vld [vmem:[%s17936_s0 + $0x271] sm:$0xff]  ;;  %v18677_v24 = vld [vmem:[#allocation155_spill] sm:$0xff] }
 0x3f7   :  { %18673 = vst [vmem:[#allocation94_spill] sm:$0xff] %v13579_v47  ;;  %v13592_v54 = vmul.f32 %v13131_v38, %v18677_v24  ;;  %v18679_v42 = vld [vmem:[#allocation162_spill] sm:$0xff]  ;;  %v18680_v20 = vld [vmem:[#allocation163_spill] sm:$0xff]  ;;  %v18681_v47 = vld [vmem:[#allocation164_spill] sm:$0xff]  ;;  %3933 = vperm.xlu0 %10194, %v9319_v39  }
 0x3f8   :  { %v1971_v58 = vmul.f32 %v13532_v59, %v18679_v42  ;;  %v1970_v40 = vmul.f32 %v13532_v59, %v18680_v20  ;;  %v1973_v43 = vmul.f32 %v13532_v59, %v18681_v47  ;;  %v18682_v5 = vld [vmem:[#allocation69_spill] sm:$0xff]  ;;  %v18684_v63 = vld [vmem:[#allocation156_spill] sm:$0xff]  ;;  %18689 = vst [vmem:[#allocation96_spill] sm:$0xff] %v13613_v55  ;;  %v13615_v20 = vpop.permute.xlu0 %2833  ;;  %v18691_v34 = vld [vmem:[#allocation75_spill] sm:$0xff] }
 0x3f9   :  { %18678 = vst [vmem:[#allocation33_spill] sm:$0xff] %v13592_v54  ;;  %v13601_v1 = vadd.f32 %v1509_v33, %v18682_v5  ;;  %v13605_v26 = vmul.f32 %v13131_v38, %v18684_v63  ;;  %v18686_v25 = vld [vmem:[#allocation157_spill] sm:$0xff]  ;;  %18690 = vst [vmem:[#allocation97_spill] sm:$0xff] %v13615_v20  ;;  %v13618_v47 = vadd.f32 %v1967_v9, %v18691_v34  ;;  %v18692_v33 = vld [vmem:[#allocation166_spill] sm:$0xff] }
 0x3fa   :  { %v13609_v24 = vmul.f32 %v13131_v38, %v18686_v25  ;;  %v18688_v54 = vld [vmem:[#allocation165_spill] sm:$0xff]  ;;  %v1975_v5 = vmul.f32 %v13532_v59, %v18692_v33  ;;  %v13626_v38 = vadd.f32 %v1966_v53, %v13223_v60  ;;  %v13629_v25 = vadd.f32 %v1969_v31, %v13231_v30  ;;  %v18694_v34 = vld [vmem:[#allocation168_spill] sm:$0xff]  ;;  %v13642_v57 = vld [vmem:[%s17936_s0 + $0x27a] sm:$0xff] }
 0x3fb   :  { %18683 = vst [vmem:[#allocation24_spill] sm:$0xff] %v13601_v1  ;;  %18685 = vst [vmem:[#allocation95_spill] sm:$0xff] %v13605_v26  ;;  %v1972_v42 = vmul.f32 %v13532_v59, %v18688_v54  ;;  %v18693_v1 = vld [vmem:[#allocation167_spill] sm:$0xff]  ;;  %v13632_v54 = vadd.f32 %v1968_v0, %v13234_v35  ;;  %v1977_v9 = vmul.f32 %v13532_v59, %v18694_v34  ;;  %v9256_v33 = vld [vmem:[%s17936_s0 + $0x288] sm:$0xff]  ;;  %2913 = vperm.xlu0 %10194, %v13642_v57  }
 0x3fc   :  { %18687 = vst [vmem:[#allocation25_spill] sm:$0xff] %v13609_v24  ;;  %v1974_v63 = vmul.f32 %v13532_v59, %v18693_v1  ;;  %v13645_v60 = vadd.f32 %v1971_v58, %v13237_v13  ;;  %v13648_v30 = vadd.f32 %v1970_v40, %v13250_v8  ;;  %v13651_v35 = vadd.f32 %v1973_v43, %v13253_v16  ;;  %v18695_v31 = vld [vmem:[#allocation169_spill] sm:$0xff]  ;;  %v18696_v0 = vld [vmem:[#allocation170_spill] sm:$0xff]  ;;  %v18697_v34 = vld [vmem:[#allocation171_spill] sm:$0xff]  ;;  %v13664_v8 = vpop.permute.xlu1 %4370  ;;  %v13666_v40 = vpop.permute.xlu0 %3858 }
 0x3fd   :  { %v1976_v1 = vmul.f32 %v13532_v59, %v18695_v31  ;;  %v13656_v53 = vadd.f32 %v1972_v42, %v13256_v28  ;;  %v1979_v39 = vmul.f32 %v13532_v59, %v18696_v0  ;;  %v1978_v24 = vmul.f32 %v13532_v59, %v18697_v34  ;;  %v18698_v13 = vld [vmem:[#allocation172_spill] sm:$0xff]  ;;  %18699 = vst [vmem:[#allocation98_spill] sm:$0xff] %v13664_v8  ;;  %v18701_v28 = vld [vmem:[#allocation173_spill] sm:$0xff]  ;;  %v18702_v0 = vld [vmem:[#allocation174_spill] sm:$0xff] }
 0x3fe   :  { %v1981_v58 = vmul.f32 %v13532_v59, %v18698_v13  ;;  %18700 = vst [vmem:[#allocation99_spill] sm:$0xff] %v13666_v40  ;;  %v13669_v16 = vadd.f32 %v1975_v5, %v13259_v29  ;;  %v13672_v43 = vadd.f32 %v1974_v63, %v13262_v19  ;;  %v1980_v42 = vmul.f32 %v13532_v59, %v18701_v28  ;;  %v18703_v13 = vld [vmem:[#allocation175_spill] sm:$0xff]  ;;  %v18704_v29 = vld [vmem:[#allocation176_spill] sm:$0xff]  ;;  %v18709_v55 = vld [vmem:[#allocation9_spill] sm:$0xff] }
 0x3ff   :  { %3426 = vperm.xlu1 %10195, %v9256_v33   ;;  %v13678_v31 = vadd.f32 %v1977_v9, %v13265_v36  ;;  %v1983_v34 = vmul.f32 %v13532_v59, %v18702_v0  ;;  %v1982_v26 = vmul.f32 %v13532_v59, %v18703_v13  ;;  %v1985_v5 = vmul.f32 %v13532_v59, %v18704_v29  ;;  %v9320_v19 = vld [vmem:[%s17936_s0 + $0x279] sm:$0xff]  ;;  %v18706_v33 = vld [vmem:[#allocation177_spill] sm:$0xff] }
 0x400   :  { %v13690_v63 = vadd.f32 %v1976_v1, %v13268_v4  ;;  %v1984_v36 = vmul.f32 %v13532_v59, %v18706_v33  ;;  %v18707_v9 = vld [vmem:[#allocation178_spill] sm:$0xff]  ;;  %v18708_v0 = vld [vmem:[#allocation179_spill] sm:$0xff]  ;;  %v13699_v13 = vadd.f32 %v1979_v39, %v13277_v15  ;;  %v13702_v29 = vadd.f32 %v1978_v24, %v13280_v44  ;;  %v18710_v4 = vld [vmem:[#allocation180_spill] sm:$0xff]  ;;  %v13709_v8 = vpop.permute.xlu1 %3351  ;;  %v13711_v33 = vpop.permute.xlu0 %2838  ;;  %3938 = vperm.xlu0 %10194, %v9320_v19  }
 0x401   :  { %v1987_v28 = vmul.f32 %v13532_v59, %v18707_v9  ;;  %v1986_v20 = vmul.f32 %v13532_v59, %v18708_v0  ;;  %v13705_v40 = vadd.f32 %v1981_v58, %v18709_v55  ;;  %v1989_v1 = vmul.f32 %v13532_v59, %v18710_v4  ;;  %18711 = vst [vmem:[#allocation101_spill] sm:$0xff] %v13709_v8  ;;  %v18713_v9 = vld [vmem:[#allocation79_spill] sm:$0xff]  ;;  %v18714_v0 = vld [vmem:[#allocation181_spill] sm:$0xff]  ;;  %v18715_v39 = vld [vmem:[#allocation182_spill] sm:$0xff] }
 0x402   :  { %18705 = vst [vmem:[#allocation100_spill] sm:$0xff] %v13690_v63  ;;  %18712 = vst [vmem:[#allocation102_spill] sm:$0xff] %v13711_v33  ;;  %v13714_v63 = vadd.f32 %v1980_v42, %v18713_v9  ;;  %v1988_v15 = vmul.f32 %v13532_v59, %v18714_v0  ;;  %v1991_v44 = vmul.f32 %v13532_v59, %v18715_v39  ;;  %v18716_v42 = vld [vmem:[#allocation183_spill] sm:$0xff]  ;;  %v9257_v9 = vld [vmem:[%s17936_s0 + $0x290] sm:$0xff] }
 0x403   :  { %4450 = vperm.xlu1 %10195, %v13540_v45   ;;  %v13722_v55 = vadd.f32 %v1983_v34, %v13319_v10  ;;  %v13725_v24 = vadd.f32 %v1982_v26, %v13327_v62  ;;  %v13728_v58 = vadd.f32 %v1985_v5, %v13330_v12  ;;  %v1990_v4 = vmul.f32 %v13532_v59, %v18716_v42  ;;  %v13738_v45 = vld [vmem:[%s17936_s0 + $0x28a] sm:$0xff]  ;;  %v18717_v26 = vld [vmem:[#allocation184_spill] sm:$0xff]  ;;  %v18719_v39 = vld [vmem:[#allocation186_spill] sm:$0xff] }
 0x404   :  { %v13741_v10 = vadd.f32 %v1984_v36, %v13333_v32  ;;  %v13744_v62 = vadd.f32 %v1987_v28, %v13346_v17  ;;  %v13747_v12 = vadd.f32 %v1986_v20, %v13349_v21  ;;  %v1993_v34 = vmul.f32 %v13532_v59, %v18717_v26  ;;  %v18718_v19 = vld [vmem:[#allocation185_spill] sm:$0xff]  ;;  %v18720_v32 = vld [vmem:[#allocation187_spill] sm:$0xff]  ;;  %v13760_v17 = vpop.permute.xlu1 %4375  ;;  %v13762_v28 = vpop.permute.xlu0 %3863  ;;  %2918 = vperm.xlu0 %10194, %v13738_v45  }
 0x405   :  { %v13752_v5 = vadd.f32 %v1989_v1, %v13352_v18  ;;  %v1992_v0 = vmul.f32 %v13532_v59, %v18718_v19  ;;  %v1995_v42 = vmul.f32 %v13532_v59, %v18719_v39  ;;  %v1994_v36 = vmul.f32 %v13532_v59, %v18720_v32  ;;  %18721 = vst [vmem:[#allocation26_spill] sm:$0xff] %v13760_v17  ;;  %v18723_v18 = vld [vmem:[#allocation188_spill] sm:$0xff]  ;;  %v18724_v19 = vld [vmem:[#allocation189_spill] sm:$0xff]  ;;  %v18725_v32 = vld [vmem:[#allocation190_spill] sm:$0xff] }
 0x406   :  { %18722 = vst [vmem:[#allocation103_spill] sm:$0xff] %v13762_v28  ;;  %v13765_v21 = vadd.f32 %v1988_v15, %v13355_v41  ;;  %v13768_v20 = vadd.f32 %v1991_v44, %v13358_v27  ;;  %v1997_v1 = vmul.f32 %v13532_v59, %v18723_v18  ;;  %v13774_v26 = vadd.f32 %v1990_v4, %v13361_v61  ;;  %v18726_v41 = vld [vmem:[#allocation191_spill] sm:$0xff]  ;;  %v9321_v27 = vld [vmem:[%s17936_s0 + $0x289] sm:$0xff] }
 0x407   :  { %3431 = vperm.xlu1 %10195, %v9257_v9   ;;  %v1996_v39 = vmul.f32 %v13532_v59, %v18724_v19  ;;  %v1999_v33 = vmul.f32 %v13532_v59, %v18725_v32  ;;  %v1998_v15 = vmul.f32 %v13532_v59, %v18726_v41  ;;  %v13786_v44 = vadd.f32 %v1993_v34, %v13364_v51  ;;  %v18727_v9 = vld [vmem:[#allocation192_spill] sm:$0xff]  ;;  %v18728_v4 = vld [vmem:[#allocation193_spill] sm:$0xff]  ;;  %v18729_v19 = vld [vmem:[#allocation194_spill] sm:$0xff] }
 0x408   :  { %v2001_v61 = vmul.f32 %v13532_v59, %v18727_v9  ;;  %v2000_v18 = vmul.f32 %v13532_v59, %v18728_v4  ;;  %v2003_v8 = vmul.f32 %v13532_v59, %v18729_v19  ;;  %v13795_v32 = vadd.f32 %v1992_v0, %v13373_v52  ;;  %v18730_v51 = vld [vmem:[#allocation195_spill] sm:$0xff]  ;;  %v13805_v17 = vpop.permute.xlu1 %3356  ;;  %v13807_v9 = vpop.permute.xlu0 %2843  ;;  %v18733_v19 = vld [vmem:[#allocation196_spill] sm:$0xff]  ;;  %v18734_v0 = vld [vmem:[#allocation197_spill] sm:$0xff]  ;;  %3943 = vperm.xlu0 %10194, %v9321_v27  }
 0x409   :  { %v13798_v41 = vadd.f32 %v1995_v42, %v13376_v22  ;;  %v13801_v28 = vadd.f32 %v1994_v36, %v13382_v37  ;;  %v2002_v34 = vmul.f32 %v13532_v59, %v18730_v51  ;;  %18731 = vst [vmem:[#allocation104_spill] sm:$0xff] %v13805_v17  ;;  %18732 = vst [vmem:[#allocation105_spill] sm:$0xff] %v13807_v9  ;;  %v9258_v51 = vld [vmem:[%s17936_s0 + $0x2a0] sm:$0xff] }
 0x40a   :  { %v13810_v4 = vadd.f32 %v1997_v1, %v13402_v23  ;;  %v2005_v52 = vmul.f32 %v13532_v59, %v18733_v19  ;;  %v2004_v22 = vmul.f32 %v13532_v59, %v18734_v0  ;;  %v13818_v37 = vadd.f32 %v1996_v39, %v13415_v14  ;;  %v18736_v23 = vld [vmem:[#allocation198_spill] sm:$0xff]  ;;  %v18742_v27 = vld [vmem:[#allocation200_spill] sm:$0xff]  ;;  %v18743_v0 = vld [vmem:[#allocation201_spill] sm:$0xff] }
 0x40b   :  { %4455 = vperm.xlu1 %10195, %v13642_v57   ;;  %v13821_v42 = vadd.f32 %v1999_v33, %v13423_v11  ;;  %v13824_v36 = vadd.f32 %v1998_v15, %v13426_v6  ;;  %v2007_v1 = vmul.f32 %v13532_v59, %v18736_v23  ;;  %v13834_v57 = vld [vmem:[%s17936_s0 + $0x292] sm:$0xff]  ;;  %v13837_v14 = vadd.f32 %v2001_v61, %v13429_v56  ;;  %v18740_v33 = vld [vmem:[#allocation199_spill] sm:$0xff] }
 0x40c   :  { %v13840_v11 = vadd.f32 %v2000_v18, %v13442_v46  ;;  %v13843_v6 = vadd.f32 %v2003_v8, %v13445_v50  ;;  %v2006_v39 = vmul.f32 %v13532_v59, %v18740_v33  ;;  %v13848_v15 = vadd.f32 %v2002_v34, %v13448_v49  ;;  %v18744_v56 = vld [vmem:[#allocation202_spill] sm:$0xff]  ;;  %v13856_v46 = vpop.permute.xlu1 %4380  ;;  %v13858_v18 = vpop.permute.xlu0 %3868  ;;  %v18747_v50 = vld [vmem:[#allocation83_spill] sm:$0xff]  ;;  %v18749_v33 = vld [vmem:[#allocation84_spill] sm:$0xff]  ;;  %2923 = vperm.xlu0 %10194, %v13834_v57  }
 0x40d   :  { %18735 = vst [vmem:[#allocation29_spill] sm:$0xff] %v13824_v36  ;;  %18737 = vst [vmem:[#allocation106_spill] sm:$0xff] %v13837_v14  ;;  %v2009_v19 = vmul.f32 %v13532_v59, %v18742_v27  ;;  %v2008_v23 = vmul.f32 %v13532_v59, %v18743_v0  ;;  %v2011_v61 = vmul.f32 %v13532_v59, %v18744_v56  ;;  %v18751_v49 = vld [vmem:[#allocation203_spill] sm:$0xff]  ;;  %v18752_v27 = vld [vmem:[#allocation85_spill] sm:$0xff] }
 0x40e   :  { %18738 = vst [vmem:[#allocation107_spill] sm:$0xff] %v13840_v11  ;;  %18739 = vst [vmem:[#allocation34_spill] sm:$0xff] %v13843_v6  ;;  %v13861_v8 = vadd.f32 %v2005_v52, %v18747_v50  ;;  %v13864_v9 = vadd.f32 %v2004_v22, %v18749_v33  ;;  %v2010_v34 = vmul.f32 %v13532_v59, %v18751_v49  ;;  %v18754_v56 = vld [vmem:[#allocation204_spill] sm:$0xff]  ;;  %v18756_v52 = vld [vmem:[#allocation206_spill] sm:$0xff] }
 0x40f   :  { %18741 = vst [vmem:[#allocation35_spill] sm:$0xff] %v13848_v15  ;;  %18745 = vst [vmem:[#allocation36_spill] sm:$0xff] %v13856_v46  ;;  %3436 = vperm.xlu1 %10195, %v9258_v51   ;;  %v13870_v0 = vadd.f32 %v2007_v1, %v18752_v27  ;;  %v2013_v17 = vmul.f32 %v13532_v59, %v18754_v56  ;;  %v18755_v46 = vld [vmem:[#allocation205_spill] sm:$0xff]  ;;  %v2015_v50 = vmul.f32 %v13532_v59, %v18756_v52  ;;  %v13881_v22 = vld [vmem:[%s17937_s1 + $0x4] ss:$0 sm:$0xff] }
 0x410   :  { %18746 = vst [vmem:[#allocation108_spill] sm:$0xff] %v13858_v18  ;;  %18748 = vst [vmem:[#allocation109_spill] sm:$0xff] %v13861_v8  ;;  %v2012_v18 = vmul.f32 %v13532_v59, %v18755_v46  ;;  %v9322_v51 = vld [vmem:[%s17936_s0 + $0x291] sm:$0xff]  ;;  %v18759_v49 = vld [vmem:[#allocation207_spill] sm:$0xff] }
 0x411   :  { %18750 = vst [vmem:[#allocation110_spill] sm:$0xff] %v13864_v9  ;;  %18753 = vst [vmem:[#allocation111_spill] sm:$0xff] %v13870_v0  ;;  %v18757_v1 = vld [vmem:[#allocation86_spill] sm:$0xff]  ;;  %v2014_v27 = vmul.f32 %v13532_v59, %v18759_v49  ;;  %v18760_v56 = vld [vmem:[#allocation208_spill] sm:$0xff]  ;;  %v13908_v49 = vpop.permute.xlu0 %2848  ;;  %3948 = vperm.xlu0 %10194, %v9322_v51  }
 0x412   :  { %v13887_v33 = vadd.f32 %v2006_v39, %v18757_v1  ;;  %v2017_v46 = vmul.f32 %v13532_v59, %v18760_v56  ;;  %v18761_v0 = vld [vmem:[#allocation209_spill] sm:$0xff]  ;;  %v18762_v9 = vld [vmem:[#allocation88_spill] sm:$0xff]  ;;  %v18764_v11 = vld [vmem:[#allocation90_spill] sm:$0xff]  ;;  %18767 = vst [vmem:[#allocation114_spill] sm:$0xff] %v13908_v49 }
 0x413   :  { %v2016_v52 = vmul.f32 %v13532_v59, %v18761_v0  ;;  %v13896_v8 = vadd.f32 %v2009_v19, %v18762_v9  ;;  %v18763_v15 = vld [vmem:[#allocation89_spill] sm:$0xff]  ;;  %v13902_v14 = vadd.f32 %v2011_v61, %v18764_v11  ;;  %v18765_v39 = vld [vmem:[#allocation210_spill] sm:$0xff]  ;;  %v18769_v0 = vld [vmem:[#allocation211_spill] sm:$0xff]  ;;  %4460 = vperm.xlu1 %10195, %v13738_v45  }
 0x414   :  { %18758 = vst [vmem:[#allocation112_spill] sm:$0xff] %v13887_v33  ;;  %v13899_v6 = vadd.f32 %v2008_v23, %v18763_v15  ;;  %v2019_v1 = vmul.f32 %v13532_v59, %v18765_v39  ;;  %v13906_v33 = vpop.permute.xlu1 %3361  ;;  %v18768_v56 = vld [vmem:[#allocation14_spill] sm:$0xff]  ;;  %v2018_v9 = vmul.f32 %v13532_v59, %v18769_v0  ;;  %v18771_v11 = vld [vmem:[#allocation15_spill] sm:$0xff]  ;;  %v18772_v61 = vld [vmem:[#allocation16_spill] sm:$0xff] }
 0x415   :  { %18766 = vst [vmem:[#allocation113_spill] sm:$0xff] %v13906_v33  ;;  %v13911_v36 = vadd.f32 %v2010_v34, %v18768_v56  ;;  %v18770_v19 = vld [vmem:[#allocation222_spill] sm:$0xff]  ;;  %v13919_v23 = vadd.f32 %v2013_v17, %v18771_v11  ;;  %v13922_v39 = vadd.f32 %v2012_v18, %v18772_v61  ;;  %v18773_v33 = vld [vmem:[#allocation17_spill] sm:$0xff]  ;;  %v18775_v34 = vld [vmem:[#allocation223_spill] sm:$0xff]  ;;  %v13941_v18 = vadd.f32 %v2017_v46, %v13543_v2  ;;  %v13959_v46 = vpop.permute.xlu0 %3873 }
 0x416   :  { %v2484_v15 = vmul.f32 %v13881_v22, %v18770_v19  ;;  %v13925_v49 = vadd.f32 %v2015_v50, %v18773_v33  ;;  %v2483_v56 = vmul.f32 %v13881_v22, %v18775_v34  ;;  %v9259_v59 = vld [vmem:[%s17936_s0 + $0x2a8] sm:$0xff]  ;;  %v13944_v50 = vadd.f32 %v2016_v52, %v13546_v7  ;;  %v18780_v34 = vld [vmem:[#allocation226_spill] sm:$0xff]  ;;  %18783 = vst [vmem:[#allocation118_spill] sm:$0xff] %v13959_v46 }
 0x417   :  { %v13935_v45 = vld [vmem:[%s17936_s0 + $0x2a2] sm:$0xff]  ;;  %v18776_v17 = vld [vmem:[#allocation93_spill] sm:$0xff]  ;;  %v13949_v19 = vadd.f32 %v2019_v1, %v13549_v48  ;;  %v13962_v7 = vadd.f32 %v2018_v9, %v13552_v3  ;;  %3441 = vperm.xlu1 %10195, %v9259_v59   ;;  %v18788_v3 = vld [vmem:[#allocation231_spill] sm:$0xff] }
 0x418   :  { %18774 = vst [vmem:[#allocation115_spill] sm:$0xff] %v13925_v49  ;;  %v13938_v51 = vadd.f32 %v2014_v27, %v18776_v17  ;;  %v18777_v33 = vld [vmem:[#allocation224_spill] sm:$0xff]  ;;  %v18779_v11 = vld [vmem:[#allocation225_spill] sm:$0xff]  ;;  %v2488_v49 = vmul.f32 %v13881_v22, %v18780_v34  ;;  %v18781_v27 = vld [vmem:[#allocation227_spill] sm:$0xff]  ;;  %v13957_v2 = vpop.permute.xlu1 %4385  ;;  %v13965_v52 = vadd.f32 %v2484_v15, %v13618_v47  ;;  %2928 = vperm.xlu0 %10194, %v13935_v45  }
 0x419   :  { %v2486_v0 = vmul.f32 %v13881_v22, %v18777_v33  ;;  %18778 = vst [vmem:[#allocation116_spill] sm:$0xff] %v13949_v19  ;;  %v2485_v61 = vmul.f32 %v13881_v22, %v18779_v11  ;;  %v2487_v17 = vmul.f32 %v13881_v22, %v18781_v27  ;;  %18782 = vst [vmem:[#allocation117_spill] sm:$0xff] %v13957_v2  ;;  %v18785_v48 = vld [vmem:[#allocation228_spill] sm:$0xff]  ;;  %v18786_v11 = vld [vmem:[#allocation229_spill] sm:$0xff] }
 0x41a   :  { %18784 = vst [vmem:[#allocation119_spill] sm:$0xff] %v13962_v7  ;;  %v2490_v1 = vmul.f32 %v13881_v22, %v18785_v48  ;;  %v13971_v33 = vadd.f32 %v2483_v56, %v13626_v38  ;;  %v2489_v34 = vmul.f32 %v13881_v22, %v18786_v11  ;;  %v18787_v27 = vld [vmem:[#allocation230_spill] sm:$0xff]  ;;  %v2491_v9 = vmul.f32 %v13881_v22, %v18788_v3  ;;  %v9323_v47 = vld [vmem:[%s17936_s0 + $0x2a1] sm:$0xff]  ;;  %v18790_v56 = vld [vmem:[#allocation233_spill] sm:$0xff] }
 0x41b   :  { %v2492_v46 = vmul.f32 %v13881_v22, %v18787_v27  ;;  %v13983_v15 = vadd.f32 %v2486_v0, %v13629_v25  ;;  %v18789_v59 = vld [vmem:[#allocation232_spill] sm:$0xff]  ;;  %v2493_v48 = vmul.f32 %v13881_v22, %v18790_v56  ;;  %v18791_v11 = vld [vmem:[#allocation234_spill] sm:$0xff]  ;;  %v13992_v27 = vadd.f32 %v2485_v61, %v13632_v54  ;;  %v18792_v25 = vld [vmem:[#allocation235_spill] sm:$0xff]  ;;  %4465 = vperm.xlu1 %10195, %v13834_v57  }
 0x41c   :  { %v2494_v38 = vmul.f32 %v13881_v22, %v18789_v59  ;;  %v2496_v2 = vmul.f32 %v13881_v22, %v18791_v11  ;;  %v13995_v3 = vadd.f32 %v2488_v49, %v13645_v60  ;;  %v13998_v19 = vadd.f32 %v2487_v17, %v13648_v30  ;;  %v14002_v7 = vpop.permute.xlu1 %3366  ;;  %v14004_v59 = vpop.permute.xlu0 %2853  ;;  %v18795_v11 = vld [vmem:[#allocation236_spill] sm:$0xff]  ;;  %v18796_v61 = vld [vmem:[#allocation237_spill] sm:$0xff]  ;;  %3953 = vperm.xlu0 %10194, %v9323_v47  }
 0x41d   :  { %v2495_v0 = vmul.f32 %v13881_v22, %v18792_v25  ;;  %18793 = vst [vmem:[#allocation120_spill] sm:$0xff] %v14002_v7  ;;  %18794 = vst [vmem:[#allocation121_spill] sm:$0xff] %v14004_v59  ;;  %v14007_v56 = vadd.f32 %v2490_v1, %v13651_v35  ;;  %v2498_v54 = vmul.f32 %v13881_v22, %v18795_v11  ;;  %v18797_v35 = vld [vmem:[#allocation238_spill] sm:$0xff]  ;;  %v14031_v57 = vld [vmem:[%s17936_s0 + $0x2aa] sm:$0xff] }
 0x41e   :  { %v2497_v60 = vmul.f32 %v13881_v22, %v18796_v61  ;;  %v14015_v30 = vadd.f32 %v2489_v34, %v13656_v53  ;;  %v14018_v49 = vadd.f32 %v2492_v46, %v13669_v16  ;;  %v14021_v17 = vadd.f32 %v2491_v9, %v13672_v43  ;;  %v9260_v25 = vld [vmem:[%s17936_s0 + $0x2b8] sm:$0xff]  ;;  %v18798_v16 = vld [vmem:[#allocation100_spill] sm:$0xff] }
 0x41f   :  { %v2500_v1 = vmul.f32 %v13881_v22, %v18797_v35  ;;  %v14034_v53 = vadd.f32 %v2494_v38, %v13678_v31  ;;  %v14037_v46 = vadd.f32 %v2493_v48, %v18798_v16  ;;  %v14040_v43 = vadd.f32 %v2496_v2, %v13699_v13  ;;  %v18799_v34 = vld [vmem:[#allocation239_spill] sm:$0xff]  ;;  %v18800_v11 = vld [vmem:[#allocation240_spill] sm:$0xff]  ;;  %v18801_v35 = vld [vmem:[#allocation241_spill] sm:$0xff]  ;;  %3446 = vperm.xlu1 %10195, %v9260_v25  }
 0x420   :  { %v2499_v9 = vmul.f32 %v13881_v22, %v18799_v34  ;;  %v14045_v47 = vadd.f32 %v2495_v0, %v13702_v29  ;;  %v2502_v61 = vmul.f32 %v13881_v22, %v18800_v11  ;;  %v2501_v59 = vmul.f32 %v13881_v22, %v18801_v35  ;;  %v18802_v31 = vld [vmem:[#allocation242_spill] sm:$0xff]  ;;  %v14053_v48 = vpop.permute.xlu1 %4390  ;;  %v14055_v16 = vpop.permute.xlu0 %3878  ;;  %v18805_v29 = vld [vmem:[#allocation243_spill] sm:$0xff]  ;;  %2933 = vperm.xlu0 %10194, %v14031_v57   ;;  %v18807_v11 = vld [vmem:[#allocation244_spill] sm:$0xff] }
 0x421   :  { %v2504_v38 = vmul.f32 %v13881_v22, %v18802_v31  ;;  %18803 = vst [vmem:[#allocation122_spill] sm:$0xff] %v14053_v48  ;;  %18804 = vst [vmem:[#allocation123_spill] sm:$0xff] %v14055_v16  ;;  %v14058_v13 = vadd.f32 %v2498_v54, %v13705_v40  ;;  %v14061_v2 = vadd.f32 %v2497_v60, %v13714_v63  ;;  %v18808_v31 = vld [vmem:[#allocation245_spill] sm:$0xff]  ;;  %v18809_v40 = vld [vmem:[#allocation246_spill] sm:$0xff] }
 0x422   :  { %v2503_v0 = vmul.f32 %v13881_v22, %v18805_v29  ;;  %v14067_v34 = vadd.f32 %v2500_v1, %v13722_v55  ;;  %v2506_v35 = vmul.f32 %v13881_v22, %v18807_v11  ;;  %v2505_v16 = vmul.f32 %v13881_v22, %v18808_v31  ;;  %v9324_v63 = vld [vmem:[%s17936_s0 + $0x2a9] sm:$0xff]  ;;  %v18810_v25 = vld [vmem:[#allocation247_spill] sm:$0xff] }
 0x423   :  { %v2508_v54 = vmul.f32 %v13881_v22, %v18809_v40  ;;  %v14079_v60 = vadd.f32 %v2499_v9, %v13725_v24  ;;  %v2507_v55 = vmul.f32 %v13881_v22, %v18810_v25  ;;  %v18811_v1 = vld [vmem:[#allocation248_spill] sm:$0xff]  ;;  %v18812_v11 = vld [vmem:[#allocation249_spill] sm:$0xff]  ;;  %v14088_v31 = vadd.f32 %v2502_v61, %v13728_v58  ;;  %v18813_v24 = vld [vmem:[#allocation250_spill] sm:$0xff]  ;;  %4470 = vperm.xlu1 %10195, %v13935_v45  }
 0x424   :  { %18806 = vst [vmem:[#allocation124_spill] sm:$0xff] %v14067_v34  ;;  %v2510_v29 = vmul.f32 %v13881_v22, %v18811_v1  ;;  %v2509_v48 = vmul.f32 %v13881_v22, %v18812_v11  ;;  %v14091_v40 = vadd.f32 %v2501_v59, %v13741_v10  ;;  %v14094_v7 = vadd.f32 %v2504_v38, %v13744_v62  ;;  %v14098_v34 = vpop.permute.xlu1 %3371  ;;  %v14100_v25 = vpop.permute.xlu0 %2858  ;;  %v18816_v11 = vld [vmem:[#allocation251_spill] sm:$0xff]  ;;  %v18817_v61 = vld [vmem:[#allocation252_spill] sm:$0xff] }
 0x425   :  { %v2512_v9 = vmul.f32 %v13881_v22, %v18813_v24  ;;  %18814 = vst [vmem:[#allocation125_spill] sm:$0xff] %v14098_v34  ;;  %18815 = vst [vmem:[#allocation126_spill] sm:$0xff] %v14100_v25  ;;  %v14103_v1 = vadd.f32 %v2503_v0, %v13747_v12  ;;  %v2511_v58 = vmul.f32 %v13881_v22, %v18816_v11  ;;  %3958 = vperm.xlu0 %10194, %v9324_v63   ;;  %v18821_v12 = vld [vmem:[#allocation253_spill] sm:$0xff]  ;;  %v9261_v24 = vld [vmem:[%s17936_s0 + $0x2c0] sm:$0xff] }
 0x426   :  { %v2514_v10 = vmul.f32 %v13881_v22, %v18817_v61  ;;  %v14111_v62 = vadd.f32 %v2506_v35, %v13752_v5  ;;  %v14114_v59 = vadd.f32 %v2505_v16, %v13765_v21  ;;  %v14117_v38 = vadd.f32 %v2508_v54, %v13768_v20  ;;  %v14127_v45 = vld [vmem:[%s17936_s0 + $0x2ba] sm:$0xff]  ;;  %v18825_v16 = vld [vmem:[#allocation254_spill] sm:$0xff]  ;;  %v18828_v61 = vld [vmem:[#allocation256_spill] sm:$0xff] }
 0x427   :  { %v2513_v0 = vmul.f32 %v13881_v22, %v18821_v12  ;;  %v14130_v5 = vadd.f32 %v2507_v55, %v13774_v26  ;;  %v14133_v21 = vadd.f32 %v2510_v29, %v13786_v44  ;;  %v14136_v20 = vadd.f32 %v2509_v48, %v13795_v32  ;;  %v18827_v63 = vld [vmem:[#allocation255_spill] sm:$0xff]  ;;  %v18829_v26 = vld [vmem:[#allocation257_spill] sm:$0xff]  ;;  %3451 = vperm.xlu1 %10195, %v9261_v24   ;;  %v18845_v25 = vld [vmem:[#allocation106_spill] sm:$0xff] }
 0x428   :  { %18818 = vst [vmem:[#allocation127_spill] sm:$0xff] %v14111_v62  ;;  %18819 = vst [vmem:[#allocation128_spill] sm:$0xff] %v14114_v59  ;;  %v2516_v35 = vmul.f32 %v13881_v22, %v18825_v16  ;;  %v14141_v54 = vadd.f32 %v2512_v9, %v13798_v41  ;;  %v2515_v11 = vmul.f32 %v13881_v22, %v18827_v63  ;;  %v14149_v44 = vpop.permute.xlu1 %4395  ;;  %v14151_v29 = vpop.permute.xlu0 %3883  ;;  %v18834_v41 = vld [vmem:[#allocation258_spill] sm:$0xff]  ;;  %v18836_v63 = vld [vmem:[#allocation259_spill] sm:$0xff] }
 0x429   :  { %18820 = vst [vmem:[#allocation129_spill] sm:$0xff] %v14117_v38  ;;  %18822 = vst [vmem:[#allocation130_spill] sm:$0xff] %v14130_v5  ;;  %v2518_v12 = vmul.f32 %v13881_v22, %v18828_v61  ;;  %v2517_v55 = vmul.f32 %v13881_v22, %v18829_v26  ;;  %v14154_v32 = vadd.f32 %v2511_v58, %v13801_v28  ;;  %2938 = vperm.xlu0 %10194, %v14127_v45   ;;  %v18837_v26 = vld [vmem:[#allocation260_spill] sm:$0xff]  ;;  %v18838_v28 = vld [vmem:[#allocation261_spill] sm:$0xff] }
 0x42a   :  { %18823 = vst [vmem:[#allocation131_spill] sm:$0xff] %v14133_v21  ;;  %18824 = vst [vmem:[#allocation132_spill] sm:$0xff] %v14136_v20  ;;  %v14157_v48 = vadd.f32 %v2514_v10, %v13810_v4  ;;  %v2520_v9 = vmul.f32 %v13881_v22, %v18834_v41  ;;  %v14163_v16 = vadd.f32 %v2513_v0, %v13818_v37  ;;  %v14174_v4 = vld [vmem:[%s17937_s1 + $0x5] ss:$0 sm:$0xff]  ;;  %v9325_v10 = vld [vmem:[%s17936_s0 + $0x2b9] sm:$0xff] }
 0x42b   :  { %18826 = vst [vmem:[#allocation133_spill] sm:$0xff] %v14141_v54  ;;  %18830 = vst [vmem:[#allocation134_spill] sm:$0xff] %v14149_v44  ;;  %v2519_v61 = vmul.f32 %v13881_v22, %v18836_v63  ;;  %v2522_v34 = vmul.f32 %v13881_v22, %v18837_v26  ;;  %v2521_v58 = vmul.f32 %v13881_v22, %v18838_v28  ;;  %v18840_v0 = vld [vmem:[#allocation262_spill] sm:$0xff]  ;;  %v18841_v41 = vld [vmem:[#allocation263_spill] sm:$0xff]  ;;  %4475 = vperm.xlu1 %10195, %v14031_v57  }
 0x42c   :  { %18831 = vst [vmem:[#allocation135_spill] sm:$0xff] %v14151_v29  ;;  %18832 = vst [vmem:[#allocation136_spill] sm:$0xff] %v14154_v32  ;;  %v14180_v37 = vadd.f32 %v2516_v35, %v13821_v42  ;;  %v2524_v24 = vmul.f32 %v13881_v22, %v18840_v0  ;;  %v2523_v63 = vmul.f32 %v13881_v22, %v18841_v41  ;;  %v18842_v26 = vld [vmem:[#allocation264_spill] sm:$0xff]  ;;  %v18843_v29 = vld [vmem:[#allocation29_spill] sm:$0xff]  ;;  %v14201_v0 = vpop.permute.xlu0 %2863 }
 0x42d   :  { %18833 = vst [vmem:[#allocation137_spill] sm:$0xff] %v14157_v48  ;;  %18835 = vst [vmem:[#allocation138_spill] sm:$0xff] %v14163_v16  ;;  %v2526_v28 = vmul.f32 %v13881_v22, %v18842_v26  ;;  %v14189_v44 = vadd.f32 %v2515_v11, %v18843_v29  ;;  %v14192_v48 = vadd.f32 %v2518_v12, %v18845_v25  ;;  %v18847_v16 = vld [vmem:[#allocation107_spill] sm:$0xff]  ;;  %v18849_v42 = vld [vmem:[#allocation265_spill] sm:$0xff]  ;;  %3963 = vperm.xlu0 %10194, %v9325_v10  }
 0x42e   :  { %18839 = vst [vmem:[#allocation47_spill] sm:$0xff] %v14180_v37  ;;  %v14195_v54 = vadd.f32 %v2517_v55, %v18847_v16  ;;  %v2525_v35 = vmul.f32 %v13881_v22, %v18849_v42  ;;  %v14199_v37 = vpop.permute.xlu1 %3376  ;;  %18851 = vst [vmem:[#allocation50_spill] sm:$0xff] %v14201_v0  ;;  %v18852_v41 = vld [vmem:[#allocation34_spill] sm:$0xff]  ;;  %v14213_v12 = vld [vmem:[%s17937_s1 + $0x6] ss:$0 sm:$0xff] }
 0x42f   :  { %18844 = vst [vmem:[#allocation139_spill] sm:$0xff] %v14189_v44  ;;  %18846 = vst [vmem:[#allocation48_spill] sm:$0xff] %v14192_v48  ;;  %v14204_v32 = vadd.f32 %v2520_v9, %v18852_v41  ;;  %v18854_v26 = vld [vmem:[#allocation266_spill] sm:$0xff]  ;;  %v18856_v55 = vld [vmem:[#allocation35_spill] sm:$0xff] }
 0x430   :  { %18848 = vst [vmem:[#allocation49_spill] sm:$0xff] %v14195_v54  ;;  %18850 = vst [vmem:[#allocation140_spill] sm:$0xff] %v14199_v37  ;;  %v2528_v11 = vmul.f32 %v13881_v22, %v18854_v26  ;;  %v18855_v29 = vld [vmem:[#allocation286_spill] sm:$0xff]  ;;  %v14217_v16 = vadd.f32 %v2519_v61, %v18856_v55  ;;  %v18858_v42 = vld [vmem:[#allocation109_spill] sm:$0xff]  ;;  %v14267_v0 = vpop.permute.xlu0 %3888 }
 0x431   :  { %18853 = vst [vmem:[#allocation141_spill] sm:$0xff] %v14204_v32  ;;  %v3001_v25 = vmul.f32 %v14174_v4, %v18855_v29  ;;  %v14220_v9 = vadd.f32 %v2522_v34, %v18858_v42  ;;  %v18859_v41 = vld [vmem:[#allocation110_spill] sm:$0xff]  ;;  %v18861_v26 = vld [vmem:[#allocation287_spill] sm:$0xff]  ;;  %v14233_v57 = vld [vmem:[%s17936_s0 + $0x2c2] sm:$0xff] }
 0x432   :  { %18857 = vst [vmem:[#allocation142_spill] sm:$0xff] %v14217_v16  ;;  %v14223_v32 = vadd.f32 %v2521_v58, %v18859_v41  ;;  %v3000_v29 = vmul.f32 %v14174_v4, %v18861_v26  ;;  %v9262_v48 = vld [vmem:[%s17936_s0 + $0x2d0] sm:$0xff]  ;;  %v18862_v61 = vld [vmem:[#allocation111_spill] sm:$0xff]  ;;  %v18863_v34 = vld [vmem:[#allocation112_spill] sm:$0xff]  ;;  %v14242_v58 = vadd.f32 %v2526_v28, %v13896_v8  ;;  %2943 = vperm.xlu0 %10194, %v14233_v57  }
 0x433   :  { %v14236_v10 = vadd.f32 %v2524_v24, %v18862_v61  ;;  %v14239_v55 = vadd.f32 %v2523_v63, %v18863_v34  ;;  %v18864_v42 = vld [vmem:[#allocation291_spill] sm:$0xff]  ;;  %v14249_v26 = vld [vmem:[%s17937_s1 + $0x7] ss:$0 sm:$0xff]  ;;  %v18867_v34 = vld [vmem:[#allocation289_spill] sm:$0xff]  ;;  %18869 = vst [vmem:[#allocation145_spill] sm:$0xff] %v14267_v0  ;;  %3456 = vperm.xlu1 %10195, %v9262_v48  }
 0x434   :  { %18860 = vst [vmem:[#allocation143_spill] sm:$0xff] %v14223_v32  ;;  %v3519_v41 = vmul.f32 %v14213_v12, %v18864_v42  ;;  %v14252_v32 = vadd.f32 %v2525_v35, %v13899_v6  ;;  %v18865_v16 = vld [vmem:[#allocation267_spill] sm:$0xff]  ;;  %v18866_v61 = vld [vmem:[#allocation288_spill] sm:$0xff]  ;;  %v3002_v8 = vmul.f32 %v14174_v4, %v18867_v34  ;;  %v14265_v42 = vpop.permute.xlu1 %4400  ;;  %v14270_v6 = vadd.f32 %v2528_v11, %v13902_v14  ;;  %v18873_v0 = vld [vmem:[#allocation293_spill] sm:$0xff]  ;;  %v14299_v59 = vpop.permute.xlu0 %2868 }
 0x435   :  { %v2527_v24 = vmul.f32 %v13881_v22, %v18865_v16  ;;  %v3518_v63 = vmul.f32 %v14213_v12, %v18866_v61  ;;  %v14263_v28 = vld [vmem:[%s17937_s1 + $0x8] ss:$0 sm:$0xff]  ;;  %18868 = vst [vmem:[#allocation144_spill] sm:$0xff] %v14265_v42  ;;  %v3065_v35 = vadd.f32 %v3001_v25, %v13965_v52  ;;  %v18870_v16 = vld [vmem:[#allocation295_spill] sm:$0xff]  ;;  %v3064_v54 = vadd.f32 %v3000_v29, %v13971_v33  ;;  %v18874_v11 = vld [vmem:[#allocation269_spill] sm:$0xff] }
 0x436   :  { %v4036_v61 = vmul.f32 %v14249_v26, %v18870_v16  ;;  %v18871_v34 = vld [vmem:[#allocation268_spill] sm:$0xff]  ;;  %v3520_v14 = vmul.f32 %v14213_v12, %v18873_v0  ;;  %v2529_v48 = vmul.f32 %v13881_v22, %v18874_v11  ;;  %v18875_v25 = vld [vmem:[#allocation290_spill] sm:$0xff]  ;;  %v18878_v38 = vld [vmem:[#allocation299_spill] sm:$0xff]  ;;  %18879 = vst [vmem:[#allocation146_spill] sm:$0xff] %v14299_v59 }
 0x437   :  { %v2530_v37 = vmul.f32 %v13881_v22, %v18871_v34  ;;  %v18872_v44 = vld [vmem:[#allocation292_spill] sm:$0xff]  ;;  %v3003_v16 = vmul.f32 %v14174_v4, %v18875_v25  ;;  %v3583_v21 = vadd.f32 %v3519_v41, %v3065_v35  ;;  %v18876_v34 = vld [vmem:[#allocation298_spill] sm:$0xff]  ;;  %v3582_v29 = vadd.f32 %v3518_v63, %v3064_v54  ;;  %4480 = vperm.xlu1 %10195, %v14127_v45   ;;  %v18881_v54 = vld [vmem:[#allocation297_spill] sm:$0xff] }
 0x438   :  { %v4035_v42 = vmul.f32 %v14249_v26, %v18872_v44  ;;  %v9326_v52 = vld [vmem:[%s17936_s0 + $0x2c1] sm:$0xff]  ;;  %v4553_v33 = vmul.f32 %v14263_v28, %v18876_v34  ;;  %v3066_v44 = vadd.f32 %v3002_v8, %v13992_v27  ;;  %v4552_v5 = vmul.f32 %v14263_v28, %v18878_v38  ;;  %v14297_v62 = vpop.permute.xlu1 %3381  ;;  %v18880_v41 = vld [vmem:[#allocation294_spill] sm:$0xff] }
 0x439   :  { %v18877_v20 = vld [vmem:[#allocation296_spill] sm:$0xff]  ;;  %v14302_v11 = vadd.f32 %v2527_v24, %v13911_v36  ;;  %v3004_v35 = vmul.f32 %v14174_v4, %v18880_v41  ;;  %v4100_v25 = vadd.f32 %v4036_v61, %v3583_v21  ;;  %3968 = vperm.xlu0 %10194, %v9326_v52   ;;  %v3521_v38 = vmul.f32 %v14213_v12, %v18881_v54  ;;  %v18882_v63 = vld [vmem:[#allocation302_spill] sm:$0xff] }
 0x43a   :  { %v4037_v0 = vmul.f32 %v14249_v26, %v18877_v20  ;;  %v4099_v27 = vadd.f32 %v4035_v42, %v3582_v29  ;;  %v3584_v20 = vadd.f32 %v3520_v14, %v3066_v44  ;;  %v4554_v8 = vmul.f32 %v14263_v28, %v18882_v63  ;;  %v9263_v36 = vld [vmem:[%s17936_s0 + $0x2d8] sm:$0xff]  ;;  %v18885_v34 = vld [vmem:[#allocation300_spill] sm:$0xff] }
 0x43b   :  { %v14317_v21 = vld [vmem:[%s17936_s0 + $0x2d2] sm:$0xff]  ;;  %v14320_v45 = vadd.f32 %v2530_v37, %v13919_v23  ;;  %v14323_v24 = vadd.f32 %v2529_v48, %v13922_v39  ;;  %v3067_v42 = vadd.f32 %v3003_v16, %v13983_v15  ;;  %v14326_v61 = vadd.f32 %v4553_v33, %v4100_v25  ;;  %v18886_v44 = vld [vmem:[#allocation303_spill] sm:$0xff]  ;;  %v14336_v23 = vpop.permute.xlu0 %3893  ;;  %v18890_v48 = vld [vmem:[#allocation301_spill] sm:$0xff]  ;;  %3461 = vperm.xlu1 %10195, %v9263_v36  }
 0x43c   :  { %v4101_v14 = vadd.f32 %v4037_v0, %v3584_v20  ;;  %v14328_v52 = vadd.f32 %v4552_v5, %v4099_v27  ;;  %v3522_v29 = vmul.f32 %v14213_v12, %v18885_v34  ;;  %v4038_v41 = vmul.f32 %v14249_v26, %v18886_v44  ;;  %v14334_v54 = vpop.permute.xlu1 %4405  ;;  %18888 = vst [vmem:[#allocation149_spill] sm:$0xff] %v14336_v23  ;;  %v18889_v37 = vld [vmem:[#allocation270_spill] sm:$0xff]  ;;  %v18893_v27 = vld [vmem:[#allocation307_spill] sm:$0xff]  ;;  %v18898_v23 = vld [vmem:[#allocation305_spill] sm:$0xff] }
 0x43d   :  { %18883 = vst [vmem:[#allocation147_spill] sm:$0xff] %v14326_v61  ;;  %18887 = vst [vmem:[#allocation148_spill] sm:$0xff] %v14334_v54  ;;  %v2532_v39 = vmul.f32 %v13881_v22, %v18889_v37  ;;  %v3068_v15 = vadd.f32 %v3004_v35, %v13998_v19  ;;  %v3005_v16 = vmul.f32 %v14174_v4, %v18890_v48  ;;  %2948 = vperm.xlu0 %10194, %v14317_v21   ;;  %v18892_v0 = vld [vmem:[#allocation306_spill] sm:$0xff]  ;;  %v18894_v19 = vld [vmem:[#allocation271_spill] sm:$0xff] }
 0x43e   :  { %18884 = vst [vmem:[#allocation51_spill] sm:$0xff] %v14328_v52  ;;  %v3585_v5 = vadd.f32 %v3521_v38, %v3067_v42  ;;  %v14344_v33 = vadd.f32 %v4554_v8, %v4101_v14  ;;  %v4555_v25 = vmul.f32 %v14263_v28, %v18892_v0  ;;  %v4039_v20 = vmul.f32 %v14249_v26, %v18893_v27  ;;  %v9327_v63 = vld [vmem:[%s17936_s0 + $0x2d1] sm:$0xff]  ;;  %v18895_v8 = vld [vmem:[#allocation304_spill] sm:$0xff]  ;;  %v18899_v54 = vld [vmem:[#allocation311_spill] sm:$0xff] }
 0x43f   :  { %v2531_v35 = vmul.f32 %v13881_v22, %v18894_v19  ;;  %v4684_v36 = vsel %vm4682_vm0, %v14326_v61, 0.0  ;;  %v4817_v38 = vmul.f32 %v14326_v61, %v14326_v61  ;;  %v3523_v42 = vmul.f32 %v14213_v12, %v18895_v8  ;;  %v18896_v37 = vld [vmem:[#allocation310_spill] sm:$0xff]  ;;  %v14367_v27 = vpop.permute.xlu0 %2873  ;;  %4485 = vperm.xlu1 %10195, %v14233_v57  }
 0x440   :  { %18891 = vst [vmem:[#allocation150_spill] sm:$0xff] %v14344_v33  ;;  %v4816_v14 = vmul.f32 %v14328_v52, %v14328_v52  ;;  %v3586_v34 = vadd.f32 %v3522_v29, %v3068_v15  ;;  %v4102_v44 = vadd.f32 %v4038_v41, %v3585_v5  ;;  %v4556_v48 = vmul.f32 %v14263_v28, %v18896_v37  ;;  %v14365_v0 = vpop.permute.xlu1 %3386  ;;  %v18900_v29 = vld [vmem:[#allocation115_spill] sm:$0xff] }
 0x441   :  { %18897 = vst [vmem:[#allocation54_spill] sm:$0xff] %v14365_v0  ;;  %v4683_v19 = vsel %vm4682_vm0, %v14328_v52, 0.0  ;;  %v3069_v61 = vadd.f32 %v3005_v16, %v13995_v3  ;;  %v3006_v8 = vmul.f32 %v14174_v4, %v18898_v23  ;;  %v4040_v59 = vmul.f32 %v14249_v26, %v18899_v54  ;;  %3973 = vperm.xlu0 %10194, %v9327_v63   ;;  %v9264_v3 = vld [vmem:[%s17936_s0 + $0x2e8] sm:$0xff]  ;;  %v14390_v54 = vld [vmem:[%s17936_s0 + $0x2da] sm:$0xff]  ;;  %v18903_v63 = vld [vmem:[#allocation314_spill] sm:$0xff] }
 0x442   :  { %v14378_v41 = vadd.f32 %v2532_v39, %v18900_v29  ;;  %v4818_v15 = vmul.f32 %v14344_v33, %v14344_v33  ;;  %v14382_v5 = vadd.f32 %v4555_v25, %v4102_v44  ;;  %v4103_v37 = vadd.f32 %v4039_v20, %v3586_v34  ;;  %v18902_v39 = vld [vmem:[#allocation308_spill] sm:$0xff] }
 0x443   :  { %v14393_v57 = vadd.f32 %v2531_v35, %v13938_v51  ;;  %v3587_v23 = vadd.f32 %v3523_v42, %v3069_v61  ;;  %v3524_v16 = vmul.f32 %v14213_v12, %v18902_v39  ;;  %v4557_v25 = vmul.f32 %v14263_v28, %v18903_v63  ;;  %v14405_v0 = vpop.permute.xlu0 %3898  ;;  %v18907_v35 = vld [vmem:[#allocation315_spill] sm:$0xff]  ;;  %3466 = vperm.xlu1 %10195, %v9264_v3   ;;  %v18910_v3 = vld [vmem:[#allocation318_spill] sm:$0xff]  ;;  %v18911_v39 = vld [vmem:[#allocation272_spill] sm:$0xff] }
 0x444   :  { %18901 = vst [vmem:[#allocation151_spill] sm:$0xff] %v14382_v5  ;;  %v4881_v20 = vsel %vm4682_vm0, %v4817_v38, 0.0  ;;  %v4685_v34 = vadd.f32 %v4684_v36, %v4683_v19  ;;  %v4880_v44 = vsel %vm4682_vm0, %v4816_v14, 0.0  ;;  %v14401_v29 = vadd.f32 %v4556_v48, %v4103_v37  ;;  %v14403_v52 = vpop.permute.xlu1 %4410  ;;  %18906 = vst [vmem:[#allocation56_spill] sm:$0xff] %v14405_v0  ;;  %v18908_v48 = vld [vmem:[#allocation309_spill] sm:$0xff] }
 0x445   :  { %18905 = vst [vmem:[#allocation55_spill] sm:$0xff] %v14403_v52  ;;  %v3070_v51 = vadd.f32 %v3006_v8, %v14015_v30  ;;  %v4104_v61 = vadd.f32 %v4040_v59, %v3587_v23  ;;  %v4041_v42 = vmul.f32 %v14249_v26, %v18907_v35  ;;  %2953 = vperm.xlu0 %10194, %v14390_v54   ;;  %v4686_v36 = vsel %vm4682_vm0, %v14344_v33, 0.0  ;;  %v9328_v30 = vld [vmem:[%s17936_s0 + $0x2d9] sm:$0xff] }
 0x446   :  { %18904 = vst [vmem:[#allocation152_spill] sm:$0xff] %v14401_v29  ;;  %v4883_v38 = vsel %vm4682_vm0, %v4818_v15, 0.0  ;;  %v4819_v14 = vmul.f32 %v14382_v5, %v14382_v5  ;;  %v3007_v19 = vmul.f32 %v14174_v4, %v18908_v48  ;;  %v4882_v59 = vadd.f32 %v4881_v20, %v4880_v44  ;;  %v18912_v48 = vld [vmem:[#allocation312_spill] sm:$0xff] }
 0x447   :  { %v3588_v8 = vadd.f32 %v3524_v16, %v3070_v51  ;;  %v14421_v37 = vadd.f32 %v4557_v25, %v4104_v61  ;;  %v4558_v23 = vmul.f32 %v14263_v28, %v18910_v3  ;;  %v2534_v15 = vmul.f32 %v13881_v22, %v18911_v39  ;;  %v14435_v16 = vpop.permute.xlu0 %2878  ;;  %4490 = vperm.xlu1 %10195, %v14317_v21   ;;  %v18913_v39 = vld [vmem:[#allocation319_spill] sm:$0xff] }
 0x448   :  { %v4688_v63 = vsel %vm4682_vm0, %v14382_v5, 0.0  ;;  %v4820_v35 = vmul.f32 %v14401_v29, %v14401_v29  ;;  %v3525_v33 = vmul.f32 %v14213_v12, %v18912_v48  ;;  %v14433_v0 = vpop.permute.xlu1 %3391  ;;  %v4687_v25 = vadd.f32 %v4686_v36, %v4685_v34  ;;  %v9265_v5 = vld [vmem:[%s17936_s0 + $0x2f0] sm:$0xff] }
 0x449   :  { %18909 = vst [vmem:[#allocation57_spill] sm:$0xff] %v14421_v37  ;;  %v4884_v20 = vadd.f32 %v4883_v38, %v4882_v59  ;;  %v4105_v44 = vadd.f32 %v4041_v42, %v3588_v8  ;;  %3978 = vperm.xlu0 %10194, %v9328_v30   ;;  %v4885_v51 = vsel %vm4682_vm0, %v4819_v14, 0.0  ;;  %v3071_v61 = vadd.f32 %v3007_v19, %v14007_v56  ;;  %v14450_v34 = vld [vmem:[%s17936_s0 + $0x2ea] sm:$0xff]  ;;  %v18917_v8 = vld [vmem:[#allocation322_spill] sm:$0xff] }
 0x44a   :  { %v4690_v3 = vsel %vm4682_vm0, %v14401_v29, 0.0  ;;  %v4042_v48 = vmul.f32 %v14249_v26, %v18913_v39  ;;  %v4689_v21 = vadd.f32 %v4688_v63, %v4687_v25  ;;  %v18914_v42 = vld [vmem:[#allocation313_spill] sm:$0xff]  ;;  %v4821_v56 = vmul.f32 %v14421_v37, %v14421_v37 }
 0x44b   :  { %v3008_v36 = vmul.f32 %v14174_v4, %v18914_v42  ;;  %v14456_v38 = vadd.f32 %v4558_v23, %v4105_v44  ;;  %v18916_v14 = vld [vmem:[#allocation273_spill] sm:$0xff]  ;;  %v4887_v30 = vsel %vm4682_vm0, %v4820_v35, 0.0  ;;  %v3589_v59 = vadd.f32 %v3525_v33, %v3071_v61  ;;  %v14465_v63 = vpop.permute.xlu0 %3903  ;;  %3471 = vperm.xlu1 %10195, %v9265_v5   ;;  %v18920_v35 = vld [vmem:[#allocation316_spill] sm:$0xff] }
 0x44c   :  { %v2533_v19 = vmul.f32 %v13881_v22, %v18916_v14  ;;  %v4559_v39 = vmul.f32 %v14263_v28, %v18917_v8  ;;  %v14463_v29 = vpop.permute.xlu1 %4415  ;;  %18919 = vst [vmem:[#allocation61_spill] sm:$0xff] %v14465_v63  ;;  %v14468_v25 = vadd.f32 %v2534_v15, %v13941_v18  ;;  %v4886_v42 = vadd.f32 %v4885_v51, %v4884_v20  ;;  %v18921_v44 = vld [vmem:[#allocation317_spill] sm:$0xff] }
 0x44d   :  { %18915 = vst [vmem:[#allocation153_spill] sm:$0xff] %v14456_v38  ;;  %18918 = vst [vmem:[#allocation60_spill] sm:$0xff] %v14463_v29  ;;  %v4691_v52 = vadd.f32 %v4690_v3, %v4689_v21  ;;  %2958 = vperm.xlu0 %10194, %v14450_v34   ;;  %v4692_v23 = vsel %vm4682_vm0, %v14421_v37, 0.0  ;;  %v3526_v33 = vmul.f32 %v14213_v12, %v18920_v35  ;;  %v9329_v18 = vld [vmem:[%s17936_s0 + $0x2e9] sm:$0xff]  ;;  %v4889_v5 = vsel %vm4682_vm0, %v4821_v56, 0.0  ;;  %v18933_v37 = vld [vmem:[#allocation330_spill] sm:$0xff] }
 0x44e   :  { %v3009_v61 = vmul.f32 %v14174_v4, %v18921_v44  ;;  %v4106_v14 = vadd.f32 %v4042_v48, %v3589_v59  ;;  %v4888_v15 = vadd.f32 %v4887_v30, %v4886_v42  ;;  %v3072_v20 = vadd.f32 %v3008_v36, %v14021_v17  ;;  %v18922_v21 = vld [vmem:[#allocation321_spill] sm:$0xff]  ;;  %v18924_v48 = vld [vmem:[#allocation323_spill] sm:$0xff]  ;;  %v18925_v36 = vld [vmem:[#allocation274_spill] sm:$0xff] }
 0x44f   :  { %v4822_v51 = vmul.f32 %v14456_v38, %v14456_v38  ;;  %v4694_v3 = vsel %vm4682_vm0, %v14456_v38, 0.0  ;;  %v3010_v8 = vmul.f32 %v14174_v4, %v18922_v21  ;;  %v4043_v59 = vmul.f32 %v14249_v26, %v18924_v48  ;;  %v2884_v30 = vpop.permute.xlu0 %2883  ;;  %4495 = vperm.xlu1 %10195, %v14390_v54  }
 0x450   :  { %v14488_v35 = vadd.f32 %v4559_v39, %v4106_v14  ;;  %v3397_v44 = vpop.permute.xlu1 %3396  ;;  %v14493_v17 = vadd.f32 %v2533_v19, %v13944_v50  ;;  %v14497_v56 = vmul.f32 %v13881_v22, %v18925_v36  ;;  %v4693_v42 = vadd.f32 %v4692_v23, %v4691_v52  ;;  %v18926_v14 = vld [vmem:[#allocation320_spill] sm:$0xff]  ;;  %v14509_v19 = vld [vmem:[%s17936_s0 + $0x2f2] sm:$0xff] }
 0x451   :  { %3983 = vperm.xlu0 %10194, %v9329_v18   ;;  %v4890_v38 = vadd.f32 %v4889_v5, %v4888_v15  ;;  %v3590_v21 = vadd.f32 %v3526_v33, %v3072_v20  ;;  %v3073_v39 = vadd.f32 %v3009_v61, %v14018_v49  ;;  %v3527_v48 = vmul.f32 %v14213_v12, %v18926_v14  ;;  %v9266_v50 = vld [vmem:[%s17936_s0 + $0x300] sm:$0xff]  ;;  %v18928_v18 = vld [vmem:[#allocation326_spill] sm:$0xff] }
 0x452   :  { %18923 = vst [vmem:[#allocation62_spill] sm:$0xff] %v14488_v35  ;;  %v4695_v52 = vadd.f32 %v4694_v3, %v4693_v42  ;;  %v4891_v54 = vsel %vm4682_vm0, %v4822_v51, 0.0  ;;  %v18927_v23 = vld [vmem:[#allocation324_spill] sm:$0xff]  ;;  %v4560_v49 = vmul.f32 %v14263_v28, %v18928_v18  ;;  %v3074_v61 = vadd.f32 %v3010_v8, %v14037_v46  ;;  %v18930_v42 = vld [vmem:[#allocation325_spill] sm:$0xff]  ;;  %v18931_v8 = vld [vmem:[#allocation327_spill] sm:$0xff] }
 0x453   :  { %v3528_v33 = vmul.f32 %v14213_v12, %v18927_v23  ;;  %v4696_v15 = vsel %vm4682_vm0, %v14488_v35, 0.0  ;;  %v4107_v20 = vadd.f32 %v4043_v59, %v3590_v21  ;;  %v3039_v5 = vmul.f32 %v14174_v4, %v14367_v27  ;;  %v3909_v3 = vpop.permute.xlu0 %3908  ;;  %3476 = vperm.xlu1 %10195, %v9266_v50   ;;  %v9330_v18 = vld [vmem:[%s17936_s0 + $0x2f1] sm:$0xff] }
 0x454   :  { %v14521_v36 = vpop.permute.xlu1 %4420  ;;  %v4823_v51 = vmul.f32 %v14488_v35, %v14488_v35  ;;  %v3011_v14 = vmul.f32 %v14174_v4, %v18930_v42  ;;  %v3041_v23 = vmul.f32 %v14174_v4, %v2884_v30  ;;  %v3591_v46 = vadd.f32 %v3527_v48, %v3073_v39 }
 0x455   :  { %18929 = vst [vmem:[#allocation63_spill] sm:$0xff] %v14521_v36  ;;  %2963 = vperm.xlu0 %10194, %v14509_v19   ;;  %v4044_v59 = vmul.f32 %v14249_v26, %v18931_v8  ;;  %v3557_v27 = vmul.f32 %v14213_v12, %v14433_v0  ;;  %v3040_v21 = vmul.f32 %v14174_v4, %v14435_v16 }
 0x456   :  { %v4892_v42 = vadd.f32 %v4891_v54, %v4890_v38  ;;  %v4697_v35 = vadd.f32 %v4696_v15, %v4695_v52  ;;  %v3592_v30 = vadd.f32 %v3528_v33, %v3074_v61  ;;  %v14538_v50 = vadd.f32 %v4560_v49, %v4107_v20  ;;  %v18934_v54 = vld [vmem:[#allocation331_spill] sm:$0xff]  ;;  %v9267_v49 = vld [vmem:[%s17936_s0 + $0x308] sm:$0xff] }
 0x457   :  { %v4561_v39 = vmul.f32 %v14263_v28, %v18933_v37  ;;  %v3103_v48 = vadd.f32 %v3039_v5, %v14220_v9  ;;  %v3558_v8 = vmul.f32 %v14213_v12, %v3397_v44  ;;  %v4074_v0 = vmul.f32 %v14249_v26, %v3909_v3  ;;  %v2889_v16 = vpop.permute.xlu0 %2888  ;;  %4500 = vperm.xlu1 %10195, %v14450_v34   ;;  %v18935_v61 = vld [vmem:[#allocation329_spill] sm:$0xff]  ;;  %v18937_v5 = vld [vmem:[#allocation334_spill] sm:$0xff] }
 0x458   :  { %18932 = vst [vmem:[#allocation64_spill] sm:$0xff] %v14538_v50  ;;  %v3402_v36 = vpop.permute.xlu1 %3401  ;;  %v4893_v63 = vsel %vm4682_vm0, %v4823_v51, 0.0  ;;  %v3075_v29 = vadd.f32 %v3011_v14, %v14034_v53  ;;  %v3105_v38 = vadd.f32 %v3041_v23, %v14236_v10  ;;  %v4108_v37 = vadd.f32 %v4044_v59, %v3591_v46  ;;  %v14559_v53 = vld [vmem:[%s17936_s0 + $0x302] sm:$0xff] }
 0x459   :  { %v3559_v52 = vmul.f32 %v14213_v12, %v3402_v36  ;;  %3988 = vperm.xlu0 %10194, %v9330_v18   ;;  %v4045_v9 = vmul.f32 %v14249_v26, %v18934_v54  ;;  %v3621_v44 = vadd.f32 %v3557_v27, %v3103_v48  ;;  %v3104_v33 = vadd.f32 %v3040_v21, %v14239_v55 }
 0x45a   :  { %v4698_v10 = vsel %vm4682_vm0, %v14538_v50, 0.0  ;;  %v4824_v34 = vmul.f32 %v14538_v50, %v14538_v50  ;;  %v3012_v15 = vmul.f32 %v14174_v4, %v18935_v61  ;;  %v14567_v55 = vadd.f32 %v4561_v39, %v4108_v37  ;;  %v18938_v39 = vld [vmem:[#allocation328_spill] sm:$0xff]  ;;  %v18943_v61 = vld [vmem:[#allocation333_spill] sm:$0xff] }
 0x45b   :  { %v3623_v20 = vadd.f32 %v3559_v52, %v3105_v38  ;;  %v4562_v36 = vmul.f32 %v14263_v28, %v18937_v5  ;;  %v3622_v3 = vadd.f32 %v3558_v8, %v3104_v33  ;;  %v4138_v51 = vadd.f32 %v4074_v0, %v3621_v44  ;;  %v3914_v23 = vpop.permute.xlu0 %3913  ;;  %3481 = vperm.xlu1 %10195, %v9267_v49   ;;  %v9331_v8 = vld [vmem:[%s17936_s0 + $0x301] sm:$0xff]  ;;  %v18944_v5 = vld [vmem:[#allocation338_spill] sm:$0xff] }
 0x45c   :  { %18936 = vst [vmem:[#allocation65_spill] sm:$0xff] %v14567_v55  ;;  %v4426_v14 = vpop.permute.xlu1 %4425  ;;  %v3042_v46 = vmul.f32 %v14174_v4, %v2889_v16  ;;  %v4075_v27 = vmul.f32 %v14249_v26, %v3914_v23  ;;  %v4894_v21 = vadd.f32 %v4893_v63, %v4892_v42  ;;  %v4699_v18 = vadd.f32 %v4698_v10, %v4697_v35  ;;  %v18939_v16 = vld [vmem:[#allocation332_spill] sm:$0xff]  ;;  %v18942_v42 = vld [vmem:[#allocation335_spill] sm:$0xff] }
 0x45d   :  { %v4591_v59 = vmul.f32 %v14263_v28, %v4426_v14  ;;  %2968 = vperm.xlu0 %10194, %v14559_v53   ;;  %v3529_v48 = vmul.f32 %v14213_v12, %v18938_v39  ;;  %v4109_v38 = vadd.f32 %v4045_v9, %v3592_v30  ;;  %v4895_v0 = vsel %vm4682_vm0, %v4824_v34, 0.0  ;;  %v9268_v14 = vld [vmem:[%s17936_s0 + $0x318] sm:$0xff]  ;;  %v18946_v39 = vld [vmem:[#allocation336_spill] sm:$0xff] }
 0x45e   :  { %v3530_v52 = vmul.f32 %v14213_v12, %v18939_v16  ;;  %v4139_v54 = vadd.f32 %v4075_v27, %v3622_v3  ;;  %v3076_v44 = vadd.f32 %v3012_v15, %v14045_v47  ;;  %v4700_v63 = vsel %vm4682_vm0, %v14567_v55, 0.0  ;;  %v18945_v3 = vld [vmem:[#allocation339_spill] sm:$0xff] }
 0x45f   :  { %v14583_v37 = vadd.f32 %v4591_v59, %v4138_v51  ;;  %v14588_v35 = vadd.f32 %v4562_v36, %v4109_v38  ;;  %v4046_v30 = vmul.f32 %v14249_v26, %v18942_v42  ;;  %v2894_v33 = vpop.permute.xlu0 %2893  ;;  %v4825_v49 = vmul.f32 %v14567_v55, %v14567_v55  ;;  %4505 = vperm.xlu1 %10195, %v14509_v19   ;;  %v18947_v38 = vld [vmem:[#allocation342_spill] sm:$0xff] }
 0x460   :  { %v3407_v9 = vpop.permute.xlu1 %3406  ;;  %v3106_v10 = vadd.f32 %v3042_v46, %v14252_v32  ;;  %v3593_v47 = vadd.f32 %v3529_v48, %v3075_v29  ;;  %v3013_v15 = vmul.f32 %v14174_v4, %v18943_v61  ;;  %v4563_v36 = vmul.f32 %v14263_v28, %v18944_v5  ;;  %v14609_v32 = vld [vmem:[%s17936_s0 + $0x30a] sm:$0xff] }
 0x461   :  { %18940 = vst [vmem:[#allocation154_spill] sm:$0xff] %v14583_v37  ;;  %18941 = vst [vmem:[#allocation66_spill] sm:$0xff] %v14588_v35  ;;  %v3560_v34 = vmul.f32 %v14213_v12, %v3407_v9  ;;  %3993 = vperm.xlu0 %10194, %v9331_v8   ;;  %v4047_v51 = vmul.f32 %v14249_v26, %v18945_v3  ;;  %v4896_v19 = vadd.f32 %v4895_v0, %v4894_v21  ;;  %v18953_v3 = vld [vmem:[#allocation346_spill] sm:$0xff] }
 0x462   :  { %v4701_v29 = vadd.f32 %v4700_v63, %v4699_v18  ;;  %v3594_v23 = vadd.f32 %v3530_v52, %v3076_v44  ;;  %v4826_v59 = vmul.f32 %v14588_v35, %v14588_v35  ;;  %v4110_v27 = vadd.f32 %v4046_v30, %v3593_v47  ;;  %v18949_v30 = vld [vmem:[#allocation343_spill] sm:$0xff] }
 0x463   :  { %v14611_v46 = vadd.f32 %v3560_v34, %v3106_v10  ;;  %v3531_v48 = vmul.f32 %v14213_v12, %v18946_v39  ;;  %v4564_v8 = vmul.f32 %v14263_v28, %v18947_v38  ;;  %v3919_v42 = vpop.permute.xlu0 %3918  ;;  %v4897_v9 = vsel %vm4682_vm0, %v4825_v49, 0.0  ;;  %3486 = vperm.xlu1 %10195, %v9268_v14   ;;  %v9332_v49 = vld [vmem:[%s17936_s0 + $0x309] sm:$0xff] }
 0x464   :  { %v4431_v16 = vpop.permute.xlu1 %4430  ;;  %v3043_v21 = vmul.f32 %v14174_v4, %v2894_v33  ;;  %v4076_v0 = vmul.f32 %v14249_v26, %v3919_v42  ;;  %v3077_v52 = vadd.f32 %v3013_v15, %v14040_v43  ;;  %v14625_v44 = vadd.f32 %v4563_v36, %v4110_v27  ;;  %v18950_v34 = vld [vmem:[#allocation337_spill] sm:$0xff] }
 0x465   :  { %v4592_v18 = vmul.f32 %v14263_v28, %v4431_v16  ;;  %2973 = vperm.xlu0 %10194, %v14609_v32   ;;  %v4111_v63 = vadd.f32 %v4047_v51, %v3594_v23  ;;  %v4048_v10 = vmul.f32 %v14249_v26, %v18949_v30  ;;  %v4702_v33 = vsel %vm4682_vm0, %v14588_v35, 0.0 }
 0x466   :  { %18948 = vst [vmem:[#allocation67_spill] sm:$0xff] %v14625_v44  ;;  %v3014_v47 = vmul.f32 %v14174_v4, %v18950_v34  ;;  %v4140_v5 = vadd.f32 %v4076_v0, %v3623_v20  ;;  %v4899_v43 = vsel %vm4682_vm0, %v4826_v59, 0.0  ;;  %v3595_v15 = vadd.f32 %v3531_v48, %v3077_v52  ;;  %v18955_v48 = vld [vmem:[#allocation340_spill] sm:$0xff] }
 0x467   :  { %v14636_v61 = vadd.f32 %v4592_v18, %v4139_v54  ;;  %v14639_v36 = vadd.f32 %v4564_v8, %v4111_v63  ;;  %v4565_v51 = vmul.f32 %v14263_v28, %v18953_v3  ;;  %v2899_v23 = vpop.permute.xlu0 %2898  ;;  %v4898_v27 = vadd.f32 %v4897_v9, %v4896_v19  ;;  %4510 = vperm.xlu1 %10195, %v14559_v53   ;;  %v18954_v54 = vld [vmem:[#allocation275_spill] sm:$0xff]  ;;  %v18959_v3 = vld [vmem:[#allocation350_spill] sm:$0xff] }
 0x468   :  { %v3412_v14 = vpop.permute.xlu1 %3411  ;;  %v3107_v39 = vadd.f32 %v3043_v21, %v14242_v58  ;;  %v2535_v20 = vmul.f32 %v13881_v22, %v18954_v54  ;;  %v4827_v59 = vmul.f32 %v14625_v44, %v14625_v44  ;;  %v3532_v8 = vmul.f32 %v14213_v12, %v18955_v48  ;;  %v9269_v19 = vld [vmem:[%s17936_s0 + $0x320] sm:$0xff]  ;;  %v18956_v21 = vld [vmem:[#allocation341_spill] sm:$0xff] }
 0x469   :  { %18951 = vst [vmem:[#allocation158_spill] sm:$0xff] %v14636_v61  ;;  %18952 = vst [vmem:[#allocation68_spill] sm:$0xff] %v14639_v36  ;;  %v3561_v38 = vmul.f32 %v14213_v12, %v3412_v14  ;;  %3998 = vperm.xlu0 %10194, %v9332_v49   ;;  %v4112_v16 = vadd.f32 %v4048_v10, %v3595_v15  ;;  %v14658_v58 = vld [vmem:[%s17936_s0 + $0x31a] sm:$0xff]  ;;  %v4703_v53 = vadd.f32 %v4702_v33, %v4701_v29 }
 0x46a   :  { %v4900_v42 = vadd.f32 %v4899_v43, %v4898_v27  ;;  %v3078_v22 = vadd.f32 %v3014_v47, %v14061_v2  ;;  %v3015_v18 = vmul.f32 %v14174_v4, %v18956_v21  ;;  %v4828_v0 = vmul.f32 %v14639_v36, %v14639_v36  ;;  %v18958_v63 = vld [vmem:[#allocation347_spill] sm:$0xff] }
 0x46b   :  { %v14661_v9 = vadd.f32 %v3561_v38, %v3107_v39  ;;  %v14667_v52 = vadd.f32 %v4565_v51, %v4112_v16  ;;  %v4049_v30 = vmul.f32 %v14249_v26, %v18958_v63  ;;  %v3924_v49 = vpop.permute.xlu0 %3923  ;;  %v4704_v29 = vsel %vm4682_vm0, %v14625_v44, 0.0  ;;  %3491 = vperm.xlu1 %10195, %v9269_v19   ;;  %v9333_v14 = vld [vmem:[%s17936_s0 + $0x319] sm:$0xff]  ;;  %v18961_v39 = vld [vmem:[#allocation345_spill] sm:$0xff] }
 0x46c   :  { %v4436_v10 = vpop.permute.xlu1 %4435  ;;  %v3044_v2 = vmul.f32 %v14174_v4, %v2899_v23  ;;  %v4077_v34 = vmul.f32 %v14249_v26, %v3924_v49  ;;  %v4901_v47 = vsel %vm4682_vm0, %v4827_v59, 0.0  ;;  %v3596_v43 = vadd.f32 %v3532_v8, %v3078_v22  ;;  %v18960_v23 = vld [vmem:[#allocation344_spill] sm:$0xff] }
 0x46d   :  { %18957 = vst [vmem:[#allocation159_spill] sm:$0xff] %v14667_v52  ;;  %v4593_v33 = vmul.f32 %v14263_v28, %v4436_v10  ;;  %2978 = vperm.xlu0 %10194, %v14658_v58   ;;  %v4706_v15 = vsel %vm4682_vm0, %v14639_v36, 0.0  ;;  %v4566_v51 = vmul.f32 %v14263_v28, %v18959_v3  ;;  %v3533_v27 = vmul.f32 %v14213_v12, %v18960_v23  ;;  %v19074_v36 = vld [vmem:[#allocation126_spill] sm:$0xff] }
 0x46e   :  { %v3016_v38 = vmul.f32 %v14174_v4, %v18961_v39  ;;  %v4141_v59 = vadd.f32 %v4077_v34, %v14611_v46  ;;  %v4705_v48 = vadd.f32 %v4704_v29, %v4703_v53  ;;  %v3079_v8 = vadd.f32 %v3015_v18, %v14058_v13  ;;  %v18962_v46 = vld [vmem:[#allocation119_spill] sm:$0xff]  ;;  %v18965_v34 = vld [vmem:[#allocation349_spill] sm:$0xff] }
 0x46f   :  { %v14689_v54 = vadd.f32 %v4593_v33, %v4140_v5  ;;  %v4903_v16 = vsel %vm4682_vm0, %v4828_v0, 0.0  ;;  %v4113_v19 = vadd.f32 %v4049_v30, %v3596_v43  ;;  %v2904_v21 = vpop.permute.xlu0 %2903  ;;  %v4902_v63 = vadd.f32 %v4901_v47, %v4900_v42  ;;  %4515 = vperm.xlu1 %10195, %v14609_v32   ;;  %v9270_v42 = vld [vmem:[%s17936_s0 + $0x330] sm:$0xff]  ;;  %v18966_v43 = vld [vmem:[#allocation351_spill] sm:$0xff] }
 0x470   :  { %v3417_v22 = vpop.permute.xlu1 %3416  ;;  %v4708_v10 = vsel %vm4682_vm0, %v14667_v52, 0.0  ;;  %v3108_v49 = vadd.f32 %v3044_v2, %v14302_v11  ;;  %v14700_v5 = vadd.f32 %v2535_v20, %v18962_v46  ;;  %v4707_v13 = vadd.f32 %v4706_v15, %v4705_v48  ;;  %v14712_v11 = vld [vmem:[%s17936_s0 + $0x322] sm:$0xff] }
 0x471   :  { %v3562_v3 = vmul.f32 %v14213_v12, %v3417_v22  ;;  %4003 = vperm.xlu0 %10194, %v9333_v14   ;;  %v4829_v53 = vmul.f32 %v14667_v52, %v14667_v52  ;;  %v14704_v18 = vadd.f32 %v4566_v51, %v4113_v19  ;;  %v4904_v32 = vadd.f32 %v4903_v16, %v4902_v63  ;;  %v18964_v2 = vld [vmem:[#allocation348_spill] sm:$0xff]  ;;  %v18969_v63 = vld [vmem:[#allocation354_spill] sm:$0xff] }
 0x472   :  { %v3597_v0 = vadd.f32 %v3533_v27, %v3079_v8  ;;  %v3080_v20 = vadd.f32 %v3016_v38, %v14079_v60  ;;  %v4709_v29 = vadd.f32 %v4708_v10, %v4707_v13  ;;  %v3534_v33 = vmul.f32 %v14213_v12, %v18964_v2  ;;  %v18967_v8 = vld [vmem:[#allocation355_spill] sm:$0xff]  ;;  %v18968_v22 = vld [vmem:[#allocation352_spill] sm:$0xff] }
 0x473   :  { %18963 = vst [vmem:[#allocation160_spill] sm:$0xff] %v14704_v18  ;;  %v3626_v30 = vadd.f32 %v3562_v3, %v3108_v49  ;;  %v3017_v47 = vmul.f32 %v14174_v4, %v18965_v34  ;;  %v4050_v15 = vmul.f32 %v14249_v26, %v18966_v43  ;;  %v3929_v14 = vpop.permute.xlu0 %3928  ;;  %v3045_v23 = vmul.f32 %v14174_v4, %v2904_v21  ;;  %v9334_v19 = vld [vmem:[%s17936_s0 + $0x321] sm:$0xff]  ;;  %v18973_v34 = vld [vmem:[#allocation358_spill] sm:$0xff] }
 0x474   :  { %v4441_v51 = vpop.permute.xlu1 %4440  ;;  %v4078_v27 = vmul.f32 %v14249_v26, %v3929_v14  ;;  %3496 = vperm.xlu1 %10195, %v9270_v42   ;;  %v4905_v60 = vsel %vm4682_vm0, %v4829_v53, 0.0  ;;  %v4710_v38 = vsel %vm4682_vm0, %v14704_v18, 0.0  ;;  %v4830_v48 = vmul.f32 %v14704_v18, %v14704_v18  ;;  %v18971_v13 = vld [vmem:[#allocation124_spill] sm:$0xff]  ;;  %v18972_v42 = vld [vmem:[#allocation353_spill] sm:$0xff] }
 0x475   :  { %v4594_v39 = vmul.f32 %v14263_v28, %v4441_v51  ;;  %2983 = vperm.xlu0 %10194, %v14712_v11   ;;  %v4051_v16 = vmul.f32 %v14249_v26, %v18967_v8  ;;  %v3535_v21 = vmul.f32 %v14213_v12, %v18968_v22  ;;  %v4567_v10 = vmul.f32 %v14263_v28, %v18969_v63  ;;  %v19073_v18 = vld [vmem:[#allocation121_spill] sm:$0xff] }
 0x476   :  { %v4142_v3 = vadd.f32 %v4078_v27, %v14661_v9  ;;  %v3598_v46 = vadd.f32 %v3534_v33, %v3080_v20  ;;  %v3081_v53 = vadd.f32 %v3017_v47, %v18971_v13  ;;  %v3018_v2 = vmul.f32 %v14174_v4, %v18972_v42  ;;  %v18974_v33 = vld [vmem:[#allocation359_spill] sm:$0xff] }
 0x477   :  { %v14739_v49 = vadd.f32 %v4594_v39, %v4141_v59  ;;  %v4568_v43 = vmul.f32 %v14263_v28, %v18973_v34  ;;  %v2909_v14 = vpop.permute.xlu0 %2908  ;;  %v4114_v8 = vadd.f32 %v4050_v15, %v3597_v0  ;;  %v3109_v22 = vadd.f32 %v3045_v23, %v14270_v6  ;;  %v9271_v39 = vld [vmem:[%s17936_s0 + $0x338] sm:$0xff]  ;;  %v18976_v23 = vld [vmem:[#allocation356_spill] sm:$0xff] }
 0x478   :  { %v3422_v51 = vpop.permute.xlu1 %3421  ;;  %4520 = vperm.xlu1 %10195, %v14658_v58   ;;  %v4906_v9 = vadd.f32 %v4905_v60, %v4904_v32  ;;  %v4711_v59 = vadd.f32 %v4710_v38, %v4709_v29  ;;  %v4115_v20 = vadd.f32 %v4051_v16, %v3598_v46  ;;  %v4052_v47 = vmul.f32 %v14249_v26, %v18974_v33  ;;  %v14758_v0 = vld [vmem:[%s17936_s0 + $0x332] sm:$0xff] }
 0x479   :  { %18970 = vst [vmem:[#allocation161_spill] sm:$0xff] %v14739_v49  ;;  %v3563_v63 = vmul.f32 %v14213_v12, %v3422_v51  ;;  %4008 = vperm.xlu0 %10194, %v9334_v19   ;;  %v4907_v6 = vsel %vm4682_vm0, %v4830_v48, 0.0  ;;  %v3599_v15 = vadd.f32 %v3535_v21, %v3081_v53  ;;  %v14761_v58 = vadd.f32 %v4567_v10, %v4114_v8  ;;  %v18978_v38 = vld [vmem:[#allocation362_spill] sm:$0xff]  ;;  %v18979_v10 = vld [vmem:[#allocation357_spill] sm:$0xff] }
 0x47a   :  { %v3082_v29 = vadd.f32 %v3018_v2, %v14091_v40  ;;  %v3536_v27 = vmul.f32 %v14213_v12, %v18976_v23  ;;  %v14766_v60 = vadd.f32 %v4568_v43, %v4115_v20  ;;  %v4569_v16 = vmul.f32 %v14263_v28, %v18978_v38  ;;  %v18980_v2 = vld [vmem:[#allocation363_spill] sm:$0xff]  ;;  %v9335_v43 = vld [vmem:[%s17936_s0 + $0x331] sm:$0xff] }
 0x47b   :  { %18975 = vst [vmem:[#allocation155_spill] sm:$0xff] %v14761_v58  ;;  %v3627_v32 = vadd.f32 %v3563_v63, %v3109_v22  ;;  %v3934_v46 = vpop.permute.xlu0 %3933  ;;  %v3046_v13 = vmul.f32 %v14174_v4, %v2909_v14  ;;  %v4908_v40 = vadd.f32 %v4907_v6, %v4906_v9  ;;  %v3019_v53 = vmul.f32 %v14174_v4, %v18979_v10  ;;  %v18982_v9 = vld [vmem:[#allocation360_spill] sm:$0xff] }
 0x47c   :  { %18977 = vst [vmem:[#allocation162_spill] sm:$0xff] %v14766_v60  ;;  %v4446_v19 = vpop.permute.xlu1 %4445  ;;  %v4079_v21 = vmul.f32 %v14249_v26, %v3934_v46  ;;  %3501 = vperm.xlu1 %10195, %v9271_v39   ;;  %v4116_v42 = vadd.f32 %v4052_v47, %v3599_v15  ;;  %v4053_v34 = vmul.f32 %v14249_v26, %v18980_v2  ;;  %v4712_v51 = vsel %vm4682_vm0, %v14761_v58, 0.0  ;;  %v18984_v47 = vld [vmem:[#allocation366_spill] sm:$0xff]  ;;  %v9272_v46 = vld [vmem:[%s17936_s0 + $0x348] sm:$0xff] }
 0x47d   :  { %v4595_v48 = vmul.f32 %v14263_v28, %v4446_v19  ;;  %2988 = vperm.xlu0 %10194, %v14758_v0   ;;  %v4831_v14 = vmul.f32 %v14761_v58, %v14761_v58  ;;  %v3600_v63 = vadd.f32 %v3536_v27, %v3082_v29  ;;  %v3537_v20 = vmul.f32 %v14213_v12, %v18982_v9 }
 0x47e   :  { %v4143_v22 = vadd.f32 %v4079_v21, %v3626_v30  ;;  %v14789_v33 = vadd.f32 %v4569_v16, %v4116_v42  ;;  %v4570_v39 = vmul.f32 %v14263_v28, %v18984_v47  ;;  %v4832_v23 = vmul.f32 %v14766_v60, %v14766_v60  ;;  %v18985_v16 = vld [vmem:[#allocation367_spill] sm:$0xff] }
 0x47f   :  { %v14785_v8 = vadd.f32 %v4595_v48, %v4142_v3  ;;  %v2914_v15 = vpop.permute.xlu0 %2913  ;;  %v3110_v38 = vadd.f32 %v3046_v13, %v14323_v24  ;;  %v4713_v30 = vadd.f32 %v4712_v51, %v4711_v59  ;;  %v3083_v29 = vadd.f32 %v3019_v53, %v14088_v31  ;;  %v14807_v24 = vld [vmem:[%s17936_s0 + $0x33a] sm:$0xff]  ;;  %v18986_v59 = vld [vmem:[#allocation361_spill] sm:$0xff] }
 0x480   :  { %18983 = vst [vmem:[#allocation164_spill] sm:$0xff] %v14789_v33  ;;  %v3427_v6 = vpop.permute.xlu1 %3426  ;;  %4525 = vperm.xlu1 %10195, %v14712_v11   ;;  %v4117_v27 = vadd.f32 %v4053_v34, %v3600_v63  ;;  %v4054_v19 = vmul.f32 %v14249_v26, %v18985_v16  ;;  %v4909_v13 = vsel %vm4682_vm0, %v4831_v14, 0.0  ;;  %v4714_v11 = vsel %vm4682_vm0, %v14766_v60, 0.0  ;;  %v18988_v42 = vld [vmem:[#allocation27_spill] sm:$0xff]  ;;  %v19063_v60 = vld [vmem:[#allocation114_spill] sm:$0xff] }
 0x481   :  { %18981 = vst [vmem:[#allocation163_spill] sm:$0xff] %v14785_v8  ;;  %v3564_v3 = vmul.f32 %v14213_v12, %v3427_v6  ;;  %4013 = vperm.xlu0 %10194, %v9335_v43   ;;  %v3020_v31 = vmul.f32 %v14174_v4, %v18986_v59  ;;  %v3601_v21 = vadd.f32 %v3537_v20, %v3083_v29  ;;  %v4911_v51 = vsel %vm4682_vm0, %v4832_v23, 0.0  ;;  %v18990_v23 = vld [vmem:[#allocation365_spill] sm:$0xff] }
 0x482   :  { %v4833_v10 = vmul.f32 %v14789_v33, %v14789_v33  ;;  %v14818_v53 = vadd.f32 %v4570_v39, %v4117_v27  ;;  %v4571_v2 = vmul.f32 %v14263_v28, %v18988_v42  ;;  %v3047_v14 = vmul.f32 %v14174_v4, %v2914_v15  ;;  %v18989_v39 = vld [vmem:[#allocation364_spill] sm:$0xff] }
 0x483   :  { %v14814_v48 = vadd.f32 %v3564_v3, %v3110_v38  ;;  %v3939_v43 = vpop.permute.xlu0 %3938  ;;  %v4910_v20 = vadd.f32 %v4909_v13, %v4908_v40  ;;  %v4715_v47 = vadd.f32 %v4714_v11, %v4713_v30  ;;  %v3538_v6 = vmul.f32 %v14213_v12, %v18989_v39  ;;  %v9336_v3 = vld [vmem:[%s17936_s0 + $0x339] sm:$0xff]  ;;  %v18993_v13 = vld [vmem:[#allocation28_spill] sm:$0xff] }
 0x484   :  { %18987 = vst [vmem:[#allocation69_spill] sm:$0xff] %v14818_v53  ;;  %v4451_v34 = vpop.permute.xlu1 %4450  ;;  %v4080_v9 = vmul.f32 %v14249_v26, %v3939_v43  ;;  %3506 = vperm.xlu1 %10195, %v9272_v46   ;;  %v4118_v38 = vadd.f32 %v4054_v19, %v3601_v21  ;;  %v4716_v15 = vsel %vm4682_vm0, %v14789_v33, 0.0  ;;  %v3021_v29 = vmul.f32 %v14174_v4, %v18990_v23  ;;  %v18995_v43 = vld [vmem:[#allocation39_spill] sm:$0xff] }
 0x485   :  { %v4596_v63 = vmul.f32 %v14263_v28, %v4451_v34  ;;  %2993 = vperm.xlu0 %10194, %v14807_v24   ;;  %v4912_v46 = vadd.f32 %v4911_v51, %v4910_v20  ;;  %v3084_v40 = vadd.f32 %v3020_v31, %v14103_v1  ;;  %v4055_v19 = vmul.f32 %v14249_v26, %v18993_v13  ;;  %v18994_v31 = vld [vmem:[#allocation18_spill] sm:$0xff] }
 0x486   :  { %v4144_v16 = vadd.f32 %v4080_v9, %v3627_v32  ;;  %v14839_v30 = vadd.f32 %v4571_v2, %v4118_v38  ;;  %v4913_v21 = vsel %vm4682_vm0, %v4833_v10, 0.0  ;;  %v4834_v42 = vmul.f32 %v14818_v53, %v14818_v53  ;;  %v9337_v10 = vld [vmem:[%s17936_s0 + $0x349] sm:$0xff] }
 0x487   :  { %v14836_v27 = vadd.f32 %v4596_v63, %v4143_v22  ;;  %v2919_v59 = vpop.permute.xlu0 %2918  ;;  %v3111_v34 = vadd.f32 %v3047_v14, %v14320_v45  ;;  %v4717_v1 = vadd.f32 %v4716_v15, %v4715_v47  ;;  %v3602_v32 = vadd.f32 %v3538_v6, %v3084_v40  ;;  %v9273_v45 = vld [vmem:[%s17936_s0 + $0x350] sm:$0xff]  ;;  %v18996_v63 = vld [vmem:[#allocation19_spill] sm:$0xff] }
 0x488   :  { %18992 = vst [vmem:[#allocation157_spill] sm:$0xff] %v14839_v30  ;;  %v3432_v11 = vpop.permute.xlu1 %3431  ;;  %4530 = vperm.xlu1 %10195, %v14758_v0   ;;  %v3539_v2 = vmul.f32 %v14213_v12, %v18994_v31  ;;  %v4572_v51 = vmul.f32 %v14263_v28, %v18995_v43  ;;  %v3085_v14 = vadd.f32 %v3021_v29, %v14094_v7  ;;  %v4718_v0 = vsel %vm4682_vm0, %v14818_v53, 0.0  ;;  %v18997_v38 = vld [vmem:[#allocation37_spill] sm:$0xff] }
 0x489   :  { %18991 = vst [vmem:[#allocation156_spill] sm:$0xff] %v14836_v27  ;;  %v3565_v22 = vmul.f32 %v14213_v12, %v3432_v11  ;;  %4018 = vperm.xlu0 %10194, %v9336_v3   ;;  %v3022_v9 = vmul.f32 %v14174_v4, %v18996_v63  ;;  %v4914_v47 = vadd.f32 %v4913_v21, %v4912_v46  ;;  %v4915_v7 = vsel %vm4682_vm0, %v4834_v42, 0.0  ;;  %v19000_v42 = vld [vmem:[#allocation128_spill] sm:$0xff] }
 0x48a   :  { %v4835_v39 = vmul.f32 %v14839_v30, %v14839_v30  ;;  %v4119_v6 = vadd.f32 %v4055_v19, %v3602_v32  ;;  %v3540_v3 = vmul.f32 %v14213_v12, %v18997_v38  ;;  %v3048_v29 = vmul.f32 %v14174_v4, %v2919_v59  ;;  %v18999_v19 = vld [vmem:[#allocation40_spill] sm:$0xff]  ;;  %v19001_v59 = vld [vmem:[#allocation38_spill] sm:$0xff] }
 0x48b   :  { %v14864_v20 = vadd.f32 %v3565_v22, %v3111_v34  ;;  %v3944_v23 = vpop.permute.xlu0 %3943  ;;  %v4719_v46 = vadd.f32 %v4718_v0, %v4717_v1  ;;  %v3603_v11 = vadd.f32 %v3539_v2, %v3085_v14  ;;  %v4056_v34 = vmul.f32 %v14249_v26, %v18999_v19  ;;  %v9338_v22 = vld [vmem:[%s17936_s0 + $0x351] sm:$0xff]  ;;  %v19003_v14 = vld [vmem:[#allocation44_spill] sm:$0xff] }
 0x48c   :  { %v4456_v15 = vpop.permute.xlu1 %4455  ;;  %v4081_v13 = vmul.f32 %v14249_v26, %v3944_v23  ;;  %4023 = vperm.xlu1 %10195, %v9337_v10   ;;  %v14874_v21 = vadd.f32 %v4572_v51, %v4119_v6  ;;  %v3086_v32 = vadd.f32 %v3022_v9, %v19000_v42  ;;  %v3023_v31 = vmul.f32 %v14174_v4, %v19001_v59  ;;  %v19002_v51 = vld [vmem:[#allocation43_spill] sm:$0xff] }
 0x48d   :  { %v4597_v40 = vmul.f32 %v14263_v28, %v4456_v15  ;;  %3511 = vperm.xlu0 %10194, %v9273_v45   ;;  %v4916_v1 = vadd.f32 %v4915_v7, %v4914_v47  ;;  %v4720_v2 = vsel %vm4682_vm0, %v14839_v30, 0.0  ;;  %v4573_v45 = vmul.f32 %v14263_v28, %v19002_v51  ;;  %v19004_v15 = vld [vmem:[#allocation41_spill] sm:$0xff]  ;;  %v19005_v7 = vld [vmem:[#allocation52_spill] sm:$0xff] }
 0x48e   :  { %18998 = vst [vmem:[#allocation165_spill] sm:$0xff] %v14874_v21  ;;  %v4145_v10 = vadd.f32 %v4081_v13, %v14814_v48  ;;  %v4057_v0 = vmul.f32 %v14249_v26, %v19003_v14  ;;  %v4917_v9 = vsel %vm4682_vm0, %v4835_v39, 0.0  ;;  %v3604_v38 = vadd.f32 %v3540_v3, %v3086_v32  ;;  %v9403_v39 = vld [vmem:[%s17936_s0 + $0x352] sm:$0xff]  ;;  %v14913_v13 = vld [vmem:[%s17937_s1 + $0x5] ss:$0 sm:$0xff]  ;;  %v19009_v32 = vld [vmem:[#allocation53_spill] sm:$0xff] }
 0x48f   :  { %v14884_v43 = vadd.f32 %v4597_v40, %v4144_v16  ;;  %v2924_v6 = vpop.permute.xlu0 %2923  ;;  %v3112_v4 = vadd.f32 %v3048_v29, %v14393_v57  ;;  %v4836_v48 = vmul.f32 %v14874_v21, %v14874_v21  ;;  %v4120_v47 = vadd.f32 %v4056_v34, %v3603_v11  ;;  %v9402_v57 = vld [vmem:[%s17936_s0 + $0x34a] sm:$0xff] }
 0x490   :  { %v3437_v63 = vpop.permute.xlu1 %3436  ;;  %4028 = vperm.xlu1 %10195, %v9338_v22   ;;  %v3541_v23 = vmul.f32 %v14213_v12, %v19004_v15  ;;  %v4574_v40 = vmul.f32 %v14263_v28, %v19005_v7  ;;  %v4721_v3 = vadd.f32 %v4720_v2, %v4719_v46  ;;  %v4918_v34 = vadd.f32 %v4917_v9, %v4916_v1 }
 0x491   :  { %v3566_v16 = vmul.f32 %v14213_v12, %v3437_v63  ;;  %4535 = vperm.xlu0 %10194, %v14807_v24   ;;  %v19006_v24 = vld [vmem:[#allocation127_spill] sm:$0xff]  ;;  %v19007_v12 = vld [vmem:[#allocation42_spill] sm:$0xff]  ;;  %v14917_v22 = vadd.f32 %v4573_v45, %v4120_v47  ;;  %v4121_v42 = vadd.f32 %v4057_v0, %v3604_v38  ;;  %v4058_v59 = vmul.f32 %v14249_v26, %v19009_v32  ;;  %v14928_v63 = vld [vmem:[%s17937_s1 + $0x7] ss:$0 sm:$0xff] }
 0x492   :  { %v3087_v29 = vadd.f32 %v3023_v31, %v19006_v24  ;;  %v3024_v11 = vmul.f32 %v14913_v13, %v19007_v12  ;;  %v4722_v31 = vsel %vm4682_vm0, %v14874_v21, 0.0  ;;  %v3049_v2 = vmul.f32 %v14913_v13, %v2924_v6  ;;  %v14935_v0 = vld [vmem:[%s17937_s1 + $0x6] ss:$0 sm:$0xff]  ;;  %v19010_v6 = vld [vmem:[#allocation45_spill] sm:$0xff]  ;;  %v19012_v38 = vld [vmem:[#allocation130_spill] sm:$0xff] }
 0x493   :  { %v3630_v19 = vadd.f32 %v3566_v16, %v3112_v4  ;;  %19008 = vst [vmem:[#allocation75_spill] sm:$0xff] %v14917_v22  ;;  %v3949_v46 = vpop.permute.xlu0 %3948  ;;  %v4919_v26 = vsel %vm4682_vm0, %v4836_v48, 0.0  ;;  %v14939_v9 = vadd.f32 %v4574_v40, %v4121_v42  ;;  %v14945_v16 = vld [vmem:[%s17937_s1 + $0x8] ss:$0 sm:$0xff]  ;;  %v19013_v47 = vld [vmem:[#allocation70_spill] sm:$0xff]  ;;  %v4724_v7 = vsel %vm4682_vm0, %v14917_v22, 0.0 }
 0x494   :  { %v4461_v51 = vpop.permute.xlu1 %4460  ;;  %v4082_v1 = vmul.f32 %v14928_v63, %v3949_v46  ;;  %4545 = vperm.xlu1 %10195, %v9403_v39   ;;  %v3605_v45 = vadd.f32 %v3541_v23, %v3087_v29  ;;  %v3088_v4 = vadd.f32 %v3024_v11, %v19012_v38  ;;  %v4575_v48 = vmul.f32 %v14945_v16, %v19013_v47  ;;  %v19014_v39 = vld [vmem:[#allocation46_spill] sm:$0xff]  ;;  %v19015_v24 = vld [vmem:[#allocation71_spill] sm:$0xff]  ;;  %v19039_v21 = vld [vmem:[#allocation21_spill] sm:$0xff] }
 0x495   :  { %v4598_v14 = vmul.f32 %v14263_v28, %v4461_v51  ;;  %4540 = vperm.xlu0 %10194, %v9402_v57   ;;  %v3542_v28 = vmul.f32 %v14935_v0, %v19010_v6  ;;  %19011 = vst [vmem:[#allocation166_spill] sm:$0xff] %v14939_v9  ;;  %v4837_v40 = vmul.f32 %v14917_v22, %v14917_v22  ;;  %v19017_v6 = vld [vmem:[#allocation78_spill] sm:$0xff] }
 0x496   :  { %v4146_v23 = vadd.f32 %v4082_v1, %v14864_v20  ;;  %v3025_v57 = vmul.f32 %v14913_v13, %v19014_v39  ;;  %v4059_v29 = vmul.f32 %v14928_v63, %v19015_v24  ;;  %v4723_v42 = vadd.f32 %v4722_v31, %v4721_v3 }
 0x497   :  { %v14949_v15 = vadd.f32 %v4598_v14, %v4145_v10  ;;  %v2929_v11 = vpop.permute.xlu0 %2928  ;;  %v4122_v32 = vadd.f32 %v4058_v59, %v3605_v45  ;;  %v3113_v10 = vadd.f32 %v3049_v2, %v14378_v41  ;;  %v3606_v51 = vadd.f32 %v3542_v28, %v3088_v4  ;;  %v19016_v14 = vld [vmem:[#allocation58_spill] sm:$0xff]  ;;  %v19019_v41 = vld [vmem:[#allocation129_spill] sm:$0xff] }
 0x498   :  { %v3442_v12 = vpop.permute.xlu1 %3441  ;;  %v4838_v46 = vmul.f32 %v14939_v9, %v14939_v9  ;;  %v3543_v1 = vmul.f32 %v14935_v0, %v19016_v14  ;;  %v4576_v38 = vmul.f32 %v14945_v16, %v19017_v6  ;;  %v4920_v47 = vadd.f32 %v4919_v26, %v4918_v34 }
 0x499   :  { %v3567_v20 = vmul.f32 %v14935_v0, %v3442_v12  ;;  %v4725_v39 = vadd.f32 %v4724_v7, %v4723_v42  ;;  %v14968_v24 = vadd.f32 %v4575_v48, %v4122_v32  ;;  %v4921_v59 = vsel %vm4682_vm0, %v4837_v40, 0.0  ;;  %v19020_v12 = vld [vmem:[#allocation8_spill] sm:$0xff]  ;;  %v19021_v40 = vld [vmem:[#allocation59_spill] sm:$0xff] }
 0x49a   :  { %v3089_v31 = vadd.f32 %v3025_v57, %v19019_v41  ;;  %v4726_v2 = vsel %vm4682_vm0, %v14939_v9, 0.0  ;;  %v4123_v45 = vadd.f32 %v4059_v29, %v3606_v51  ;;  %v4060_v14 = vmul.f32 %v14928_v63, %v19020_v12  ;;  %v19023_v32 = vld [vmem:[#allocation80_spill] sm:$0xff] }
 0x49b   :  { %19018 = vst [vmem:[#allocation167_spill] sm:$0xff] %v14968_v24  ;;  %v3631_v3 = vadd.f32 %v3567_v20, %v3113_v10  ;;  %v3954_v4 = vpop.permute.xlu0 %3953  ;;  %v3050_v6 = vmul.f32 %v14913_v13, %v2929_v11  ;;  %v4923_v48 = vsel %vm4682_vm0, %v4838_v46, 0.0  ;;  %v3026_v57 = vmul.f32 %v14913_v13, %v19021_v40  ;;  %v19024_v46 = vld [vmem:[#allocation76_spill] sm:$0xff] }
 0x49c   :  { %v4466_v28 = vpop.permute.xlu1 %4465  ;;  %v4083_v26 = vmul.f32 %v14928_v63, %v3954_v4  ;;  %v3607_v7 = vadd.f32 %v3543_v1, %v3089_v31  ;;  %v14982_v42 = vadd.f32 %v4576_v38, %v4123_v45  ;;  %v4839_v29 = vmul.f32 %v14968_v24, %v14968_v24  ;;  %v19025_v31 = vld [vmem:[#allocation77_spill] sm:$0xff] }
 0x49d   :  { %v4599_v34 = vmul.f32 %v14945_v16, %v4466_v28  ;;  %v4577_v10 = vmul.f32 %v14945_v16, %v19023_v32  ;;  %v4922_v51 = vadd.f32 %v4921_v59, %v4920_v47  ;;  %v4728_v41 = vsel %vm4682_vm0, %v14968_v24, 0.0 }
 0x49e   :  { %19022 = vst [vmem:[#allocation168_spill] sm:$0xff] %v14982_v42  ;;  %v4147_v11 = vadd.f32 %v4083_v26, %v3630_v19  ;;  %v3544_v1 = vmul.f32 %v14935_v0, %v19024_v46  ;;  %v3027_v38 = vmul.f32 %v14913_v13, %v19025_v31  ;;  %v4727_v4 = vadd.f32 %v4726_v2, %v4725_v39  ;;  %v19026_v19 = vld [vmem:[#allocation132_spill] sm:$0xff] }
 0x49f   :  { %v14988_v20 = vadd.f32 %v4599_v34, %v4146_v23  ;;  %v2934_v28 = vpop.permute.xlu0 %2933  ;;  %v4124_v12 = vadd.f32 %v4060_v14, %v3607_v7  ;;  %v3114_v40 = vadd.f32 %v3050_v6, %v14493_v17  ;;  %v4924_v34 = vadd.f32 %v4923_v48, %v4922_v51  ;;  %v19027_v26 = vld [vmem:[#allocation12_spill] sm:$0xff]  ;;  %v19029_v14 = vld [vmem:[#allocation131_spill] sm:$0xff] }
 0x4a0   :  { %v3447_v45 = vpop.permute.xlu1 %3446  ;;  %v3090_v47 = vadd.f32 %v3026_v57, %v19026_v19  ;;  %v4840_v59 = vmul.f32 %v14982_v42, %v14982_v42  ;;  %v4061_v32 = vmul.f32 %v14928_v63, %v19027_v26  ;;  %v4729_v46 = vadd.f32 %v4728_v41, %v4727_v4  ;;  %v19030_v48 = vld [vmem:[#allocation87_spill] sm:$0xff] }
 0x4a1   :  { %v3568_v23 = vmul.f32 %v14935_v0, %v3447_v45  ;;  %v4925_v31 = vsel %vm4682_vm0, %v4839_v29, 0.0  ;;  %v15004_v22 = vadd.f32 %v4577_v10, %v4124_v12  ;;  %v3091_v17 = vadd.f32 %v3027_v38, %v19029_v14  ;;  %v19031_v45 = vld [vmem:[#allocation10_spill] sm:$0xff]  ;;  %v19032_v4 = vld [vmem:[#allocation11_spill] sm:$0xff] }
 0x4a2   :  { %v3608_v2 = vadd.f32 %v3544_v1, %v3090_v47  ;;  %v4730_v6 = vsel %vm4682_vm0, %v14982_v42, 0.0  ;;  %v4578_v7 = vmul.f32 %v14945_v16, %v19030_v48  ;;  %v3545_v19 = vmul.f32 %v14935_v0, %v19031_v45  ;;  %v19033_v47 = vld [vmem:[#allocation13_spill] sm:$0xff]  ;;  %v19036_v45 = vld [vmem:[#allocation32_spill] sm:$0xff]  ;;  %v19105_v42 = vld [vmem:[#allocation95_spill] sm:$0xff] }
 0x4a3   :  { %19028 = vst [vmem:[#allocation169_spill] sm:$0xff] %v15004_v22  ;;  %v3632_v39 = vadd.f32 %v3568_v23, %v3114_v40  ;;  %v3959_v51 = vpop.permute.xlu0 %3958  ;;  %v3051_v41 = vmul.f32 %v14913_v13, %v2934_v28  ;;  %v4926_v1 = vadd.f32 %v4925_v31, %v4924_v34  ;;  %v4927_v38 = vsel %vm4682_vm0, %v4840_v59, 0.0  ;;  %v19034_v34 = vld [vmem:[#allocation81_spill] sm:$0xff] }
 0x4a4   :  { %v4471_v57 = vpop.permute.xlu1 %4470  ;;  %v4084_v10 = vmul.f32 %v14928_v63, %v3959_v51  ;;  %v3028_v12 = vmul.f32 %v14913_v13, %v19032_v4  ;;  %v4125_v40 = vadd.f32 %v4061_v32, %v3608_v2  ;;  %v4841_v23 = vmul.f32 %v15004_v22, %v15004_v22 }
 0x4a5   :  { %v4600_v29 = vmul.f32 %v14945_v16, %v4471_v57  ;;  %v4062_v26 = vmul.f32 %v14928_v63, %v19033_v47  ;;  %v4731_v48 = vadd.f32 %v4730_v6, %v4729_v46  ;;  %v4732_v57 = vsel %vm4682_vm0, %v15004_v22, 0.0  ;;  %v19037_v46 = vld [vmem:[#allocation136_spill] sm:$0xff]  ;;  %v19104_v22 = vld [vmem:[#allocation73_spill] sm:$0xff] }
 0x4a6   :  { %v4148_v28 = vadd.f32 %v4084_v10, %v3631_v3  ;;  %v3546_v59 = vmul.f32 %v14935_v0, %v19034_v34  ;;  %v15029_v31 = vadd.f32 %v4578_v7, %v4125_v40  ;;  %v3609_v2 = vadd.f32 %v3545_v19, %v3091_v17 }
 0x4a7   :  { %v15023_v14 = vadd.f32 %v4600_v29, %v4147_v11  ;;  %v2939_v32 = vpop.permute.xlu0 %2938  ;;  %v4579_v4 = vmul.f32 %v14945_v16, %v19036_v45  ;;  %v3115_v47 = vadd.f32 %v3051_v41, %v14468_v25  ;;  %v4928_v3 = vadd.f32 %v4927_v38, %v4926_v1  ;;  %v19038_v29 = vld [vmem:[#allocation82_spill] sm:$0xff]  ;;  %v19040_v41 = vld [vmem:[#allocation91_spill] sm:$0xff] }
 0x4a8   :  { %19035 = vst [vmem:[#allocation170_spill] sm:$0xff] %v15029_v31  ;;  %v3452_v51 = vpop.permute.xlu1 %3451  ;;  %v3092_v6 = vadd.f32 %v3028_v12, %v19037_v46  ;;  %v3029_v10 = vmul.f32 %v14913_v13, %v19038_v29  ;;  %v4063_v7 = vmul.f32 %v14928_v63, %v19039_v21  ;;  %v4733_v40 = vadd.f32 %v4732_v57, %v4731_v48  ;;  %v19041_v38 = vld [vmem:[#allocation98_spill] sm:$0xff]  ;;  %v19043_v57 = vld [vmem:[#allocation133_spill] sm:$0xff]  ;;  %v19045_v29 = vld [vmem:[#allocation92_spill] sm:$0xff] }
 0x4a9   :  { %v3569_v11 = vmul.f32 %v14935_v0, %v3452_v51  ;;  %v4929_v34 = vsel %vm4682_vm0, %v4841_v23, 0.0  ;;  %v4126_v17 = vadd.f32 %v4062_v26, %v3609_v2  ;;  %v4842_v25 = vmul.f32 %v15029_v31, %v15029_v31 }
 0x4aa   :  { %v3610_v30 = vadd.f32 %v3546_v59, %v3092_v6  ;;  %v3547_v1 = vmul.f32 %v14935_v0, %v19040_v41  ;;  %v4580_v12 = vmul.f32 %v14945_v16, %v19041_v38  ;;  %v3052_v21 = vmul.f32 %v14913_v13, %v2939_v32 }
 0x4ab   :  { %v3633_v19 = vadd.f32 %v3569_v11, %v3115_v47  ;;  %v3964_v45 = vpop.permute.xlu0 %3963  ;;  %v15047_v46 = vadd.f32 %v4579_v4, %v4126_v17  ;;  %v4930_v48 = vadd.f32 %v4929_v34, %v4928_v3  ;;  %v3093_v59 = vadd.f32 %v3029_v10, %v19043_v57  ;;  %v19044_v47 = vld [vmem:[#allocation99_spill] sm:$0xff]  ;;  %v19047_v3 = vld [vmem:[#allocation26_spill] sm:$0xff] }
 0x4ac   :  { %v4476_v51 = vpop.permute.xlu1 %4475  ;;  %v4085_v26 = vmul.f32 %v14928_v63, %v3964_v45  ;;  %v4127_v2 = vadd.f32 %v4063_v7, %v3610_v30  ;;  %v4064_v11 = vmul.f32 %v14928_v63, %v19044_v47  ;;  %v4734_v6 = vsel %vm4682_vm0, %v15029_v31, 0.0 }
 0x4ad   :  { %19042 = vst [vmem:[#allocation171_spill] sm:$0xff] %v15047_v46  ;;  %v4601_v23 = vmul.f32 %v14945_v16, %v4476_v51  ;;  %v3030_v4 = vmul.f32 %v14913_v13, %v19045_v29  ;;  %v4931_v41 = vsel %vm4682_vm0, %v4842_v25, 0.0  ;;  %v3611_v38 = vadd.f32 %v3547_v1, %v3093_v59  ;;  %v19048_v25 = vld [vmem:[#allocation96_spill] sm:$0xff]  ;;  %v19051_v29 = vld [vmem:[#allocation138_spill] sm:$0xff] }
 0x4ae   :  { %v4149_v32 = vadd.f32 %v4085_v26, %v3632_v39  ;;  %v15062_v51 = vadd.f32 %v4580_v12, %v4127_v2  ;;  %v4581_v30 = vmul.f32 %v14945_v16, %v19047_v3  ;;  %v4736_v34 = vsel %vm4682_vm0, %v15047_v46, 0.0  ;;  %v19049_v12 = vld [vmem:[#allocation97_spill] sm:$0xff]  ;;  %v19050_v59 = vld [vmem:[#allocation116_spill] sm:$0xff] }
 0x4af   :  { %v15059_v17 = vadd.f32 %v4601_v23, %v4148_v28  ;;  %v2944_v7 = vpop.permute.xlu0 %2943  ;;  %v4843_v45 = vmul.f32 %v15047_v46, %v15047_v46  ;;  %v3116_v28 = vadd.f32 %v3052_v21, %v14700_v5  ;;  %v4735_v23 = vadd.f32 %v4734_v6, %v4733_v40  ;;  %v19053_v21 = vld [vmem:[#allocation103_spill] sm:$0xff] }
 0x4b0   :  { %19046 = vst [vmem:[#allocation172_spill] sm:$0xff] %v15062_v51  ;;  %v3457_v10 = vpop.permute.xlu1 %3456  ;;  %v3548_v1 = vmul.f32 %v14935_v0, %v19048_v25  ;;  %v3031_v26 = vmul.f32 %v14913_v13, %v19049_v12  ;;  %v4128_v57 = vadd.f32 %v4064_v11, %v3611_v38  ;;  %v2600_v2 = vadd.f32 %v14497_v56, %v19050_v59  ;;  %v19054_v38 = vld [vmem:[#allocation137_spill] sm:$0xff] }
 0x4b1   :  { %v3570_v39 = vmul.f32 %v14935_v0, %v3457_v10  ;;  %v4932_v47 = vadd.f32 %v4931_v41, %v4930_v48  ;;  %v3094_v3 = vadd.f32 %v3030_v4, %v19051_v29  ;;  %v4737_v33 = vadd.f32 %v4736_v34, %v4735_v23 }
 0x4b2   :  { %v4844_v5 = vmul.f32 %v15062_v51, %v15062_v51  ;;  %v15083_v40 = vadd.f32 %v4581_v30, %v4128_v57  ;;  %v4065_v6 = vmul.f32 %v14928_v63, %v19053_v21  ;;  %v4933_v11 = vsel %vm4682_vm0, %v4843_v45, 0.0  ;;  %v19057_v57 = vld [vmem:[#allocation102_spill] sm:$0xff] }
 0x4b3   :  { %v15079_v53 = vadd.f32 %v3570_v39, %v3116_v28  ;;  %v3053_v56 = vmul.f32 %v14913_v13, %v2944_v7  ;;  %v3612_v41 = vadd.f32 %v3548_v1, %v3094_v3  ;;  %v3095_v34 = vadd.f32 %v3031_v26, %v19054_v38  ;;  %v19055_v28 = vld [vmem:[#allocation101_spill] sm:$0xff]  ;;  %v19056_v39 = vld [vmem:[#allocation36_spill] sm:$0xff] }
 0x4b4   :  { %19052 = vst [vmem:[#allocation173_spill] sm:$0xff] %v15083_v40  ;;  %v4481_v10 = vpop.permute.xlu1 %4480  ;;  %v3969_v25 = vpop.permute.xlu0 %3968  ;;  %v3549_v30 = vmul.f32 %v14935_v0, %v19055_v28  ;;  %v4582_v23 = vmul.f32 %v14945_v16, %v19056_v39  ;;  %v4738_v12 = vsel %vm4682_vm0, %v15062_v51, 0.0  ;;  %v3032_v45 = vmul.f32 %v14913_v13, %v19057_v57  ;;  %v19059_v28 = vld [vmem:[#allocation108_spill] sm:$0xff] }
 0x4b5   :  { %v4602_v48 = vmul.f32 %v14945_v16, %v4481_v10  ;;  %v4086_v4 = vmul.f32 %v14928_v63, %v3969_v25  ;;  %v4934_v29 = vadd.f32 %v4933_v11, %v4932_v47  ;;  %v4935_v1 = vsel %vm4682_vm0, %v4844_v5, 0.0  ;;  %v19058_v25 = vld [vmem:[#allocation104_spill] sm:$0xff] }
 0x4b6   :  { %v4845_v26 = vmul.f32 %v15083_v40, %v15083_v40  ;;  %v4129_v3 = vadd.f32 %v4065_v6, %v3612_v41  ;;  %v3550_v38 = vmul.f32 %v14935_v0, %v19058_v25  ;;  %v4066_v39 = vmul.f32 %v14928_v63, %v19059_v28  ;;  %v19061_v6 = vld [vmem:[#allocation139_spill] sm:$0xff]  ;;  %v19062_v41 = vld [vmem:[#allocation105_spill] sm:$0xff] }
 0x4b7   :  { %v15100_v7 = vadd.f32 %v4602_v48, %v4149_v32  ;;  %v15102_v59 = vadd.f32 %v4086_v4, %v3633_v19  ;;  %v3117_v32 = vadd.f32 %v3053_v56, %v2600_v2  ;;  %v4739_v48 = vadd.f32 %v4738_v12, %v4737_v33  ;;  %v19064_v33 = vld [vmem:[#allocation117_spill] sm:$0xff] }
 0x4b8   :  { %v3462_v21 = vpop.permute.xlu1 %3461  ;;  %v15107_v10 = vpop.permute.xlu0 %2948  ;;  %v3613_v47 = vadd.f32 %v3549_v30, %v3095_v34  ;;  %v4740_v5 = vsel %vm4682_vm0, %v15083_v40, 0.0  ;;  %v15116_v11 = vadd.f32 %v4582_v23, %v4129_v3  ;;  %v3096_v4 = vadd.f32 %v3032_v45, %v19061_v6  ;;  %v19065_v30 = vld [vmem:[#allocation118_spill] sm:$0xff]  ;;  %v19066_v6 = vld [vmem:[#allocation113_spill] sm:$0xff] }
 0x4b9   :  { %v3571_v19 = vmul.f32 %v14935_v0, %v3462_v21  ;;  %v3033_v57 = vmul.f32 %v14913_v13, %v19062_v41  ;;  %v3034_v25 = vmul.f32 %v14913_v13, %v19063_v60  ;;  %v4936_v2 = vadd.f32 %v4935_v1, %v4934_v29 }
 0x4ba   :  { %19060 = vst [vmem:[#allocation174_spill] sm:$0xff] %v15116_v11  ;;  %v4937_v56 = vsel %vm4682_vm0, %v4845_v26, 0.0  ;;  %v4583_v34 = vmul.f32 %v14945_v16, %v19064_v33  ;;  %v4067_v23 = vmul.f32 %v14928_v63, %v19065_v30  ;;  %v4741_v3 = vadd.f32 %v4740_v5, %v4739_v48  ;;  %v19067_v26 = vld [vmem:[#allocation120_spill] sm:$0xff]  ;;  %v19069_v30 = vld [vmem:[#allocation47_spill] sm:$0xff] }
 0x4bb   :  { %v15123_v58 = vadd.f32 %v3571_v19, %v3117_v32  ;;  %v3614_v21 = vadd.f32 %v3550_v38, %v3096_v4  ;;  %v4130_v28 = vadd.f32 %v4066_v39, %v3613_v47  ;;  %v3551_v60 = vmul.f32 %v14935_v0, %v19066_v6  ;;  %v19068_v19 = vld [vmem:[#allocation122_spill] sm:$0xff]  ;;  %v19070_v38 = vld [vmem:[#allocation49_spill] sm:$0xff]  ;;  %v19071_v47 = vld [vmem:[#allocation123_spill] sm:$0xff] }
 0x4bc   :  { %v15130_v12 = vpop.permute.xlu1 %4485  ;;  %v15132_v45 = vpop.permute.xlu0 %3973  ;;  %v4742_v29 = vsel %vm4682_vm0, %v15116_v11, 0.0  ;;  %v4846_v1 = vmul.f32 %v15116_v11, %v15116_v11  ;;  %v3552_v32 = vmul.f32 %v14935_v0, %v19067_v26  ;;  %v4584_v41 = vmul.f32 %v14945_v16, %v19068_v19 }
 0x4bd   :  { %v4938_v33 = vadd.f32 %v4937_v56, %v4936_v2  ;;  %v3097_v48 = vadd.f32 %v3033_v57, %v19069_v30  ;;  %v3098_v39 = vadd.f32 %v3034_v25, %v19070_v38  ;;  %v4068_v5 = vmul.f32 %v14928_v63, %v19071_v47  ;;  %v19075_v56 = vld [vmem:[#allocation134_spill] sm:$0xff]  ;;  %v19076_v30 = vld [vmem:[#allocation135_spill] sm:$0xff]  ;;  %v19079_v47 = vld [vmem:[#allocation140_spill] sm:$0xff] }
 0x4be   :  { %v15148_v4 = vadd.f32 %v4583_v34, %v4130_v28  ;;  %v4131_v6 = vadd.f32 %v4067_v23, %v3614_v21  ;;  %v3035_v52 = vmul.f32 %v14913_v13, %v19073_v18  ;;  %v3036_v26 = vmul.f32 %v14913_v13, %v19074_v36  ;;  %v19078_v18 = vld [vmem:[#allocation125_spill] sm:$0xff] }
 0x4bf   :  { %v4743_v2 = vadd.f32 %v4742_v29, %v4741_v3  ;;  %v3615_v57 = vadd.f32 %v3551_v60, %v3097_v48  ;;  %v4585_v25 = vmul.f32 %v14945_v16, %v19075_v56  ;;  %v4069_v34 = vmul.f32 %v14928_v63, %v19076_v30  ;;  %v19080_v3 = vld [vmem:[#allocation50_spill] sm:$0xff]  ;;  %v19081_v29 = vld [vmem:[#allocation144_spill] sm:$0xff] }
 0x4c0   :  { %19072 = vst [vmem:[#allocation175_spill] sm:$0xff] %v15148_v4  ;;  %v15154_v44 = vpop.permute.xlu1 %3466  ;;  %v15156_v19 = vpop.permute.xlu0 %2953  ;;  %v4939_v23 = vsel %vm4682_vm0, %v4846_v1, 0.0  ;;  %v3616_v21 = vadd.f32 %v3552_v32, %v3098_v39  ;;  %v15163_v28 = vadd.f32 %v4584_v41, %v4131_v6  ;;  %v3553_v36 = vmul.f32 %v14935_v0, %v19078_v18  ;;  %v19082_v1 = vld [vmem:[#allocation48_spill] sm:$0xff]  ;;  %v19083_v41 = vld [vmem:[#allocation142_spill] sm:$0xff]  ;;  %v19084_v6 = vld [vmem:[#allocation145_spill] sm:$0xff] }
 0x4c1   :  { %v4132_v38 = vadd.f32 %v4068_v5, %v3615_v57  ;;  %v3554_v35 = vmul.f32 %v14935_v0, %v19079_v47  ;;  %v3037_v60 = vmul.f32 %v14913_v13, %v19080_v3  ;;  %v4586_v48 = vmul.f32 %v14945_v16, %v19081_v29  ;;  %v19086_v29 = vld [vmem:[#allocation146_spill] sm:$0xff] }
 0x4c2   :  { %19077 = vst [vmem:[#allocation176_spill] sm:$0xff] %v15163_v28  ;;  %v4847_v56 = vmul.f32 %v15148_v4, %v15148_v4  ;;  %v3099_v32 = vadd.f32 %v3035_v52, %v19082_v1  ;;  %v3100_v39 = vadd.f32 %v3036_v26, %v19083_v41  ;;  %v4070_v30 = vmul.f32 %v14928_v63, %v19084_v6  ;;  %v19087_v1 = vld [vmem:[#allocation148_spill] sm:$0xff]  ;;  %v19088_v6 = vld [vmem:[#allocation149_spill] sm:$0xff] }
 0x4c3   :  { %v15183_v18 = vadd.f32 %v4585_v25, %v4132_v38  ;;  %v4133_v47 = vadd.f32 %v4069_v34, %v3616_v21  ;;  %v3555_v3 = vmul.f32 %v14935_v0, %v14297_v62  ;;  %v3038_v55 = vmul.f32 %v14913_v13, %v19086_v29  ;;  %v19089_v21 = vld [vmem:[#allocation141_spill] sm:$0xff]  ;;  %v19091_v29 = vld [vmem:[#allocation54_spill] sm:$0xff] }
 0x4c4   :  { %v15179_v5 = vpop.permute.xlu1 %4490  ;;  %v15181_v57 = vpop.permute.xlu0 %3978  ;;  %v4744_v52 = vsel %vm4682_vm0, %v15148_v4, 0.0  ;;  %v3617_v26 = vadd.f32 %v3553_v36, %v3099_v32  ;;  %v4587_v41 = vmul.f32 %v14945_v16, %v19087_v1  ;;  %v4071_v50 = vmul.f32 %v14928_v63, %v19088_v6  ;;  %v19092_v4 = vld [vmem:[#allocation55_spill] sm:$0xff]  ;;  %v19093_v32 = vld [vmem:[#allocation56_spill] sm:$0xff] }
 0x4c5   :  { %19085 = vst [vmem:[#allocation177_spill] sm:$0xff] %v15183_v18  ;;  %v4848_v25 = vmul.f32 %v15163_v28, %v15163_v28  ;;  %v3618_v34 = vadd.f32 %v3554_v35, %v3100_v39  ;;  %v3101_v38 = vadd.f32 %v3037_v60, %v19089_v21  ;;  %v15198_v62 = vadd.f32 %v4586_v48, %v4133_v47  ;;  %v19094_v39 = vld [vmem:[#allocation143_spill] sm:$0xff]  ;;  %v19096_v21 = vld [vmem:[#allocation60_spill] sm:$0xff] }
 0x4c6   :  { %v4134_v11 = vadd.f32 %v4070_v30, %v3617_v26  ;;  %v3556_v40 = vmul.f32 %v14935_v0, %v19091_v29  ;;  %v4588_v36 = vmul.f32 %v14945_v16, %v19092_v4  ;;  %v4072_v1 = vmul.f32 %v14928_v63, %v19093_v32  ;;  %v19097_v29 = vld [vmem:[#allocation61_spill] sm:$0xff] }
 0x4c7   :  { %19090 = vst [vmem:[#allocation178_spill] sm:$0xff] %v15198_v62  ;;  %v4941_v35 = vsel %vm4682_vm0, %v4847_v56, 0.0  ;;  %v4849_v60 = vmul.f32 %v15183_v18, %v15183_v18  ;;  %v3619_v48 = vadd.f32 %v3555_v3, %v3101_v38  ;;  %v3102_v30 = vadd.f32 %v3038_v55, %v19094_v39 }
 0x4c8   :  { %v15206_v51 = vpop.permute.xlu1 %3471  ;;  %v15208_v6 = vpop.permute.xlu0 %2958  ;;  %v15214_v47 = vadd.f32 %v4587_v41, %v4134_v11  ;;  %v4135_v26 = vadd.f32 %v4071_v50, %v3618_v34  ;;  %v4589_v4 = vmul.f32 %v14945_v16, %v19096_v21  ;;  %v4073_v32 = vmul.f32 %v14928_v63, %v19097_v29  ;;  %v19099_v50 = vld [vmem:[#allocation63_spill] sm:$0xff]  ;;  %v19102_v29 = vld [vmem:[#allocation72_spill] sm:$0xff] }
 0x4c9   :  { %v4940_v46 = vadd.f32 %v4939_v23, %v4938_v33  ;;  %v4746_v31 = vsel %vm4682_vm0, %v15163_v28, 0.0  ;;  %v4943_v56 = vsel %vm4682_vm0, %v4848_v25, 0.0  ;;  %v4850_v3 = vmul.f32 %v15198_v62, %v15198_v62  ;;  %v15236_v33 = vld [vmem:[%s17937_s1 + $0x3] ss:$0 sm:$0xff] }
 0x4ca   :  { %19095 = vst [vmem:[#allocation179_spill] sm:$0xff] %v15214_v47  ;;  %v3620_v38 = vadd.f32 %v3556_v40, %v3102_v30  ;;  %v15225_v55 = vadd.f32 %v4588_v36, %v4135_v26  ;;  %v4136_v11 = vadd.f32 %v4072_v1, %v3619_v48  ;;  %v4590_v41 = vmul.f32 %v14945_v16, %v19099_v50  ;;  %v19100_v23 = vld [vmem:[#allocation212_spill] sm:$0xff]  ;;  %v19103_v50 = vld [vmem:[#allocation33_spill] sm:$0xff] }
 0x4cb   :  { %v2021_v25 = vmul.f32 %v15236_v33, %v19100_v23  ;;  %v4745_v21 = vadd.f32 %v4744_v52, %v4743_v2  ;;  %v4942_v40 = vadd.f32 %v4941_v35, %v4940_v46  ;;  %v4748_v36 = vsel %vm4682_vm0, %v15183_v18, 0.0 }
 0x4cc   :  { %19098 = vst [vmem:[#allocation9_spill] sm:$0xff] %v15225_v55  ;;  %v15229_v34 = vpop.permute.xlu1 %4495  ;;  %v15231_v39 = vpop.permute.xlu0 %3983  ;;  %v4945_v1 = vsel %vm4682_vm0, %v4849_v60, 0.0  ;;  %v4851_v48 = vmul.f32 %v15214_v47, %v15214_v47  ;;  %v15245_v30 = vadd.f32 %v4589_v4, %v4136_v11  ;;  %v4137_v26 = vadd.f32 %v4073_v32, %v3620_v38  ;;  %v19109_v11 = vld [vmem:[#allocation74_spill] sm:$0xff] }
 0x4cd   :  { %v15249_v28 = vadd.f32 %v19103_v50, %v19102_v29  ;;  %v15253_v23 = vadd.f32 %v19105_v42, %v19104_v22  ;;  %v4747_v46 = vadd.f32 %v4746_v31, %v4745_v21  ;;  %v4944_v2 = vadd.f32 %v4943_v56, %v4942_v40  ;;  %v19110_v29 = vld [vmem:[#allocation25_spill] sm:$0xff]  ;;  %v19112_v40 = vld [vmem:[#allocation30_spill] sm:$0xff] }
 0x4ce   :  { %19101 = vst [vmem:[#allocation180_spill] sm:$0xff] %v15245_v30  ;;  %v4750_v52 = vsel %vm4682_vm0, %v15198_v62, 0.0  ;;  %v4947_v35 = vsel %vm4682_vm0, %v4850_v3, 0.0  ;;  %v4852_v60 = vmul.f32 %v15225_v55, %v15225_v55  ;;  %v15260_v4 = vadd.f32 %v4590_v41, %v4137_v26  ;;  %v19111_v42 = vld [vmem:[#allocation213_spill] sm:$0xff]  ;;  %v19113_v62 = vld [vmem:[#allocation214_spill] sm:$0xff] }
 0x4cf   :  { %v15268_v22 = vadd.f32 %v19110_v29, %v19109_v11  ;;  %v2020_v31 = vmul.f32 %v15236_v33, %v19111_v42  ;;  %v4749_v56 = vadd.f32 %v4748_v36, %v4747_v46  ;;  %v4946_v21 = vadd.f32 %v4945_v1, %v4944_v2  ;;  %v19114_v29 = vld [vmem:[#allocation215_spill] sm:$0xff]  ;;  %v19115_v1 = vld [vmem:[#allocation216_spill] sm:$0xff] }
 0x4d0   :  { %19106 = vst [vmem:[#allocation79_spill] sm:$0xff] %v15260_v4  ;;  %v15262_v32 = vpop.permute.xlu1 %3476  ;;  %v15264_v38 = vpop.permute.xlu0 %2963  ;;  %v15273_v3 = vadd.f32 %v2021_v25, %v19112_v40  ;;  %v4752_v41 = vsel %vm4682_vm0, %v15214_v47, 0.0  ;;  %v4949_v26 = vsel %vm4682_vm0, %v4851_v48, 0.0  ;;  %v4853_v50 = vmul.f32 %v15245_v30, %v15245_v30 }
 0x4d1   :  { %19107 = vst [vmem:[#allocation181_spill] sm:$0xff] %v15262_v32  ;;  %19108 = vst [vmem:[#allocation182_spill] sm:$0xff] %v15264_v38  ;;  %v2023_v11 = vmul.f32 %v15236_v33, %v19113_v62  ;;  %v2022_v18 = vmul.f32 %v15236_v33, %v19114_v29  ;;  %v4751_v42 = vadd.f32 %v4750_v52, %v4749_v56  ;;  %v4754_v46 = vsel %vm4682_vm0, %v15225_v55, 0.0  ;;  %v19117_v62 = vld [vmem:[#allocation20_spill] sm:$0xff]  ;;  %v19118_v29 = vld [vmem:[#allocation217_spill] sm:$0xff] }
 0x4d2   :  { %v4948_v36 = vadd.f32 %v4947_v35, %v4946_v21  ;;  %v2025_v25 = vmul.f32 %v15236_v33, %v19115_v1  ;;  %v4951_v2 = vsel %vm4682_vm0, %v4852_v60, 0.0  ;;  %v4854_v48 = vmul.f32 %v15260_v4, %v15260_v4  ;;  %v19119_v21 = vld [vmem:[#allocation218_spill] sm:$0xff]  ;;  %v19120_v38 = vld [vmem:[#allocation31_spill] sm:$0xff] }
 0x4d3   :  { %v2084_v24 = vadd.f32 %v2020_v31, %v19117_v62  ;;  %v2024_v52 = vmul.f32 %v15236_v33, %v19118_v29  ;;  %v4753_v35 = vadd.f32 %v4752_v41, %v4751_v42  ;;  %v2027_v1 = vmul.f32 %v15236_v33, %v19119_v21  ;;  %v19122_v41 = vld [vmem:[#allocation23_spill] sm:$0xff] }
 0x4d4   :  { %v15291_v40 = vpop.permute.xlu1 %4500  ;;  %v15293_v47 = vpop.permute.xlu0 %3988  ;;  %v4950_v56 = vadd.f32 %v4949_v26, %v4948_v36  ;;  %v4756_v60 = vsel %vm4682_vm0, %v15245_v30, 0.0  ;;  %v4953_v55 = vsel %vm4682_vm0, %v4853_v50, 0.0  ;;  %v4855_v9 = vmul.f32 %v14583_v37, %v14583_v37 }
 0x4d5   :  { %19116 = vst [vmem:[#allocation183_spill] sm:$0xff] %v15293_v47  ;;  %v2087_v32 = vadd.f32 %v2023_v11, %v19120_v38  ;;  %v19121_v47 = vld [vmem:[#allocation22_spill] sm:$0xff]  ;;  %v4755_v62 = vadd.f32 %v4754_v46, %v4753_v35  ;;  %v15310_v26 = vadd.f32 %v2025_v25, %v19122_v41  ;;  %v4758_v42 = vsel %vm4682_vm0, %v15260_v4, 0.0  ;;  %v19128_v4 = vld [vmem:[#allocation220_spill] sm:$0xff] }
 0x4d6   :  { %v15307_v31 = vadd.f32 %v2022_v18, %v19121_v47  ;;  %v4952_v29 = vadd.f32 %v4951_v2, %v4950_v56  ;;  %v4955_v36 = vsel %vm4682_vm0, %v4854_v48, 0.0  ;;  %v4856_v50 = vmul.f32 %v14636_v61, %v14636_v61  ;;  %v19125_v38 = vld [vmem:[#allocation94_spill] sm:$0xff]  ;;  %v19126_v47 = vld [vmem:[#allocation219_spill] sm:$0xff]  ;;  %v19127_v2 = vld [vmem:[#allocation24_spill] sm:$0xff] }
 0x4d7   :  { %v15322_v18 = vadd.f32 %v2024_v52, %v19125_v38  ;;  %v2026_v11 = vmul.f32 %v15236_v33, %v19126_v47  ;;  %v4757_v25 = vadd.f32 %v4756_v60, %v4755_v62  ;;  %v15327_v35 = vadd.f32 %v2027_v1, %v19127_v2  ;;  %v19129_v38 = vld [vmem:[#allocation221_spill] sm:$0xff]  ;;  %v19130_v1 = vld [vmem:[#allocation276_spill] sm:$0xff] }
 0x4d8   :  { %v15317_v21 = vpop.permute.xlu1 %3481  ;;  %v15319_v30 = vpop.permute.xlu0 %2968  ;;  %v4954_v46 = vadd.f32 %v4953_v55, %v4952_v29  ;;  %v4760_v48 = vsel %vm4682_vm0, %v14583_v37, 0.0  ;;  %v4957_v56 = vsel %vm4682_vm0, %v4855_v9, 0.0  ;;  %v4857_v41 = vmul.f32 %v14689_v54, %v14689_v54  ;;  %v15341_v55 = vld [vmem:[%s17937_s1 + $0x4] ss:$0 sm:$0xff] }
 0x4d9   :  { %19123 = vst [vmem:[#allocation184_spill] sm:$0xff] %v15317_v21  ;;  %19124 = vst [vmem:[#allocation185_spill] sm:$0xff] %v15319_v30  ;;  %v2029_v52 = vmul.f32 %v15236_v33, %v19128_v4  ;;  %v2028_v30 = vmul.f32 %v15236_v33, %v19129_v38  ;;  %v4759_v47 = vadd.f32 %v4758_v42, %v4757_v25  ;;  %v4762_v9 = vsel %vm4682_vm0, %v14636_v61, 0.0 }
 0x4da   :  { %v4956_v60 = vadd.f32 %v4955_v36, %v4954_v46  ;;  %v2538_v62 = vmul.f32 %v15341_v55, %v19130_v1  ;;  %v4959_v29 = vsel %vm4682_vm0, %v4856_v50, 0.0  ;;  %v4858_v4 = vmul.f32 %v14739_v49, %v14739_v49  ;;  %v19132_v36 = vld [vmem:[#allocation277_spill] sm:$0xff]  ;;  %v19133_v1 = vld [vmem:[#allocation278_spill] sm:$0xff] }
 0x4db   :  { %v2090_v42 = vadd.f32 %v2026_v11, %v15249_v28  ;;  %v2537_v25 = vmul.f32 %v15341_v55, %v19132_v36  ;;  %v4761_v46 = vadd.f32 %v4760_v48, %v4759_v47  ;;  %v2540_v37 = vmul.f32 %v15341_v55, %v19133_v1 }
 0x4dc   :  { %v15350_v2 = vpop.permute.xlu1 %4505  ;;  %v15352_v33 = vpop.permute.xlu0 %3993  ;;  %v4958_v38 = vadd.f32 %v4957_v56, %v4956_v60  ;;  %v4764_v50 = vsel %vm4682_vm0, %v14689_v54, 0.0  ;;  %v4961_v61 = vsel %vm4682_vm0, %v4857_v41, 0.0  ;;  %v4859_v21 = vmul.f32 %v14785_v8, %v14785_v8 }
 0x4dd   :  { %19131 = vst [vmem:[#allocation186_spill] sm:$0xff] %v15352_v33  ;;  %v15365_v33 = vadd.f32 %v2029_v52, %v15253_v23  ;;  %v15368_v28 = vadd.f32 %v2028_v30, %v15268_v22  ;;  %v4763_v11 = vadd.f32 %v4762_v9, %v4761_v46  ;;  %v15371_v56 = vadd.f32 %v2538_v62, %v15273_v3  ;;  %v19134_v30 = vld [vmem:[#allocation279_spill] sm:$0xff] }
 0x4de   :  { %v4960_v48 = vadd.f32 %v4959_v29, %v4958_v38  ;;  %v4766_v47 = vsel %vm4682_vm0, %v14739_v49, 0.0  ;;  %v4963_v60 = vsel %vm4682_vm0, %v4858_v4, 0.0  ;;  %v4860_v41 = vmul.f32 %v14836_v27, %v14836_v27  ;;  %v19135_v38 = vld [vmem:[#allocation280_spill] sm:$0xff] }
 0x4df   :  { %v15382_v52 = vadd.f32 %v2537_v25, %v2084_v24  ;;  %v2539_v22 = vmul.f32 %v15341_v55, %v19134_v30  ;;  %v4765_v9 = vadd.f32 %v4764_v50, %v4763_v11  ;;  %v15386_v62 = vadd.f32 %v2540_v37, %v2087_v32  ;;  %v19136_v24 = vld [vmem:[#allocation281_spill] sm:$0xff]  ;;  %v19137_v50 = vld [vmem:[#allocation282_spill] sm:$0xff] }
 0x4e0   :  { %v15378_v36 = vpop.permute.xlu1 %3486  ;;  %v15380_v23 = vpop.permute.xlu0 %2973  ;;  %v4962_v3 = vadd.f32 %v4961_v61, %v4960_v48  ;;  %v4768_v29 = vsel %vm4682_vm0, %v14785_v8, 0.0  ;;  %v4965_v4 = vsel %vm4682_vm0, %v4859_v21, 0.0  ;;  %v4861_v46 = vmul.f32 %v14884_v43, %v14884_v43 }
 0x4e1   :  { %v2542_v1 = vmul.f32 %v15341_v55, %v19135_v38  ;;  %v2541_v25 = vmul.f32 %v15341_v55, %v19136_v24  ;;  %v4767_v49 = vadd.f32 %v4766_v47, %v4765_v9  ;;  %v2544_v37 = vmul.f32 %v15341_v55, %v19137_v50  ;;  %v19138_v47 = vld [vmem:[#allocation283_spill] sm:$0xff] }
 0x4e2   :  { %v4964_v30 = vadd.f32 %v4963_v60, %v4962_v3  ;;  %v4770_v61 = vsel %vm4682_vm0, %v14836_v27, 0.0  ;;  %v4967_v32 = vsel %vm4682_vm0, %v4860_v41, 0.0  ;;  %v4862_v21 = vmul.f32 %v14949_v15, %v14949_v15 }
 0x4e3   :  { %v15409_v38 = vadd.f32 %v2539_v22, %v15307_v31  ;;  %v2543_v60 = vmul.f32 %v15341_v55, %v19138_v47  ;;  %v4769_v9 = vadd.f32 %v4768_v29, %v4767_v49  ;;  %v4772_v24 = vsel %vm4682_vm0, %v14884_v43, 0.0  ;;  %v19139_v47 = vld [vmem:[#allocation284_spill] sm:$0xff] }
 0x4e4   :  { %v15404_v11 = vpop.permute.xlu1 %4510  ;;  %v15406_v48 = vpop.permute.xlu0 %3998  ;;  %v4966_v3 = vadd.f32 %v4965_v4, %v4964_v30  ;;  %v4969_v41 = vsel %vm4682_vm0, %v4861_v46, 0.0  ;;  %v4863_v50 = vmul.f32 %v14988_v20, %v14988_v20  ;;  %v4603_v27 = vmul.f32 %v14945_v16, %v15130_v12 }
 0x4e5   :  { %v15421_v8 = vadd.f32 %v2542_v1, %v15310_v26  ;;  %v15424_v31 = vadd.f32 %v2541_v25, %v15322_v18  ;;  %v4771_v22 = vadd.f32 %v4770_v61, %v4769_v9  ;;  %v15427_v29 = vadd.f32 %v2544_v37, %v15327_v35 }
 0x4e6   :  { %v4968_v49 = vadd.f32 %v4967_v32, %v4966_v3  ;;  %v4774_v4 = vsel %vm4682_vm0, %v14949_v15, 0.0  ;;  %v4971_v46 = vsel %vm4682_vm0, %v4862_v21, 0.0  ;;  %v4864_v30 = vmul.f32 %v15023_v14, %v15023_v14 }
 0x4e7   :  { %v15438_v1 = vadd.f32 %v2543_v60, %v2090_v42  ;;  %v4773_v18 = vadd.f32 %v4772_v24, %v4771_v22  ;;  %v4776_v35 = vsel %vm4682_vm0, %v14988_v20, 0.0  ;;  %v4973_v37 = vsel %vm4682_vm0, %v4863_v50, 0.0 }
 0x4e8   :  { %v15434_v12 = vpop.permute.xlu1 %3491  ;;  %v15436_v26 = vpop.permute.xlu0 %2978  ;;  %v4970_v25 = vadd.f32 %v4969_v41, %v4968_v49  ;;  %v4865_v61 = vmul.f32 %v15059_v17, %v15059_v17  ;;  %v15446_v32 = vadd.f32 %v4603_v27, %v15102_v59  ;;  %v4087_v21 = vmul.f32 %v14928_v63, %v15132_v45 }
 0x4e9   :  { %v15452_v42 = vmul.f32 %v15341_v55, %v19139_v47  ;;  %v4775_v60 = vadd.f32 %v4774_v4, %v4773_v18  ;;  %v4778_v3 = vsel %vm4682_vm0, %v15023_v14, 0.0  ;;  %v4975_v24 = vsel %vm4682_vm0, %v4864_v30, 0.0 }
 0x4ea   :  { %v4972_v9 = vadd.f32 %v4971_v46, %v4970_v25  ;;  %v4866_v41 = vmul.f32 %v15100_v7, %v15100_v7  ;;  %v4604_v27 = vmul.f32 %v14945_v16, %v15179_v5  ;;  %v4088_v59 = vmul.f32 %v14928_v63, %v15181_v57 }
 0x4eb   :  { %v4777_v22 = vadd.f32 %v4776_v35, %v4775_v60  ;;  %v4780_v4 = vsel %vm4682_vm0, %v15059_v17, 0.0  ;;  %v3054_v46 = vmul.f32 %v14913_v13, %v15107_v10  ;;  %v4977_v30 = vsel %vm4682_vm0, %v4865_v61, 0.0 }
 0x4ec   :  { %v15463_v45 = vpop.permute.xlu1 %4515  ;;  %v15465_v50 = vpop.permute.xlu0 %4003  ;;  %v4974_v49 = vadd.f32 %v4973_v37, %v4972_v9  ;;  %v4867_v5 = vmul.f32 %v15446_v32, %v15446_v32  ;;  %v4151_v18 = vadd.f32 %v4087_v21, %v15079_v53  ;;  %v4605_v57 = vmul.f32 %v14945_v16, %v15229_v34 }
 0x4ed   :  { %v4779_v25 = vadd.f32 %v4778_v3, %v4777_v22  ;;  %v4782_v35 = vsel %vm4682_vm0, %v15100_v7, 0.0  ;;  %v3572_v37 = vmul.f32 %v14935_v0, %v15154_v44  ;;  %v4979_v10 = vsel %vm4682_vm0, %v4866_v41, 0.0 }
 0x4ee   :  { %v4976_v47 = vadd.f32 %v4975_v24, %v4974_v49  ;;  %v3055_v61 = vmul.f32 %v14913_v13, %v15156_v19  ;;  %v15484_v60 = vadd.f32 %v4604_v27, %v4151_v18  ;;  %v4152_v53 = vadd.f32 %v4088_v59, %v15123_v58 }
 0x4ef   :  { %v4781_v9 = vadd.f32 %v4780_v4, %v4779_v25  ;;  %v3118_v24 = vadd.f32 %v3054_v46, %v15382_v52  ;;  %v4784_v44 = vsel %vm4682_vm0, %v15446_v32, 0.0  ;;  %v4981_v41 = vsel %vm4682_vm0, %v4867_v5, 0.0 }
 0x4f0   :  { %v15487_v21 = vpop.permute.xlu1 %3496  ;;  %v15489_v34 = vpop.permute.xlu0 %2983  ;;  %v4978_v3 = vadd.f32 %v4977_v30, %v4976_v47  ;;  %v3573_v19 = vmul.f32 %v14935_v0, %v15206_v51  ;;  %v15497_v27 = vadd.f32 %v4605_v57, %v4152_v53  ;;  %v4089_v58 = vmul.f32 %v14928_v63, %v15231_v39  ;;  %v19140_v51 = vld [vmem:[#allocation183_spill] sm:$0xff]  ;;  %v19141_v47 = vld [vmem:[#allocation181_spill] sm:$0xff] }
 0x4f1   :  { %v4783_v59 = vadd.f32 %v4782_v35, %v4781_v9  ;;  %v3636_v49 = vadd.f32 %v3572_v37, %v3118_v24  ;;  %v3056_v4 = vmul.f32 %v14913_v13, %v15208_v6  ;;  %v3119_v52 = vadd.f32 %v3055_v61, %v15371_v56  ;;  %v19142_v37 = vld [vmem:[#allocation182_spill] sm:$0xff] }
 0x4f2   :  { %v4980_v22 = vadd.f32 %v4979_v10, %v4978_v3  ;;  %v4868_v46 = vmul.f32 %v15484_v60, %v15484_v60  ;;  %v4606_v30 = vmul.f32 %v14945_v16, %v15291_v40  ;;  %v4090_v5 = vmul.f32 %v14928_v63, %v19140_v51  ;;  %v19143_v3 = vld [vmem:[#allocation184_spill] sm:$0xff] }
 0x4f3   :  { %v4785_v39 = vadd.f32 %v4784_v44, %v4783_v59  ;;  %v3574_v35 = vmul.f32 %v14935_v0, %v19141_v47  ;;  %v3057_v6 = vmul.f32 %v14913_v13, %v19142_v37  ;;  %v3637_v56 = vadd.f32 %v3573_v19, %v3119_v52  ;;  %v19144_v44 = vld [vmem:[#allocation186_spill] sm:$0xff] }
 0x4f4   :  { %v4521_v18 = vpop.permute.xlu1 %4520  ;;  %v4009_v57 = vpop.permute.xlu0 %4008  ;;  %v4982_v25 = vadd.f32 %v4981_v41, %v4980_v22  ;;  %v4869_v10 = vmul.f32 %v15497_v27, %v15497_v27  ;;  %v4153_v61 = vadd.f32 %v4089_v58, %v3636_v49  ;;  %v4607_v40 = vmul.f32 %v14945_v16, %v15350_v2  ;;  %v19145_v58 = vld [vmem:[#allocation185_spill] sm:$0xff] }
 0x4f5   :  { %v4786_v53 = vsel %vm4682_vm0, %v15484_v60, 0.0  ;;  %v3120_v9 = vadd.f32 %v3056_v4, %v15409_v38  ;;  %v3575_v24 = vmul.f32 %v14935_v0, %v19143_v3  ;;  %v4091_v41 = vmul.f32 %v14928_v63, %v19144_v44 }
 0x4f6   :  { %v4983_v19 = vsel %vm4682_vm0, %v4868_v46, 0.0  ;;  %v15526_v59 = vadd.f32 %v4606_v30, %v4153_v61  ;;  %v4154_v22 = vadd.f32 %v4090_v5, %v3637_v56  ;;  %v3058_v49 = vmul.f32 %v14913_v13, %v19145_v58 }
 0x4f7   :  { %v3638_v51 = vadd.f32 %v3574_v35, %v3120_v9  ;;  %v3121_v38 = vadd.f32 %v3057_v6, %v15386_v62  ;;  %v4608_v4 = vmul.f32 %v14945_v16, %v15404_v11  ;;  %v4092_v47 = vmul.f32 %v14928_v63, %v15406_v48 }
 0x4f8   :  { %v15530_v2 = vpop.permute.xlu1 %3501  ;;  %v15532_v52 = vpop.permute.xlu0 %2988  ;;  %v4787_v46 = vadd.f32 %v4786_v53, %v4785_v39  ;;  %v4788_v30 = vsel %vm4682_vm0, %v15497_v27, 0.0  ;;  %v4985_v5 = vsel %vm4682_vm0, %v4869_v10, 0.0  ;;  %v15542_v37 = vadd.f32 %v4607_v40, %v4154_v22 }
 0x4f9   :  { %v3639_v56 = vadd.f32 %v3575_v24, %v3121_v38  ;;  %v4155_v61 = vadd.f32 %v4091_v41, %v3638_v51  ;;  %v3576_v35 = vmul.f32 %v14935_v0, %v15378_v36  ;;  %v4609_v62 = vmul.f32 %v14945_v16, %v15463_v45 }
 0x4fa   :  { %v4984_v11 = vadd.f32 %v4983_v19, %v4982_v25  ;;  %v4790_v48 = vsel %vm4682_vm0, %v15526_v59, 0.0  ;;  %v4870_v39 = vmul.f32 %v15526_v59, %v15526_v59  ;;  %v3122_v6 = vadd.f32 %v3058_v49, %v15424_v31 }
 0x4fb   :  { %v3059_v53 = vmul.f32 %v14913_v13, %v15380_v23  ;;  %v15555_v9 = vadd.f32 %v4608_v4, %v4155_v61  ;;  %v4156_v36 = vadd.f32 %v4092_v47, %v3639_v56  ;;  %v4093_v45 = vmul.f32 %v14928_v63, %v15465_v50  ;;  %v19146_v61 = vld [vmem:[#allocation285_spill] sm:$0xff] }
 0x4fc   :  { %v4526_v10 = vpop.permute.xlu1 %4525  ;;  %v4014_v40 = vpop.permute.xlu0 %4013  ;;  %v4789_v25 = vadd.f32 %v4788_v30, %v4787_v46  ;;  %v4986_v3 = vadd.f32 %v4985_v5, %v4984_v11  ;;  %v4871_v24 = vmul.f32 %v15542_v37, %v15542_v37  ;;  %v3060_v44 = vmul.f32 %v14913_v13, %v15436_v26 }
 0x4fd   :  { %v3640_v31 = vadd.f32 %v3576_v35, %v3122_v6  ;;  %v3577_v41 = vmul.f32 %v14935_v0, %v15434_v12  ;;  %v15565_v19 = vadd.f32 %v4609_v62, %v4156_v36  ;;  %v4610_v23 = vmul.f32 %v14945_v16, %v4521_v18 }
 0x4fe   :  { %v4791_v22 = vadd.f32 %v4790_v48, %v4789_v25  ;;  %v4987_v58 = vsel %vm4682_vm0, %v4870_v39, 0.0  ;;  %v4792_v50 = vsel %vm4682_vm0, %v15542_v37, 0.0  ;;  %v3578_v49 = vmul.f32 %v14935_v0, %v15487_v21 }
 0x4ff   :  { %v3123_v13 = vadd.f32 %v3059_v53, %v15421_v8  ;;  %v4872_v12 = vmul.f32 %v15555_v9, %v15555_v9  ;;  %v4157_v26 = vadd.f32 %v4093_v45, %v3640_v31  ;;  %v4094_v4 = vmul.f32 %v14928_v63, %v4009_v57 }
 0x500   :  { %v3507_v51 = vpop.permute.xlu1 %3506  ;;  %v2994_v38 = vpop.permute.xlu0 %2993  ;;  %v4989_v18 = vsel %vm4682_vm0, %v4871_v24, 0.0  ;;  %v4794_v47 = vsel %vm4682_vm0, %v15555_v9, 0.0  ;;  %v3124_v46 = vadd.f32 %v3060_v44, %v15438_v1  ;;  %v4095_v30 = vmul.f32 %v14928_v63, %v4014_v40  ;;  %v10306_v63 = vld [vmem:[%s17937_s1 + $0x5] ss:$0 sm:$0xff] }
 0x501   :  { %v3641_v21 = vadd.f32 %v3577_v41, %v3123_v13  ;;  %v4873_v5 = vmul.f32 %v15565_v19, %v15565_v19  ;;  %v15584_v8 = vadd.f32 %v4610_v23, %v4157_v26  ;;  %v4611_v56 = vmul.f32 %v14945_v16, %v4526_v10 }
 0x502   :  { %v2545_v57 = vmul.f32 %v15341_v55, %v19146_v61  ;;  %v4988_v35 = vadd.f32 %v4987_v58, %v4986_v3  ;;  %v4793_v62 = vadd.f32 %v4792_v50, %v4791_v22  ;;  %v3642_v11 = vadd.f32 %v3578_v49, %v3124_v46  ;;  %v10309_v61 = vld [vmem:[%s17937_s1 + $0x8] ss:$0 sm:$0xff] }
 0x503   :  { %v4991_v1 = vsel %vm4682_vm0, %v4872_v12, 0.0  ;;  %v3061_v6 = vmul.f32 %v10306_v63, %v15489_v34  ;;  %v4158_v40 = vadd.f32 %v4094_v4, %v3641_v21  ;;  %v4796_v55 = vsel %vm4682_vm0, %v15565_v19, 0.0 }
 0x504   :  { %v4531_v48 = vpop.permute.xlu1 %4530  ;;  %v4019_v39 = vpop.permute.xlu0 %4018  ;;  %v4990_v10 = vadd.f32 %v4989_v18, %v4988_v35  ;;  %v4795_v36 = vadd.f32 %v4794_v47, %v4793_v62  ;;  %v4159_v45 = vadd.f32 %v4095_v30, %v3642_v11  ;;  %v4993_v25 = vsel %vm4682_vm0, %v4873_v5, 0.0 }
 0x505   :  { %v4612_v53 = vmul.f32 %v14945_v16, %v4531_v48  ;;  %v4874_v3 = vmul.f32 %v15584_v8, %v15584_v8  ;;  %v3579_v24 = vmul.f32 %v14935_v0, %v15530_v2  ;;  %v15602_v44 = vadd.f32 %v4611_v56, %v4158_v40  ;;  %v10307_v0 = vld [vmem:[%s17937_s1 + $0x7] ss:$0 sm:$0xff] }
 0x506   :  { %v4992_v34 = vadd.f32 %v4991_v1, %v4990_v10  ;;  %v3062_v31 = vmul.f32 %v10306_v63, %v15532_v52  ;;  %v3063_v16 = vmul.f32 %v10306_v63, %v2994_v38  ;;  %v2610_v58 = vadd.f32 %v15452_v42, %v15365_v33  ;;  %v10308_v52 = vld [vmem:[%s17937_s1 + $0x6] ss:$0 sm:$0xff] }
 0x507   :  { %v15605_v41 = vadd.f32 %v4612_v53, %v4159_v45  ;;  %v2609_v50 = vadd.f32 %v2545_v57, %v15368_v28  ;;  %v3125_v49 = vadd.f32 %v3061_v6, %v15427_v29  ;;  %v4096_v2 = vmul.f32 %v10307_v0, %v4019_v39 }
 0x508   :  { %v4024_v23 = vpop.permute.xlu1 %4023  ;;  %v3512_v22 = vpop.permute.xlu0 %3511  ;;  %v4797_v13 = vadd.f32 %v4796_v55, %v4795_v36  ;;  %v4994_v12 = vadd.f32 %v4993_v25, %v4992_v34  ;;  %v3580_v38 = vmul.f32 %v10308_v52, %v3507_v51  ;;  %v4798_v33 = vsel %vm4682_vm0, %v15584_v8, 0.0 }
 0x509   :  { %v3581_v26 = vmul.f32 %v10308_v52, %v3512_v22  ;;  %v4995_v28 = vsel %vm4682_vm0, %v4874_v3, 0.0  ;;  %v3643_v42 = vadd.f32 %v3579_v24, %v3125_v49  ;;  %v4875_v29 = vmul.f32 %v15602_v44, %v15602_v44 }
 0x50a   :  { %v3126_v4 = vadd.f32 %v3062_v31, %v2609_v50  ;;  %v3127_v18 = vadd.f32 %v3063_v16, %v2610_v58  ;;  %v4876_v47 = vmul.f32 %v15605_v41, %v15605_v41  ;;  %v4097_v46 = vmul.f32 %v10307_v0, %v4024_v23 }
 0x50b   :  { %v4800_v51 = vsel %vm4682_vm0, %v15602_v44, 0.0  ;;  %v4160_v5 = vadd.f32 %v4096_v2, %v3643_v42  ;;  %v4799_v35 = vadd.f32 %v4798_v33, %v4797_v13  ;;  %v4996_v48 = vadd.f32 %v4995_v28, %v4994_v12 }
 0x50c   :  { %v4029_v30 = vpop.permute.xlu1 %4028  ;;  %v4536_v21 = vpop.permute.xlu0 %4535  ;;  %v3644_v62 = vadd.f32 %v3580_v38, %v3126_v4  ;;  %v3645_v11 = vadd.f32 %v3581_v26, %v3127_v18  ;;  %v4997_v39 = vsel %vm4682_vm0, %v4875_v29, 0.0  ;;  %v4802_v1 = vsel %vm4682_vm0, %v15605_v41, 0.0  ;;  %v10196_v4 = vld [vmem:[%s17938_s2 + $0x38] sm:$0xff]  }
 0x50d   :  { %v4098_v56 = vmul.f32 %v10307_v0, %v4029_v30  ;;  %v4613_v57 = vmul.f32 %v10309_v61, %v4536_v21  ;;  %v4801_v6 = vadd.f32 %v4800_v51, %v4799_v35  ;;  %v4999_v40 = vsel %vm4682_vm0, %v4876_v47, 0.0  ;;  %v10197_v18 = vld [vmem:[%s17938_s2 + $0x18] sm:$0xff]   ;;  %9782 = vmatprep.subr.bf16.mxu0 %v10196_v4  ;;  %v10198_v30 = vld [vmem:[%s17938_s2 + $0x30] sm:$0xff]  }
 0x50e   :  { %v4161_v53 = vadd.f32 %v4097_v46, %v3644_v62  ;;  %v4998_v34 = vadd.f32 %v4997_v39, %v4996_v48  ;;  %9806 = vmatprep.subr.bf16.mxu1 %v10197_v18  ;;  %9783 = vmatpush3.bf16.msra.mxu0 %v10196_v4  ;;  %v10199_v21 = vld [vmem:[%s17938_s2 + $0x10] sm:$0xff]   ;;  %v10202_v39 = vld [vmem:[%s17938_s2 + $0x20] sm:$0xff]  }
 0x50f   :  { %v15632_v63 = vadd.f32 %v4613_v57, %v4160_v5  ;;  %v4162_v10 = vadd.f32 %v4098_v56, %v3645_v11  ;;  %v4803_v31 = vadd.f32 %v4802_v1, %v4801_v6  ;;  %9807 = vmatpush3.bf16.msra.mxu1 %v10197_v18  ;;  %v10200_v56 = vld [vmem:[%s17938_s2 + $0x28] sm:$0xff]   ;;  %v17987_v57 = vmov 0.0   ;;  %9784 = vmatprep.subr.bf16.mxu0 %v10198_v30  ;;  %v10203_v1 = vld [vmem:[%s17938_s2] sm:$0xff]  }
 0x510   :  { %v4546_v36 = vpop.permute.xlu1 %4545  ;;  %v4541_v55 = vpop.permute.xlu0 %4540  ;;  %v5000_v58 = vadd.f32 %v4999_v40, %v4998_v34  ;;  %5589 = vst.msk [vmem:[#allocation3] sm:$0xff] %vm4682_vm0, %v17987_v57  ;;  %5592 = vst.msk [vmem:[#allocation3 + $0x10] sm:$0xff] %vm4682_vm0, %v17987_v57  ;;  %9808 = vmatprep.subr.bf16.mxu1 %v10199_v21  ;;  %v10207_v34 = vld [vmem:[%s17938_s2 + $0x78] sm:$0xff]  }
 0x511   :  { %v4804_v45 = vsel %vm4682_vm0, %v15632_v63, 0.0  ;;  %v4877_v25 = vmul.f32 %v15632_v63, %v15632_v63  ;;  %v4615_v3 = vmul.f32 %v10309_v61, %v4546_v36  ;;  %v4614_v24 = vmul.f32 %v10309_v61, %v4541_v55  ;;  %v10201_v61 = vld [vmem:[%s17938_s2 + $0x8] sm:$0xff]   ;;  %5591 = vst.msk [vmem:[#allocation3 + $0x8] sm:$0x3] %vm5590_vm1, %v17987_v57  ;;  %5593 = vst.msk [vmem:[#allocation3 + $0x18] sm:$0x3] %vm5590_vm1, %v17987_v57 }
 0x512   :  { %v4805_v50 = vadd.f32 %v4804_v45, %v4803_v31  ;;  %5594 = vst.msk [vmem:[#allocation3 + $0x20] sm:$0xff] %vm4682_vm0, %v17987_v57  ;;  %5596 = vst.msk [vmem:[#allocation3 + $0x30] sm:$0xff] %vm4682_vm0, %v17987_v57  ;;  %9785 = vmatpush3.bf16.msra.mxu0 %v10198_v30  ;;  %v10204_v36 = vld [vmem:[%s17938_s2 + $0x58] sm:$0xff]   ;;  %v19150_v30 = vld [vmem:[#allocation168_spill] sm:$0xff] }
 0x513   :  { %v5001_v16 = vsel %vm4682_vm0, %v4877_v25, 0.0  ;;  %v15640_v23 = vadd.f32 %v4615_v3, %v4162_v10  ;;  %v15642_v22 = vadd.f32 %v4614_v24, %v4161_v53  ;;  %5595 = vst.msk [vmem:[#allocation3 + $0x28] sm:$0x3] %vm5590_vm1, %v17987_v57  ;;  %5597 = vst.msk [vmem:[#allocation3 + $0x38] sm:$0x3] %vm5590_vm1, %v17987_v57  ;;  %9809 = vmatpush3.bf16.msra.mxu1 %v10199_v21  ;;  %9786 = vmatprep.subr.bf16.mxu0 %v10200_v56  ;;  %v5022_v24 = vlaneseq }
 0x514   :  { %v5002_v13 = vadd.f32 %v5001_v16, %v5000_v58  ;;  %5598 = vst.msk [vmem:[#allocation3 + $0x40] sm:$0xff] %vm4682_vm0, %v17987_v57  ;;  %5600 = vst.msk [vmem:[#allocation3 + $0x50] sm:$0xff] %vm4682_vm0, %v17987_v57  ;;  %9810 = vmatprep.subr.bf16.mxu1 %v10201_v61  ;;  %v4680_v16 = vld [vmem:[%s17939_s3] sm:$0x1] }
 0x515   :  { %v4879_v49 = vmul.f32 %v15640_v23, %v15640_v23  ;;  %v4806_v0 = vsel %vm4682_vm0, %v15642_v22, 0.0  ;;  %v4878_v2 = vmul.f32 %v15642_v22, %v15642_v22  ;;  %v4808_v52 = vsel %vm4682_vm0, %v15640_v23, 0.0  ;;  %5599 = vst.msk [vmem:[#allocation3 + $0x48] sm:$0x3] %vm5590_vm1, %v17987_v57  ;;  %5601 = vst.msk [vmem:[#allocation3 + $0x58] sm:$0x3] %vm5590_vm1, %v17987_v57 }
 0x516   :  { %v4807_v12 = vadd.f32 %v4806_v0, %v4805_v50  ;;  %5602 = vst.msk [vmem:[#allocation3 + $0x60] sm:$0xff] %vm4682_vm0, %v17987_v57  ;;  %5604 = vst.msk [vmem:[#allocation3 + $0x70] sm:$0xff] %vm4682_vm0, %v17987_v57  ;;  %9787 = vmatpush3.bf16.msra.mxu0 %v10200_v56  ;;  %v5023_v31 = vshrl.u32 %v5022_v24, 7  ;;  %v4681_v0 = vld [vmem:[%s17939_s3 + $0x1] sm:$0x1]  ;;  %v19152_v56 = vld [vmem:[#allocation170_spill] sm:$0xff] }
 0x517   :  { %v5003_v38 = vsel %vm4682_vm0, %v4878_v2, 0.0  ;;  %v5005_v28 = vsel %vm4682_vm0, %v4879_v49, 0.0  ;;  %5603 = vst.msk [vmem:[#allocation3 + $0x68] sm:$0x3] %vm5590_vm1, %v17987_v57  ;;  %5605 = vst.msk [vmem:[#allocation3 + $0x78] sm:$0x3] %vm5590_vm1, %v17987_v57  ;;  %9811 = vmatpush3.bf16.msra.mxu1 %v10201_v61  ;;  %9788 = vmatprep.subr.bf16.mxu0 %v10202_v39 }
 0x518   :  { %v4809_v26 = vadd.f32 %v4808_v52, %v4807_v12  ;;  %v5004_v33 = vadd.f32 %v5003_v38, %v5002_v13  ;;  %5606 = vst.msk [vmem:[#allocation3 + $0x80] sm:$0xff] %vm4682_vm0, %v17987_v57  ;;  %5608 = vst.msk [vmem:[#allocation3 + $0x90] sm:$0xff] %vm4682_vm0, %v17987_v57  ;;  %9812 = vmatprep.subr.bf16.mxu1 %v10203_v1  ;;  %v15767_v58 = vsub.s32 0, %v5023_v31 }
 0x519   :  { %5607 = vst.msk [vmem:[#allocation3 + $0x88] sm:$0x3] %vm5590_vm1, %v17987_v57  ;;  %5609 = vst.msk [vmem:[#allocation3 + $0x98] sm:$0x3] %vm5590_vm1, %v17987_v57 }
 0x51a   :  { %v4810_v42 = vrot.slane %v4809_v26, 4  ;;  %v5006_v29 = vadd.f32 %v5005_v28, %v5004_v33  ;;  %5610 = vst.msk [vmem:[#allocation3 + $0xa0] sm:$0xff] %vm4682_vm0, %v17987_v57  ;;  %5612 = vst.msk [vmem:[#allocation3 + $0xb0] sm:$0xff] %vm4682_vm0, %v17987_v57  ;;  %9789 = vmatpush3.bf16.msra.mxu0 %v10202_v39  ;;  %v19155_v39 = vld [vmem:[#allocation173_spill] sm:$0xff] }
 0x51b   :  { %5611 = vst.msk [vmem:[#allocation3 + $0xa8] sm:$0x3] %vm5590_vm1, %v17987_v57  ;;  %5613 = vst.msk [vmem:[#allocation3 + $0xb8] sm:$0x3] %vm5590_vm1, %v17987_v57  ;;  %9813 = vmatpush3.bf16.msra.mxu1 %v10203_v1  ;;  %9830 = vmatprep.subr.bf16.mxu0 %v10204_v36  ;;  %v19158_v36 = vld [vmem:[#allocation176_spill] sm:$0xff] }
 0x51c   :  { %v4811_v47 = vadd.f32 %v4810_v42, %v4809_v26  ;;  %v5007_v46 = vrot.slane %v5006_v29, 4  ;;  %5614 = vst.msk [vmem:[#allocation3 + $0xc0] sm:$0xff] %vm4682_vm0, %v17987_v57  ;;  %5616 = vst.msk [vmem:[#allocation3 + $0xd0] sm:$0xff] %vm4682_vm0, %v17987_v57  ;;  %9854 = vmatprep.subr.bf16.mxu1 %v10207_v34  ;;  %v19161_v34 = vld [vmem:[#allocation179_spill] sm:$0xff] }
 0x51d   :  { %5615 = vst.msk [vmem:[#allocation3 + $0xc8] sm:$0x3] %vm5590_vm1, %v17987_v57  ;;  %5617 = vst.msk [vmem:[#allocation3 + $0xd8] sm:$0x3] %vm5590_vm1, %v17987_v57 }
 0x51e   :  { %v4812_v51 = vrot.slane %v4811_v47, 2  ;;  %v5008_v5 = vadd.f32 %v5007_v46, %v5006_v29  ;;  %5618 = vst.msk [vmem:[#allocation3 + $0xe0] sm:$0xff] %vm4682_vm0, %v17987_v57  ;;  %5620 = vst.msk [vmem:[#allocation3 + $0xf0] sm:$0xff] %vm4682_vm0, %v17987_v57 }
 0x51f   :  { %5619 = vst.msk [vmem:[#allocation3 + $0xe8] sm:$0x3] %vm5590_vm1, %v17987_v57  ;;  %5621 = vst.msk [vmem:[#allocation3 + $0xf8] sm:$0x3] %vm5590_vm1, %v17987_v57 }
 0x520   :  { %5622 = vst.msk [vmem:[#allocation3 + $0x100] sm:$0xff] %vm4682_vm0, %v17987_v57  ;;  %5624 = vst.msk [vmem:[#allocation3 + $0x110] sm:$0xff] %vm4682_vm0, %v17987_v57  ;;  %v4813_v35 = vadd.f32 %v4812_v51, %v4811_v47  ;;  %v5009_v62 = vrot.slane %v5008_v5, 2  ;;  %v19149_v47 = vld [vmem:[#allocation167_spill] sm:$0xff]  ;;  %v19151_v51 = vld [vmem:[#allocation169_spill] sm:$0xff] }
 0x521   :  { %5623 = vst.msk [vmem:[#allocation3 + $0x108] sm:$0x3] %vm5590_vm1, %v17987_v57  ;;  %5625 = vst.msk [vmem:[#allocation3 + $0x118] sm:$0x3] %vm5590_vm1, %v17987_v57 }
 0x522   :  { %5626 = vst.msk [vmem:[#allocation3 + $0x120] sm:$0xff] %vm4682_vm0, %v17987_v57  ;;  %5628 = vst.msk [vmem:[#allocation3 + $0x130] sm:$0xff] %vm4682_vm0, %v17987_v57  ;;  %v4814_v11 = vrot.slane %v4813_v35, 1  ;;  %v5010_v48 = vadd.f32 %v5009_v62, %v5008_v5 }
 0x523   :  { %5627 = vst.msk [vmem:[#allocation3 + $0x128] sm:$0x3] %vm5590_vm1, %v17987_v57  ;;  %5629 = vst.msk [vmem:[#allocation3 + $0x138] sm:$0x3] %vm5590_vm1, %v17987_v57  ;;  %v19198_v57 = vld [vmem:[#allocation159_spill] sm:$0xff] }
 0x524   :  { %v4815_v6 = vadd.f32 %v4814_v11, %v4813_v35  ;;  %v5011_v40 = vrot.slane %v5010_v48, 1  ;;  %19147 = vst [vmem:[#allocation187_spill] sm:$0xff] %v15767_v58  ;;  %v19153_v35 = vld [vmem:[#allocation171_spill] sm:$0xff]  ;;  %v19154_v11 = vld [vmem:[#allocation172_spill] sm:$0xff] }
 0x526   :  { %v5012_v53 = vadd.f32 %v5011_v40, %v5010_v48  ;;  %v5013_v10 = vmul.f32 0.001953125, %v4815_v6  ;;  %v19156_v6 = vld [vmem:[#allocation174_spill] sm:$0xff] }
 0x528   :  { %v5014_v55 = vmul.f32 0.001953125, %v5012_v53  ;;  %v5015_v45 = vmul.f32 %v5013_v10, %v5013_v10  ;;  %v19157_v53 = vld [vmem:[#allocation175_spill] sm:$0xff] }
 0x52a   :  { %v5016_v25 = vsub.f32 %v5014_v55, %v5015_v45  ;;  %v19159_v45 = vld [vmem:[#allocation177_spill] sm:$0xff] }
 0x52c   :  { %v5017_v3 = vadd.f32 1e-05, %v5016_v25 }
 0x52e   :  { %10296 = vrsqrt.f32 %v5017_v3  ;;  %v19160_v3 = vld [vmem:[#allocation178_spill] sm:$0xff] }
 0x53b   :  { %v10297_v50 = vpop.eup %10296 }
 0x53c   :  { %v5019_v49 = vmul.f32 %v10297_v50, %v4680_v16  ;;  %v19162_v16 = vld [vmem:[#allocation9_spill] sm:$0xff] }
 0x53e   :  { %v5020_v2 = vmul.f32 %v5019_v49, %v5013_v10  ;;  %v15773_v13 = vrot.slane %v5019_v49, %v15767_v58  ;;  %v19163_v49 = vld [vmem:[#allocation180_spill] sm:$0xff] }
 0x540   :  { %v5021_v12 = vsub.f32 %v4681_v0, %v5020_v2  ;;  %v5088_v52 = vmul.f32 %v15773_v13, %v15642_v22  ;;  %v5089_v38 = vmul.f32 %v15773_v13, %v15640_v23  ;;  %v19148_v22 = vld [vmem:[#allocation166_spill] sm:$0xff]  ;;  %v5049_v46 = vmul.f32 %v15773_v13, %v19149_v47  ;;  %v19164_v2 = vld [vmem:[#allocation79_spill] sm:$0xff]  ;;  %v19169_v47 = vld [vmem:[#allocation156_spill] sm:$0xff] }
 0x541   :  { %v5048_v23 = vmul.f32 %v15773_v13, %v19148_v22  ;;  %v5050_v21 = vmul.f32 %v15773_v13, %v19150_v30  ;;  %v5051_v5 = vmul.f32 %v15773_v13, %v19151_v51  ;;  %v5052_v61 = vmul.f32 %v15773_v13, %v19152_v56 }
 0x542   :  { %v15780_v26 = vrot.slane %v5021_v12, %v15767_v58  ;;  %v5053_v62 = vmul.f32 %v15773_v13, %v19153_v35  ;;  %v5054_v48 = vmul.f32 %v15773_v13, %v19154_v11  ;;  %v5055_v1 = vmul.f32 %v15773_v13, %v19155_v39  ;;  %v19199_v58 = vld [vmem:[#allocation160_spill] sm:$0xff] }
 0x543   :  { %v5056_v40 = vmul.f32 %v15773_v13, %v19156_v6  ;;  %v5057_v10 = vmul.f32 %v15773_v13, %v19157_v53  ;;  %v5058_v55 = vmul.f32 %v15773_v13, %v19158_v36  ;;  %v5059_v25 = vmul.f32 %v15773_v13, %v19159_v45 }
 0x544   :  { %v5156_v33 = vadd.f32 %v15780_v26, %v5088_v52  ;;  %v5157_v28 = vadd.f32 %v15780_v26, %v5089_v38  ;;  %v5060_v24 = vmul.f32 %v15773_v13, %v19160_v3  ;;  %v5061_v31 = vmul.f32 %v15773_v13, %v19161_v34  ;;  %v19165_v52 = vld [vmem:[#allocation154_spill] sm:$0xff] }
 0x545   :  { %v5062_v50 = vmul.f32 %v15773_v13, %v19162_v16  ;;  %v5063_v0 = vmul.f32 %v15773_v13, %v19163_v49  ;;  %v5064_v12 = vmul.f32 %v15773_v13, %v19164_v2  ;;  %v5065_v38 = vmul.f32 %v15773_v13, %v19165_v52 }
 0x546   :  { %vm5220_vm2 = vcmp.ge.f32.partialorder %v5156_v33, 0.0  ;;  %vm5221_vm3 = vcmp.ge.f32.partialorder %v5157_v28, 0.0  ;;  %v5284_v42 = vmul.f32 0.01, %v5156_v33  ;;  %v5285_v29 = vmul.f32 0.01, %v5157_v28 }
 0x547   :  { %v5070_v30 = vmul.f32 %v15773_v13, %v19169_v47  ;;  %v5071_v51 = vmul.f32 %v15773_v13, %v14884_v43  ;;  %v5072_v56 = vmul.f32 %v15773_v13, %v14949_v15  ;;  %v5073_v35 = vmul.f32 %v15773_v13, %v14988_v20 }
 0x548   :  { %v5348_v4 = vsel %vm5220_vm2, %v5156_v33, %v5284_v42  ;;  %v5349_v18 = vsel %vm5221_vm3, %v5157_v28, %v5285_v29  ;;  %v19166_v33 = vld [vmem:[#allocation158_spill] sm:$0xff]  ;;  %v5067_v42 = vmul.f32 %v15773_v13, %v14689_v54  ;;  %v19167_v29 = vld [vmem:[#allocation161_spill] sm:$0xff]  ;;  %v5074_v54 = vmul.f32 %v15773_v13, %v15023_v14 }
 0x549   :  { %5412 = vst.msk [vmem:[#allocation2 + $0x1f0] sm:$0xff] %vm4682_vm0, %v5348_v4  ;;  %5413 = vst.msk [vmem:[#allocation2 + $0x1f8] sm:$0xff] %vm4682_vm0, %v5349_v18  ;;  %v5066_v28 = vmul.f32 %v15773_v13, %v19166_v33  ;;  %v5068_v4 = vmul.f32 %v15773_v13, %v19167_v29  ;;  %v19168_v18 = vld [vmem:[#allocation163_spill] sm:$0xff]  ;;  %v5075_v11 = vmul.f32 %v15773_v13, %v15059_v17 }
 0x54a   :  { %v5069_v22 = vmul.f32 %v15773_v13, %v19168_v18  ;;  %v5076_v39 = vmul.f32 %v15773_v13, %v15100_v7  ;;  %v5077_v6 = vmul.f32 %v15773_v13, %v15446_v32  ;;  %v5078_v43 = vmul.f32 %v15773_v13, %v15484_v60 }
 0x54b   :  { %v5079_v15 = vmul.f32 %v15773_v13, %v15497_v27  ;;  %v5080_v20 = vmul.f32 %v15773_v13, %v15526_v59  ;;  %v5081_v14 = vmul.f32 %v15773_v13, %v15542_v37  ;;  %v5082_v17 = vmul.f32 %v15773_v13, %v15555_v9 }
 0x54c   :  { %v5083_v7 = vmul.f32 %v15773_v13, %v15565_v19  ;;  %v5084_v32 = vmul.f32 %v15773_v13, %v15584_v8  ;;  %v5085_v60 = vmul.f32 %v15773_v13, %v15602_v44  ;;  %v5086_v27 = vmul.f32 %v15773_v13, %v15605_v41 }
 0x54d   :  { %v5087_v59 = vmul.f32 %v15773_v13, %v15632_v63  ;;  %v15867_v37 = vadd.f32 %v15780_v26, %v5048_v23  ;;  %v15870_v9 = vadd.f32 %v15780_v26, %v5049_v46  ;;  %v15873_v19 = vadd.f32 %v15780_v26, %v5050_v21 }
 0x54e   :  { %v15876_v8 = vadd.f32 %v15780_v26, %v5051_v5  ;;  %v15879_v44 = vadd.f32 %v15780_v26, %v5052_v61  ;;  %v15882_v41 = vadd.f32 %v15780_v26, %v5053_v62  ;;  %v15885_v63 = vadd.f32 %v15780_v26, %v5054_v48 }
 0x54f   :  { %v15888_v23 = vadd.f32 %v15780_v26, %v5055_v1  ;;  %v15891_v46 = vadd.f32 %v15780_v26, %v5056_v40  ;;  %v15894_v21 = vadd.f32 %v15780_v26, %v5057_v10  ;;  %v15897_v5 = vadd.f32 %v15780_v26, %v5058_v55 }
 0x550   :  { %v15900_v61 = vadd.f32 %v15780_v26, %v5059_v25  ;;  %v15903_v62 = vadd.f32 %v15780_v26, %v5060_v24  ;;  %v15906_v48 = vadd.f32 %v15780_v26, %v5061_v31  ;;  %v15909_v1 = vadd.f32 %v15780_v26, %v5062_v50 }
 0x551   :  { %v15912_v40 = vadd.f32 %v15780_v26, %v5063_v0  ;;  %v15915_v53 = vadd.f32 %v15780_v26, %v5064_v12  ;;  %v15918_v10 = vadd.f32 %v15780_v26, %v5065_v38  ;;  %v15921_v36 = vadd.f32 %v15780_v26, %v5066_v28 }
 0x552   :  { %v15924_v55 = vadd.f32 %v15780_v26, %v5067_v42  ;;  %v15927_v45 = vadd.f32 %v15780_v26, %v5068_v4  ;;  %v15930_v25 = vadd.f32 %v15780_v26, %v5069_v22  ;;  %v15933_v3 = vadd.f32 %v15780_v26, %v5070_v30  ;;  %v19185_v22 = vld [vmem:[#allocation51_spill] sm:$0xff] }
 0x553   :  { %v15936_v24 = vadd.f32 %v15780_v26, %v5071_v51  ;;  %v15939_v34 = vadd.f32 %v15780_v26, %v5072_v56  ;;  %v15942_v31 = vadd.f32 %v15780_v26, %v5073_v35  ;;  %v15945_v16 = vadd.f32 %v15780_v26, %v5074_v54  ;;  %v19186_v30 = vld [vmem:[#allocation147_spill] sm:$0xff]  ;;  %v19187_v56 = vld [vmem:[#allocation150_spill] sm:$0xff] }
 0x554   :  { %19170 = vst [vmem:[#allocation188_spill] sm:$0xff] %v15933_v3  ;;  %v15948_v50 = vadd.f32 %v15780_v26, %v5075_v11  ;;  %v15951_v49 = vadd.f32 %v15780_v26, %v5076_v39  ;;  %v15954_v0 = vadd.f32 %v15780_v26, %v5077_v6  ;;  %v15957_v2 = vadd.f32 %v15780_v26, %v5078_v43  ;;  %v19188_v54 = vld [vmem:[#allocation151_spill] sm:$0xff]  ;;  %v19189_v39 = vld [vmem:[#allocation152_spill] sm:$0xff]  ;;  %v19190_v43 = vld [vmem:[#allocation57_spill] sm:$0xff] }
 0x555   :  { %19171 = vst [vmem:[#allocation189_spill] sm:$0xff] %v15936_v24  ;;  %v15960_v12 = vadd.f32 %v15780_v26, %v5079_v15  ;;  %v15963_v52 = vadd.f32 %v15780_v26, %v5080_v20  ;;  %v15966_v38 = vadd.f32 %v15780_v26, %v5081_v14  ;;  %v15969_v33 = vadd.f32 %v15780_v26, %v5082_v17  ;;  %v19191_v20 = vld [vmem:[#allocation153_spill] sm:$0xff]  ;;  %v19192_v17 = vld [vmem:[#allocation62_spill] sm:$0xff] }
 0x556   :  { %19172 = vst [vmem:[#allocation190_spill] sm:$0xff] %v15948_v50  ;;  %19173 = vst [vmem:[#allocation191_spill] sm:$0xff] %v15951_v49  ;;  %v15972_v28 = vadd.f32 %v15780_v26, %v5083_v7  ;;  %v15975_v42 = vadd.f32 %v15780_v26, %v5084_v32  ;;  %v15978_v29 = vadd.f32 %v15780_v26, %v5085_v60  ;;  %v19193_v32 = vld [vmem:[#allocation64_spill] sm:$0xff] }
 0x557   :  { %19174 = vst [vmem:[#allocation192_spill] sm:$0xff] %v15954_v0  ;;  %19175 = vst [vmem:[#allocation193_spill] sm:$0xff] %v15957_v2  ;;  %v15981_v4 = vadd.f32 %v15780_v26, %v5086_v27  ;;  %v15984_v18 = vadd.f32 %v15780_v26, %v5087_v59  ;;  %v5026_v47 = vmul.f32 %v15773_v13, %v19185_v22  ;;  %v19194_v27 = vld [vmem:[#allocation65_spill] sm:$0xff]  ;;  %v19195_v22 = vld [vmem:[#allocation66_spill] sm:$0xff] }
 0x558   :  { %19176 = vst [vmem:[#allocation194_spill] sm:$0xff] %v15960_v12  ;;  %19177 = vst [vmem:[#allocation195_spill] sm:$0xff] %v15963_v52  ;;  %v5027_v51 = vmul.f32 %v15773_v13, %v19186_v30  ;;  %v5028_v35 = vmul.f32 %v15773_v13, %v19187_v56  ;;  %v5029_v11 = vmul.f32 %v15773_v13, %v19188_v54  ;;  %v19196_v56 = vld [vmem:[#allocation67_spill] sm:$0xff] }
 0x559   :  { %19178 = vst [vmem:[#allocation196_spill] sm:$0xff] %v15966_v38  ;;  %19179 = vst [vmem:[#allocation197_spill] sm:$0xff] %v15969_v33  ;;  %v5030_v6 = vmul.f32 %v15773_v13, %v19189_v39  ;;  %v5031_v15 = vmul.f32 %v15773_v13, %v19190_v43  ;;  %v5032_v14 = vmul.f32 %v15773_v13, %v19191_v20  ;;  %v19197_v39 = vld [vmem:[#allocation68_spill] sm:$0xff]  ;;  %v19205_v33 = vld [vmem:[#allocation165_spill] sm:$0xff] }
 0x55a   :  { %19180 = vst [vmem:[#allocation198_spill] sm:$0xff] %v15972_v28  ;;  %19181 = vst [vmem:[#allocation199_spill] sm:$0xff] %v15975_v42  ;;  %v5033_v7 = vmul.f32 %v15773_v13, %v19192_v17  ;;  %v5034_v60 = vmul.f32 %v15773_v13, %v19193_v32  ;;  %v5035_v59 = vmul.f32 %v15773_v13, %v19194_v27  ;;  %v19203_v42 = vld [vmem:[#allocation69_spill] sm:$0xff]  ;;  %v19206_v38 = vld [vmem:[#allocation75_spill] sm:$0xff] }
 0x55b   :  { %19182 = vst [vmem:[#allocation200_spill] sm:$0xff] %v15978_v29  ;;  %19183 = vst [vmem:[#allocation201_spill] sm:$0xff] %v15981_v4  ;;  %v5036_v30 = vmul.f32 %v15773_v13, %v19195_v22  ;;  %v5037_v54 = vmul.f32 %v15773_v13, %v19196_v56  ;;  %v5038_v43 = vmul.f32 %v15773_v13, %v19197_v39  ;;  %v19201_v4 = vld [vmem:[#allocation162_spill] sm:$0xff]  ;;  %v19202_v29 = vld [vmem:[#allocation164_spill] sm:$0xff] }
 0x55c   :  { %19184 = vst [vmem:[#allocation202_spill] sm:$0xff] %v15984_v18  ;;  %v5039_v20 = vmul.f32 %v15773_v13, %v19198_v57  ;;  %v5040_v17 = vmul.f32 %v15773_v13, %v19199_v58  ;;  %v19200_v18 = vld [vmem:[#allocation155_spill] sm:$0xff]  ;;  %v5042_v27 = vmul.f32 %v15773_v13, %v19201_v4  ;;  %v5043_v22 = vmul.f32 %v15773_v13, %v19202_v29  ;;  %v19204_v28 = vld [vmem:[#allocation157_spill] sm:$0xff] }
 0x55d   :  { %v5041_v32 = vmul.f32 %v15773_v13, %v19200_v18  ;;  %v5044_v56 = vmul.f32 %v15773_v13, %v19203_v42  ;;  %v5045_v39 = vmul.f32 %v15773_v13, %v19204_v28  ;;  %v5046_v57 = vmul.f32 %v15773_v13, %v19205_v33 }
 0x55e   :  { %v5047_v58 = vmul.f32 %v15773_v13, %v19206_v38  ;;  %v5094_v18 = vadd.f32 %v15780_v26, %v5026_v47  ;;  %v5095_v52 = vadd.f32 %v15780_v26, %v5027_v51  ;;  %v5096_v4 = vadd.f32 %v15780_v26, %v5028_v35 }
 0x55f   :  { %v5097_v29 = vadd.f32 %v15780_v26, %v5029_v11  ;;  %v5098_v12 = vadd.f32 %v15780_v26, %v5030_v6  ;;  %v16036_v42 = vadd.f32 %v15780_v26, %v5031_v15  ;;  %v16039_v28 = vadd.f32 %v15780_v26, %v5032_v14 }
 0x560   :  { %v16042_v33 = vadd.f32 %v15780_v26, %v5033_v7  ;;  %v16045_v13 = vadd.f32 %v15780_v26, %v5034_v60  ;;  %v16048_v38 = vadd.f32 %v15780_v26, %v5035_v59  ;;  %v16051_v47 = vadd.f32 %v15780_v26, %v5036_v30 }
 0x561   :  { %v16054_v51 = vadd.f32 %v15780_v26, %v5037_v54  ;;  %v16057_v35 = vadd.f32 %v15780_v26, %v5038_v43  ;;  %v16060_v11 = vadd.f32 %v15780_v26, %v5039_v20  ;;  %v16063_v6 = vadd.f32 %v15780_v26, %v5040_v17 }
 0x562   :  { %v16066_v15 = vadd.f32 %v15780_v26, %v5041_v32  ;;  %v16069_v14 = vadd.f32 %v15780_v26, %v5042_v27  ;;  %v16072_v7 = vadd.f32 %v15780_v26, %v5043_v22  ;;  %v16075_v60 = vadd.f32 %v15780_v26, %v5044_v56 }
 0x563   :  { %19207 = vst [vmem:[#allocation83_spill] sm:$0xff] %v16063_v6  ;;  %v16078_v59 = vadd.f32 %v15780_v26, %v5045_v39  ;;  %v16081_v30 = vadd.f32 %v15780_v26, %v5046_v57  ;;  %vm5158_vm4 = vcmp.ge.f32.partialorder %v5094_v18, 0.0  ;;  %vm5159_vm5 = vcmp.ge.f32.partialorder %v5095_v52, 0.0 }
 0x564   :  { %vm5160_vm6 = vcmp.ge.f32.partialorder %v5096_v4, 0.0  ;;  %vm5161_vm7 = vcmp.ge.f32.partialorder %v5097_v29, 0.0  ;;  %vm5162_vm8 = vcmp.ge.f32.partialorder %v5098_v12, 0.0  ;;  %vm5163_vm9 = vcmp.ge.f32.partialorder %v16036_v42, 0.0 }
 0x565   :  { %vm5164_vm10 = vcmp.ge.f32.partialorder %v16039_v28, 0.0  ;;  %vm5165_vm11 = vcmp.ge.f32.partialorder %v16042_v33, 0.0  ;;  %vm5166_vm12 = vcmp.ge.f32.partialorder %v16045_v13, 0.0  ;;  %vm5167_vm13 = vcmp.ge.f32.partialorder %v16048_v38, 0.0 }
 0x566   :  { %v5222_v54 = vmul.f32 0.01, %v5094_v18  ;;  %v16089_v43 = vadd.f32 %v15780_v26, %v5047_v58  ;;  %vm5168_vm14 = vcmp.ge.f32.partialorder %v16051_v47, 0.0  ;;  %v5223_v20 = vmul.f32 0.01, %v5095_v52 }
 0x567   :  { %v5224_v17 = vmul.f32 0.01, %v5096_v4  ;;  %v5225_v32 = vmul.f32 0.01, %v5097_v29  ;;  %vm5169_vm15 = vcmp.ge.f32.partialorder %v16054_v51, 0.0  ;;  %vm5170_vm1 = vcmp.ge.f32.partialorder %v16057_v35, 0.0 }
 0x568   :  { %v5226_v27 = vmul.f32 0.01, %v5098_v12  ;;  %v5227_v22 = vmul.f32 0.01, %v16036_v42  ;;  %v5228_v56 = vmul.f32 0.01, %v16039_v28  ;;  %v5286_v39 = vsel %vm5158_vm4, %v5094_v18, %v5222_v54 }
 0x569   :  { %v5229_v57 = vmul.f32 0.01, %v16042_v33  ;;  %v5230_v26 = vmul.f32 0.01, %v16045_v13  ;;  %v5231_v58 = vmul.f32 0.01, %v16048_v38  ;;  %v5287_v2 = vsel %vm5159_vm5, %v5095_v52, %v5223_v20 }
 0x56a   :  { %5350 = vst.msk [vmem:[#allocation2] sm:$0xff] %vm4682_vm0, %v5286_v39  ;;  %vm5171_vm2 = vcmp.ge.f32.partialorder %v16060_v11, 0.0  ;;  %v5232_v0 = vmul.f32 0.01, %v16051_v47  ;;  %v16105_v49 = vmul.f32 0.01, %v16054_v51  ;;  %v5288_v54 = vsel %vm5160_vm6, %v5096_v4, %v5224_v17 }
 0x56b   :  { %v16108_v18 = vmul.f32 0.01, %v16057_v35  ;;  %5351 = vst.msk [vmem:[#allocation2 + $0x8] sm:$0xff] %vm4682_vm0, %v5287_v2  ;;  %vm5172_vm3 = vcmp.ge.f32.partialorder %v16063_v6, 0.0  ;;  %v16114_v52 = vmul.f32 0.01, %v16060_v11  ;;  %v5289_v50 = vsel %vm5161_vm7, %v5097_v29, %v5225_v32 }
 0x56c   :  { %v16117_v20 = vmul.f32 0.01, %v16063_v6  ;;  %v16120_v39 = vmul.f32 0.01, %v16066_v15  ;;  %5352 = vst.msk [vmem:[#allocation2 + $0x10] sm:$0xff] %vm4682_vm0, %v5288_v54  ;;  %vm5173_vm4 = vcmp.ge.f32.partialorder %v16066_v15, 0.0  ;;  %v5290_v6 = vsel %vm5162_vm8, %v5098_v12, %v5226_v27 }
 0x56d   :  { %v16126_v4 = vmul.f32 0.01, %v16069_v14  ;;  %v16129_v2 = vmul.f32 0.01, %v16072_v7  ;;  %v16132_v17 = vmul.f32 0.01, %v16075_v60 }
 0x56e   :  { %5353 = vst.msk [vmem:[#allocation2 + $0x18] sm:$0xff] %vm4682_vm0, %v5289_v50  ;;  %vm5174_vm5 = vcmp.ge.f32.partialorder %v16069_v14, 0.0  ;;  %v16138_v29 = vmul.f32 0.01, %v16078_v59  ;;  %v16141_v32 = vmul.f32 0.01, %v16081_v30 }
 0x56f   :  { %19208 = vst [vmem:[#allocation84_spill] sm:$0xff] %v16129_v2  ;;  %v16144_v54 = vmul.f32 0.01, %v16089_v43  ;;  %v5291_v2 = vsel %vm5163_vm9, %v16036_v42, %v5227_v22  ;;  %5354 = vst.msk [vmem:[#allocation2 + $0x20] sm:$0xff] %vm4682_vm0, %v5290_v6  ;;  %vm5175_vm6 = vcmp.ge.f32.partialorder %v16072_v7, 0.0  ;;  %vm5176_vm7 = vcmp.ge.f32.partialorder %v16075_v60, 0.0 }
 0x570   :  { %v16152_v50 = vmul.f32 0.01, %v15867_v37  ;;  %v16155_v12 = vmul.f32 0.01, %v15870_v9  ;;  %v16158_v27 = vmul.f32 0.01, %v15873_v19 }
 0x571   :  { %19209 = vst [vmem:[#allocation203_spill] sm:$0xff] %v16144_v54  ;;  %v5292_v54 = vsel %vm5164_vm10, %v16039_v28, %v5228_v56  ;;  %5355 = vst.msk [vmem:[#allocation2 + $0x28] sm:$0xff] %vm4682_vm0, %v5291_v2  ;;  %v16166_v42 = vmul.f32 0.01, %v15876_v8  ;;  %v16169_v6 = vmul.f32 0.01, %v15879_v44 }
 0x572   :  { %19210 = vst [vmem:[#allocation85_spill] sm:$0xff] %v16158_v27  ;;  %v16172_v22 = vmul.f32 0.01, %v15882_v41  ;;  %v5293_v27 = vsel %vm5165_vm11, %v16042_v33, %v5229_v57  ;;  %5356 = vst.msk [vmem:[#allocation2 + $0x30] sm:$0xff] %vm4682_vm0, %v5292_v54  ;;  %v16182_v28 = vmul.f32 0.01, %v15885_v63  ;;  %v5294_v33 = vsel %vm5166_vm12, %v16045_v13, %v5230_v26 }
 0x573   :  { %v16185_v56 = vmul.f32 0.01, %v15888_v23  ;;  %v16188_v2 = vmul.f32 0.01, %v15891_v46  ;;  %5357 = vst.msk [vmem:[#allocation2 + $0x38] sm:$0xff] %vm4682_vm0, %v5293_v27  ;;  %vm5180_vm11 = vcmp.ge.f32.partialorder %v15867_v37, 0.0  ;;  %v5295_v13 = vsel %vm5167_vm13, %v16048_v38, %v5231_v58 }
 0x574   :  { %v16199_v57 = vmul.f32 0.01, %v15894_v21  ;;  %v16202_v54 = vmul.f32 0.01, %v15897_v5  ;;  %5358 = vst.msk [vmem:[#allocation2 + $0x40] sm:$0xff] %vm4682_vm0, %v5294_v33  ;;  %vm5184_vm12 = vcmp.ge.f32.partialorder %v15879_v44, 0.0  ;;  %v5296_v38 = vsel %vm5168_vm14, %v16051_v47, %v5232_v0 }
 0x575   :  { %19211 = vst [vmem:[#allocation204_spill] sm:$0xff] %v16188_v2  ;;  %v16205_v2 = vmul.f32 0.01, %v15900_v61  ;;  %v16216_v26 = vmul.f32 0.01, %v15903_v62  ;;  %5359 = vst.msk [vmem:[#allocation2 + $0x48] sm:$0xff] %vm4682_vm0, %v5295_v13  ;;  %v5297_v0 = vsel %vm5169_vm15, %v16054_v51, %v16105_v49  ;;  %v5298_v49 = vsel %vm5170_vm1, %v16057_v35, %v16108_v18 }
 0x576   :  { %v16219_v27 = vmul.f32 0.01, %v15906_v48  ;;  %vm5188_vm13 = vcmp.ge.f32.partialorder %v15891_v46, 0.0  ;;  %v16233_v58 = vmul.f32 0.01, %v15912_v40  ;;  %5360 = vst.msk [vmem:[#allocation2 + $0x50] sm:$0xff] %vm4682_vm0, %v5296_v38  ;;  %v5299_v35 = vsel %vm5171_vm2, %v16060_v11, %v16114_v52 }
 0x577   :  { %19212 = vst [vmem:[#allocation205_spill] sm:$0xff] %v16205_v2  ;;  %v16222_v2 = vmul.f32 0.01, %v15909_v1  ;;  %v16236_v33 = vmul.f32 0.01, %v15915_v53  ;;  %vm5192_vm14 = vcmp.ge.f32.partialorder %v15903_v62, 0.0 }
 0x578   :  { %v16251_v47 = vmul.f32 0.01, %v15921_v36  ;;  %v16254_v13 = vmul.f32 0.01, %v15924_v55  ;;  %5361 = vst.msk [vmem:[#allocation2 + $0x58] sm:$0xff] %vm4682_vm0, %v5297_v0  ;;  %vm5196_vm15 = vcmp.ge.f32.partialorder %v15915_v53, 0.0 }
 0x579   :  { %19213 = vst [vmem:[#allocation206_spill] sm:$0xff] %v16222_v2  ;;  %v16239_v2 = vmul.f32 0.01, %v15918_v10  ;;  %v16269_v51 = vmul.f32 0.01, %v15930_v25  ;;  %5362 = vst.msk [vmem:[#allocation2 + $0x60] sm:$0xff] %vm4682_vm0, %v5298_v49 }
 0x57a   :  { %v16272_v38 = vmul.f32 0.01, %v15933_v3  ;;  %vm5200_vm1 = vcmp.ge.f32.partialorder %v15927_v45, 0.0  ;;  %v16287_v18 = vmul.f32 0.01, %v15939_v34  ;;  %v19220_v11 = vld [vmem:[#allocation83_spill] sm:$0xff] }
 0x57b   :  { %19214 = vst [vmem:[#allocation86_spill] sm:$0xff] %v16239_v2  ;;  %v16257_v2 = vmul.f32 0.01, %v15927_v45  ;;  %v16290_v0 = vmul.f32 0.01, %v15942_v31  ;;  %v5300_v52 = vsel %vm5172_vm3, %v19220_v11, %v16117_v20  ;;  %5363 = vst.msk [vmem:[#allocation2 + $0x68] sm:$0xff] %vm4682_vm0, %v5299_v35  ;;  %v5301_v20 = vsel %vm5173_vm4, %v16066_v15, %v16120_v39 }
 0x57c   :  { %19217 = vst [vmem:[#allocation209_spill] sm:$0xff] %v16287_v18  ;;  %vm5204_vm2 = vcmp.ge.f32.partialorder %v15939_v34, 0.0  ;;  %v19221_v49 = vld [vmem:[#allocation190_spill] sm:$0xff]  ;;  %v19223_v18 = vld [vmem:[#allocation191_spill] sm:$0xff]  ;;  %5364 = vst.msk [vmem:[#allocation2 + $0x70] sm:$0xff] %vm4682_vm0, %v5300_v52  ;;  %v5302_v15 = vsel %vm5174_vm5, %v16069_v14, %v16126_v4  ;;  %vm19244_vm8 = vcmp.ge.f32.partialorder %v16081_v30, 0.0 }
 0x57d   :  { %19215 = vst [vmem:[#allocation207_spill] sm:$0xff] %v16257_v2  ;;  %v16275_v2 = vmul.f32 0.01, %v15936_v24  ;;  %19218 = vst [vmem:[#allocation88_spill] sm:$0xff] %v16290_v0  ;;  %v16305_v0 = vmul.f32 0.01, %v19221_v49 }
 0x57e   :  { %v19225_v24 = vld [vmem:[#allocation192_spill] sm:$0xff]  ;;  %vm5208_vm3 = vcmp.ge.f32.partialorder %v19223_v18, 0.0  ;;  %v19227_v35 = vld [vmem:[#allocation193_spill] sm:$0xff]  ;;  %v19228_v11 = vld [vmem:[#allocation194_spill] sm:$0xff]  ;;  %5365 = vst.msk [vmem:[#allocation2 + $0x78] sm:$0xff] %vm4682_vm0, %v5301_v20  ;;  %vm19246_vm9 = vcmp.ge.f32.partialorder %v16089_v43, 0.0 }
 0x57f   :  { %19216 = vst [vmem:[#allocation208_spill] sm:$0xff] %v16275_v2  ;;  %v16293_v2 = vmul.f32 0.01, %v15945_v16  ;;  %19222 = vst [vmem:[#allocation90_spill] sm:$0xff] %v16305_v0  ;;  %v16311_v3 = vmul.f32 0.01, %v19225_v24 }
 0x580   :  { %v19231_v49 = vld [vmem:[#allocation195_spill] sm:$0xff]  ;;  %v19233_v39 = vld [vmem:[#allocation196_spill] sm:$0xff]  ;;  %v19234_v52 = vld [vmem:[#allocation197_spill] sm:$0xff]  ;;  %5366 = vst.msk [vmem:[#allocation2 + $0x80] sm:$0xff] %vm4682_vm0, %v5302_v15 }
 0x581   :  { %19219 = vst [vmem:[#allocation89_spill] sm:$0xff] %v16293_v2  ;;  %v16308_v2 = vmul.f32 0.01, %v19223_v18  ;;  %19226 = vst [vmem:[#allocation14_spill] sm:$0xff] %v16311_v3  ;;  %v16326_v3 = vmul.f32 0.01, %v19228_v11 }
 0x582   :  { %v16329_v0 = vmul.f32 0.01, %v19231_v49  ;;  %vm5212_vm4 = vcmp.ge.f32.partialorder %v19231_v49, 0.0  ;;  %v16341_v11 = vmul.f32 0.01, %v19233_v39  ;;  %v19237_v14 = vld [vmem:[#allocation84_spill] sm:$0xff] }
 0x583   :  { %19224 = vst [vmem:[#allocation210_spill] sm:$0xff] %v16308_v2  ;;  %v16323_v2 = vmul.f32 0.01, %v19227_v35  ;;  %19230 = vst [vmem:[#allocation222_spill] sm:$0xff] %v16326_v3  ;;  %v19235_v35 = vld [vmem:[#allocation198_spill] sm:$0xff]  ;;  %v5303_v4 = vsel %vm5175_vm6, %v16072_v7, %v19237_v14  ;;  %v19238_v20 = vld [vmem:[#allocation199_spill] sm:$0xff]  ;;  %v5304_v7 = vsel %vm5176_vm7, %v16075_v60, %v16132_v17  ;;  %v5308_v17 = vsel %vm5180_vm11, %v15867_v37, %v16152_v50 }
 0x584   :  { %19232 = vst [vmem:[#allocation15_spill] sm:$0xff] %v16329_v0  ;;  %v16344_v0 = vmul.f32 0.01, %v19234_v52  ;;  %v16347_v3 = vmul.f32 0.01, %v19235_v35  ;;  %vm5216_vm5 = vcmp.ge.f32.partialorder %v19238_v20, 0.0  ;;  %v5312_v37 = vsel %vm5184_vm12, %v15879_v44, %v16169_v6 }
 0x585   :  { %19229 = vst [vmem:[#allocation211_spill] sm:$0xff] %v16323_v2  ;;  %v19239_v49 = vld [vmem:[#allocation200_spill] sm:$0xff]  ;;  %v19240_v2 = vld [vmem:[#allocation201_spill] sm:$0xff]  ;;  %v19241_v39 = vld [vmem:[#allocation202_spill] sm:$0xff]  ;;  %v16359_v52 = vmul.f32 0.01, %v19238_v20 }
 0x586   :  { %19236 = vst [vmem:[#allocation16_spill] sm:$0xff] %v16347_v3  ;;  %vm5217_vm10 = vcmp.ge.f32.partialorder %v19239_v49, 0.0  ;;  %v16362_v35 = vmul.f32 0.01, %v19239_v49  ;;  %v16365_v3 = vmul.f32 0.01, %v19240_v2  ;;  %v5306_v2 = vsel %vm19244_vm8, %v16081_v30, %v16141_v32 }
 0x587   :  { %5367 = vst.msk [vmem:[#allocation2 + $0x88] sm:$0xff] %vm4682_vm0, %v5303_v4  ;;  %v16373_v15 = vmul.f32 0.01, %v19241_v39  ;;  %vm19243_vm6 = vcmp.ge.f32.partialorder %v16078_v59, 0.0  ;;  %5368 = vst.msk [vmem:[#allocation2 + $0x90] sm:$0xff] %vm4682_vm0, %v5304_v7  ;;  %vm19247_vm7 = vcmp.ge.f32.partialorder %v15870_v9, 0.0 }
 0x588   :  { %19242 = vst [vmem:[#allocation17_spill] sm:$0xff] %v16365_v3  ;;  %v5305_v14 = vsel %vm19243_vm6, %v16078_v59, %v16138_v29  ;;  %v19245_v3 = vld [vmem:[#allocation203_spill] sm:$0xff]  ;;  %v5309_v59 = vsel %vm19247_vm7, %v15870_v9, %v16155_v12  ;;  %v19248_v29 = vld [vmem:[#allocation85_spill] sm:$0xff]  ;;  %vm19249_vm8 = vcmp.ge.f32.partialorder %v15873_v19, 0.0  ;;  %5370 = vst.msk [vmem:[#allocation2 + $0xa0] sm:$0xff] %vm4682_vm0, %v5306_v2  ;;  %vm19251_vm11 = vcmp.ge.f32.partialorder %v15882_v41, 0.0 }
 0x589   :  { %v5307_v60 = vsel %vm19246_vm9, %v16089_v43, %v19245_v3  ;;  %v5310_v30 = vsel %vm19249_vm8, %v15873_v19, %v19248_v29  ;;  %vm19250_vm9 = vcmp.ge.f32.partialorder %v15876_v8, 0.0  ;;  %5369 = vst.msk [vmem:[#allocation2 + $0x98] sm:$0xff] %vm4682_vm0, %v5305_v14  ;;  %v5313_v9 = vsel %vm19251_vm11, %v15882_v41, %v16172_v22  ;;  %5372 = vst.msk [vmem:[#allocation2 + $0xb0] sm:$0xff] %vm4682_vm0, %v5308_v17  ;;  %v19254_v44 = vld [vmem:[#allocation204_spill] sm:$0xff]  ;;  %v19257_v43 = vld [vmem:[#allocation205_spill] sm:$0xff] }
 0x58a   :  { %v5311_v3 = vsel %vm19250_vm9, %v15876_v8, %v16166_v42  ;;  %5371 = vst.msk [vmem:[#allocation2 + $0xa8] sm:$0xff] %vm4682_vm0, %v5307_v60  ;;  %vm19252_vm6 = vcmp.ge.f32.partialorder %v15885_v63, 0.0  ;;  %vm19253_vm7 = vcmp.ge.f32.partialorder %v15888_v23, 0.0  ;;  %5373 = vst.msk [vmem:[#allocation2 + $0xb8] sm:$0xff] %vm4682_vm0, %v5309_v59  ;;  %v5316_v41 = vsel %vm5188_vm13, %v15891_v46, %v19254_v44  ;;  %v19271_v6 = vld [vmem:[#allocation208_spill] sm:$0xff]  ;;  %v19272_v22 = vld [vmem:[#allocation189_spill] sm:$0xff] }
 0x58b   :  { %v5314_v19 = vsel %vm19252_vm6, %v15885_v63, %v16182_v28  ;;  %v5315_v8 = vsel %vm19253_vm7, %v15888_v23, %v16185_v56  ;;  %5374 = vst.msk [vmem:[#allocation2 + $0xc0] sm:$0xff] %vm4682_vm0, %v5310_v30  ;;  %5375 = vst.msk [vmem:[#allocation2 + $0xc8] sm:$0xff] %vm4682_vm0, %v5311_v3  ;;  %vm19255_vm12 = vcmp.ge.f32.partialorder %v15894_v21, 0.0  ;;  %vm19256_vm8 = vcmp.ge.f32.partialorder %v15897_v5, 0.0  ;;  %v19275_v2 = vld [vmem:[#allocation88_spill] sm:$0xff]  ;;  %v19286_v7 = vld [vmem:[#allocation193_spill] sm:$0xff] }
 0x58c   :  { %v5317_v63 = vsel %vm19255_vm12, %v15894_v21, %v16199_v57  ;;  %v5318_v23 = vsel %vm19256_vm8, %v15897_v5, %v16202_v54  ;;  %vm19258_vm9 = vcmp.ge.f32.partialorder %v15900_v61, 0.0  ;;  %5376 = vst.msk [vmem:[#allocation2 + $0xd0] sm:$0xff] %vm4682_vm0, %v5312_v37  ;;  %5377 = vst.msk [vmem:[#allocation2 + $0xd8] sm:$0xff] %vm4682_vm0, %v5313_v9  ;;  %v5320_v46 = vsel %vm5192_vm14, %v15903_v62, %v16216_v26  ;;  %v19260_v5 = vld [vmem:[#allocation206_spill] sm:$0xff]  ;;  %v19277_v54 = vld [vmem:[#allocation89_spill] sm:$0xff] }
 0x58d   :  { %v5319_v32 = vsel %vm19258_vm9, %v15900_v61, %v19257_v43  ;;  %5378 = vst.msk [vmem:[#allocation2 + $0xe0] sm:$0xff] %vm4682_vm0, %v5314_v19  ;;  %5379 = vst.msk [vmem:[#allocation2 + $0xe8] sm:$0xff] %vm4682_vm0, %v5315_v8  ;;  %vm19259_vm13 = vcmp.ge.f32.partialorder %v15906_v48, 0.0  ;;  %vm19261_vm11 = vcmp.ge.f32.partialorder %v15909_v1, 0.0  ;;  %vm19262_vm6 = vcmp.ge.f32.partialorder %v15912_v40, 0.0  ;;  %v19285_v4 = vld [vmem:[#allocation211_spill] sm:$0xff] }
 0x58e   :  { %v5321_v21 = vsel %vm19259_vm13, %v15906_v48, %v16219_v27  ;;  %v5322_v61 = vsel %vm19261_vm11, %v15909_v1, %v19260_v5  ;;  %v5323_v50 = vsel %vm19262_vm6, %v15912_v40, %v16233_v58  ;;  %5380 = vst.msk [vmem:[#allocation2 + $0xf0] sm:$0xff] %vm4682_vm0, %v5316_v41  ;;  %5381 = vst.msk [vmem:[#allocation2 + $0xf8] sm:$0xff] %vm4682_vm0, %v5317_v63  ;;  %v19263_v48 = vld [vmem:[#allocation86_spill] sm:$0xff]  ;;  %vm19264_vm14 = vcmp.ge.f32.partialorder %v15918_v10, 0.0  ;;  %v19291_v30 = vld [vmem:[#allocation15_spill] sm:$0xff] }
 0x58f   :  { %5382 = vst.msk [vmem:[#allocation2 + $0x100] sm:$0xff] %vm4682_vm0, %v5318_v23  ;;  %5383 = vst.msk [vmem:[#allocation2 + $0x108] sm:$0xff] %vm4682_vm0, %v5319_v32  ;;  %v5324_v62 = vsel %vm5196_vm15, %v15915_v53, %v16236_v33  ;;  %v5325_v1 = vsel %vm19264_vm14, %v15918_v10, %v19263_v48  ;;  %vm19265_vm7 = vcmp.ge.f32.partialorder %v15921_v36, 0.0  ;;  %vm19266_vm12 = vcmp.ge.f32.partialorder %v15924_v55, 0.0  ;;  %v19267_v53 = vld [vmem:[#allocation207_spill] sm:$0xff]  ;;  %v19279_v27 = vld [vmem:[#allocation90_spill] sm:$0xff] }
 0x590   :  { %v5326_v40 = vsel %vm19265_vm7, %v15921_v36, %v16251_v47  ;;  %v5327_v12 = vsel %vm19266_vm12, %v15924_v55, %v16254_v13  ;;  %5384 = vst.msk [vmem:[#allocation2 + $0x110] sm:$0xff] %vm4682_vm0, %v5320_v46  ;;  %5385 = vst.msk [vmem:[#allocation2 + $0x118] sm:$0xff] %vm4682_vm0, %v5321_v21  ;;  %v5328_v10 = vsel %vm5200_vm1, %v15927_v45, %v19267_v53  ;;  %vm19268_vm15 = vcmp.ge.f32.partialorder %v15930_v25, 0.0  ;;  %v19269_v55 = vld [vmem:[#allocation188_spill] sm:$0xff]  ;;  %v19280_v58 = vld [vmem:[#allocation190_spill] sm:$0xff] }
 0x591   :  { %5386 = vst.msk [vmem:[#allocation2 + $0x120] sm:$0xff] %vm4682_vm0, %v5322_v61  ;;  %5387 = vst.msk [vmem:[#allocation2 + $0x128] sm:$0xff] %vm4682_vm0, %v5323_v50  ;;  %v5329_v36 = vsel %vm19268_vm15, %v15930_v25, %v16269_v51  ;;  %vm19270_vm8 = vcmp.ge.f32.partialorder %v19269_v55, 0.0  ;;  %vm19273_vm9 = vcmp.ge.f32.partialorder %v19272_v22, 0.0  ;;  %v16507_v45 = vld [vmem:[#allocation2 + $0x20] ss:$2 sm:$0xff]  ;;  %v5345_v46 = vsel %vm5217_vm10, %v19239_v49, %v16362_v35 }
 0x592   :  { %v5330_v42 = vsel %vm19270_vm8, %v19269_v55, %v16272_v38  ;;  %v5331_v28 = vsel %vm19273_vm9, %v19272_v22, %v19271_v6  ;;  %5388 = vst.msk [vmem:[#allocation2 + $0x130] sm:$0xff] %vm4682_vm0, %v5324_v62  ;;  %5389 = vst.msk [vmem:[#allocation2 + $0x138] sm:$0xff] %vm4682_vm0, %v5325_v1  ;;  %v19274_v25 = vld [vmem:[#allocation209_spill] sm:$0xff]  ;;  %vm19276_vm1 = vcmp.ge.f32.partialorder %v15942_v31, 0.0  ;;  %vm19278_vm13 = vcmp.ge.f32.partialorder %v15945_v16, 0.0  ;;  %v19283_v51 = vld [vmem:[#allocation14_spill] sm:$0xff] }
 0x593   :  { %5390 = vst.msk [vmem:[#allocation2 + $0x140] sm:$0xff] %vm4682_vm0, %v5326_v40  ;;  %5391 = vst.msk [vmem:[#allocation2 + $0x148] sm:$0xff] %vm4682_vm0, %v5327_v12  ;;  %v5332_v56 = vsel %vm5204_vm2, %v15939_v34, %v19274_v25  ;;  %v5333_v57 = vsel %vm19276_vm1, %v15942_v31, %v19275_v2  ;;  %v5334_v26 = vsel %vm19278_vm13, %v15945_v16, %v19277_v54  ;;  %vm19281_vm11 = vcmp.ge.f32.partialorder %v19280_v58, 0.0  ;;  %v16529_v34 = vld [vmem:[#allocation2 + $0x40] ss:$2 sm:$0xff]  ;;  %v19282_v16 = vld [vmem:[#allocation210_spill] sm:$0xff] }
 0x594   :  { %v5335_v33 = vsel %vm19281_vm11, %v19280_v58, %v19279_v27  ;;  %5392 = vst.msk [vmem:[#allocation2 + $0x150] sm:$0xff] %vm4682_vm0, %v5328_v10  ;;  %5393 = vst.msk [vmem:[#allocation2 + $0x158] sm:$0xff] %vm4682_vm0, %v5329_v36  ;;  %v16531_v31 = vld [vmem:[#allocation2 + $0x21] ss:$2 sm:$0xff]  ;;  %v5336_v13 = vsel %vm5208_vm3, %v19223_v18, %v19282_v16  ;;  %vm19284_vm2 = vcmp.ge.f32.partialorder %v19225_v24, 0.0  ;;  %vm19287_vm6 = vcmp.ge.f32.partialorder %v19286_v7, 0.0 }
 0x595   :  { %5394 = vst.msk [vmem:[#allocation2 + $0x160] sm:$0xff] %vm4682_vm0, %v5330_v42  ;;  %5395 = vst.msk [vmem:[#allocation2 + $0x168] sm:$0xff] %vm4682_vm0, %v5331_v28  ;;  %v16533_v47 = vld [vmem:[#allocation2 + $0x41] ss:$2 sm:$0xff]  ;;  %v5337_v38 = vsel %vm19284_vm2, %v19225_v24, %v19283_v51  ;;  %v5338_v14 = vsel %vm19287_vm6, %v19286_v7, %v19285_v4  ;;  %v19288_v60 = vld [vmem:[#allocation222_spill] sm:$0xff]  ;;  %vm19303_vm15 = vcmp.ge.f32.partialorder %v19241_v39, 0.0 }
 0x596   :  { %v19289_v17 = vld [vmem:[#allocation194_spill] sm:$0xff]  ;;  %5396 = vst.msk [vmem:[#allocation2 + $0x170] sm:$0xff] %vm4682_vm0, %v5332_v56  ;;  %5397 = vst.msk [vmem:[#allocation2 + $0x178] sm:$0xff] %vm4682_vm0, %v5333_v57  ;;  %v16555_v18 = vld [vmem:[#allocation2 + $0x60] ss:$2 sm:$0xff]  ;;  %v5347_v50 = vsel %vm19303_vm15, %v19241_v39, %v16373_v15  ;;  %v5542_v39 = vmax.f32 %v16507_v45, %v16531_v31  ;;  %vm10336_vm10 = vmmov 0  }
 0x597   :  { %vm19290_vm14 = vcmp.ge.f32.partialorder %v19289_v17, 0.0  ;;  %5398 = vst.msk [vmem:[#allocation2 + $0x180] sm:$0xff] %vm4682_vm0, %v5334_v26  ;;  %5399 = vst.msk [vmem:[#allocation2 + $0x188] sm:$0xff] %vm4682_vm0, %v5335_v33  ;;  %v16557_v24 = vld [vmem:[#allocation2 + $0x61] ss:$2 sm:$0xff]  ;;  %v19298_v63 = vld [vmem:[#allocation198_spill] sm:$0xff] }
 0x598   :  { %v5339_v59 = vsel %vm19290_vm14, %v19289_v17, %v19288_v60  ;;  %v5480_v29 = vld [vmem:[#allocation2 + $0x30] ss:$2 sm:$0xff]  ;;  %v19293_v9 = vld [vmem:[#allocation196_spill] sm:$0xff]  ;;  %vm19299_vm12 = vcmp.ge.f32.partialorder %v19298_v63, 0.0  ;;  %5400 = vst.msk [vmem:[#allocation2 + $0x190] sm:$0xff] %vm4682_vm0, %v5336_v13  ;;  %5401 = vst.msk [vmem:[#allocation2 + $0x198] sm:$0xff] %vm4682_vm0, %v5337_v38  ;;  %v5544_v15 = vmax.f32 %v16555_v18, %v16557_v24 }
 0x599   :  { %v19292_v3 = vld [vmem:[#allocation195_spill] sm:$0xff]  ;;  %vm19294_vm3 = vcmp.ge.f32.partialorder %v19293_v9, 0.0  ;;  %v19295_v8 = vld [vmem:[#allocation197_spill] sm:$0xff]  ;;  %v19297_v41 = vld [vmem:[#allocation16_spill] sm:$0xff]  ;;  %5402 = vst.msk [vmem:[#allocation2 + $0x1a0] sm:$0xff] %vm4682_vm0, %v5338_v14 }
 0x59a   :  { %v5340_v37 = vsel %vm5212_vm4, %v19292_v3, %v19291_v30  ;;  %v5341_v19 = vsel %vm19294_vm3, %v19293_v9, %v16341_v11  ;;  %vm19296_vm7 = vcmp.ge.f32.partialorder %v19295_v8, 0.0  ;;  %v5343_v23 = vsel %vm19299_vm12, %v19298_v63, %v19297_v41  ;;  %5403 = vst.msk [vmem:[#allocation2 + $0x1a8] sm:$0xff] %vm4682_vm0, %v5339_v59  ;;  %v5482_v43 = vld [vmem:[#allocation2 + $0x50] ss:$2 sm:$0xff]  ;;  %v5512_v11 = vld [vmem:[#allocation2 + $0x31] ss:$2 sm:$0xff] }
 0x59b   :  { %v5342_v44 = vsel %vm19296_vm7, %v19295_v8, %v16344_v0  ;;  %v5514_v32 = vld [vmem:[#allocation2 + $0x51] ss:$2 sm:$0xff]  ;;  %v5344_v0 = vsel %vm5216_vm5, %v19238_v20, %v16359_v52  ;;  %5404 = vst.msk [vmem:[#allocation2 + $0x1b0] sm:$0xff] %vm4682_vm0, %v5340_v37  ;;  %5405 = vst.msk [vmem:[#allocation2 + $0x1b8] sm:$0xff] %vm4682_vm0, %v5341_v19  ;;  %v5484_v52 = vld [vmem:[#allocation2 + $0x70] ss:$2 sm:$0xff]  ;;  %v5543_v20 = vmax.f32 %v16529_v34, %v16533_v47 }
 0x59c   :  { %v19300_v21 = vld [vmem:[#allocation17_spill] sm:$0xff]  ;;  %5406 = vst.msk [vmem:[#allocation2 + $0x1c0] sm:$0xff] %vm4682_vm0, %v5342_v44  ;;  %5407 = vst.msk [vmem:[#allocation2 + $0x1c8] sm:$0xff] %vm4682_vm0, %v5343_v23  ;;  %v5558_v2 = vmax.f32 %v5480_v29, %v5512_v11  ;;  %v5559_v57 = vmax.f32 %v5482_v43, %v5514_v32 }
 0x59d   :  { %v19301_v5 = vld [vmem:[#allocation201_spill] sm:$0xff]  ;;  %5408 = vst.msk [vmem:[#allocation2 + $0x1d0] sm:$0xff] %vm4682_vm0, %v5344_v0  ;;  %5409 = vst.msk [vmem:[#allocation2 + $0x1d8] sm:$0xff] %vm4682_vm0, %v5345_v46 }
 0x59e   :  { %vm19302_vm4 = vcmp.ge.f32.partialorder %v19301_v5, 0.0  ;;  %v5516_v49 = vld [vmem:[#allocation2 + $0x71] ss:$2 sm:$0xff]  ;;  %v5414_v35 = vld [vmem:[#allocation2] ss:$2 sm:$0xff]  ;;  %5411 = vst.msk [vmem:[#allocation2 + $0x1e8] sm:$0xff] %vm4682_vm0, %v5347_v50  ;;  %v5574_v4 = vmax.f32 %v5542_v39, %v5558_v2  ;;  %v5575_v7 = vmax.f32 %v5543_v20, %v5559_v57 }
 0x59f   :  { %v5346_v61 = vsel %vm19302_vm4, %v19301_v5, %v19300_v21  ;;  %v5446_v62 = vld [vmem:[#allocation2 + $0x1] ss:$2 sm:$0xff]  ;;  %v5478_v48 = vld [vmem:[#allocation2 + $0x10] ss:$2 sm:$0xff]  ;;  %v5510_v1 = vld [vmem:[#allocation2 + $0x11] ss:$2 sm:$0xff]  ;;  %v5560_v54 = vmax.f32 %v5484_v52, %v5516_v49 }
 0x5a0   :  { %5410 = vst.msk [vmem:[#allocation2 + $0x1e0] sm:$0xff] %vm4682_vm0, %v5346_v61  ;;  %v16609_v40 = vld [vmem:[#allocation2 + $0x1f0] ss:$2 sm:$0xff]  ;;  %v16611_v12 = vld [vmem:[#allocation2 + $0x1f1] ss:$2 sm:$0xff]  ;;  %v5541_v33 = vmax.f32 %v5414_v35, %v5446_v62  ;;  %v5557_v34 = vmax.f32 %v5478_v48, %v5510_v1  ;;  %5632 = vst.msk [vmem:[#allocation3 + $0x21] sm:$0xff] %vm4682_vm0, %v5574_v4 }
 0x5a1   :  { %v16613_v53 = vld [vmem:[#allocation2 + $0x80] ss:$2 sm:$0xff]  ;;  %v16619_v55 = vld [vmem:[#allocation2 + $0x81] ss:$2 sm:$0xff]  ;;  %v5486_v13 = vld [vmem:[#allocation2 + $0x90] ss:$2 sm:$0xff]  ;;  %v5576_v14 = vmax.f32 %v5544_v15, %v5560_v54  ;;  %v5572_v3 = vmax.f32 %v16609_v40, %v16611_v12 }
 0x5a2   :  { %v16615_v10 = vld [vmem:[#allocation2 + $0xa0] ss:$2 sm:$0xff]  ;;  %v16621_v42 = vld [vmem:[#allocation2 + $0xa1] ss:$2 sm:$0xff]  ;;  %v16647_v51 = vld [vmem:[#allocation2 + $0xb0] ss:$2 sm:$0xff]  ;;  %v5573_v30 = vmax.f32 %v5541_v33, %v5557_v34  ;;  %v5545_v41 = vmax.f32 %v16613_v53, %v16619_v55 }
 0x5a3   :  { %v16617_v36 = vld [vmem:[#allocation2 + $0xc0] ss:$2 sm:$0xff]  ;;  %v16623_v6 = vld [vmem:[#allocation2 + $0xc1] ss:$2 sm:$0xff]  ;;  %v16649_v38 = vld [vmem:[#allocation2 + $0xd0] ss:$2 sm:$0xff]  ;;  %v5546_v63 = vmax.f32 %v16615_v10, %v16621_v42 }
 0x5a4   :  { %v16625_v22 = vld [vmem:[#allocation2 + $0xe0] ss:$2 sm:$0xff]  ;;  %v16631_v25 = vld [vmem:[#allocation2 + $0xe1] ss:$2 sm:$0xff]  ;;  %v16657_v18 = vld [vmem:[#allocation2 + $0xf0] ss:$2 sm:$0xff]  ;;  %v5547_v23 = vmax.f32 %v16617_v36, %v16623_v6 }
 0x5a5   :  { %v16627_v28 = vld [vmem:[#allocation2 + $0x100] ss:$2 sm:$0xff]  ;;  %v16633_v56 = vld [vmem:[#allocation2 + $0x101] ss:$2 sm:$0xff]  ;;  %v16659_v24 = vld [vmem:[#allocation2 + $0x110] ss:$2 sm:$0xff]  ;;  %v5548_v46 = vmax.f32 %v16625_v22, %v16631_v25 }
 0x5a6   :  { %v16629_v45 = vld [vmem:[#allocation2 + $0x120] ss:$2 sm:$0xff]  ;;  %v16637_v27 = vld [vmem:[#allocation2 + $0x121] ss:$2 sm:$0xff]  ;;  %v16661_v29 = vld [vmem:[#allocation2 + $0x130] ss:$2 sm:$0xff]  ;;  %v5549_v21 = vmax.f32 %v16627_v28, %v16633_v56 }
 0x5a7   :  { %v16635_v26 = vld [vmem:[#allocation2 + $0x140] ss:$2 sm:$0xff]  ;;  %v16639_v58 = vld [vmem:[#allocation2 + $0x141] ss:$2 sm:$0xff]  ;;  %v5498_v19 = vld [vmem:[#allocation2 + $0x150] ss:$2 sm:$0xff]  ;;  %v5550_v5 = vmax.f32 %v16629_v45, %v16637_v27 }
 0x5a8   :  { %v16641_v31 = vld [vmem:[#allocation2 + $0x160] ss:$2 sm:$0xff]  ;;  %v16645_v16 = vld [vmem:[#allocation2 + $0x161] ss:$2 sm:$0xff]  ;;  %v5500_v8 = vld [vmem:[#allocation2 + $0x170] ss:$2 sm:$0xff]  ;;  %v5551_v61 = vmax.f32 %v16635_v26, %v16639_v58 }
 0x5a9   :  { %v16643_v47 = vld [vmem:[#allocation2 + $0x180] ss:$2 sm:$0xff]  ;;  %v16653_v17 = vld [vmem:[#allocation2 + $0x181] ss:$2 sm:$0xff]  ;;  %v16669_v44 = vld [vmem:[#allocation2 + $0x190] ss:$2 sm:$0xff]  ;;  %v5552_v35 = vmax.f32 %v16641_v31, %v16645_v16 }
 0x5aa   :  { %v16651_v60 = vld [vmem:[#allocation2 + $0x1a0] ss:$2 sm:$0xff]  ;;  %v16655_v59 = vld [vmem:[#allocation2 + $0x1a1] ss:$2 sm:$0xff]  ;;  %5633 = vst.msk [vmem:[#allocation3 + $0x31] sm:$0xff] %vm4682_vm0, %v5575_v7  ;;  %5634 = vst.msk [vmem:[#allocation3 + $0x41] sm:$0xff] %vm4682_vm0, %v5576_v14  ;;  %v5553_v39 = vmax.f32 %v16643_v47, %v16653_v17 }
 0x5ab   :  { %v16665_v37 = vld [vmem:[#allocation2 + $0x1c0] ss:$2 sm:$0xff]  ;;  %v16667_v9 = vld [vmem:[#allocation2 + $0x1c1] ss:$2 sm:$0xff]  ;;  %v5504_v32 = vld [vmem:[#allocation2 + $0x1b0] ss:$2 sm:$0xff]  ;;  %v5554_v20 = vmax.f32 %v16651_v60, %v16655_v59 }
 0x5ac   :  { %v5444_v43 = vld [vmem:[#allocation2 + $0x1e0] ss:$2 sm:$0xff]  ;;  %v5476_v11 = vld [vmem:[#allocation2 + $0x1e1] ss:$2 sm:$0xff]  ;;  %v5506_v0 = vld [vmem:[#allocation2 + $0x1d0] ss:$2 sm:$0xff]  ;;  %v5555_v40 = vmax.f32 %v16665_v37, %v16667_v9 }
 0x5ad   :  { %5631 = vst.msk [vmem:[#allocation3 + $0x11] sm:$0xff] %vm4682_vm0, %v5573_v30  ;;  %v5518_v50 = vld [vmem:[#allocation2 + $0x91] ss:$2 sm:$0xff]  ;;  %v5556_v15 = vmax.f32 %v5444_v43, %v5476_v11  ;;  %v5679_v31 = vld [vmem:[#allocation3 + $0x1] sm:$0xff]  ;;  %vm7668_vm4 = vcmask 1041409  }
 0x5ae   :  { %v5520_v52 = vld [vmem:[#allocation2 + $0xb1] ss:$2 sm:$0xff]  ;;  %v5561_v12 = vmax.f32 %v5486_v13, %v5518_v50  ;;  %v5647_v47 = vld [vmem:[#allocation3] sm:$0xff]  ;;  %v10206_v25 = vld [vmem:[%s17938_s2 + $0x48] sm:$0xff]  }
 0x5af   :  { %v5522_v49 = vld [vmem:[#allocation2 + $0xd1] ss:$2 sm:$0xff]  ;;  %v5562_v53 = vmax.f32 %v16647_v51, %v5520_v52  ;;  %v5588_v56 = vmax.f32 %v5556_v15, %v5572_v3  ;;  %v16704_v51 = vld [vmem:[#allocation3 + $0x21] sm:$0xff] }
 0x5b0   :  { %v5524_v62 = vld [vmem:[#allocation2 + $0xf1] ss:$2 sm:$0xff]  ;;  %v5563_v10 = vmax.f32 %v16649_v38, %v5522_v49  ;;  %v5577_v58 = vmax.f32 %v5545_v41, %v5561_v12  ;;  %v16708_v4 = vld [vmem:[#allocation3 + $0x20] sm:$0xff] }
 0x5b1   :  { %v5526_v48 = vld [vmem:[#allocation2 + $0x111] ss:$2 sm:$0xff]  ;;  %v5564_v6 = vmax.f32 %v16657_v18, %v5524_v62  ;;  %v5578_v16 = vmax.f32 %v5546_v63, %v5562_v53  ;;  %5646 = vst.msk [vmem:[#allocation3 + $0x121] sm:$0xff] %vm4682_vm0, %v5588_v56  ;;  %v16753_v43 = vld [vmem:[#allocation3 + $0x40] sm:$0xff] }
 0x5b2   :  { %v5528_v1 = vld [vmem:[#allocation2 + $0x131] ss:$2 sm:$0xff]  ;;  %v5565_v28 = vmax.f32 %v16659_v24, %v5526_v48  ;;  %v5579_v13 = vmax.f32 %v5547_v23, %v5563_v10  ;;  %5635 = vst.msk [vmem:[#allocation3 + $0x51] sm:$0xff] %vm4682_vm0, %v5577_v58  ;;  %v16751_v23 = vld [vmem:[#allocation3 + $0x41] sm:$0xff] }
 0x5b3   :  { %v5530_v36 = vld [vmem:[#allocation2 + $0x151] ss:$2 sm:$0xff]  ;;  %v5566_v45 = vmax.f32 %v16661_v29, %v5528_v1  ;;  %5636 = vst.msk [vmem:[#allocation3 + $0x61] sm:$0xff] %vm4682_vm0, %v5578_v16  ;;  %v5580_v63 = vmax.f32 %v5548_v46, %v5564_v6  ;;  %v5687_v46 = vld [vmem:[#allocation3 + $0xa1] sm:$0xff] }
 0x5b4   :  { %v5532_v55 = vld [vmem:[#allocation2 + $0x171] ss:$2 sm:$0xff]  ;;  %v5567_v54 = vmax.f32 %v5498_v19, %v5530_v36  ;;  %v5581_v7 = vmax.f32 %v5549_v21, %v5565_v28  ;;  %5637 = vst.msk [vmem:[#allocation3 + $0x71] sm:$0xff] %vm4682_vm0, %v5579_v13  ;;  %v5655_v21 = vld [vmem:[#allocation3 + $0xa0] sm:$0xff] }
 0x5b5   :  { %v5534_v42 = vld [vmem:[#allocation2 + $0x191] ss:$2 sm:$0xff]  ;;  %v5568_v26 = vmax.f32 %v5500_v8, %v5532_v55  ;;  %v5582_v14 = vmax.f32 %v5550_v5, %v5566_v45  ;;  %5638 = vst.msk [vmem:[#allocation3 + $0x81] sm:$0xff] %vm4682_vm0, %v5580_v63  ;;  %v10210_v5 = vld [vmem:[%s17938_s2 + $0x68] sm:$0xff]   ;;  %v10209_v12 = vld [vmem:[%s17938_s2 + $0x40] sm:$0xff]  }
 0x5b6   :  { %v5536_v2 = vld [vmem:[#allocation2 + $0x1b1] ss:$2 sm:$0xff]  ;;  %v5569_v27 = vmax.f32 %v16669_v44, %v5534_v42  ;;  %v5583_v60 = vmax.f32 %v5551_v61, %v5567_v54  ;;  %5639 = vst.msk [vmem:[#allocation3 + $0xb1] sm:$0xff] %vm4682_vm0, %v5581_v7  ;;  %v10211_v53 = vld [vmem:[%s17938_s2 + $0x60] sm:$0xff]   ;;  %v10214_v63 = vld [vmem:[%s17938_s2 + $0x88] sm:$0xff]  }
 0x5b7   :  { %v5538_v57 = vld [vmem:[#allocation2 + $0x1d1] ss:$2 sm:$0xff]  ;;  %v5570_v33 = vmax.f32 %v5504_v32, %v5536_v2  ;;  %v5584_v17 = vmax.f32 %v5552_v35, %v5568_v26  ;;  %5640 = vst.msk [vmem:[#allocation3 + $0xc1] sm:$0xff] %vm4682_vm0, %v5582_v14  ;;  %v6001_v16 = vld [vmem:[#allocation3 + $0x2] sm:$0xff] }
 0x5b8   :  { %v5571_v34 = vmax.f32 %v5506_v0, %v5538_v57  ;;  %v16706_v38 = vld [vmem:[#allocation3 + $0x31] sm:$0xff]  ;;  %v5585_v30 = vmax.f32 %v5553_v39, %v5569_v27  ;;  %5641 = vst.msk [vmem:[#allocation3 + $0xd1] sm:$0xff] %vm4682_vm0, %v5583_v60 }
 0x5b9   :  { %v16711_v59 = vld [vmem:[#allocation3 + $0x11] sm:$0xff]  ;;  %v16717_v24 = vpack.c.bf16 %v16706_v38, %v16704_v51  ;;  %v5586_v3 = vmax.f32 %v5554_v20, %v5570_v33  ;;  %5642 = vst.msk [vmem:[#allocation3 + $0xe1] sm:$0xff] %vm4682_vm0, %v5584_v17 }
 0x5ba   :  { %v16713_v18 = vld [vmem:[#allocation3 + $0x10] sm:$0xff]  ;;  %v5587_v37 = vmax.f32 %v5555_v40, %v5571_v34  ;;  %v5695_v9 = vpack.c.bf16 %v16711_v59, %v5679_v31  ;;  %5643 = vst.msk [vmem:[#allocation3 + $0xf1] sm:$0xff] %vm4682_vm0, %v5585_v30  ;;  %v10310_v22 = vld [vmem:[%s17938_s2 + $0x58] sm:$0xff]   ;;  %v16780_v52 = vld [vmem:[#allocation3 + $0x61] sm:$0xff] }
 0x5bb   :  { %v16719_v29 = vld [vmem:[#allocation3 + $0x30] sm:$0xff]  ;;  %v5663_v19 = vpack.c.bf16 %v16713_v18, %v5647_v47  ;;  %5644 = vst.msk [vmem:[#allocation3 + $0x101] sm:$0xff] %vm4682_vm0, %v5586_v3  ;;  %v10311_v11 = vld [vmem:[%s17938_s2 + $0x78] sm:$0xff]   ;;  %v16784_v35 = vld [vmem:[#allocation3 + $0x60] sm:$0xff]  ;;  %v6210_v17 = vpack.c.bf16 %v16708_v4, %v16713_v18 }
 0x5bc   :  { %v16727_v8 = vpack.c.bf16 %v16719_v29, %v16708_v4  ;;  %v10205_v44 = vld [vmem:[%s17938_s2 + $0x50] sm:$0xff]   ;;  %5645 = vst.msk [vmem:[#allocation3 + $0x111] sm:$0xff] %vm4682_vm0, %v5587_v37  ;;  %9790 = vmatprep.mubr.msk.bf16.mxu0 %vm4682_vm0, %v5695_v9  ;;  %v10212_v10 = vld [vmem:[%s17938_s2 + $0x98] sm:$0xff]   ;;  %v16891_v30 = vld [vmem:[#allocation3 + $0x22] sm:$0xff]  ;;  %v6211_v18 = vpack.c.bf16 %v16753_v43, %v16719_v29 }
 0x5bd   :  { %v10208_v41 = vld [vmem:[%s17938_s2 + $0x70] sm:$0xff]   ;;  %9814 = vmatprep.mubr.msk.bf16.mxu1 %vm4682_vm0, %v5663_v19  ;;  %9791 = vmatmul.mubr.msk.bf16.vlgmr.msra.gmra.mxu0 %vm4682_vm0, %v16717_v24  ;;  %v10215_v42 = vld [vmem:[%s17938_s2 + $0xb8] sm:$0xff]   ;;  %v16895_v37 = vld [vmem:[#allocation3 + $0x42] sm:$0xff] }
 0x5be   :  { %9815 = vmatmul.mubr.msk.bf16.vlgmr.msra.gmra.mxu1 %vm4682_vm0, %v16727_v8  ;;  %9831 = vmatpush3.bf16.msra.mxu0 %v10310_v22  ;;  %v16765_v32 = vld [vmem:[#allocation3 + $0x51] sm:$0xff]  ;;  %v16821_v36 = vld [vmem:[#allocation3 + $0xc1] sm:$0xff] }
 0x5bf   :  { %9855 = vmatpush3.bf16.msra.mxu1 %v10311_v11  ;;  %v16767_v0 = vld [vmem:[#allocation3 + $0x50] sm:$0xff]  ;;  %9832 = vmatprep.subr.bf16.mxu0 %v10205_v44  ;;  %v16774_v61 = vpack.c.bf16 %v16765_v32, %v16751_v23  ;;  %v16828_v6 = vld [vmem:[#allocation3 + $0xc0] sm:$0xff] }
 0x5c0   :  { %9856 = vmatprep.subr.bf16.mxu1 %v10208_v41  ;;  %v16778_v50 = vpack.c.bf16 %v16767_v0, %v16753_v43  ;;  %v16782_v49 = vld [vmem:[#allocation3 + $0x71] sm:$0xff]  ;;  %v16832_v45 = vld [vmem:[#allocation3 + $0xe1] sm:$0xff] }
 0x5c1   :  { %v16786_v39 = vld [vmem:[#allocation3 + $0x70] sm:$0xff]  ;;  %9794 = vmatprep.mubr.msk.bf16.mxu0 %vm4682_vm0, %v16774_v61  ;;  %v16798_v62 = vpack.c.bf16 %v16782_v49, %v16780_v52  ;;  %v16836_v2 = vld [vmem:[#allocation3 + $0xe0] sm:$0xff] }
 0x5c2   :  { %v16788_v20 = vld [vmem:[#allocation3 + $0xb1] sm:$0xff]  ;;  %9818 = vmatprep.mubr.msk.bf16.mxu1 %vm4682_vm0, %v16778_v50  ;;  %v16802_v48 = vpack.c.bf16 %v16786_v39, %v16784_v35  ;;  %9833 = vmatpush3.bf16.msra.mxu0 %v10205_v44  ;;  %v16864_v33 = vld [vmem:[#allocation3 + $0x101] sm:$0xff] }
 0x5c3   :  { %v16790_v15 = vld [vmem:[#allocation3 + $0xb0] sm:$0xff]  ;;  %9857 = vmatpush3.bf16.msra.mxu1 %v10208_v41  ;;  %v5699_v1 = vpack.c.bf16 %v16788_v20, %v5687_v46  ;;  %9834 = vmatprep.subr.bf16.mxu0 %v10206_v25  ;;  %v16868_v31 = vld [vmem:[#allocation3 + $0x100] sm:$0xff]  ;;  %v6212_v41 = vpack.c.bf16 %v16784_v35, %v16767_v0 }
 0x5c4   :  { %v5667_v40 = vpack.c.bf16 %v16790_v15, %v5655_v21  ;;  %9858 = vmatprep.subr.bf16.mxu1 %v10210_v5  ;;  %v16823_v55 = vld [vmem:[#allocation3 + $0xd1] sm:$0xff]  ;;  %v16926_v43 = vld [vmem:[#allocation3 + $0x62] sm:$0xff] }
 0x5c5   :  { %9795 = vmatmul.mubr.msk.bf16.gmra.mxu0 %vm4682_vm0, %v16798_v62  ;;  %v16830_v28 = vld [vmem:[#allocation3 + $0xd0] sm:$0xff]  ;;  %v16842_v54 = vpack.c.bf16 %v16823_v55, %v16821_v36  ;;  %v6009_v11 = vld [vmem:[#allocation3 + $0xa2] sm:$0xff] }
 0x5c6   :  { %9819 = vmatmul.mubr.msk.bf16.gmra.mxu1 %vm4682_vm0, %v16802_v48  ;;  %9798 = vmatprep.mubr.msk.bf16.mxu0 %vm4682_vm0, %v5699_v1  ;;  %v16834_v56 = vld [vmem:[#allocation3 + $0xf1] sm:$0xff]  ;;  %v16846_v26 = vpack.c.bf16 %v16830_v28, %v16828_v6  ;;  %v6214_v1 = vpack.c.bf16 %v16828_v6, %v16790_v15  ;;  %v16957_v15 = vld [vmem:[#allocation3 + $0xc2] sm:$0xff] }
 0x5c7   :  { %9822 = vmatprep.mubr.msk.bf16.mxu1 %vm4682_vm0, %v5667_v40  ;;  %9835 = vmatpush3.bf16.msra.mxu0 %v10206_v25  ;;  %v16838_v57 = vld [vmem:[#allocation3 + $0xf0] sm:$0xff]  ;;  %v16850_v27 = vpack.c.bf16 %v16834_v56, %v16832_v45  ;;  %v16930_v25 = vld [vmem:[#allocation3 + $0x80] sm:$0xff] }
 0x5c8   :  { %9859 = vmatpush3.bf16.msra.mxu1 %v10210_v5  ;;  %9836 = vmatprep.subr.bf16.mxu0 %v10209_v12  ;;  %v16854_v58 = vpack.c.bf16 %v16838_v57, %v16836_v2  ;;  %v16866_v34 = vld [vmem:[#allocation3 + $0x111] sm:$0xff]  ;;  %v6213_v21 = vpack.c.bf16 %v16930_v25, %v16786_v39  ;;  %v10218_v5 = vld [vmem:[%s17938_s2 + $0xa8] sm:$0xff]   ;;  %v10217_v40 = vld [vmem:[%s17938_s2 + $0x80] sm:$0xff]  }
 0x5c9   :  { %9860 = vmatprep.subr.bf16.mxu1 %v10211_v53  ;;  %v16870_v47 = vld [vmem:[#allocation3 + $0x110] sm:$0xff]  ;;  %v16876_v7 = vpack.c.bf16 %v16866_v34, %v16864_v33  ;;  %v10219_v39 = vld [vmem:[%s17938_s2 + $0xa0] sm:$0xff]  }
 0x5ca   :  { %v16872_v13 = vld [vmem:[#allocation3 + $0x12] sm:$0xff]  ;;  %v16880_v14 = vpack.c.bf16 %v16870_v47, %v16868_v31 }
 0x5cb   :  { %9837 = vmatpush3.bf16.msra.mxu0 %v10209_v12  ;;  %v6017_v60 = vpack.c.bf16 %v16872_v13, %v6001_v16  ;;  %v16893_v3 = vld [vmem:[#allocation3 + $0x32] sm:$0xff]  ;;  %v6215_v16 = vpack.c.bf16 %v16836_v2, %v16830_v28  ;;  %v6015_v28 = vld [vmem:[#allocation3 + $0x102] sm:$0xff] }
 0x5cc   :  { %9861 = vmatpush3.bf16.msra.mxu1 %v10211_v53  ;;  %9878 = vmatprep.subr.bf16.mxu0 %v10212_v10  ;;  %v16897_v9 = vld [vmem:[#allocation3 + $0x52] sm:$0xff]  ;;  %v16901_v4 = vpack.c.bf16 %v16893_v3, %v16891_v30 }
 0x5cd   :  { %9902 = vmatprep.subr.bf16.mxu1 %v10215_v42  ;;  %9799 = vmatmul.mubr.msk.bf16.gmra.mxu0 %vm4682_vm0, %v16842_v54  ;;  %v10213_v19 = vld [vmem:[%s17938_s2 + $0x90] sm:$0xff]   ;;  %v16910_v44 = vpack.c.bf16 %v16897_v9, %v16895_v37  ;;  %v10220_v53 = vld [vmem:[%s17938_s2 + $0xd8] sm:$0xff]  }
 0x5ce   :  { %9823 = vmatmul.mubr.msk.bf16.gmra.mxu1 %vm4682_vm0, %v16846_v26  ;;  %9802 = vmatprep.mubr.msk.bf16.mxu0 %vm4682_vm0, %v16850_v27  ;;  %v10216_v29 = vld [vmem:[%s17938_s2 + $0xb0] sm:$0xff]  }
 0x5cf   :  { %9826 = vmatprep.mubr.msk.bf16.mxu1 %vm4682_vm0, %v16854_v58  ;;  %v16928_v22 = vld [vmem:[#allocation3 + $0x72] sm:$0xff] }
 0x5d0   :  { %v16932_v0 = vld [vmem:[#allocation3 + $0xb2] sm:$0xff]  ;;  %v16936_v46 = vpack.c.bf16 %v16928_v22, %v16926_v43 }
 0x5d1   :  { %v6021_v35 = vpack.c.bf16 %v16932_v0, %v6009_v11  ;;  %v16959_v12 = vld [vmem:[#allocation3 + $0xd2] sm:$0xff]  ;;  %v10225_v11 = vld [vmem:[%s17938_s2 + $0xc0] sm:$0xff]  }
 0x5d2   :  { %v16970_v6 = vpack.c.bf16 %v16959_v12, %v16957_v15  ;;  %v16989_v2 = vld [vmem:[#allocation3 + $0x112] sm:$0xff] }
 0x5d5   :  { %9803 = vmatmul.mubr.msk.bf16.gmra.mxu0 %vm4682_vm0, %v16876_v7 }
 0x5d6   :  { %9827 = vmatmul.mubr.msk.bf16.gmra.mxu1 %vm4682_vm0, %v16880_v14  ;;  %9838 = vmatprep.mubr.msk.bf16.mxu0 %vm4682_vm0, %v6017_v60  ;;  %v10223_v60 = vld [vmem:[%s17938_s2 + $0xf8] sm:$0xff]  }
 0x5d7   :  { %9862 = vmatprep.mubr.msk.bf16.mxu1 %vm4682_vm0, %v6210_v17 }
 0x5dd   :  { %9839 = vmatmul.mubr.msk.bf16.vlgmr.msra.gmra.mxu0 %vm4682_vm0, %v16901_v4 }
 0x5de   :  { %9863 = vmatmul.mubr.msk.bf16.vlgmr.msra.gmra.mxu1 %vm4682_vm0, %v6211_v18  ;;  %9879 = vmatpush3.bf16.msra.mxu0 %v10212_v10  ;;  %v16964_v10 = vld [vmem:[#allocation3 + $0xe2] sm:$0xff]  ;;  %v6216_v18 = vpack.c.bf16 %v16868_v31, %v16838_v57  ;;  %v16994_v57 = vpack.c.bf16 %v16989_v2, %v6015_v28 }
 0x5df   :  { %9842 = vmatprep.mubr.msk.bf16.mxu0 %vm4682_vm0, %v16910_v44  ;;  %9866 = vmatprep.mubr.msk.bf16.mxu1 %vm4682_vm0, %v6212_v41  ;;  %v6403_v41 = vpack.c.bf16 %v16704_v51, %v16711_v59  ;;  %v10221_v51 = vld [vmem:[%s17938_s2 + $0xd0] sm:$0xff]   ;;  %v6405_v59 = vpack.c.bf16 %v16780_v52, %v16765_v32  ;;  %v6394_v32 = vld [vmem:[#allocation3 + $0x81] sm:$0xff] }
 0x5e0   :  { %9880 = vmatprep.subr.bf16.mxu0 %v10213_v19  ;;  %9903 = vmatpush3.bf16.msra.mxu1 %v10215_v42  ;;  %v16966_v42 = vld [vmem:[#allocation3 + $0xf2] sm:$0xff]  ;;  %v17028_v52 = vld [vmem:[#allocation3 + $0x82] sm:$0xff] }
 0x5e1   :  { %9904 = vmatprep.subr.bf16.mxu1 %v10216_v29  ;;  %v16979_v17 = vpack.c.bf16 %v16966_v42, %v16964_v10 }
 0x5e2   :  { %9881 = vmatpush3.bf16.msra.mxu0 %v10213_v19  ;;  %v16991_v19 = vld [vmem:[#allocation3 + $0x120] sm:$0xff] }
 0x5e3   :  { %9882 = vmatprep.subr.bf16.mxu0 %v10214_v63  ;;  %v6217_v31 = vpack.c.bf16 %v16991_v19, %v16870_v47  ;;  %v6597_v47 = vpack.c.bf16 %v16895_v37, %v16893_v3  ;;  %v6599_v3 = vpack.c.bf16 %v17028_v52, %v16928_v22  ;;  %v10226_v37 = vld [vmem:[%s17938_s2 + $0xe8] sm:$0xff]   ;;  %v6601_v22 = vpack.c.bf16 %v16964_v10, %v16959_v12 }
 0x5e4   :  { %9905 = vmatpush3.bf16.msra.mxu1 %v10216_v29  ;;  %v6596_v29 = vpack.c.bf16 %v16891_v30, %v16872_v13  ;;  %v6598_v13 = vpack.c.bf16 %v16926_v43, %v16897_v9  ;;  %v6406_v30 = vpack.c.bf16 %v6394_v32, %v16782_v49  ;;  %v6407_v9 = vpack.c.bf16 %v16821_v36, %v16788_v20  ;;  %v10227_v49 = vld [vmem:[%s17938_s2 + $0xe0] sm:$0xff]   ;;  %v10228_v20 = vld [vmem:[%s17938_s2 + $0x118] sm:$0xff]  }
 0x5e5   :  { %9843 = vmatmul.mubr.msk.bf16.gmra.mxu0 %vm4682_vm0, %v16936_v46  ;;  %9906 = vmatprep.subr.bf16.mxu1 %v10218_v5  ;;  %v6600_v43 = vpack.c.bf16 %v16957_v15, %v16932_v0  ;;  %v6408_v36 = vpack.c.bf16 %v16832_v45, %v16823_v55  ;;  %v6409_v0 = vpack.c.bf16 %v16864_v33, %v16834_v56  ;;  %v19304_v55 = vmov 0.0   ;;  %v6402_v45 = vld [vmem:[#allocation3 + $0x121] sm:$0xff]  ;;  %v10229_v33 = vld [vmem:[%s17938_s2 + $0x110] sm:$0xff]  }
 0x5e6   :  { %9867 = vmatmul.mubr.msk.bf16.gmra.mxu1 %vm4682_vm0, %v6213_v21  ;;  %9846 = vmatprep.mubr.msk.bf16.mxu0 %vm4682_vm0, %v6021_v35  ;;  %v6602_v21 = vpack.c.bf16 %v6015_v28, %v16966_v42  ;;  %v6410_v35 = vpack.c.bf16 %v6402_v45, %v16866_v34  ;;  %v6974_v34 = vld [vmem:[#allocation3 + $0x91] sm:$0xff] }
 0x5e7   :  { %9870 = vmatprep.mubr.msk.bf16.mxu1 %vm4682_vm0, %v6214_v1  ;;  %9883 = vmatpush3.bf16.msra.mxu0 %v10214_v63  ;;  %v6404_v63 = vpack.c.bf16 %v16751_v23, %v16706_v38  ;;  %v10224_v38 = vld [vmem:[%s17938_s2 + $0xf0] sm:$0xff]   ;;  %v10222_v23 = vld [vmem:[%s17938_s2 + $0xc8] sm:$0xff]   ;;  %v6986_v1 = vpack.c.bf16 %v6974_v34, %v6394_v32 }
 0x5e8   :  { %9884 = vmatprep.subr.bf16.mxu0 %v10217_v40  ;;  %9907 = vmatpush3.bf16.msra.mxu1 %v10218_v5  ;;  %v6595_v5 = vld [vmem:[#allocation3 + $0x122] sm:$0xff] }
 0x5e9   :  { %9908 = vmatprep.subr.bf16.mxu1 %v10219_v39  ;;  %v6603_v56 = vpack.c.bf16 %v6595_v5, %v16989_v2 }
 0x5eb   :  { %9885 = vmatpush3.bf16.msra.mxu0 %v10217_v40 }
 0x5ec   :  { %9909 = vmatpush3.bf16.msra.mxu1 %v10219_v39  ;;  %9926 = vmatprep.subr.bf16.mxu0 %v10220_v53 }
 0x5ed   :  { %9847 = vmatmul.mubr.msk.bf16.gmra.mxu0 %vm4682_vm0, %v16970_v6  ;;  %9950 = vmatprep.subr.bf16.mxu1 %v10223_v60 }
 0x5ee   :  { %9871 = vmatmul.mubr.msk.bf16.gmra.mxu1 %vm4682_vm0, %v6215_v16  ;;  %9850 = vmatprep.mubr.msk.bf16.mxu0 %vm4682_vm0, %v16979_v17 }
 0x5ef   :  { %9874 = vmatprep.mubr.msk.bf16.mxu1 %vm4682_vm0, %v6216_v18 }
 0x5f5   :  { %9851 = vmatmul.mubr.msk.bf16.gmra.mxu0 %vm4682_vm0, %v16994_v57 }
 0x5f6   :  { %9875 = vmatmul.mubr.msk.bf16.gmra.mxu1 %vm4682_vm0, %v6217_v31  ;;  %9886 = vmatprep.mubr.msk.bf16.mxu0 %vm4682_vm0, %v6403_v41 }
 0x5f7   :  { %9910 = vmatprep.mubr.msk.bf16.mxu1 %vm4682_vm0, %v6596_v29 }
 0x5fd   :  { %9887 = vmatmul.mubr.msk.bf16.vlgmr.msra.gmra.mxu0 %vm4682_vm0, %v6404_v63 }
 0x5fe   :  { %9911 = vmatmul.mubr.msk.bf16.vlgmr.msra.gmra.mxu1 %vm4682_vm0, %v6597_v47  ;;  %9927 = vmatpush3.bf16.msra.mxu0 %v10220_v53 }
 0x5ff   :  { %9890 = vmatprep.mubr.msk.bf16.mxu0 %vm4682_vm0, %v6405_v59  ;;  %9914 = vmatprep.mubr.msk.bf16.mxu1 %vm4682_vm0, %v6598_v13 }
 0x600   :  { %9928 = vmatprep.subr.bf16.mxu0 %v10221_v51  ;;  %9951 = vmatpush3.bf16.msra.mxu1 %v10223_v60 }
 0x601   :  { %9952 = vmatprep.subr.bf16.mxu1 %v10224_v38 }
 0x602   :  { %9929 = vmatpush3.bf16.msra.mxu0 %v10221_v51 }
 0x603   :  { %9930 = vmatprep.subr.bf16.mxu0 %v10222_v23 }
 0x604   :  { %9953 = vmatpush3.bf16.msra.mxu1 %v10224_v38 }
 0x605   :  { %9891 = vmatmul.mubr.msk.bf16.gmra.mxu0 %vm4682_vm0, %v6406_v30  ;;  %9954 = vmatprep.subr.bf16.mxu1 %v10226_v37 }
 0x606   :  { %9915 = vmatmul.mubr.msk.bf16.gmra.mxu1 %vm4682_vm0, %v6599_v3  ;;  %9894 = vmatprep.mubr.msk.bf16.mxu0 %vm4682_vm0, %v6407_v9 }
 0x607   :  { %9918 = vmatprep.mubr.msk.bf16.mxu1 %vm4682_vm0, %v6600_v43  ;;  %9931 = vmatpush3.bf16.msra.mxu0 %v10222_v23 }
 0x608   :  { %9932 = vmatprep.subr.bf16.mxu0 %v10225_v11  ;;  %9955 = vmatpush3.bf16.msra.mxu1 %v10226_v37 }
 0x609   :  { %9956 = vmatprep.subr.bf16.mxu1 %v10227_v49 }
 0x60b   :  { %9933 = vmatpush3.bf16.msra.mxu0 %v10225_v11 }
 0x60c   :  { %9957 = vmatpush3.bf16.msra.mxu1 %v10227_v49  ;;  %9974 = vmatprep.subr.bf16.mxu0 %v10228_v20 }
 0x60d   :  { %9895 = vmatmul.mubr.msk.bf16.gmra.mxu0 %vm4682_vm0, %v6408_v36  ;;  %9998 = vmatprep.subr.bf16.mxu1 %v19304_v55 }
 0x60e   :  { %9919 = vmatmul.mubr.msk.bf16.gmra.mxu1 %vm4682_vm0, %v6601_v22  ;;  %9898 = vmatprep.mubr.msk.bf16.mxu0 %vm4682_vm0, %v6409_v0 }
 0x60f   :  { %9922 = vmatprep.mubr.msk.bf16.mxu1 %vm4682_vm0, %v6602_v21 }
 0x615   :  { %9899 = vmatmul.mubr.msk.bf16.gmra.mxu0 %vm4682_vm0, %v6410_v35 }
 0x616   :  { %9923 = vmatmul.mubr.msk.bf16.gmra.mxu1 %vm4682_vm0, %v6603_v56  ;;  %9934 = vmatprep.mubr.msk.bf16.mxu0 %vm4682_vm0, %v16727_v8  ;;  %v6781_v8 = vld [vmem:[#allocation3 + $0x90] sm:$0xff] }
 0x617   :  { %9958 = vmatprep.mubr.msk.bf16.mxu1 %vm4682_vm0, %v16717_v24  ;;  %v10230_v24 = vld [vmem:[%s17938_s2 + $0x108] sm:$0xff]  }
 0x61d   :  { %9935 = vmatmul.mubr.msk.bf16.vlgmr.msra.gmra.mxu0 %vm4682_vm0, %v16778_v50  ;;  %v6793_v50 = vpack.c.bf16 %v6781_v8, %v16930_v25 }
 0x61e   :  { %9959 = vmatmul.mubr.msk.bf16.vlgmr.msra.gmra.mxu1 %vm4682_vm0, %v16774_v61  ;;  %9975 = vmatpush3.bf16.msra.mxu0 %v10228_v20  ;;  %v10231_v61 = vld [vmem:[%s17938_s2 + $0x100] sm:$0xff]  }
 0x61f   :  { %9938 = vmatprep.mubr.msk.bf16.mxu0 %vm4682_vm0, %v16802_v48  ;;  %9962 = vmatprep.mubr.msk.bf16.mxu1 %vm4682_vm0, %v16798_v62  ;;  %v6789_v62 = vld [vmem:[#allocation3 + $0x130] sm:$0xff] }
 0x620   :  { %9976 = vmatprep.subr.bf16.mxu0 %v10229_v33  ;;  %v6982_v48 = vld [vmem:[#allocation3 + $0x131] sm:$0xff] }
 0x622   :  { %9977 = vmatpush3.bf16.msra.mxu0 %v10229_v33 }
 0x623   :  { %9978 = vmatprep.subr.bf16.mxu0 %v10230_v24 }
 0x625   :  { %9939 = vmatmul.mubr.msk.bf16.gmra.mxu0 %vm4682_vm0, %v6793_v50 }
 0x626   :  { %9963 = vmatmul.mubr.msk.bf16.gmra.mxu1 %vm4682_vm0, %v6986_v1  ;;  %9942 = vmatprep.mubr.msk.bf16.mxu0 %vm4682_vm0, %v16846_v26  ;;  %v6990_v26 = vpack.c.bf16 %v6982_v48, %v6402_v45 }
 0x627   :  { %9966 = vmatprep.mubr.msk.bf16.mxu1 %vm4682_vm0, %v16842_v54  ;;  %9979 = vmatpush3.bf16.msra.mxu0 %v10230_v24  ;;  %v6797_v54 = vpack.c.bf16 %v6789_v62, %v16991_v19 }
 0x628   :  { %9980 = vmatprep.subr.bf16.mxu0 %v10231_v61 }
 0x62b   :  { %9981 = vmatpush3.bf16.msra.mxu0 %v10231_v61 }
 0x62c   :  { %10022 = vmatprep.subr.bf16.mxu0 %v19304_v55 }
 0x62d   :  { %9943 = vmatmul.mubr.msk.bf16.gmra.mxu0 %vm4682_vm0, %v16854_v58 }
 0x62e   :  { %9967 = vmatmul.mubr.msk.bf16.gmra.mxu1 %vm4682_vm0, %v16850_v27  ;;  %9946 = vmatprep.mubr.msk.bf16.mxu0 %vm4682_vm0, %v16880_v14  ;;  %v7167_v27 = vld [vmem:[#allocation3 + $0x92] sm:$0xff] }
 0x62f   :  { %9970 = vmatprep.mubr.msk.bf16.mxu1 %vm4682_vm0, %v16876_v7  ;;  %v7179_v58 = vpack.c.bf16 %v7167_v27, %v17028_v52  ;;  %v7175_v7 = vld [vmem:[#allocation3 + $0x132] sm:$0xff] }
 0x630   :  { %v7183_v14 = vpack.c.bf16 %v7175_v7, %v6595_v5 }
 0x635   :  { %9947 = vmatmul.mubr.msk.bf16.gmra.mxu0 %vm4682_vm0, %v6797_v54 }
 0x636   :  { %9971 = vmatmul.mubr.msk.bf16.gmra.mxu1 %vm4682_vm0, %v6990_v26  ;;  %9982 = vmatprep.mubr.msk.bf16.mxu0 %vm4682_vm0, %v16901_v4 }
 0x637   :  { %10006 = vmatprep.mubr.msk.bf16.mxu1 %vm10336_vm10, %v19304_v55 }
 0x63d   :  { %9983 = vmatmul.mubr.msk.bf16.vlgmr.msra.gmra.mxu0 %vm4682_vm0, %v16910_v44 }
 0x63e   :  { %9986 = vmatprep.mubr.msk.bf16.mxu0 %vm4682_vm0, %v16936_v46 }
 0x645   :  { %9987 = vmatmul.mubr.msk.bf16.gmra.mxu0 %vm4682_vm0, %v7179_v58 }
 0x646   :  { %9990 = vmatprep.mubr.msk.bf16.mxu0 %vm4682_vm0, %v16970_v6 }
 0x64d   :  { %9991 = vmatmul.mubr.msk.bf16.gmra.mxu0 %vm4682_vm0, %v16979_v17 }
 0x64e   :  { %9994 = vmatprep.mubr.msk.bf16.mxu0 %vm4682_vm0, %v16994_v57 }
 0x655   :  { %9995 = vmatmul.mubr.msk.bf16.gmra.mxu0 %vm4682_vm0, %v7183_v14 }
 0x656   :  { %10030 = vmatprep.mubr.msk.bf16.mxu0 %vm10336_vm10, %v19304_v55 }
 0x67d   :  { %v9792_v4 = vpop.f32.mrf.mxu0 }
 0x67e   :  { %v9816_v44 = vpop.f32.mrf.mxu1 }
 0x67f   :  { %v5947_v25 = vadd.f32 %v9816_v44, %v9792_v4  ;;  %v5793_v46 = vpop.f32.mrf.mxu0 }
 0x680   :  { %v5938_v40 = vpop.f32.mrf.mxu1 }
 0x681   :  { %v5939_v39 = vadd.f32 %v5938_v40, %v5793_v46  ;;  %v9793_v15 = vpop.f32.mrf.mxu0 }
 0x682   :  { %v9817_v12 = vpop.f32.mrf.mxu1 }
 0x683   :  { %v5950_v53 = vadd.f32 %v9817_v12, %v9793_v15  ;;  %v5796_v10 = vpop.f32.mrf.mxu0 }
 0x684   :  { %v5941_v42 = vpop.f32.mrf.mxu1 }
 0x685   :  { %v5942_v6 = vadd.f32 %v5941_v42, %v5796_v10  ;;  %v9796_v16 = vpop.f32.mrf.mxu0 }
 0x686   :  { %v9820_v60 = vpop.f32.mrf.mxu1 }
 0x687   :  { %v5963_v17 = vadd.f32 %v9820_v60, %v9796_v16  ;;  %v5809_v18 = vpop.f32.mrf.mxu0 }
 0x688   :  { %v5954_v28 = vpop.f32.mrf.mxu1 }
 0x689   :  { %v5955_v2 = vadd.f32 %v5954_v28, %v5809_v18  ;;  %v9797_v19 = vpop.f32.mrf.mxu0 }
 0x68a   :  { %v9821_v57 = vpop.f32.mrf.mxu1 }
 0x68b   :  { %v5966_v31 = vadd.f32 %v9821_v57, %v9797_v19  ;;  %v5812_v41 = vpop.f32.mrf.mxu0 }
 0x68c   :  { %v5957_v29 = vpop.f32.mrf.mxu1 }
 0x68d   :  { %v5958_v63 = vadd.f32 %v5957_v29, %v5812_v41  ;;  %v9800_v47 = vpop.f32.mrf.mxu0 }
 0x68e   :  { %v9824_v51 = vpop.f32.mrf.mxu1 }
 0x68f   :  { %v5979_v59 = vadd.f32 %v9824_v51, %v9800_v47  ;;  %v5825_v13 = vpop.f32.mrf.mxu0 }
 0x690   :  { %v5970_v38 = vpop.f32.mrf.mxu1 }
 0x691   :  { %v5971_v23 = vadd.f32 %v5970_v38, %v5825_v13  ;;  %v9801_v32 = vpop.f32.mrf.mxu0 }
 0x692   :  { %v9825_v52 = vpop.f32.mrf.mxu1 }
 0x693   :  { %v5982_v30 = vadd.f32 %v9825_v52, %v9801_v32  ;;  %v5828_v3 = vpop.f32.mrf.mxu0 }
 0x694   :  { %v5973_v37 = vpop.f32.mrf.mxu1 }
 0x695   :  { %v5974_v9 = vadd.f32 %v5973_v37, %v5828_v3  ;;  %v9804_v43 = vpop.f32.mrf.mxu0 }
 0x696   :  { %v9828_v11 = vpop.f32.mrf.mxu1 }
 0x697   :  { %v5995_v49 = vadd.f32 %v9828_v11, %v9804_v43  ;;  %v5841_v20 = vpop.f32.mrf.mxu0 }
 0x698   :  { %v5986_v36 = vpop.f32.mrf.mxu1 }
 0x699   :  { %v5987_v22 = vadd.f32 %v5986_v36, %v5841_v20  ;;  %v9805_v0 = vpop.f32.mrf.mxu0 }
 0x69a   :  { %v9829_v21 = vpop.f32.mrf.mxu1 }
 0x69b   :  { %v5998_v45 = vadd.f32 %v9829_v21, %v9805_v0  ;;  %v5844_v5 = vpop.f32.mrf.mxu0 }
 0x69c   :  { %v5989_v35 = vpop.f32.mrf.mxu1 }
 0x69d   :  { %v5990_v56 = vadd.f32 %v5989_v35, %v5844_v5  ;;  %v9840_v33 = vpop.f32.mrf.mxu0 }
 0x69e   :  { %v9864_v24 = vpop.f32.mrf.mxu1  ;;  %v6180_v8 = vadd.f32 %v9840_v33, %v5947_v25 }
 0x69f   :  { %v6115_v34 = vpop.f32.mrf.mxu0 }
 0x6a0   :  { %v17124_v50 = vpop.f32.mrf.mxu1  ;;  %v6373_v1 = vadd.f32 %v9864_v24, %v6180_v8  ;;  %v17126_v61 = vadd.f32 %v6115_v34, %v5939_v39 }
 0x6a1   :  { %v9841_v62 = vpop.f32.mrf.mxu0 }
 0x6a2   :  { %v17128_v48 = vpop.f32.mrf.mxu1  ;;  %v17130_v54 = vadd.f32 %v9841_v62, %v5950_v53 }
 0x6a3   :  { %v6118_v26 = vpop.f32.mrf.mxu0 }
 0x6a4   :  { %v17132_v27 = vpop.f32.mrf.mxu1  ;;  %v17134_v58 = vadd.f32 %v6118_v26, %v5942_v6 }
 0x6a5   :  { %v9844_v7 = vpop.f32.mrf.mxu0 }
 0x6a6   :  { %v9868_v14 = vpop.f32.mrf.mxu1  ;;  %v6184_v4 = vadd.f32 %v9844_v7, %v5963_v17 }
 0x6a7   :  { %v6131_v44 = vpop.f32.mrf.mxu0 }
 0x6a8   :  { %v17136_v25 = vpop.f32.mrf.mxu1  ;;  %v6377_v46 = vadd.f32 %v9868_v14, %v6184_v4  ;;  %v17138_v40 = vadd.f32 %v6131_v44, %v5955_v2 }
 0x6a9   :  { %v9845_v39 = vpop.f32.mrf.mxu0 }
 0x6aa   :  { %v17140_v15 = vpop.f32.mrf.mxu1  ;;  %v17142_v12 = vadd.f32 %v9845_v39, %v5966_v31 }
 0x6ab   :  { %v6134_v53 = vpop.f32.mrf.mxu0 }
 0x6ac   :  { %v17144_v10 = vpop.f32.mrf.mxu1  ;;  %v17146_v42 = vadd.f32 %v6134_v53, %v5958_v63 }
 0x6ad   :  { %v9848_v6 = vpop.f32.mrf.mxu0 }
 0x6ae   :  { %v9872_v16 = vpop.f32.mrf.mxu1  ;;  %v6188_v60 = vadd.f32 %v9848_v6, %v5979_v59 }
 0x6af   :  { %v6147_v17 = vpop.f32.mrf.mxu0 }
 0x6b0   :  { %v17148_v18 = vpop.f32.mrf.mxu1  ;;  %v6381_v28 = vadd.f32 %v9872_v16, %v6188_v60  ;;  %v17150_v19 = vadd.f32 %v6147_v17, %v5971_v23  ;;  %v10232_v60 = vld [vmem:[%s17940_s4 + $0x18] sm:$0xff]  }
 0x6b1   :  { %v9849_v2 = vpop.f32.mrf.mxu0  ;;  %9999 = vmatpush3.bf16.msra.mxu1 %v10232_v60 }
 0x6b2   :  { %v17152_v57 = vpop.f32.mrf.mxu1  ;;  %v17154_v41 = vadd.f32 %v9849_v2, %v5982_v30  ;;  %10000 = vmatprep.subr.bf16.mxu1 %v19304_v55 }
 0x6b3   :  { %v6150_v31 = vpop.f32.mrf.mxu0 }
 0x6b4   :  { %v17156_v29 = vpop.f32.mrf.mxu1  ;;  %v17158_v47 = vadd.f32 %v6150_v31, %v5974_v9 }
 0x6b5   :  { %v9852_v63 = vpop.f32.mrf.mxu0 }
 0x6b6   :  { %v9876_v51 = vpop.f32.mrf.mxu1  ;;  %v6192_v13 = vadd.f32 %v9852_v63, %v5995_v49  ;;  %v10233_v63 = vld [vmem:[%s17940_s4 + $0x10] sm:$0xff]  }
 0x6b7   :  { %v6163_v59 = vpop.f32.mrf.mxu0  ;;  %10001 = vmatpush3.bf16.msra.mxu1 %v10233_v63 }
 0x6b8   :  { %v17160_v38 = vpop.f32.mrf.mxu1  ;;  %v6385_v32 = vadd.f32 %v9876_v51, %v6192_v13  ;;  %v17162_v52 = vadd.f32 %v6163_v59, %v5987_v22  ;;  %v10236_v59 = vld [vmem:[%s17940_s4 + $0x50] sm:$0xff]   ;;  %10002 = vmatprep.subr.bf16.mxu1 %v19304_v55 }
 0x6b9   :  { %v9853_v23 = vpop.f32.mrf.mxu0 }
 0x6ba   :  { %v17164_v3 = vpop.f32.mrf.mxu1  ;;  %v17166_v37 = vadd.f32 %v9853_v23, %v5998_v45 }
 0x6bb   :  { %v6166_v30 = vpop.f32.mrf.mxu0 }
 0x6bc   :  { %v17168_v43 = vpop.f32.mrf.mxu1  ;;  %v17170_v11 = vadd.f32 %v6166_v30, %v5990_v56  ;;  %v10234_v30 = vld [vmem:[%s17940_s4 + $0x8] sm:$0xff]  }
 0x6bd   :  { %v9888_v9 = vpop.f32.mrf.mxu0  ;;  %10003 = vmatpush3.bf16.msra.mxu1 %v10234_v30 }
 0x6be   :  { %v17172_v20 = vpop.f32.mrf.mxu1  ;;  %v17174_v49 = vadd.f32 %v9888_v9, %v6373_v1  ;;  %10004 = vmatprep.subr.bf16.mxu1 %v19304_v55 }
 0x6bf   :  { %v17176_v36 = vpop.f32.mrf.mxu0 }
 0x6c0   :  { %v17178_v0 = vpop.f32.mrf.mxu1 }
 0x6c1   :  { %v17180_v22 = vpop.f32.mrf.mxu0 }
 0x6c2   :  { %v17182_v21 = vpop.f32.mrf.mxu1 }
 0x6c3   :  { %v17184_v45 = vpop.f32.mrf.mxu0 }
 0x6c4   :  { %v17186_v5 = vpop.f32.mrf.mxu1 }
 0x6c5   :  { %v9892_v35 = vpop.f32.mrf.mxu0 }
 0x6c6   :  { %v17188_v56 = vpop.f32.mrf.mxu1  ;;  %v17190_v33 = vadd.f32 %v9892_v35, %v6377_v46 }
 0x6c7   :  { %v17192_v24 = vpop.f32.mrf.mxu0 }
 0x6c8   :  { %v17194_v8 = vpop.f32.mrf.mxu1 }
 0x6c9   :  { %v17196_v34 = vpop.f32.mrf.mxu0 }
 0x6ca   :  { %v17198_v1 = vpop.f32.mrf.mxu1 }
 0x6cb   :  { %v17200_v62 = vpop.f32.mrf.mxu0 }
 0x6cc   :  { %v17202_v26 = vpop.f32.mrf.mxu1 }
 0x6cd   :  { %v9896_v7 = vpop.f32.mrf.mxu0 }
 0x6ce   :  { %v17204_v14 = vpop.f32.mrf.mxu1  ;;  %v17206_v4 = vadd.f32 %v9896_v7, %v6381_v28  ;;  %v10235_v28 = vld [vmem:[%s17940_s4 + $0x58] sm:$0xff]   ;;  %v10238_v7 = vld [vmem:[%s17940_s4 + $0x48] sm:$0xff]  }
 0x6cf   :  { %v17208_v44 = vpop.f32.mrf.mxu0  ;;  %10023 = vmatpush3.bf16.msra.mxu0 %v10235_v28  ;;  %v10237_v28 = vld [vmem:[%s17940_s4] sm:$0xff]  }
 0x6d0   :  { %v17210_v46 = vpop.f32.mrf.mxu1  ;;  %10024 = vmatprep.subr.bf16.mxu0 %v19304_v55  ;;  %10005 = vmatpush3.bf16.msra.mxu1 %v10237_v28 }
 0x6d1   :  { %19305 = vst [vmem:[#allocation223_spill] sm:$0xff] %v17210_v46  ;;  %v17212_v39 = vpop.f32.mrf.mxu0  ;;  %10010 = vmatprep.subr.bf16.mxu1 %v19304_v55 }
 0x6d2   :  { %v17214_v53 = vpop.f32.mrf.mxu1 }
 0x6d3   :  { %19306 = vst [vmem:[#allocation93_spill] sm:$0xff] %v17214_v53  ;;  %v17216_v6 = vpop.f32.mrf.mxu0  ;;  %10025 = vmatpush3.bf16.msra.mxu0 %v10236_v59  ;;  %v10239_v59 = vld [vmem:[%s17940_s4 + $0x40] sm:$0xff]  }
 0x6d4   :  { %v17218_v16 = vpop.f32.mrf.mxu1  ;;  %10026 = vmatprep.subr.bf16.mxu0 %v19304_v55 }
 0x6d5   :  { %19307 = vst [vmem:[#allocation224_spill] sm:$0xff] %v17218_v16  ;;  %v9900_v17 = vpop.f32.mrf.mxu0 }
 0x6d6   :  { %v17223_v2 = vpop.f32.mrf.mxu1  ;;  %v17232_v31 = vadd.f32 %v9900_v17, %v6385_v32 }
 0x6d7   :  { %19308 = vst [vmem:[#allocation225_spill] sm:$0xff] %v17223_v2  ;;  %v17237_v51 = vpop.f32.mrf.mxu0  ;;  %10027 = vmatpush3.bf16.msra.mxu0 %v10238_v7 }
 0x6d8   :  { %19309 = vst [vmem:[#allocation226_spill] sm:$0xff] %v17232_v31  ;;  %v17239_v13 = vpop.f32.mrf.mxu1  ;;  %10028 = vmatprep.subr.bf16.mxu0 %v19304_v55 }
 0x6d9   :  { %19310 = vst [vmem:[#allocation227_spill] sm:$0xff] %v17239_v13  ;;  %v17246_v32 = vpop.f32.mrf.mxu0 }
 0x6da   :  { %v17248_v23 = vpop.f32.mrf.mxu1 }
 0x6db   :  { %19311 = vst [vmem:[#allocation228_spill] sm:$0xff] %v17248_v23  ;;  %v17253_v9 = vpop.f32.mrf.mxu0  ;;  %10029 = vmatpush3.bf16.msra.mxu0 %v10239_v59 }
 0x6dc   :  { %19312 = vst [vmem:[#allocation229_spill] sm:$0xff] %v17253_v9  ;;  %v17255_v35 = vpop.f32.mrf.mxu1  ;;  %10046 = vmatprep.subr.bf16.mxu0 %v19304_v55  ;;  %v6371_v55 = vadd.f32 %v17124_v50, %v17126_v61 }
 0x6dd   :  { %19313 = vst [vmem:[#allocation230_spill] sm:$0xff] %v17255_v35  ;;  %v9936_v60 = vpop.f32.mrf.mxu0 }
 0x6de   :  { %v17262_v17 = vpop.f32.mrf.mxu1 }
 0x6df   :  { %v6888_v63 = vpop.f32.mrf.mxu0 }
 0x6e0   :  { %v7081_v35 = vpop.f32.mrf.mxu1 }
 0x6e1   :  { %v9937_v23 = vpop.f32.mrf.mxu0 }
 0x6e2   :  { %v17273_v30 = vpop.f32.mrf.mxu1 }
 0x6e3   :  { %v6891_v13 = vpop.f32.mrf.mxu0  ;;  %19314 = vst [vmem:[#allocation231_spill] sm:$0xff] %v17273_v30 }
 0x6e4   :  { %v17278_v31 = vpop.f32.mrf.mxu1 }
 0x6e5   :  { %v17276_v2 = vpop.f32.mrf.mxu0  ;;  %19316 = vst [vmem:[#allocation233_spill] sm:$0xff] %v17278_v31  ;;  %v6564_v31 = vadd.f32 %v17176_v36, %v6371_v55  ;;  %v6375_v55 = vadd.f32 %v17136_v25, %v17138_v40  ;;  %v6378_v36 = vadd.f32 %v17140_v15, %v17142_v12  ;;  %v6380_v25 = vadd.f32 %v17156_v29, %v17158_v47 }
 0x6e6   :  { %19315 = vst [vmem:[#allocation232_spill] sm:$0xff] %v17276_v2  ;;  %v17284_v9 = vpop.f32.mrf.mxu1  ;;  %v6383_v40 = vadd.f32 %v17160_v38, %v17162_v52  ;;  %v6386_v29 = vadd.f32 %v17164_v3, %v17166_v37  ;;  %v6384_v47 = vadd.f32 %v17168_v43, %v17170_v11  ;;  %v6763_v38 = vadd.f32 %v17188_v56, %v17190_v33 }
 0x6e7   :  { %v6904_v7 = vpop.f32.mrf.mxu0  ;;  %19319 = vst [vmem:[#allocation236_spill] sm:$0xff] %v17284_v9  ;;  %v6568_v15 = vadd.f32 %v17192_v24, %v6375_v55  ;;  %v6571_v12 = vadd.f32 %v17196_v34, %v6378_v36  ;;  %v6573_v3 = vadd.f32 %v17216_v6, %v6380_v25 }
 0x6e8   :  { %v17290_v46 = vpop.f32.mrf.mxu1  ;;  %v6576_v37 = vadd.f32 %v17237_v51, %v6383_v40  ;;  %v6579_v56 = vadd.f32 %v17246_v32, %v6386_v29  ;;  %v19326_v51 = vld [vmem:[#allocation93_spill] sm:$0xff]  ;;  %v19335_v40 = vld [vmem:[#allocation230_spill] sm:$0xff] }
 0x6e9   :  { %v17280_v16 = vpop.f32.mrf.mxu0  ;;  %v6761_v24 = vadd.f32 %v17194_v8, %v6568_v15  ;;  %v6764_v34 = vadd.f32 %v17198_v1, %v6571_v12  ;;  %v19324_v8 = vld [vmem:[#allocation223_spill] sm:$0xff]  ;;  %v19325_v1 = vld [vmem:[#allocation229_spill] sm:$0xff] }
 0x6ea   :  { %19317 = vst [vmem:[#allocation234_spill] sm:$0xff] %v17280_v16  ;;  %v17299_v16 = vpop.f32.mrf.mxu1 }
 0x6eb   :  { %v17282_v53 = vpop.f32.mrf.mxu0  ;;  %v6955_v6 = vadd.f32 %v6904_v7, %v6761_v24 }
 0x6ec   :  { %19318 = vst [vmem:[#allocation235_spill] sm:$0xff] %v17282_v53 }
 0x6ed   :  { %v17286_v28 = vpop.f32.mrf.mxu0  ;;  %v19333_v55 = vld [vmem:[#allocation232_spill] sm:$0xff]  ;;  %v7148_v12 = vadd.f32 %v17290_v46, %v6955_v6 }
 0x6ee   :  { %19320 = vst [vmem:[#allocation237_spill] sm:$0xff] %v17286_v28  ;;  %v6374_v28 = vadd.f32 %v17128_v48, %v17130_v54  ;;  %v6376_v48 = vadd.f32 %v17144_v10, %v17146_v42  ;;  %v6957_v36 = vadd.f32 %v19333_v55, %v6763_v38 }
 0x6ef   :  { %v17288_v59 = vpop.f32.mrf.mxu0 }
 0x6f0   :  { %19321 = vst [vmem:[#allocation238_spill] sm:$0xff] %v17288_v59  ;;  %v6372_v59 = vadd.f32 %v17132_v27, %v17134_v58  ;;  %v6567_v50 = vadd.f32 %v17180_v22, %v6374_v28  ;;  %v6379_v27 = vadd.f32 %v17148_v18, %v17150_v19  ;;  %v6382_v58 = vadd.f32 %v17152_v57, %v17154_v41 }
 0x6f1   :  { %v17292_v30 = vpop.f32.mrf.mxu0  ;;  %v6569_v19 = vadd.f32 %v17200_v62, %v6376_v48  ;;  %v19334_v48 = vld [vmem:[#allocation228_spill] sm:$0xff] }
 0x6f2   :  { %19322 = vst [vmem:[#allocation100_spill] sm:$0xff] %v17292_v30  ;;  %v6757_v30 = vadd.f32 %v17178_v0, %v6564_v31  ;;  %v6565_v61 = vadd.f32 %v17184_v45, %v6372_v59  ;;  %v6759_v0 = vadd.f32 %v17172_v20, %v17174_v49  ;;  %v6760_v42 = vadd.f32 %v17182_v21, %v6567_v50  ;;  %v19330_v59 = vld [vmem:[#allocation226_spill] sm:$0xff]  ;;  %v19331_v50 = vld [vmem:[#allocation225_spill] sm:$0xff] }
 0x6f3   :  { %v17296_v2 = vpop.f32.mrf.mxu0  ;;  %v6572_v52 = vadd.f32 %v17208_v44, %v6379_v27  ;;  %v6575_v49 = vadd.f32 %v17212_v39, %v6382_v58  ;;  %v6762_v11 = vadd.f32 %v17202_v26, %v6569_v19  ;;  %v6767_v39 = vadd.f32 %v17204_v14, %v17206_v4  ;;  %v19332_v14 = vld [vmem:[#allocation227_spill] sm:$0xff] }
 0x6f4   :  { %19323 = vst [vmem:[#allocation239_spill] sm:$0xff] %v17296_v2  ;;  %v17312_v2 = vpop.f32.mrf.mxu1  ;;  %v6951_v22 = vadd.f32 %v6888_v63, %v6757_v30  ;;  %v6758_v18 = vadd.f32 %v17186_v5, %v6565_v61  ;;  %v6953_v57 = vadd.f32 %v9936_v60, %v6759_v0  ;;  %v6954_v45 = vadd.f32 %v9937_v23, %v6760_v42  ;;  %v19327_v60 = vld [vmem:[#allocation231_spill] sm:$0xff]  ;;  %v19328_v63 = vld [vmem:[#allocation233_spill] sm:$0xff]  ;;  %v19336_v42 = vld [vmem:[#allocation234_spill] sm:$0xff] }
 0x6f5   :  { %v17301_v53 = vpop.f32.mrf.mxu0  ;;  %v6765_v31 = vadd.f32 %v19324_v8, %v6572_v52  ;;  %v17370_v61 = vadd.f32 %v19331_v50, %v19330_v59  ;;  %v6769_v4 = vadd.f32 %v19332_v14, %v6576_v37  ;;  %v17375_v27 = vadd.f32 %v19334_v48, %v6579_v56  ;;  %v19337_v19 = vld [vmem:[#allocation235_spill] sm:$0xff] }
 0x6f6   :  { %v17339_v41 = vpop.f32.mrf.mxu1  ;;  %v7144_v21 = vadd.f32 %v7081_v35, %v6951_v22  ;;  %v6952_v5 = vadd.f32 %v6891_v13, %v6758_v18  ;;  %v7146_v33 = vadd.f32 %v17262_v17, %v6953_v57  ;;  %v6577_v13 = vadd.f32 %v19325_v1, %v6384_v47  ;;  %v19329_v17 = vld [vmem:[#allocation224_spill] sm:$0xff] }
 0x6f7   :  { %v17307_v9 = vpop.f32.mrf.mxu0  ;;  %v6768_v35 = vadd.f32 %v19326_v51, %v6575_v49  ;;  %v7147_v26 = vadd.f32 %v19327_v60, %v6954_v45  ;;  %v6766_v28 = vadd.f32 %v19329_v17, %v6573_v3  ;;  %v6958_v18 = vadd.f32 %v19336_v42, %v6764_v34  ;;  %v19338_v49 = vld [vmem:[#allocation236_spill] sm:$0xff]  ;;  %v19339_v46 = vld [vmem:[#allocation238_spill] sm:$0xff] }
 0x6f8   :  { %v7113_v62 = vpop.f32.mrf.mxu1  ;;  %v7145_v32 = vadd.f32 %v19328_v63, %v6952_v5  ;;  %v17384_v15 = vadd.f32 %v19335_v40, %v6577_v13  ;;  %v6956_v57 = vadd.f32 %v19337_v19, %v6762_v11  ;;  %v6959_v45 = vadd.f32 %v19339_v46, %v6765_v31 }
 0x6f9   :  { %v17320_v54 = vpop.f32.mrf.mxu0 }
 0x6fa   :  { %v9969_v58 = vpop.f32.mrf.mxu1  ;;  %v7149_v8 = vadd.f32 %v17312_v2, %v6956_v57 }
 0x6fb   :  { %v17334_v10 = vpop.f32.mrf.mxu0 }
 0x6fc   :  { %v7116_v3 = vpop.f32.mrf.mxu1 }
 0x6fd   :  { %v9984_v20 = vpop.f32.mrf.mxu0 }
 0x6fe   :  { %v17365_v30 = vadd.f32 %v9984_v20, %v7146_v33  ;;  %v7151_v33 = vadd.f32 %v17299_v16, %v6958_v18  ;;  %v9972_v2 = vpop.f32.mrf.mxu1 }
 0x6ff   :  { %v7274_v43 = vpop.f32.mrf.mxu0 }
 0x700   :  { %v17356_v44 = vadd.f32 %v7274_v43, %v7144_v21  ;;  %v7394_v47 = vmul.f32 %v17365_v30, %v17365_v30  ;;  %v7150_v21 = vadd.f32 %v19338_v49, %v6957_v36  ;;  %v7358_v5 = vsel %vm4682_vm0, %v17365_v30, 0.0 }
 0x701   :  { %v9985_v23 = vpop.f32.mrf.mxu0 }
 0x702   :  { %v7392_v0 = vmul.f32 %v17356_v44, %v17356_v44  ;;  %v17379_v22 = vadd.f32 %v9985_v23, %v7147_v26  ;;  %v7355_v38 = vsel %vm4682_vm0, %v17356_v44, 0.0  ;;  %v7411_v6 = vsel %vm4682_vm0, %v7394_v47, 0.0  ;;  %v19340_v26 = vld [vmem:[#allocation237_spill] sm:$0xff] }
 0x703   :  { %v7277_v7 = vpop.f32.mrf.mxu0  ;;  %v6961_v63 = vadd.f32 %v19340_v26, %v6767_v39 }
 0x704   :  { %v17381_v25 = vadd.f32 %v7277_v7, %v7145_v32  ;;  %v7408_v37 = vsel %vm4682_vm0, %v7392_v0, 0.0  ;;  %v7395_v43 = vmul.f32 %v17379_v22, %v17379_v22  ;;  %v7360_v23 = vsel %vm4682_vm0, %v17379_v22, 0.0  ;;  %v19341_v7 = vld [vmem:[#allocation100_spill] sm:$0xff]  ;;  %v19342_v0 = vld [vmem:[#allocation239_spill] sm:$0xff] }
 0x705   :  { %v9988_v29 = vpop.f32.mrf.mxu0  ;;  %v7152_v32 = vadd.f32 %v7113_v62, %v6959_v45  ;;  %v6962_v48 = vadd.f32 %v19341_v7, %v6768_v35  ;;  %v6960_v40 = vadd.f32 %v19342_v0, %v6766_v28  ;;  %v6963_v35 = vadd.f32 %v17307_v9, %v6769_v4 }
 0x706   :  { %v7356_v52 = vsel %vm4682_vm0, %v17381_v25, 0.0  ;;  %v7393_v20 = vmul.f32 %v17381_v25, %v17381_v25  ;;  %v17412_v51 = vadd.f32 %v9988_v29, %v7150_v21  ;;  %v7413_v50 = vsel %vm4682_vm0, %v7395_v43, 0.0 }
 0x707   :  { %v7357_v24 = vadd.f32 %v7356_v52, %v7355_v38  ;;  %v7290_v34 = vpop.f32.mrf.mxu0  ;;  %v7154_v29 = vadd.f32 %v17339_v41, %v6961_v63  ;;  %v7129_v52 = vpop.f32.mrf.mxu1  ;;  %v7155_v45 = vadd.f32 %v9969_v58, %v6962_v48 }
 0x708   :  { %v7409_v11 = vsel %vm4682_vm0, %v7393_v20, 0.0  ;;  %v17405_v56 = vadd.f32 %v7290_v34, %v7148_v12  ;;  %v7398_v42 = vmul.f32 %v17412_v51, %v17412_v51  ;;  %v7366_v20 = vsel %vm4682_vm0, %v17412_v51, 0.0 }
 0x709   :  { %v7359_v31 = vadd.f32 %v7358_v5, %v7357_v24  ;;  %v7410_v1 = vadd.f32 %v7409_v11, %v7408_v37  ;;  %v9989_v13 = vpop.f32.mrf.mxu0  ;;  %v7153_v5 = vadd.f32 %v7116_v3, %v6960_v40  ;;  %v6965_v11 = vadd.f32 %v17301_v53, %v17370_v61 }
 0x70a   :  { %v7396_v60 = vmul.f32 %v17405_v56, %v17405_v56  ;;  %v7362_v14 = vsel %vm4682_vm0, %v17405_v56, 0.0  ;;  %v17420_v55 = vadd.f32 %v9989_v13, %v7151_v33  ;;  %v7419_v9 = vsel %vm4682_vm0, %v7398_v42, 0.0 }
 0x70b   :  { %v7412_v17 = vadd.f32 %v7411_v6, %v7410_v1  ;;  %v7361_v16 = vadd.f32 %v7360_v23, %v7359_v31  ;;  %v7293_v59 = vpop.f32.mrf.mxu0  ;;  %v7156_v33 = vadd.f32 %v7129_v52, %v6963_v35  ;;  %v9973_v31 = vpop.f32.mrf.mxu1  ;;  %v6964_v53 = vadd.f32 %v17334_v10, %v17384_v15 }
 0x70c   :  { %v17422_v36 = vadd.f32 %v7293_v59, %v7149_v8  ;;  %v7415_v18 = vsel %vm4682_vm0, %v7396_v60, 0.0  ;;  %v7399_v49 = vmul.f32 %v17420_v55, %v17420_v55  ;;  %v7368_v4 = vsel %vm4682_vm0, %v17420_v55, 0.0 }
 0x70d   :  { %v7363_v12 = vadd.f32 %v7362_v14, %v7361_v16  ;;  %v7414_v39 = vadd.f32 %v7413_v50, %v7412_v17  ;;  %v9992_v62 = vpop.f32.mrf.mxu0  ;;  %v6966_v60 = vadd.f32 %v17320_v54, %v17375_v27  ;;  %v7158_v50 = vadd.f32 %v9972_v2, %v6965_v11  ;;  %v7132_v7 = vpop.f32.mrf.mxu1 }
 0x70e   :  { %v7364_v19 = vsel %vm4682_vm0, %v17422_v36, 0.0  ;;  %v7397_v57 = vmul.f32 %v17422_v36, %v17422_v36  ;;  %v17445_v37 = vadd.f32 %v9992_v62, %v7154_v29  ;;  %v7421_v1 = vsel %vm4682_vm0, %v7399_v49, 0.0 }
 0x70f   :  { %v7416_v47 = vadd.f32 %v7415_v18, %v7414_v39  ;;  %v7365_v28 = vadd.f32 %v7364_v19, %v7363_v12  ;;  %v7306_v38 = vpop.f32.mrf.mxu0  ;;  %v7159_v40 = vadd.f32 %v9973_v31, %v6966_v60  ;;  %v7157_v12 = vadd.f32 %v7132_v7, %v6964_v53 }
 0x710   :  { %v7417_v21 = vsel %vm4682_vm0, %v7397_v57, 0.0  ;;  %v17440_v46 = vadd.f32 %v7306_v38, %v7152_v32  ;;  %v7402_v32 = vmul.f32 %v17445_v37, %v17445_v37  ;;  %v7374_v10 = vsel %vm4682_vm0, %v17445_v37, 0.0 }
 0x711   :  { %v7367_v24 = vadd.f32 %v7366_v20, %v7365_v28  ;;  %v7418_v41 = vadd.f32 %v7417_v21, %v7416_v47  ;;  %v9993_v34 = vpop.f32.mrf.mxu0 }
 0x712   :  { %v7400_v43 = vmul.f32 %v17440_v46, %v17440_v46  ;;  %v7370_v13 = vsel %vm4682_vm0, %v17440_v46, 0.0  ;;  %v17454_v6 = vadd.f32 %v9993_v34, %v7155_v45  ;;  %v7427_v2 = vsel %vm4682_vm0, %v7402_v32, 0.0 }
 0x713   :  { %v7420_v8 = vadd.f32 %v7419_v9, %v7418_v41  ;;  %v7369_v58 = vadd.f32 %v7368_v4, %v7367_v24  ;;  %v7309_v3 = vpop.f32.mrf.mxu0 }
 0x714   :  { %v17456_v23 = vadd.f32 %v7309_v3, %v7153_v5  ;;  %v7423_v17 = vsel %vm4682_vm0, %v7400_v43, 0.0  ;;  %v7403_v15 = vmul.f32 %v17454_v6, %v17454_v6  ;;  %v7376_v18 = vsel %vm4682_vm0, %v17454_v6, 0.0 }
 0x715   :  { %v7371_v61 = vadd.f32 %v7370_v13, %v7369_v58  ;;  %v7422_v26 = vadd.f32 %v7421_v1, %v7420_v8  ;;  %v9996_v63 = vpop.f32.mrf.mxu0 }
 0x716   :  { %v7372_v16 = vsel %vm4682_vm0, %v17456_v23, 0.0  ;;  %v7401_v59 = vmul.f32 %v17456_v23, %v17456_v23  ;;  %v17479_v19 = vadd.f32 %v9996_v63, %v7158_v50  ;;  %v7429_v28 = vsel %vm4682_vm0, %v7403_v15, 0.0 }
 0x717   :  { %v7424_v14 = vadd.f32 %v7423_v17, %v7422_v26  ;;  %v7373_v54 = vadd.f32 %v7372_v16, %v7371_v61  ;;  %v7322_v27 = vpop.f32.mrf.mxu0 }
 0x718   :  { %v7425_v48 = vsel %vm4682_vm0, %v7401_v59, 0.0  ;;  %v17474_v0 = vadd.f32 %v7322_v27, %v7156_v33  ;;  %v7406_v45 = vmul.f32 %v17479_v19, %v17479_v19  ;;  %v7382_v4 = vsel %vm4682_vm0, %v17479_v19, 0.0 }
 0x719   :  { %v7375_v39 = vadd.f32 %v7374_v10, %v7373_v54  ;;  %v7426_v62 = vadd.f32 %v7425_v48, %v7424_v14  ;;  %v9997_v42 = vpop.f32.mrf.mxu0 }
 0x71a   :  { %v7404_v57 = vmul.f32 %v17474_v0, %v17474_v0  ;;  %v7378_v38 = vsel %vm4682_vm0, %v17474_v0, 0.0  ;;  %v17486_v52 = vadd.f32 %v9997_v42, %v7159_v40  ;;  %v7435_v58 = vsel %vm4682_vm0, %v7406_v45, 0.0  ;;  %v7354_v42 = vld [vmem:[%s17939_s3 + $0x3] sm:$0x1] }
 0x71b   :  { %v7428_v29 = vadd.f32 %v7427_v2, %v7426_v62  ;;  %v7377_v35 = vadd.f32 %v7376_v18, %v7375_v39  ;;  %v7325_v47 = vpop.f32.mrf.mxu0  ;;  %v19343_v18 = vld [vmem:[#allocation187_spill] sm:$0xff] }
 0x71c   :  { %v7350_v20 = vadd.f32 %v7325_v47, %v7157_v12  ;;  %v7431_v5 = vsel %vm4682_vm0, %v7404_v57, 0.0  ;;  %v7407_v43 = vmul.f32 %v17486_v52, %v17486_v52  ;;  %v7384_v3 = vsel %vm4682_vm0, %v17486_v52, 0.0  ;;  %v7353_v12 = vld [vmem:[%s17939_s3 + $0x2] sm:$0x1] }
 0x71d   :  { %v7379_v49 = vadd.f32 %v7378_v38, %v7377_v35  ;;  %v7430_v21 = vadd.f32 %v7429_v28, %v7428_v29 }
 0x71e   :  { %v7380_v24 = vsel %vm4682_vm0, %v7350_v20, 0.0  ;;  %v7405_v41 = vmul.f32 %v7350_v20, %v7350_v20  ;;  %v7437_v13 = vsel %vm4682_vm0, %v7407_v43, 0.0 }
 0x71f   :  { %v7432_v34 = vadd.f32 %v7431_v5, %v7430_v21  ;;  %v7381_v9 = vadd.f32 %v7380_v24, %v7379_v49 }
 0x720   :  { %v7433_v11 = vsel %vm4682_vm0, %v7405_v41, 0.0 }
 0x721   :  { %v7383_v33 = vadd.f32 %v7382_v4, %v7381_v9  ;;  %v7434_v8 = vadd.f32 %v7433_v11, %v7432_v34 }
 0x723   :  { %v7385_v31 = vadd.f32 %v7384_v3, %v7383_v33  ;;  %v7436_v1 = vadd.f32 %v7435_v58, %v7434_v8 }
 0x725   :  { %v7386_v60 = vrot.slane %v7385_v31, 4  ;;  %v7438_v53 = vadd.f32 %v7437_v13, %v7436_v1 }
 0x727   :  { %v7387_v61 = vadd.f32 %v7386_v60, %v7385_v31  ;;  %v7439_v26 = vrot.slane %v7438_v53, 4 }
 0x729   :  { %v7388_v63 = vrot.slane %v7387_v61, 2  ;;  %v7440_v32 = vadd.f32 %v7439_v26, %v7438_v53 }
 0x72b   :  { %v7389_v17 = vadd.f32 %v7388_v63, %v7387_v61  ;;  %v7441_v16 = vrot.slane %v7440_v32, 2 }
 0x72d   :  { %v7390_v59 = vrot.slane %v7389_v17, 1  ;;  %v7442_v50 = vadd.f32 %v7441_v16, %v7440_v32 }
 0x72f   :  { %v7391_v14 = vadd.f32 %v7390_v59, %v7389_v17  ;;  %v7443_v54 = vrot.slane %v7442_v50, 1 }
 0x731   :  { %v7444_v27 = vadd.f32 %v7443_v54, %v7442_v50  ;;  %v7445_v7 = vmul.f32 0.0078125, %v7391_v14 }
 0x733   :  { %v7446_v10 = vmul.f32 0.0078125, %v7444_v27  ;;  %v7447_v15 = vmul.f32 %v7445_v7, %v7445_v7 }
 0x735   :  { %v7448_v48 = vsub.f32 %v7446_v10, %v7447_v15 }
 0x737   :  { %v7449_v40 = vadd.f32 1e-05, %v7448_v48 }
 0x739   :  { %10298 = vrsqrt.f32 %v7449_v40 }
 0x746   :  { %v10299_v39 = vpop.eup %10298 }
 0x747   :  { %v7451_v62 = vmul.f32 %v10299_v39, %v7353_v12 }
 0x749   :  { %v7452_v2 = vmul.f32 %v7451_v62, %v7445_v7  ;;  %v17508_v57 = vrot.slane %v7451_v62, %v19343_v18 }
 0x74b   :  { %v7453_v29 = vsub.f32 %v7354_v42, %v7452_v2  ;;  %v7471_v35 = vmul.f32 %v17508_v57, %v7350_v20  ;;  %v7458_v47 = vmul.f32 %v17508_v57, %v17356_v44  ;;  %v7459_v28 = vmul.f32 %v17508_v57, %v17381_v25 }
 0x74c   :  { %v7466_v38 = vmul.f32 %v17508_v57, %v17440_v46  ;;  %v7467_v49 = vmul.f32 %v17508_v57, %v17456_v23  ;;  %v7460_v21 = vmul.f32 %v17508_v57, %v17365_v30  ;;  %v7461_v45 = vmul.f32 %v17508_v57, %v17379_v22 }
 0x74d   :  { %v17524_v20 = vrot.slane %v7453_v29, %v19343_v18  ;;  %v7468_v44 = vmul.f32 %v17508_v57, %v17445_v37  ;;  %v7469_v25 = vmul.f32 %v17508_v57, %v17454_v6  ;;  %v7462_v46 = vmul.f32 %v17508_v57, %v17405_v56 }
 0x74e   :  { %v7463_v23 = vmul.f32 %v17508_v57, %v17422_v36  ;;  %v7470_v30 = vmul.f32 %v17508_v57, %v17474_v0  ;;  %v7464_v22 = vmul.f32 %v17508_v57, %v17412_v51  ;;  %v7465_v5 = vmul.f32 %v17508_v57, %v17420_v55 }
 0x74f   :  { %v7491_v37 = vadd.f32 %v17524_v20, %v7471_v35  ;;  %v7478_v24 = vadd.f32 %v17524_v20, %v7458_v47  ;;  %v7479_v6 = vadd.f32 %v17524_v20, %v7459_v28  ;;  %v7486_v56 = vadd.f32 %v17524_v20, %v7466_v38 }
 0x750   :  { %v7487_v41 = vadd.f32 %v17524_v20, %v7467_v49  ;;  %v7480_v36 = vadd.f32 %v17524_v20, %v7460_v21  ;;  %v7481_v0 = vadd.f32 %v17524_v20, %v7461_v45  ;;  %v7488_v34 = vadd.f32 %v17524_v20, %v7468_v44 }
 0x751   :  { %vm7507_vm5 = vcmp.ge.f32.partialorder %v7491_v37, 0.0  ;;  %v7523_v51 = vmul.f32 0.01, %v7491_v37  ;;  %vm7494_vm8 = vcmp.ge.f32.partialorder %v7478_v24, 0.0  ;;  %vm7495_vm9 = vcmp.ge.f32.partialorder %v7479_v6, 0.0 }
 0x752   :  { %vm7502_vm1 = vcmp.ge.f32.partialorder %v7486_v56, 0.0  ;;  %vm7503_vm13 = vcmp.ge.f32.partialorder %v7487_v41, 0.0  ;;  %v7510_v55 = vmul.f32 0.01, %v7478_v24  ;;  %v7511_v9 = vmul.f32 0.01, %v7479_v6 }
 0x753   :  { %v7539_v4 = vsel %vm7507_vm5, %v7491_v37, %v7523_v51  ;;  %v7518_v43 = vmul.f32 0.01, %v7486_v56  ;;  %v7519_v11 = vmul.f32 0.01, %v7487_v41  ;;  %v7489_v33 = vadd.f32 %v17524_v20, %v7469_v25 }
 0x754   :  { %7555 = vst.msk [vmem:[#allocation4 + $0x68] sm:$0xff] %vm4682_vm0, %v7539_v4  ;;  %v7526_v8 = vsel %vm7494_vm8, %v7478_v24, %v7510_v55  ;;  %v7527_v58 = vsel %vm7495_vm9, %v7479_v6, %v7511_v9  ;;  %vm7496_vm11 = vcmp.ge.f32.partialorder %v7480_v36, 0.0  ;;  %vm7497_vm2 = vcmp.ge.f32.partialorder %v7481_v0, 0.0  ;;  %v10240_v4 = vld [vmem:[%s17940_s4 + $0x38] sm:$0xff]  }
 0x755   :  { %v7534_v3 = vsel %vm7502_vm1, %v7486_v56, %v7518_v43  ;;  %v7535_v31 = vsel %vm7503_vm13, %v7487_v41, %v7519_v11  ;;  %7542 = vst.msk [vmem:[#allocation4] sm:$0xff] %vm4682_vm0, %v7526_v8  ;;  %7543 = vst.msk [vmem:[#allocation4 + $0x8] sm:$0xff] %vm4682_vm0, %v7527_v58  ;;  %vm7504_vm6 = vcmp.ge.f32.partialorder %v7488_v34, 0.0  ;;  %vm7505_vm14 = vcmp.ge.f32.partialorder %v7489_v33, 0.0  ;;  %v10241_v11 = vld [vmem:[%s17940_s4 + $0x98] sm:$0xff]  }
 0x756   :  { %7550 = vst.msk [vmem:[#allocation4 + $0x40] sm:$0xff] %vm4682_vm0, %v7534_v3  ;;  %7551 = vst.msk [vmem:[#allocation4 + $0x48] sm:$0xff] %vm4682_vm0, %v7535_v31  ;;  %v7512_v1 = vmul.f32 0.01, %v7480_v36  ;;  %v7513_v13 = vmul.f32 0.01, %v7481_v0  ;;  %v7482_v53 = vadd.f32 %v17524_v20, %v7462_v46  ;;  %v7483_v26 = vadd.f32 %v17524_v20, %v7463_v23 }
 0x757   :  { %v7520_v60 = vmul.f32 0.01, %v7488_v34  ;;  %v7521_v61 = vmul.f32 0.01, %v7489_v33  ;;  %v7490_v63 = vadd.f32 %v17524_v20, %v7470_v30  ;;  %v7472_v32 = vmul.f32 %v17508_v57, %v17479_v19 }
 0x758   :  { %v7528_v17 = vsel %vm7496_vm11, %v7480_v36, %v7512_v1  ;;  %v7529_v16 = vsel %vm7497_vm2, %v7481_v0, %v7513_v13  ;;  %vm7498_vm3 = vcmp.ge.f32.partialorder %v7482_v53, 0.0  ;;  %vm7499_vm7 = vcmp.ge.f32.partialorder %v7483_v26, 0.0  ;;  %v10242_v1 = vld [vmem:[%s17940_s4 + $0x30] sm:$0xff]  }
 0x759   :  { %v7536_v59 = vsel %vm7504_vm6, %v7488_v34, %v7520_v60  ;;  %v7537_v50 = vsel %vm7505_vm14, %v7489_v33, %v7521_v61  ;;  %7544 = vst.msk [vmem:[#allocation4 + $0x10] sm:$0xff] %vm4682_vm0, %v7528_v17  ;;  %7545 = vst.msk [vmem:[#allocation4 + $0x18] sm:$0xff] %vm4682_vm0, %v7529_v16  ;;  %vm7506_vm12 = vcmp.ge.f32.partialorder %v7490_v63, 0.0  ;;  %v7514_v14 = vmul.f32 0.01, %v7482_v53  ;;  %v10243_v13 = vld [vmem:[%s17940_s4 + $0x90] sm:$0xff]  }
 0x75a   :  { %7552 = vst.msk [vmem:[#allocation4 + $0x50] sm:$0xff] %vm4682_vm0, %v7536_v59  ;;  %7553 = vst.msk [vmem:[#allocation4 + $0x58] sm:$0xff] %vm4682_vm0, %v7537_v50  ;;  %v7515_v54 = vmul.f32 0.01, %v7483_v26  ;;  %v7522_v19 = vmul.f32 0.01, %v7490_v63  ;;  %v7473_v27 = vmul.f32 %v17508_v57, %v17486_v52  ;;  %v17568_v7 = vadd.f32 %v17524_v20, %v7464_v22 }
 0x75b   :  { %v7530_v10 = vsel %vm7498_vm3, %v7482_v53, %v7514_v14  ;;  %v17571_v15 = vadd.f32 %v17524_v20, %v7465_v5  ;;  %v17574_v48 = vadd.f32 %v17524_v20, %v7472_v32  ;;  %v19344_v53 = vmov 0.0  }
 0x75c   :  { %v7558_v40 = vld [vmem:[#allocation4] ss:$2 sm:$0xf]  ;;  %v7574_v12 = vld [vmem:[#allocation4 + $0x1] ss:$2 sm:$0xf]  ;;  %v7531_v39 = vsel %vm7499_vm7, %v7483_v26, %v7515_v54  ;;  %v7538_v62 = vsel %vm7506_vm12, %v7490_v63, %v7522_v19  ;;  %v17578_v42 = vadd.f32 %v17524_v20, %v7473_v27 }
 0x75d   :  { %7546 = vst.msk [vmem:[#allocation4 + $0x20] sm:$0xff] %vm4682_vm0, %v7530_v10  ;;  %v7566_v52 = vld [vmem:[#allocation4 + $0x40] ss:$2 sm:$0xf]  ;;  %7547 = vst.msk [vmem:[#allocation4 + $0x28] sm:$0xff] %vm4682_vm0, %v7531_v39  ;;  %v7621_v29 = vmax.f32 %v7558_v40, %v7574_v12  ;;  %v10244_v26 = vld [vmem:[%s17940_s4 + $0x28] sm:$0xff]  }
 0x75e   :  { %v7582_v2 = vld [vmem:[#allocation4 + $0x41] ss:$2 sm:$0xf]  ;;  %7554 = vst.msk [vmem:[#allocation4 + $0x60] sm:$0xff] %vm4682_vm0, %v7538_v62  ;;  %v10245_v63 = vld [vmem:[%s17940_s4 + $0x88] sm:$0xff]   ;;  %vm7500_vm15 = vcmp.ge.f32.partialorder %v17568_v7, 0.0 }
 0x75f   :  { %v7590_v18 = vld [vmem:[#allocation4 + $0x8] ss:$2 sm:$0xf]  ;;  %v7625_v35 = vmax.f32 %v7566_v52, %v7582_v2  ;;  %v7606_v47 = vld [vmem:[#allocation4 + $0x9] ss:$2 sm:$0xf] }
 0x760   :  { %v7598_v57 = vld [vmem:[#allocation4 + $0x48] ss:$2 sm:$0xf]  ;;  %v7614_v28 = vld [vmem:[#allocation4 + $0x49] ss:$2 sm:$0xf]  ;;  %v7629_v38 = vmax.f32 %v7590_v18, %v7606_v47 }
 0x761   :  { %v7633_v49 = vmax.f32 %v7598_v57, %v7614_v28  ;;  %v7568_v21 = vld [vmem:[#allocation4 + $0x50] ss:$2 sm:$0xf]  ;;  %v7584_v45 = vld [vmem:[#allocation4 + $0x51] ss:$2 sm:$0xf] }
 0x762   :  { %v7637_v44 = vmax.f32 %v7621_v29, %v7629_v38  ;;  %v7600_v20 = vld [vmem:[#allocation4 + $0x58] ss:$2 sm:$0xf]  ;;  %v7616_v46 = vld [vmem:[#allocation4 + $0x59] ss:$2 sm:$0xf]  ;;  %v7626_v22 = vmax.f32 %v7568_v21, %v7584_v45 }
 0x763   :  { %v7641_v25 = vmax.f32 %v7625_v35, %v7633_v49  ;;  %v7634_v5 = vmax.f32 %v7600_v20, %v7616_v46  ;;  %v7560_v6 = vld [vmem:[#allocation4 + $0x10] ss:$2 sm:$0xf]  ;;  %v7576_v56 = vld [vmem:[#allocation4 + $0x11] ss:$2 sm:$0xf] }
 0x764   :  { %v7653_v23 = vpack.c.bf16 %v7637_v44, %v7637_v44  ;;  %v7592_v41 = vld [vmem:[#allocation4 + $0x18] ss:$2 sm:$0xf]  ;;  %v7608_v36 = vld [vmem:[#allocation4 + $0x19] ss:$2 sm:$0xf]  ;;  %v7622_v33 = vmax.f32 %v7560_v6, %v7576_v56 }
 0x765   :  { %v7654_v30 = vpack.c.bf16 %v7641_v25, %v7641_v25  ;;  %v7642_v55 = vmax.f32 %v7626_v22, %v7634_v5  ;;  %v7630_v8 = vmax.f32 %v7592_v41, %v7608_v36  ;;  %vm7501_vm5 = vcmp.ge.f32.partialorder %v17571_v15, 0.0  ;;  %v10246_v19 = vld [vmem:[%s17940_s4 + $0x20] sm:$0xff]   ;;  %v10250_v18 = vld [vmem:[%s17940_s4 + $0x70] sm:$0xff]   ;;  %v7602_v29 = vld [vmem:[#allocation4 + $0x68] ss:$2 sm:$0xf] }
 0x766   :  { %v17582_v37 = vunpack.c.l.b16 %v7653_v23  ;;  %vm7508_vm8 = vcmp.ge.f32.partialorder %v17574_v48, 0.0  ;;  %v7516_v17 = vmul.f32 0.01, %v17568_v7  ;;  %v7517_v16 = vmul.f32 0.01, %v17571_v15  ;;  %v10247_v27 = vld [vmem:[%s17940_s4 + $0x80] sm:$0xff]  }
 0x767   :  { %v17584_v24 = vunpack.c.l.b16 %v7654_v30  ;;  %v7979_v31 = vpack.c.bf16 %v7642_v55, %v7642_v55  ;;  %v7638_v60 = vmax.f32 %v7622_v33, %v7630_v8  ;;  %vm7509_vm9 = vcmp.ge.f32.partialorder %v17578_v42, 0.0  ;;  %v10251_v57 = vld [vmem:[%s17940_s4 + $0xd0] sm:$0xff]   ;;  %v7618_v35 = vld [vmem:[#allocation4 + $0x69] ss:$2 sm:$0xf]  ;;  %v10254_v23 = vld [vmem:[%s17940_s4 + $0x60] sm:$0xff]  }
 0x768   :  { %v7826_v34 = vrot.slane %v17582_v37, 2  ;;  %v7747_v59 = vrot.slane %v17582_v37, 1  ;;  %v7524_v14 = vmul.f32 0.01, %v17574_v48  ;;  %v7525_v54 = vmul.f32 0.01, %v17578_v42 }
 0x769   :  { %v7667_v0 = vrot.slane %v17584_v24, 7  ;;  %v7827_v51 = vrot.slane %v17584_v24, 1  ;;  %v17612_v61 = vunpack.c.l.b16 %v7979_v31  ;;  %v7978_v32 = vpack.c.bf16 %v7638_v60, %v7638_v60  ;;  %v7570_v47 = vld [vmem:[#allocation4 + $0x60] ss:$2 sm:$0xf]  ;;  %v10252_v38 = vld [vmem:[%s17940_s4 + $0x68] sm:$0xff]  }
 0x76a   :  { %v7532_v40 = vsel %vm7500_vm15, %v17568_v7, %v7516_v17  ;;  %v7533_v12 = vsel %vm7501_vm5, %v17571_v15, %v7517_v16  ;;  %v7540_v39 = vsel %vm7508_vm8, %v17574_v48, %v7524_v14  ;;  %v7541_v62 = vsel %vm7509_vm9, %v17578_v42, %v7525_v54  ;;  %v10248_v15 = vld [vmem:[%s17940_s4 + $0x78] sm:$0xff]   ;;  %v7586_v28 = vld [vmem:[#allocation4 + $0x61] ss:$2 sm:$0xf]  ;;  %v10253_v49 = vld [vmem:[%s17940_s4 + $0xc8] sm:$0xff]  }
 0x76b   :  { %v7669_v9 = vsel %vm7668_vm4, %v7667_v0, %v17582_v37  ;;  %v7828_v43 = vsel %vm7668_vm4, %v7827_v51, %v7826_v34  ;;  %v7992_v50 = vrot.slane %v17612_v61, 7  ;;  %v17638_v10 = vunpack.c.l.b16 %v7978_v32  ;;  %7548 = vst.msk [vmem:[#allocation4 + $0x30] sm:$0xff] %vm4682_vm0, %v7532_v40  ;;  %7549 = vst.msk [vmem:[#allocation4 + $0x38] sm:$0xff] %vm4682_vm0, %v7533_v12  ;;  %v10249_v48 = vld [vmem:[%s17940_s4 + $0xd8] sm:$0xff]   ;;  %v10255_v30 = vld [vmem:[%s17940_s4 + $0xc0] sm:$0xff]  }
 0x76c   :  { %v7670_v58 = vpack.c.b16 %v7669_v9, %v7669_v9  ;;  %v7829_v3 = vpack.c.b16 %v7828_v43, %v7828_v43  ;;  %7556 = vst.msk [vmem:[#allocation4 + $0x70] sm:$0xff] %vm4682_vm0, %v7540_v39  ;;  %v7748_v52 = vsel %vm7668_vm4, %v17584_v24, %v7747_v59  ;;  %7557 = vst.msk [vmem:[#allocation4 + $0x78] sm:$0xff] %vm4682_vm0, %v7541_v62  ;;  %v7906_v44 = vrot.slane %v17582_v37, 3  ;;  %v7562_v22 = vld [vmem:[#allocation4 + $0x20] ss:$2 sm:$0xf] }
 0x76d   :  { %v7993_v7 = vsel %vm7668_vm4, %v7992_v50, %v17638_v10  ;;  %v7749_v42 = vpack.c.b16 %v7748_v52, %v7748_v52  ;;  %v7627_v21 = vmax.f32 %v7570_v47, %v7586_v28  ;;  %v7635_v45 = vmax.f32 %v7602_v29, %v7618_v35  ;;  %v7578_v5 = vld [vmem:[#allocation4 + $0x21] ss:$2 sm:$0xf]  ;;  %v7594_v37 = vld [vmem:[#allocation4 + $0x28] ss:$2 sm:$0xf] }
 0x76e   :  { %10007 = vmatmul.mubr.msk.bf16.vlgmr.msra.gmra.mxu1 %vm4682_vm0, %v7670_v58  ;;  %10031 = vmatmul.mubr.msk.bf16.vlgmr.msra.gmra.mxu0 %vm4682_vm0, %v7829_v3  ;;  %v7994_v2 = vpack.c.b16 %v7993_v7, %v7993_v7  ;;  %v7907_v25 = vrot.slane %v17584_v24, 2  ;;  %v8150_v20 = vrot.slane %v17638_v10, 2  ;;  %v8151_v46 = vrot.slane %v17612_v61, 1  ;;  %v7610_v24 = vld [vmem:[#allocation4 + $0x29] ss:$2 sm:$0xf] }
 0x76f   :  { %10011 = vmatpush3.bf16.msra.mxu1 %v10240_v4  ;;  %10047 = vmatpush3.bf16.msra.mxu0 %v10241_v11  ;;  %v7643_v41 = vmax.f32 %v7627_v21, %v7635_v45  ;;  %v10256_v36 = vld [vmem:[%s17940_s4 + $0xb8] sm:$0xff]   ;;  %v7623_v34 = vmax.f32 %v7562_v22, %v7578_v5  ;;  %v7631_v51 = vmax.f32 %v7594_v37, %v7610_v24  ;;  %v10258_v43 = vld [vmem:[%s17940_s4 + $0xb0] sm:$0xff]   ;;  %v10260_v58 = vld [vmem:[%s17940_s4 + $0xa8] sm:$0xff]   ;;  %v8230_v7 = vrot.slane %v17638_v10, 3 }
 0x770   :  { %10012 = vmatprep.subr.bf16.mxu1 %v19344_v53  ;;  %10048 = vmatprep.subr.bf16.mxu0 %v19344_v53  ;;  %v7908_v6 = vsel %vm7668_vm4, %v7907_v25, %v7906_v44  ;;  %v8152_v56 = vsel %vm7668_vm4, %v8151_v46, %v8150_v20  ;;  %v10257_v0 = vld [vmem:[%s17940_s4 + $0x118] sm:$0xff]   ;;  %v10259_v11 = vld [vmem:[%s17940_s4 + $0x110] sm:$0xff]   ;;  %v10261_v3 = vld [vmem:[%s17940_s4 + $0x108] sm:$0xff]  }
 0x771   :  { %10018 = vmatprep.mubr.msk.bf16.mxu1 %vm10336_vm10, %v19344_v53  ;;  %10054 = vmatprep.mubr.msk.bf16.mxu0 %vm10336_vm10, %v19344_v53  ;;  %v7909_v55 = vpack.c.b16 %v7908_v6, %v7908_v6  ;;  %v8153_v9 = vpack.c.b16 %v8152_v56, %v8152_v56  ;;  %v8303_v4 = vpack.c.bf16 %v7643_v41, %v7643_v41  ;;  %v10262_v60 = vld [vmem:[%s17940_s4 + $0xa0] sm:$0xff]   ;;  %v10264_v16 = vld [vmem:[%s17940_s4 + $0xf8] sm:$0xff]   ;;  %v10266_v54 = vld [vmem:[%s17940_s4 + $0xf0] sm:$0xff]  }
 0x772   :  { %v7639_v33 = vmax.f32 %v7623_v34, %v7631_v51  ;;  %v10265_v59 = vld [vmem:[%s17940_s4 + $0x158] sm:$0xff]   ;;  %v10268_v62 = vld [vmem:[%s17940_s4 + $0xe8] sm:$0xff]   ;;  %v10271_v29 = vld [vmem:[%s17940_s4 + $0x140] sm:$0xff]  }
 0x773   :  { %10013 = vmatpush3.bf16.msra.mxu1 %v10242_v1  ;;  %10049 = vmatpush3.bf16.msra.mxu0 %v10243_v13  ;;  %v17722_v8 = vunpack.c.l.b16 %v8303_v4  ;;  %v8071_v1 = vrot.slane %v17638_v10, 1  ;;  %v7588_v40 = vld [vmem:[#allocation4 + $0x71] ss:$2 sm:$0xf]  ;;  %v10269_v52 = vld [vmem:[%s17940_s4 + $0x148] sm:$0xff]   ;;  %v10272_v21 = vld [vmem:[%s17940_s4 + $0x138] sm:$0xff]  }
 0x774   :  { %10014 = vmatprep.subr.bf16.mxu1 %v19344_v53  ;;  %10050 = vmatprep.subr.bf16.mxu0 %v19344_v53  ;;  %v8302_v31 = vpack.c.bf16 %v7639_v33, %v7639_v33  ;;  %v7604_v12 = vld [vmem:[#allocation4 + $0x78] ss:$2 sm:$0xf]  ;;  %v7620_v39 = vld [vmem:[#allocation4 + $0x79] ss:$2 sm:$0xf] }
 0x775   :  { %v8316_v13 = vrot.slane %v17722_v8, 7  ;;  %v8072_v32 = vsel %vm7668_vm4, %v17612_v61, %v8071_v1  ;;  %v7564_v35 = vld [vmem:[#allocation4 + $0x30] ss:$2 sm:$0xf]  ;;  %v10273_v45 = vld [vmem:[%s17940_s4 + $0x198] sm:$0xff]   ;;  %v10276_v24 = vld [vmem:[%s17940_s4 + $0x128] sm:$0xff]  }
 0x776   :  { %v8073_v50 = vpack.c.b16 %v8072_v32, %v8072_v32  ;;  %v7580_v10 = vld [vmem:[#allocation4 + $0x31] ss:$2 sm:$0xf]  ;;  %v7612_v47 = vld [vmem:[#allocation4 + $0x39] ss:$2 sm:$0xf] }
 0x777   :  { %10015 = vmatpush3.bf16.msra.mxu1 %v10244_v26  ;;  %10051 = vmatpush3.bf16.msra.mxu0 %v10245_v63  ;;  %v10263_v26 = vld [vmem:[%s17940_s4 + $0x100] sm:$0xff]   ;;  %v17740_v63 = vunpack.c.l.b16 %v8302_v31  ;;  %v7624_v44 = vmax.f32 %v7564_v35, %v7580_v10  ;;  %v10275_v22 = vld [vmem:[%s17940_s4 + $0x190] sm:$0xff]   ;;  %v10277_v6 = vld [vmem:[%s17940_s4 + $0x188] sm:$0xff]  }
 0x778   :  { %10016 = vmatprep.subr.bf16.mxu1 %v19344_v53  ;;  %10052 = vmatprep.subr.bf16.mxu0 %v19344_v53  ;;  %v10279_v34 = vld [vmem:[%s17940_s4 + $0x180] sm:$0xff]   ;;  %v10280_v4 = vld [vmem:[%s17940_s4 + $0x178] sm:$0xff]   ;;  %v10284_v31 = vld [vmem:[%s17940_s4 + $0x168] sm:$0xff]  }
 0x779   :  { %v8317_v17 = vsel %vm7668_vm4, %v8316_v13, %v17740_v63  ;;  %v8395_v41 = vrot.slane %v17740_v63, 1  ;;  %v10285_v1 = vld [vmem:[%s17940_s4 + $0x1c8] sm:$0xff]   ;;  %v8554_v13 = vrot.slane %v17740_v63, 3 }
 0x77a   :  { %v8318_v14 = vpack.c.b16 %v8317_v17, %v8317_v17  ;;  %v10286_v17 = vld [vmem:[%s17940_s4 + $0x160] sm:$0xff]  }
 0x77b   :  { %10017 = vmatpush3.bf16.msra.mxu1 %v10246_v19  ;;  %10053 = vmatpush3.bf16.msra.mxu0 %v10247_v27  ;;  %v10267_v19 = vld [vmem:[%s17940_s4 + $0x150] sm:$0xff]  }
 0x77c   :  { %10034 = vmatprep.subr.bf16.mxu1 %v19344_v53  ;;  %10070 = vmatprep.subr.bf16.mxu0 %v19344_v53  ;;  %v7572_v27 = vld [vmem:[#allocation4 + $0x70] ss:$2 sm:$0xf] }
 0x77e   :  { %10019 = vmatmul.mubr.msk.bf16.vlgmr.msra.gmra.mxu1 %vm4682_vm0, %v7749_v42  ;;  %10055 = vmatmul.mubr.msk.bf16.vlgmr.msra.gmra.mxu0 %vm4682_vm0, %v7994_v2  ;;  %v8475_v42 = vrot.slane %v17722_v8, 1  ;;  %v7628_v2 = vmax.f32 %v7572_v27, %v7588_v40  ;;  %v10291_v40 = vld [vmem:[%s17940_s4 + $0x1a0] sm:$0xff]  }
 0x77f   :  { %10035 = vmatpush3.bf16.msra.mxu1 %v10248_v15  ;;  %10071 = vmatpush3.bf16.msra.mxu0 %v10249_v48  ;;  %v8231_v15 = vrot.slane %v17612_v61, 2  ;;  %v8474_v48 = vrot.slane %v17740_v63, 2  ;;  %v7596_v61 = vld [vmem:[#allocation4 + $0x38] ss:$2 sm:$0xf] }
 0x780   :  { %10036 = vmatprep.subr.bf16.mxu1 %v19344_v53  ;;  %10072 = vmatprep.subr.bf16.mxu0 %v19344_v53  ;;  %v7632_v25 = vmax.f32 %v7596_v61, %v7612_v47 }
 0x781   :  { %10042 = vmatprep.mubr.msk.bf16.mxu1 %vm10336_vm10, %v19344_v53  ;;  %10078 = vmatprep.mubr.msk.bf16.mxu0 %vm10336_vm10, %v19344_v53  ;;  %v8232_v28 = vsel %vm7668_vm4, %v8231_v15, %v8230_v7  ;;  %v10294_v7 = vld [vmem:[%s17940_s4 + $0x1e8] sm:$0xff]  }
 0x782   :  { %v8233_v20 = vpack.c.b16 %v8232_v28, %v8232_v28  ;;  %v7640_v5 = vmax.f32 %v7624_v44, %v7632_v25 }
 0x783   :  { %10037 = vmatpush3.bf16.msra.mxu1 %v10250_v18  ;;  %10073 = vmatpush3.bf16.msra.mxu0 %v10251_v57  ;;  %v7636_v18 = vmax.f32 %v7604_v12, %v7620_v39  ;;  %v10270_v57 = vld [vmem:[%s17940_s4 + $0xe0] sm:$0xff]   ;;  %v10292_v39 = vld [vmem:[%s17940_s4 + $0x1f8] sm:$0xff]  }
 0x784   :  { %10038 = vmatprep.subr.bf16.mxu1 %v19344_v53  ;;  %10074 = vmatprep.subr.bf16.mxu0 %v19344_v53  ;;  %v8626_v56 = vpack.c.bf16 %v7640_v5, %v7640_v5 }
 0x786   :  { %v17832_v51 = vunpack.c.l.b16 %v8626_v56 }
 0x787   :  { %10039 = vmatpush3.bf16.msra.mxu1 %v10252_v38  ;;  %10075 = vmatpush3.bf16.msra.mxu0 %v10253_v49  ;;  %v8476_v38 = vsel %vm7668_vm4, %v8475_v42, %v8474_v48  ;;  %v7644_v49 = vmax.f32 %v7628_v2, %v7636_v18  ;;  %v10295_v42 = vld [vmem:[%s17940_s4 + $0x1e0] sm:$0xff]  }
 0x788   :  { %10040 = vmatprep.subr.bf16.mxu1 %v19344_v53  ;;  %10076 = vmatprep.subr.bf16.mxu0 %v19344_v53  ;;  %v8477_v46 = vpack.c.b16 %v8476_v38, %v8476_v38  ;;  %v8719_v27 = vrot.slane %v17832_v51, 1  ;;  %v8878_v15 = vrot.slane %v17832_v51, 3 }
 0x78b   :  { %10041 = vmatpush3.bf16.msra.mxu1 %v10254_v23  ;;  %10077 = vmatpush3.bf16.msra.mxu0 %v10255_v30  ;;  %v8627_v23 = vpack.c.bf16 %v7644_v49, %v7644_v49  ;;  %v10274_v30 = vld [vmem:[%s17940_s4 + $0x130] sm:$0xff]   ;;  %v9513_v49 = vld [vmem:[%s17941_s5] ss:$0 sm:$0xff] }
 0x78c   :  { %10058 = vmatprep.subr.bf16.mxu1 %v19344_v53  ;;  %10094 = vmatprep.subr.bf16.mxu0 %v19344_v53 }
 0x78d   :  { %v17814_v37 = vunpack.c.l.b16 %v8627_v23 }
 0x78e   :  { %10043 = vmatmul.mubr.msk.bf16.vlgmr.msra.gmra.mxu1 %vm4682_vm0, %v7909_v55  ;;  %10079 = vmatmul.mubr.msk.bf16.vlgmr.msra.gmra.mxu0 %vm4682_vm0, %v8153_v9  ;;  %v8396_v55 = vsel %vm7668_vm4, %v17722_v8, %v8395_v41 }
 0x78f   :  { %10059 = vmatpush3.bf16.msra.mxu1 %v10256_v36  ;;  %10095 = vmatpush3.bf16.msra.mxu0 %v10257_v0  ;;  %v8640_v36 = vrot.slane %v17814_v37, 7  ;;  %v10278_v0 = vld [vmem:[%s17940_s4 + $0x120] sm:$0xff]   ;;  %v8799_v32 = vrot.slane %v17814_v37, 1  ;;  %v8720_v12 = vsel %vm7668_vm4, %v17814_v37, %v8719_v27  ;;  %v8879_v48 = vrot.slane %v17814_v37, 2 }
 0x790   :  { %10060 = vmatprep.subr.bf16.mxu1 %v19344_v53  ;;  %10096 = vmatprep.subr.bf16.mxu0 %v19344_v53 }
 0x791   :  { %10066 = vmatprep.mubr.msk.bf16.mxu1 %vm10336_vm10, %v19344_v53  ;;  %10102 = vmatprep.mubr.msk.bf16.mxu0 %vm10336_vm10, %v19344_v53  ;;  %v8641_v9 = vsel %vm7668_vm4, %v8640_v36, %v17832_v51  ;;  %v8880_v2 = vsel %vm7668_vm4, %v8879_v48, %v8878_v15 }
 0x792   :  { %v8642_v33 = vpack.c.b16 %v8641_v9, %v8641_v9  ;;  %v8881_v18 = vpack.c.b16 %v8880_v2, %v8880_v2 }
 0x793   :  { %10061 = vmatpush3.bf16.msra.mxu1 %v10258_v43  ;;  %10097 = vmatpush3.bf16.msra.mxu0 %v10259_v11  ;;  %v10281_v43 = vld [vmem:[%s17940_s4 + $0x1d8] sm:$0xff]   ;;  %v8397_v11 = vpack.c.b16 %v8396_v55, %v8396_v55 }
 0x794   :  { %10062 = vmatprep.subr.bf16.mxu1 %v19344_v53  ;;  %10098 = vmatprep.subr.bf16.mxu0 %v19344_v53 }
 0x797   :  { %10063 = vmatpush3.bf16.msra.mxu1 %v10260_v58  ;;  %10099 = vmatpush3.bf16.msra.mxu0 %v10261_v3  ;;  %v10282_v58 = vld [vmem:[%s17940_s4 + $0x170] sm:$0xff]  }
 0x798   :  { %10064 = vmatprep.subr.bf16.mxu1 %v19344_v53  ;;  %10100 = vmatprep.subr.bf16.mxu0 %v19344_v53  ;;  %v10283_v3 = vld [vmem:[%s17940_s4 + $0x1d0] sm:$0xff]  }
 0x79b   :  { %10065 = vmatpush3.bf16.msra.mxu1 %v10262_v60  ;;  %10101 = vmatpush3.bf16.msra.mxu0 %v10263_v26  ;;  %v8555_v60 = vrot.slane %v17722_v8, 2  ;;  %v8798_v26 = vrot.slane %v17832_v51, 2 }
 0x79c   :  { %10082 = vmatprep.subr.bf16.mxu1 %v19344_v53  ;;  %10118 = vmatprep.subr.bf16.mxu0 %v19344_v53 }
 0x79d   :  { %v8556_v8 = vsel %vm7668_vm4, %v8555_v60, %v8554_v13  ;;  %v8800_v63 = vsel %vm7668_vm4, %v8799_v32, %v8798_v26 }
 0x79e   :  { %10067 = vmatmul.mubr.msk.bf16.vlgmr.msra.gmra.mxu1 %vm4682_vm0, %v8073_v50  ;;  %10103 = vmatmul.mubr.msk.bf16.vlgmr.msra.gmra.mxu0 %vm4682_vm0, %v8318_v14  ;;  %v8557_v50 = vpack.c.b16 %v8556_v8, %v8556_v8  ;;  %v8801_v14 = vpack.c.b16 %v8800_v63, %v8800_v63 }
 0x79f   :  { %10083 = vmatpush3.bf16.msra.mxu1 %v10264_v16  ;;  %10119 = vmatpush3.bf16.msra.mxu0 %v10265_v59  ;;  %v10287_v16 = vld [vmem:[%s17940_s4 + $0x1c0] sm:$0xff]   ;;  %v10288_v59 = vld [vmem:[%s17940_s4 + $0x1b8] sm:$0xff]  }
 0x7a0   :  { %10084 = vmatprep.subr.bf16.mxu1 %v19344_v53  ;;  %10120 = vmatprep.subr.bf16.mxu0 %v19344_v53 }
 0x7a1   :  { %10090 = vmatprep.mubr.msk.bf16.mxu1 %vm10336_vm10, %v19344_v53  ;;  %10126 = vmatprep.mubr.msk.bf16.mxu0 %vm10336_vm10, %v19344_v53 }
 0x7a3   :  { %10085 = vmatpush3.bf16.msra.mxu1 %v10266_v54  ;;  %10121 = vmatpush3.bf16.msra.mxu0 %v10267_v19  ;;  %v10289_v54 = vld [vmem:[%s17940_s4 + $0x1b0] sm:$0xff]   ;;  %v10290_v19 = vld [vmem:[%s17940_s4 + $0x1a8] sm:$0xff]  }
 0x7a4   :  { %10086 = vmatprep.subr.bf16.mxu1 %v19344_v53  ;;  %10122 = vmatprep.subr.bf16.mxu0 %v19344_v53 }
 0x7a7   :  { %10087 = vmatpush3.bf16.msra.mxu1 %v10268_v62  ;;  %10123 = vmatpush3.bf16.msra.mxu0 %v10269_v52  ;;  %v8721_v62 = vpack.c.b16 %v8720_v12, %v8720_v12  ;;  %v10293_v52 = vld [vmem:[%s17940_s4 + $0x1f0] sm:$0xff]   ;;  %s10337_s4 = smov [#allocation5]  }
 0x7a8   :  { %10088 = vmatprep.subr.bf16.mxu1 %v19344_v53  ;;  %10124 = vmatprep.subr.bf16.mxu0 %v19344_v53  ;;  %s8958_s5 = sshll.u32 %s10337_s4, 4  ;;  %s8959_s5 = int_to_ptr.vmem [resolvable:$true] %s8958_s5 }
 0x7a9   :  { %s10312_s28 = scalar_lea.vmem %s8959_s5, 32  ;;  %p10317_p1 = scmp.lt.s32.totalorder %s8959_s5, %s8959_s5 }
 0x7aa   :  { %p10313_p0 = scmp.ne.s32.totalorder %s8959_s5, %s10312_s28  ;;  %p10318_p2 = scmp.lt.s32.totalorder %s10312_s28, %s10312_s28 }
 0x7ab   :  { %10089 = vmatpush3.bf16.msra.mxu1 %v10270_v57  ;;  %10125 = vmatpush3.bf16.msra.mxu0 %v10271_v29 }
 0x7ac   :  { %10106 = vmatprep.subr.bf16.mxu1 %v19344_v53  ;;  %10142 = vmatprep.subr.bf16.mxu0 %v19344_v53  ;;  %p10319_p3 = por %p10318_p2, %p10317_p1 }
 0x7ae   :  { %10091 = vmatmul.mubr.msk.bf16.vlgmr.msra.gmra.mxu1 %vm4682_vm0, %v8233_v20  ;;  %10127 = vmatmul.mubr.msk.bf16.vlgmr.msra.gmra.mxu0 %vm4682_vm0, %v8477_v46  ;;  %p10320_p4 = pnand %p10319_p3, %p10313_p0 }
 0x7af   :  { %10107 = vmatpush3.bf16.msra.mxu1 %v10272_v21  ;;  %10143 = vmatpush3.bf16.msra.mxu0 %v10273_v45 }
 0x7b0   :  { %10108 = vmatprep.subr.bf16.mxu1 %v19344_v53  ;;  %10144 = vmatprep.subr.bf16.mxu0 %v19344_v53 }
 0x7b1   :  { %10114 = vmatprep.mubr.msk.bf16.mxu1 %vm10336_vm10, %v19344_v53  ;;  %10150 = vmatprep.mubr.msk.bf16.mxu0 %vm10336_vm10, %v19344_v53 }
 0x7b3   :  { %10109 = vmatpush3.bf16.msra.mxu1 %v10274_v30  ;;  %10145 = vmatpush3.bf16.msra.mxu0 %v10275_v22 }
 0x7b4   :  { %10110 = vmatprep.subr.bf16.mxu1 %v19344_v53  ;;  %10146 = vmatprep.subr.bf16.mxu0 %v19344_v53 }
 0x7b7   :  { %10111 = vmatpush3.bf16.msra.mxu1 %v10276_v24  ;;  %10147 = vmatpush3.bf16.msra.mxu0 %v10277_v6 }
 0x7b8   :  { %10112 = vmatprep.subr.bf16.mxu1 %v19344_v53  ;;  %10148 = vmatprep.subr.bf16.mxu0 %v19344_v53 }
 0x7bb   :  { %10113 = vmatpush3.bf16.msra.mxu1 %v10278_v0  ;;  %10149 = vmatpush3.bf16.msra.mxu0 %v10279_v34 }
 0x7bc   :  { %10130 = vmatprep.subr.bf16.mxu1 %v19344_v53  ;;  %10166 = vmatprep.subr.bf16.mxu0 %v19344_v53 }
 0x7be   :  { %10115 = vmatmul.mubr.msk.bf16.vlgmr.msra.gmra.mxu1 %vm4682_vm0, %v8397_v11  ;;  %10151 = vmatmul.mubr.msk.bf16.vlgmr.msra.gmra.mxu0 %vm4682_vm0, %v8642_v33 }
 0x7bf   :  { %10131 = vmatpush3.bf16.msra.mxu1 %v10280_v4  ;;  %10167 = vmatpush3.bf16.msra.mxu0 %v10281_v43 }
 0x7c0   :  { %10132 = vmatprep.subr.bf16.mxu1 %v19344_v53  ;;  %10168 = vmatprep.subr.bf16.mxu0 %v19344_v53 }
 0x7c1   :  { %10138 = vmatprep.mubr.msk.bf16.mxu1 %vm10336_vm10, %v19344_v53  ;;  %10174 = vmatprep.mubr.msk.bf16.mxu0 %vm10336_vm10, %v19344_v53 }
 0x7c3   :  { %10133 = vmatpush3.bf16.msra.mxu1 %v10282_v58  ;;  %10169 = vmatpush3.bf16.msra.mxu0 %v10283_v3 }
 0x7c4   :  { %10134 = vmatprep.subr.bf16.mxu1 %v19344_v53  ;;  %10170 = vmatprep.subr.bf16.mxu0 %v19344_v53 }
 0x7c7   :  { %10135 = vmatpush3.bf16.msra.mxu1 %v10284_v31  ;;  %10171 = vmatpush3.bf16.msra.mxu0 %v10285_v1 }
 0x7c8   :  { %10136 = vmatprep.subr.bf16.mxu1 %v19344_v53  ;;  %10172 = vmatprep.subr.bf16.mxu0 %v19344_v53 }
 0x7cb   :  { %10137 = vmatpush3.bf16.msra.mxu1 %v10286_v17  ;;  %10173 = vmatpush3.bf16.msra.mxu0 %v10287_v16 }
 0x7cc   :  { %10154 = vmatprep.subr.bf16.mxu1 %v19344_v53 }
 0x7ce   :  { %10139 = vmatmul.mubr.msk.bf16.vlgmr.msra.gmra.mxu1 %vm4682_vm0, %v8557_v50  ;;  %10175 = vmatmul.mubr.msk.bf16.vlgmr.msra.gmra.mxu0 %vm4682_vm0, %v8801_v14 }
 0x7cf   :  { %10155 = vmatpush3.bf16.msra.mxu1 %v10288_v59  ;;  %10162 = vmatprep.mubr.msk.bf16.mxu1 %vm10336_vm10, %v19344_v53 }
 0x7d0   :  { %10156 = vmatprep.subr.bf16.mxu1 %v19344_v53 }
 0x7d3   :  { %10157 = vmatpush3.bf16.msra.mxu1 %v10289_v54 }
 0x7d4   :  { %10158 = vmatprep.subr.bf16.mxu1 %v19344_v53 }
 0x7d7   :  { %10159 = vmatpush3.bf16.msra.mxu1 %v10290_v19 }
 0x7d8   :  { %10160 = vmatprep.subr.bf16.mxu1 %v19344_v53 }
 0x7db   :  { %10161 = vmatpush3.bf16.msra.mxu1 %v10291_v40 }
 0x7dc   :  { %10178 = vmatprep.subr.bf16.mxu1 %v19344_v53 }
 0x7de   :  { %10163 = vmatmul.mubr.msk.bf16.vlgmr.msra.gmra.mxu1 %vm4682_vm0, %v8721_v62 }
 0x7df   :  { %10179 = vmatpush3.bf16.msra.mxu1 %v10292_v39  ;;  %10186 = vmatprep.mubr.msk.bf16.mxu1 %vm10336_vm10, %v19344_v53 }
 0x7e0   :  { %10180 = vmatprep.subr.bf16.mxu1 %v19344_v53 }
 0x7e3   :  { %10181 = vmatpush3.bf16.msra.mxu1 %v10293_v52 }
 0x7e4   :  { %10182 = vmatprep.subr.bf16.mxu1 %v19344_v53 }
 0x7e7   :  { %10183 = vmatpush3.bf16.msra.mxu1 %v10294_v7 }
 0x7e8   :  { %10184 = vmatprep.subr.bf16.mxu1 %v19344_v53 }
 0x7eb   :  { %10185 = vmatpush3.bf16.msra.mxu1 %v10295_v42 }
 0x7ee   :  { %10187 = vmatmul.mubr.msk.bf16.vlgmr.msra.gmra.mxu1 %vm4682_vm0, %v8881_v18  ;;  %vm8950_vm0 = vcmask 254976  }
 0x82e   :  { %v7732_v57 = vpop.f32.mrf.mxu1  ;;  %v7891_v29 = vpop.f32.mrf.mxu0 }
 0x82f   :  { %v7738_v21 = vadd.f32 %v9513_v49, %v7732_v57 }
 0x830   :  { %v10008_v35 = vpop.f32.mrf.mxu1  ;;  %v10032_v10 = vpop.f32.mrf.mxu0 }
 0x832   :  { %v7735_v61 = vpop.f32.mrf.mxu1  ;;  %v7894_v47 = vpop.f32.mrf.mxu0 }
 0x834   :  { %v10009_v28 = vpop.f32.mrf.mxu1  ;;  %v10033_v38 = vpop.f32.mrf.mxu0 }
 0x83e   :  { %v7811_v53 = vpop.f32.mrf.mxu1  ;;  %v8056_v45 = vpop.f32.mrf.mxu0 }
 0x83f   :  { %v7817_v44 = vadd.f32 %v7811_v53, %v7738_v21 }
 0x840   :  { %v10020_v25 = vpop.f32.mrf.mxu1  ;;  %v10056_v20 = vpop.f32.mrf.mxu0 }
 0x841   :  { %v7897_v46 = vadd.f32 %v7891_v29, %v7817_v44 }
 0x842   :  { %v7814_v23 = vpop.f32.mrf.mxu1  ;;  %v8059_v30 = vpop.f32.mrf.mxu0 }
 0x844   :  { %v10021_v22 = vpop.f32.mrf.mxu1  ;;  %v10057_v5 = vpop.f32.mrf.mxu0 }
 0x84e   :  { %v7971_v37 = vpop.f32.mrf.mxu1  ;;  %v8215_v24 = vpop.f32.mrf.mxu0 }
 0x84f   :  { %v7977_v6 = vadd.f32 %v7971_v37, %v7897_v46 }
 0x850   :  { %v10044_v56 = vpop.f32.mrf.mxu1  ;;  %v10080_v41 = vpop.f32.mrf.mxu0 }
 0x851   :  { %v8062_v36 = vadd.f32 %v8056_v45, %v7977_v6 }
 0x852   :  { %v7974_v0 = vpop.f32.mrf.mxu1  ;;  %v8218_v34 = vpop.f32.mrf.mxu0 }
 0x854   :  { %v10045_v51 = vpop.f32.mrf.mxu1  ;;  %v10081_v55 = vpop.f32.mrf.mxu0 }
 0x85e   :  { %v8135_v9 = vpop.f32.mrf.mxu1  ;;  %v8380_v4 = vpop.f32.mrf.mxu0 }
 0x85f   :  { %v8141_v43 = vadd.f32 %v8135_v9, %v8062_v36 }
 0x860   :  { %v10068_v11 = vpop.f32.mrf.mxu1  ;;  %v10104_v33 = vpop.f32.mrf.mxu0 }
 0x861   :  { %v8221_v58 = vadd.f32 %v8215_v24, %v8141_v43 }
 0x862   :  { %v8138_v3 = vpop.f32.mrf.mxu1  ;;  %v8383_v31 = vpop.f32.mrf.mxu0 }
 0x864   :  { %v10069_v1 = vpop.f32.mrf.mxu1  ;;  %v10105_v13 = vpop.f32.mrf.mxu0 }
 0x86e   :  { %v8295_v60 = vpop.f32.mrf.mxu1  ;;  %v8539_v26 = vpop.f32.mrf.mxu0 }
 0x86f   :  { %v8301_v32 = vadd.f32 %v8295_v60, %v8221_v58 }
 0x870   :  { %v10092_v17 = vpop.f32.mrf.mxu1  ;;  %v10128_v16 = vpop.f32.mrf.mxu0 }
 0x871   :  { %v8386_v8 = vadd.f32 %v8380_v4, %v8301_v32 }
 0x872   :  { %v8298_v63 = vpop.f32.mrf.mxu1  ;;  %v8542_v59 = vpop.f32.mrf.mxu0 }
 0x874   :  { %v10093_v50 = vpop.f32.mrf.mxu1  ;;  %v10129_v14 = vpop.f32.mrf.mxu0 }
 0x87e   :  { %v8459_v54 = vpop.f32.mrf.mxu1  ;;  %v8704_v19 = vpop.f32.mrf.mxu0 }
 0x87f   :  { %v8465_v35 = vadd.f32 %v8459_v54, %v8386_v8 }
 0x880   :  { %v10116_v27 = vpop.f32.mrf.mxu1  ;;  %v10152_v40 = vpop.f32.mrf.mxu0 }
 0x881   :  { %v8545_v47 = vadd.f32 %v8539_v26, %v8465_v35 }
 0x882   :  { %v8462_v12 = vpop.f32.mrf.mxu1  ;;  %v8707_v39 = vpop.f32.mrf.mxu0 }
 0x884   :  { %v10117_v62 = vpop.f32.mrf.mxu1  ;;  %v10153_v52 = vpop.f32.mrf.mxu0 }
 0x88e   :  { %v8619_v7 = vpop.f32.mrf.mxu1  ;;  %v8863_v15 = vpop.f32.mrf.mxu0 }
 0x88f   :  { %v8625_v38 = vadd.f32 %v8619_v7, %v8545_v47 }
 0x890   :  { %v10140_v48 = vpop.f32.mrf.mxu1  ;;  %v10176_v42 = vpop.f32.mrf.mxu0 }
 0x891   :  { %v8710_v21 = vadd.f32 %v8704_v19, %v8625_v38 }
 0x892   :  { %v8622_v2 = vpop.f32.mrf.mxu1  ;;  %v8866_v18 = vpop.f32.mrf.mxu0 }
 0x894   :  { %v10141_v57 = vpop.f32.mrf.mxu1  ;;  %v10177_v29 = vpop.f32.mrf.mxu0 }
 0x89e   :  { %v8783_v10 = vpop.f32.mrf.mxu1 }
 0x89f   :  { %v8789_v53 = vadd.f32 %v8783_v10, %v8710_v21 }
 0x8a0   :  { %v10164_v61 = vpop.f32.mrf.mxu1 }
 0x8a1   :  { %v8869_v45 = vadd.f32 %v8863_v15, %v8789_v53 }
 0x8a2   :  { %v8786_v28 = vpop.f32.mrf.mxu1 }
 0x8a4   :  { %v10165_v49 = vpop.f32.mrf.mxu1 }
 0x8ae   :  { %v8943_v44 = vpop.f32.mrf.mxu1 }
 0x8af   :  { %v8949_v25 = vadd.f32 %v8943_v44, %v8869_v45 }
 0x8b0   :  { %v10188_v20 = vpop.f32.mrf.mxu1 }
 0x8b1   :  { %8951 = vst.msk [vmem:[#allocation5] sm:$0x3] %vm8950_vm0, %v8949_v25 }
 0x8b2   :  { %v8946_v46 = vpop.f32.mrf.mxu1 }
 0x8b3   :  { %10323 = shalt.err (!%p10320_p4)
}
 0x8b4   :  { %8961 = dma.vmem_to_hbm [thread:$0]  %s8959_s5, 32, %s17942_s6, [#allocation6]   ;;  %v10189_v23 = vpop.f32.mrf.mxu1 }
 0x8b5   :  { %10332 = dma.done.wait [#allocation6], 32  }
 0x8b6   :  { %10333 = vsyncadd [#allocation6], 4294967264 }
 0x8b7   :  { %8965 = vsyncpa [#allocation6], 1 }

</bundles_post_ra>
